<compile_context>
chip_gen: v5e
topology: v5e:2x2
jax: 0.10.0
libtpu: 0.0.40
codegen_flags: <defaults>
</compile_context>

<pallas_src>
import jax
import jax.numpy as jnp
from jax.experimental import pallas as pl
from jax.experimental.pallas import tpu as pltpu


K1_PAD = 1024      # hidden-1 width padded: 1000 -> 1024
N2_PAD = 3072      # hidden-2 width padded: 3000 -> 3072
NUM_SHARDS = 2     # leading "parallel" grid axis (v7x: one shard per TensorCore)
TN = 1536          # layer-2 output tile; N2_PAD / (NUM_SHARDS * TN) = 1 inner step


def smallnet_kernel(x_ref, w1_ref, b1_ref, w2_ref, b2_ref, w3_ref,
                    o_ref, h1_ref):
    j = pl.program_id(1)   # inner reduction ("arbitrary") axis within this shard

    @pl.when(j == 0)
    def _init():
        # Layer 1 (tiny, recomputed once per shard): (B,30)bf16 @ (30,1024)bf16 -> f32,
        # bias-add + sigmoid in f32; result stays resident in f32 VMEM scratch.
        h1 = jnp.dot(x_ref[...].astype(jnp.bfloat16), w1_ref[...],
                     preferred_element_type=jnp.float32)
        h1_ref[...] = jax.nn.sigmoid(h1 + b1_ref[...])
        o_ref[...] = jnp.zeros_like(o_ref)

    # Layer 2, one lane tile: (B,1024)bf16 @ (1024,TN)bf16 -> f32 accumulate,
    # bias-add + sigmoid in f32.
    h2 = jnp.dot(h1_ref[...].astype(jnp.bfloat16), w2_ref[...],
                 preferred_element_type=jnp.float32)
    h2 = jax.nn.sigmoid(h2 + b2_ref[...])

    # Layer 3 partial in f32 (w3 streamed per tile, no in-kernel dynamic slice),
    # accumulated into this shard's resident (1,B,2) output block.
    part = jnp.dot(h2, w3_ref[...], preferred_element_type=jnp.float32)
    o_ref[...] += part[None]


def smallnet_forward(x, prepared_params):
    w1, b1, w2, b2, w3, b3 = prepared_params
    B, F = x.shape
    k1p = w1.shape[1]
    n2p = w2.shape[1]
    assert n2p % (NUM_SHARDS * TN) == 0 and k1p % 128 == 0
    steps_per_shard = n2p // (NUM_SHARDS * TN)
    grid = (NUM_SHARDS, steps_per_shard)

    def col(c, j):
        return c * steps_per_shard + j

    bytes_accessed = (sum(int(a.size) * a.dtype.itemsize
                          for a in (x, w1, b1, w2, b2, w3))
                      + NUM_SHARDS * B * 2 * 4)
    cost = pl.CostEstimate(
        flops=2 * B * (F * k1p + k1p * n2p + n2p * 2),
        transcendentals=B * (k1p + n2p),
        bytes_accessed=bytes_accessed,
    )

    grid_spec = pltpu.PrefetchScalarGridSpec(
        num_scalar_prefetch=0,
        grid=grid,
        in_specs=[
            pl.BlockSpec((B, F), lambda c, j: (0, 0)),              # x   (resident)
            pl.BlockSpec((w1.shape[0], k1p), lambda c, j: (0, 0)),  # w1  (resident, bf16)
            pl.BlockSpec((1, k1p), lambda c, j: (0, 0)),            # b1  (resident, f32)
            pl.BlockSpec((k1p, TN), lambda c, j: (0, col(c, j))),   # w2  (streamed, bf16)
            pl.BlockSpec((1, TN), lambda c, j: (0, col(c, j))),     # b2  (streamed, f32)
            pl.BlockSpec((TN, 2), lambda c, j: (col(c, j), 0)),     # w3  (streamed, f32)
        ],
        out_specs=pl.BlockSpec((1, B, 2), lambda c, j: (c, 0, 0)),  # per-shard partial
        scratch_shapes=[pltpu.VMEM((B, k1p), jnp.float32)],         # resident h1 (f32)
    )

    partials = pl.pallas_call(
        smallnet_kernel,
        out_shape=jax.ShapeDtypeStruct((NUM_SHARDS, B, 2), jnp.float32),
        grid_spec=grid_spec,
        compiler_params=pltpu.CompilerParams(
            dimension_semantics=("parallel", "arbitrary"),  # shard axis / reduction axis
            vmem_limit_bytes=32 << 20,                      # fits v7x's 64 MiB physical VMEM
        ),
        cost_estimate=cost,
    )(x, w1, b1, w2, b2, w3)

    # Combine the two per-shard partials and add the final bias outside the kernel.
    return partials.sum(axis=0) + b3


def init_params(key):
    # Deterministic synthetic init (shapes match the torch module; not a checkpoint).
    k1, k2, k3, k4, k5, k6 = jax.random.split(key, 6)
    w1 = jax.random.normal(k1, (30, 1000), jnp.float32) * (1.0 / jnp.sqrt(30.0))
    b1 = jax.random.normal(k2, (1, 1000), jnp.float32) * 0.01
    w2 = jax.random.normal(k3, (1000, 3000), jnp.float32) * (1.0 / jnp.sqrt(1000.0))
    b2 = jax.random.normal(k4, (1, 3000), jnp.float32) * 0.01
    w3 = jax.random.normal(k5, (3000, 2), jnp.float32) * (1.0 / jnp.sqrt(3000.0))
    b3 = jax.random.normal(k6, (1, 2), jnp.float32) * 0.01
    return (w1, b1, w2, b2, w3, b3)


def _pad_axis(a, target, axis):
    pad = target - a.shape[axis]
    if pad <= 0:
        return a
    widths = [(0, 0)] * a.ndim
    widths[axis] = (0, pad)
    return jnp.pad(a, widths)


def prepare_params(params):
    """Zero-pad hidden dims to lane multiples; cast w1/w2 to bf16, keep w3/biases f32.

    Padding is exact: padded bias columns are 0, so the extra sigmoid outputs are 0.5,
    but the matching (zero) w2 rows / w3 rows contribute nothing.
    """
    w1, b1, w2, b2, w3, b3 = params
    w1p = _pad_axis(w1, K1_PAD, 1).astype(jnp.bfloat16)              # (30, 1024)   bf16
    b1p = _pad_axis(b1, K1_PAD, 1)                                   # (1, 1024)    f32
    w2p = _pad_axis(_pad_axis(w2, K1_PAD, 0), N2_PAD, 1)             # (1024, 3072)
    w2p = w2p.astype(jnp.bfloat16)                                   #              bf16
    b2p = _pad_axis(b2, N2_PAD, 1)                                   # (1, 3072)    f32
    w3p = _pad_axis(w3, N2_PAD, 0)                                   # (3072, 2)    f32
    return (w1p, b1p, w2p, b2p, w3p, b3)


def smallnet_reference(x, prepared_params):
    # Pure-JAX f32 reference on the same (padded, bf16-quantised) weights.
    w1, b1, w2, b2, w3, b3 = (p.astype(jnp.float32) for p in prepared_params)
    h1 = jax.nn.sigmoid(x @ w1 + b1)
    h2 = jax.nn.sigmoid(h1 @ w2 + b2)
    return h2 @ w3 + b3


if __name__ == "__main__":
    key = jax.random.PRNGKey(0)
    kx, kp = jax.random.split(key)
    x = jax.random.normal(kx, (8, 30), jnp.float32)   # batch=8, in_features=30
    params = prepare_params(init_params(kp))

    out = smallnet_forward(x, params)
    out = jax.block_until_ready(out)

    ref = smallnet_reference(x, params)
    assert out.shape == (8, 2)
    # Tolerance covers the in-kernel bf16 casts of x and h1 (weights are quantised
    # identically in kernel and reference).
    assert jnp.allclose(out, ref, atol=2e-2, rtol=2e-2), float(jnp.max(jnp.abs(out - ref)))

    print("KERNEL_OK")
</pallas_src>

<mosaic_0001>
module attributes {stable_mosaic.version = 11 : i64} {
  func.func @smallnet_kernel(%arg0: i32, %arg1: i32, %arg2: memref<8x30xf32, #tpu.memory_space<vmem>>, %arg3: memref<30x1024xbf16, #tpu.memory_space<vmem>>, %arg4: memref<1x1024xf32, #tpu.memory_space<vmem>>, %arg5: memref<1024x1536xbf16, #tpu.memory_space<vmem>>, %arg6: memref<1x1536xf32, #tpu.memory_space<vmem>>, %arg7: memref<1536x2xf32, #tpu.memory_space<vmem>>, %arg8: memref<1x8x2xf32, #tpu.memory_space<vmem>>, %arg9: memref<8x1024xf32, #tpu.memory_space<vmem>>) attributes {dimension_semantics = [#tpu.dimension_semantics<parallel>, #tpu.dimension_semantics<arbitrary>], iteration_bounds = array<i64: 2, 1>, scalar_prefetch = 0 : i64, scratch_operands = 1 : i64, tpu.core_type = #tpu.core_type<tc>, window_params = [{pipeline_mode = #tpu.pipeline_mode<synchronous>, transform_indices = @transform_0, window_bounds = array<i64: 8, 30>}, {pipeline_mode = #tpu.pipeline_mode<synchronous>, transform_indices = @transform_1, window_bounds = array<i64: 30, 1024>}, {pipeline_mode = #tpu.pipeline_mode<synchronous>, transform_indices = @transform_2, window_bounds = array<i64: 1, 1024>}, {transform_indices = @transform_3, window_bounds = array<i64: 1024, 1536>}, {transform_indices = @transform_4, window_bounds = array<i64: 1, 1536>}, {transform_indices = @transform_5, window_bounds = array<i64: 1536, 2>}, {transform_indices = @transform_6, window_bounds = array<i64: 1, 8, 2>}]} {
    %c0_i32 = arith.constant 0 : i32
    %0 = arith.cmpi eq, %arg1, %c0_i32 : i32
    %1 = arith.extui %0 : i1 to i32
    %c0_i32_0 = arith.constant 0 : i32
    %2 = arith.cmpi ne, %1, %c0_i32_0 : i32
    scf.if %2 {
      %c0_16 = arith.constant 0 : index
      %c0_17 = arith.constant 0 : index
      %21 = vector.load %arg2[%c0_16, %c0_17] : memref<8x30xf32, #tpu.memory_space<vmem>>, vector<8x30xf32>
      %22 = arith.truncf %21 : vector<8x30xf32> to vector<8x30xbf16>
      %c0_18 = arith.constant 0 : index
      %c0_19 = arith.constant 0 : index
      %23 = vector.load %arg3[%c0_18, %c0_19] : memref<30x1024xbf16, #tpu.memory_space<vmem>>, vector<30x1024xbf16>
      %cst_20 = arith.constant dense<0.000000e+00> : vector<8x1024xf32>
      %24 = tpu.matmul %22, %23, %cst_20 {dimension_numbers = #tpu.dot_dimension_numbers<[1], [0], [0], [1], [0, 0, 1, 1], [], []>} : vector<8x30xbf16>, vector<30x1024xbf16>, vector<8x1024xf32> -> vector<8x1024xf32>
      %c0_21 = arith.constant 0 : index
      %c0_22 = arith.constant 0 : index
      %25 = vector.load %arg4[%c0_21, %c0_22] : memref<1x1024xf32, #tpu.memory_space<vmem>>, vector<1x1024xf32>
      %26 = vector.broadcast %25 : vector<1x1024xf32> to vector<8x1024xf32>
      %27 = arith.addf %24, %26 : vector<8x1024xf32>
      %28 = arith.negf %27 : vector<8x1024xf32>
      %29 = math.exp %28 : vector<8x1024xf32>
      %cst_23 = arith.constant 1.000000e+00 : f32
      %30 = vector.broadcast %cst_23 : f32 to vector<8x1024xf32>
      %31 = arith.addf %30, %29 : vector<8x1024xf32>
      %32 = arith.divf %30, %31 : vector<8x1024xf32>
      %c0_24 = arith.constant 0 : index
      %c0_25 = arith.constant 0 : index
      %33 = vector.load %arg9[%c0_24, %c0_25] : memref<8x1024xf32, #tpu.memory_space<vmem>>, vector<8x1024xf32>
      tpu.vector_store %arg9[%c0_24, %c0_25], %32 {strides = array<i32>} : memref<8x1024xf32, #tpu.memory_space<vmem>>, vector<8x1024xf32>,
      %cst_26 = arith.constant 0.000000e+00 : f32
      %34 = vector.broadcast %cst_26 : f32 to vector<1x8x2xf32>
      %c0_27 = arith.constant 0 : index
      %c0_28 = arith.constant 0 : index
      %c0_29 = arith.constant 0 : index
      %35 = vector.load %arg8[%c0_27, %c0_28, %c0_29] : memref<1x8x2xf32, #tpu.memory_space<vmem>>, vector<1x8x2xf32>
      tpu.vector_store %arg8[%c0_27, %c0_28, %c0_29], %34 {strides = array<i32>} : memref<1x8x2xf32, #tpu.memory_space<vmem>>, vector<1x8x2xf32>,
    } else {
    }
    %c0 = arith.constant 0 : index
    %c0_1 = arith.constant 0 : index
    %3 = vector.load %arg9[%c0, %c0_1] : memref<8x1024xf32, #tpu.memory_space<vmem>>, vector<8x1024xf32>
    %4 = arith.truncf %3 : vector<8x1024xf32> to vector<8x1024xbf16>
    %c0_2 = arith.constant 0 : index
    %c0_3 = arith.constant 0 : index
    %5 = vector.load %arg5[%c0_2, %c0_3] : memref<1024x1536xbf16, #tpu.memory_space<vmem>>, vector<1024x1536xbf16>
    %cst = arith.constant dense<0.000000e+00> : vector<8x1536xf32>
    %6 = tpu.matmul %4, %5, %cst {dimension_numbers = #tpu.dot_dimension_numbers<[1], [0], [0], [1], [0, 0, 1, 1], [], []>} : vector<8x1024xbf16>, vector<1024x1536xbf16>, vector<8x1536xf32> -> vector<8x1536xf32>
    %c0_4 = arith.constant 0 : index
    %c0_5 = arith.constant 0 : index
    %7 = vector.load %arg6[%c0_4, %c0_5] : memref<1x1536xf32, #tpu.memory_space<vmem>>, vector<1x1536xf32>
    %8 = vector.broadcast %7 : vector<1x1536xf32> to vector<8x1536xf32>
    %9 = arith.addf %6, %8 : vector<8x1536xf32>
    %10 = arith.negf %9 : vector<8x1536xf32>
    %11 = math.exp %10 : vector<8x1536xf32>
    %cst_6 = arith.constant 1.000000e+00 : f32
    %12 = vector.broadcast %cst_6 : f32 to vector<8x1536xf32>
    %13 = arith.addf %12, %11 : vector<8x1536xf32>
    %14 = arith.divf %12, %13 : vector<8x1536xf32>
    %c0_7 = arith.constant 0 : index
    %c0_8 = arith.constant 0 : index
    %15 = vector.load %arg7[%c0_7, %c0_8] : memref<1536x2xf32, #tpu.memory_space<vmem>>, vector<1536x2xf32>
    %cst_9 = arith.constant dense<0.000000e+00> : vector<8x2xf32>
    %16 = tpu.matmul %14, %15, %cst_9 {dimension_numbers = #tpu.dot_dimension_numbers<[1], [0], [0], [1], [0, 0, 1, 1], [], []>} : vector<8x1536xf32>, vector<1536x2xf32>, vector<8x2xf32> -> vector<8x2xf32>
    %c0_10 = arith.constant 0 : index
    %c0_11 = arith.constant 0 : index
    %c0_12 = arith.constant 0 : index
    %17 = vector.load %arg8[%c0_10, %c0_11, %c0_12] : memref<1x8x2xf32, #tpu.memory_space<vmem>>, vector<1x8x2xf32>
    %18 = vector.shape_cast %16 : vector<8x2xf32> to vector<1x8x2xf32>
    %19 = arith.addf %17, %18 : vector<1x8x2xf32>
    %c0_13 = arith.constant 0 : index
    %c0_14 = arith.constant 0 : index
    %c0_15 = arith.constant 0 : index
    %20 = vector.load %arg8[%c0_13, %c0_14, %c0_15] : memref<1x8x2xf32, #tpu.memory_space<vmem>>, vector<1x8x2xf32>
    tpu.vector_store %arg8[%c0_13, %c0_14, %c0_15], %19 {strides = array<i32>} : memref<1x8x2xf32, #tpu.memory_space<vmem>>, vector<1x8x2xf32>,
    return
  }
  func.func @transform_0(%arg0: i32, %arg1: i32) -> (i32, i32) {
    %c0_i32 = arith.constant 0 : i32
    %c0_i32_0 = arith.constant 0 : i32
    %c0_i32_1 = arith.constant 0 : i32
    return %c0_i32, %c0_i32_0 : i32, i32
  }
  func.func @transform_1(%arg0: i32, %arg1: i32) -> (i32, i32) {
    %c0_i32 = arith.constant 0 : i32
    %c0_i32_0 = arith.constant 0 : i32
    %c0_i32_1 = arith.constant 0 : i32
    return %c0_i32, %c0_i32_0 : i32, i32
  }
  func.func @transform_2(%arg0: i32, %arg1: i32) -> (i32, i32) {
    %c0_i32 = arith.constant 0 : i32
    %c0_i32_0 = arith.constant 0 : i32
    %c0_i32_1 = arith.constant 0 : i32
    return %c0_i32, %c0_i32_0 : i32, i32
  }
  func.func @transform_3(%arg0: i32, %arg1: i32) -> (i32, i32) {
    %c1_i32 = arith.constant 1 : i32
    %0 = arith.muli %arg0, %c1_i32 : i32
    %1 = arith.addi %0, %arg1 : i32
    %c0_i32 = arith.constant 0 : i32
    %c0_i32_0 = arith.constant 0 : i32
    return %c0_i32, %1 : i32, i32
  }
  func.func @transform_4(%arg0: i32, %arg1: i32) -> (i32, i32) {
    %c1_i32 = arith.constant 1 : i32
    %0 = arith.muli %arg0, %c1_i32 : i32
    %1 = arith.addi %0, %arg1 : i32
    %c0_i32 = arith.constant 0 : i32
    %c0_i32_0 = arith.constant 0 : i32
    return %c0_i32, %1 : i32, i32
  }
  func.func @transform_5(%arg0: i32, %arg1: i32) -> (i32, i32) {
    %c1_i32 = arith.constant 1 : i32
    %0 = arith.muli %arg0, %c1_i32 : i32
    %1 = arith.addi %0, %arg1 : i32
    %c0_i32 = arith.constant 0 : i32
    %c0_i32_0 = arith.constant 0 : i32
    return %1, %c0_i32 : i32, i32
  }
  func.func @transform_6(%arg0: i32, %arg1: i32) -> (i32, i32, i32) {
    %c0_i32 = arith.constant 0 : i32
    %c0_i32_0 = arith.constant 0 : i32
    %c0_i32_1 = arith.constant 0 : i32
    return %arg0, %c0_i32, %c0_i32_0 : i32, i32, i32
  }
}

</mosaic_0001>

<bundles_post_ra>
// kernel: tpu_custom_call.1
= control target key start
LH: loop header
LB: loop body
LE: loop exit
PB: predicated region body
PF: predicated region fallthrough
CT: control target
= control target key end

     0   :  { %s14677_s0 = inlined_call_operand.hbm [shape: f32[8,30], index: 0, kind: input, shape index: {}]   ;;  %s14678_s1 = inlined_call_operand.hbm [shape: bf16[30,1024], index: 1, kind: input, shape index: {}]   ;;  %s14679_s2 = inlined_call_operand.hbm [shape: f32[1,1024], index: 2, kind: input, shape index: {}]   ;;  %s14680_s3 = inlined_call_operand.hbm [shape: bf16[1024,3072], index: 3, kind: input, shape index: {}]   ;;  %s14681_s4 = inlined_call_operand.hbm [shape: f32[1,3072], index: 4, kind: input, shape index: {}]   ;;  %s14682_s5 = inlined_call_operand.vmem [shape: f32[3072,2], index: 5, kind: input, shape index: {}]   ;;  %s14683_s6 = inlined_call_operand.vmem [shape: f32[2,8,2], index: 6, kind: output, shape index: {}]  }
   0x1   :  { %14687 = sst [smem:[#allocation17_spill]] %s14678_s1 }
   0x2   :  { %14688 = sst [smem:[#allocation18_spill]] %s14680_s3 }
   0x3   :  { %14689 = sst [smem:[#allocation19_spill]] %s14683_s6 }
   0x4   :  { %11 = vsyncpa [#allocation4], 0 }
   0x5   :  { %12 = vsyncpa [#allocation6], 0 }
   0x6   :  { %13 = vsyncpa [#allocation9], 0 }
   0x7   :  { %15 = vsyncpa [#allocation9 + $0x1], 0  ;;  %s11920_s21 = smov 0   ;;  %s11922_s22 = smov 0  }
   0x8   :  { %s11924_s23 = smov 0   ;;  %s11926_s24 = smov 0  }
   0x9   :  { %s11928_s25 = smov 0   ;;  %s11930_s26 = smov 0  }
   0xa LB: > { %14690 = sst [smem:[#allocation14_spill]] %s11862_s23  ;;  %s14684_s27 = sadd.s32 4294967295, %s11874_s26   ;;  %s11874_s26 = sphi %s11930_s26, %s21_s26   ;;  %s11870_s25 = sphi %s11928_s25, %s14751_s25   ;;  %s11866_s24 = sphi %s11926_s24, %s14750_s24   ;;  %s11862_s23 = sphi %s11924_s23, %s14746_s23   ;;  %s11858_s22 = sphi %s11922_s22, %s14749_s22   ;;  %s11854_s21 = sphi %s11920_s21, %s14748_s21  }
   0xb   : > { %p118_p0 = scmp.ne.s32.totalorder %s11858_s22, %s11854_s21  ;;  %p11952_p1 = scmp.eq.s32.totalorder %s14684_s27, 0 }
   0xc   : > { %p7517_p2 = scmp.ge.s32.totalorder %s11874_s26, 1  ;;  %p211_p3 = scmp.lt.s32.totalorder %s11874_s26, 3 }
   0xd   : > { %p11960_p4 = por %p11952_p1, %p118_p0  ;;  %s14693_s1 = sld [smem:[#allocation17_spill]] }
   0xe   : > { %p11967_p5 = pnand %p7517_p2, %p211_p3  ;;  %s11876_s10 = smov [#allocation5]  }
   0xf   : > { %s236_s11 = sshll.u32 %s11876_s10, 4  ;;  %s11877_s13 = smov 512   ;;  %s237_s11 = int_to_ptr.vmem [resolvable:$true] %s236_s11 }
  0x10   : > { %p11500_p6 = pneg %p11967_p5  ;;  %s11878_s14 = smov 32  }
  0x11   : > { %s33_s15 = sadd.s32 1, %s11870_s25  ;;  %s105_s16 = sadd.s32 1, %s11862_s23 }
  0x12   : > { %p11975_p7 = pnand %p11500_p6, %p11952_p1  ;;  %p35_p8 = scmp.ge.s32.totalorder %s33_s15, 2 }
  0x13   : > { %s234_s8 = sshll.u32 %s14693_s1, 4  ;;  %p112_p9 = scmp.ne.s32.totalorder %s11862_s23, %s11858_s22  ;;  %s235_s8 = int_to_ptr.hbm [resolvable:$true] %s234_s8 }
  0x14   : > { %11506 = dma.hbm_to_vmem [thread:$0]  (!%p11975_p7), %s235_s8, 2048, %s237_s11, [#allocation6], %s11877_s13, %s11877_s13, %s11878_s14  }
  0x15   : > { %p113_p10 = scmp.eq.s32.totalorder %s11874_s26, 0  ;;  %s14753_s15 = smov (%p35_p8, %s33_s15), 0 }
  0x16   : > { %14696 = sst [smem:[#allocation15_spill]] %s14753_s15  ;;  %p11520_p12 = scmp.lt.s32.totalorder %s11874_s26, 2 }
  0x17   : > { %p114_p11 = por %p113_p10, %p112_p9  ;;  %s102_s17 = ssub.s32 %s11870_s25, %s14753_s15 }
  0x18   : > { %s262_s18 = sand.u32 1, %s11874_s26   ;;  %p103_p13 = scmp.eq.s32.totalorder %s102_s17, 0 }
  0x19   : > { %s264_s19 = sand.u32 1, %s11862_s23   ;;  %s10695_s20 = smul.u32 48, %s11870_s25 }
  0x1a   : > { %s11995_s21 = scalar_select %p103_p13, %s11862_s23, %s105_s16  }
  0x1b   : > { %s11480_s30 = smul.u32 6144, %s264_s19  ;;  %s14698_s3 = sld [smem:[#allocation18_spill]] }
  0x1c   : > { %14697 = sst [smem:[#allocation16_spill]] %s11995_s21  ;;  %p12000_p0 = pnand %p11520_p12, %p114_p11 }
  0x1d   : > { %s266_s14 = scalar_lea.vmem [#allocation8], %s11480_s30  ;;  %s263_s17 = scalar_lea.sflag [#allocation9], %s262_s18 }
  0x1e   : > { %s275_s27 = sshll.u32 %s266_s14, 4  ;;  %s11879_s1 = smov 1536   ;;  %s276_s27 = int_to_ptr.vmem [resolvable:$true] %s275_s27 }
  0x1f   : > { %s11880_s16 = smov 768   ;;  %s11881_s15 = smov 48  }
  0x20   : > { %s223_s8 = sshll.u32 %s14677_s0, 4  ;;  %s249_s21 = sshll.u32 %s14679_s2, 4  ;;  %s224_s8 = int_to_ptr.hbm [resolvable:$true] %s223_s8  ;;  %s250_s21 = int_to_ptr.hbm [resolvable:$true] %s249_s21 }
  0x21   : > { %s272_s10 = scalar_lea.hbm %s14698_s3, %s10695_s20  ;;  %s11882_s30 = smov [#allocation3]  }
  0x22   : > { %s273_s11 = sshll.u32 %s272_s10, 4  ;;  %s225_s14 = sshll.u32 %s11882_s30, 4  ;;  %s274_s11 = int_to_ptr.hbm [resolvable:$true] %s273_s11  ;;  %s226_s14 = int_to_ptr.vmem [resolvable:$true] %s225_s14 }
  0x23   : > { %11513 = dma.hbm_to_vmem [thread:$0]  (!%p12000_p0), %s274_s11, 98304, %s276_s27, %s263_s17, %s11879_s1, %s11880_s16, %s11881_s15  }
  0x24   : > { %11503 = dma.hbm_to_vmem [thread:$0]  (!%p11975_p7), %s224_s8, 128, %s226_s14, [#allocation4]  }
  0x25   : > { %s11883_s18 = smov [#allocation7]   ;;  %s11481_s6 = smul.u32 12, %s264_s19 }
  0x26   : > { %s251_s23 = sshll.u32 %s11883_s18, 4  ;;  %s291_s1 = smul.u32 12, %s11870_s25  ;;  %s252_s23 = int_to_ptr.vmem [resolvable:$true] %s251_s23 }
  0x27   : > { %11509 = dma.hbm_to_vmem [thread:$0]  (!%p11975_p7), %s250_s21, 128, %s252_s23, [#allocation6]  }
  0x28   : > { %s294_s11 = scalar_lea.hbm %s14681_s4, %s291_s1  ;;  %s289_s16 = scalar_lea.vmem [#allocation10], %s11481_s6 }
  0x29   : > { %s296_s3 = sshll.u32 %s294_s11, 4  ;;  %s298_s20 = sshll.u32 %s289_s16, 4  ;;  %s297_s3 = int_to_ptr.hbm [resolvable:$true] %s296_s3  ;;  %s299_s20 = int_to_ptr.vmem [resolvable:$true] %s298_s20 }
  0x2a   : > { %11516 = dma.hbm_to_vmem [thread:$0]  (!%p12000_p0), %s297_s3, 192, %s299_s20, %s263_s17  }
  0x2b   : > { %318 = sbr.rel (%p11967_p5) target bundleno = 1240 (0x4d8), region = 44 }
  0x30   : > { %11841 = dma.done.wait (%p11952_p1), [#allocation4], 128  }
  0x31   : > { %11843 = vsyncadd (%p11952_p1), [#allocation4], 4294967168 }
  0x32   : > { %11845 = dma.done.wait (%p11952_p1), [#allocation6], 2176  }
  0x33   : > { %11847 = vsyncadd (%p11952_p1), [#allocation6], 4294965120  ;;  %s14700_s6 = sadd.s32 4294967295, %s11874_s26   ;;  %s337_s9 = sand.u32 1, %s11858_s22  }
  0x34   : > { %s335_s23 = sand.u32 1, %s14700_s6   ;;  %s11482_s12 = smul.u32 6144, %s337_s9 }
  0x35   : > { %s336_s19 = scalar_lea.sflag [#allocation9], %s335_s23 }
  0x36   : > { %s12037_s21 = scalar_lea.vmem [#allocation8], %s11482_s12 }
  0x37   : > { %11849 = dma.done.wait (%p11960_p4), %s336_s19, 98496  }
  0x38   : > { %11851 = vsyncadd (%p11960_p4), %s336_s19, 4294868800  ;;  %vm522_vm0 = vcmask 1046528   ;;  %v7563_v0 = vld [vmem:[#allocation5 + $0x40] sm:$0xf]  ;;  %v10704_v2 = vld [vmem:[#allocation5 + $0x44] sm:$0xf] }
  0x39   : > { %v10708_v1 = vld [vmem:[#allocation5 + $0x5c] sm:$0x70]  ;;  %v7565_v4 = vld [vmem:[#allocation5 + $0x60] sm:$0x70]  ;;  %v7571_v5 = vld [vmem:[#allocation5 + $0x48] sm:$0xf] }
  0x3a   : > { %v7564_v3 = vor.u32 %v10708_v1, %v7563_v0  ;;  %v10709_v6 = vld [vmem:[#allocation5 + $0x64] sm:$0x70]  ;;  %v7568_v7 = vor.u32 %v10704_v2, %v7565_v4  ;;  %v10705_v9 = vld [vmem:[#allocation5 + $0x4c] sm:$0xf]  ;;  %v7531_v11 = vld [vmem:[#allocation5] sm:$0xf] }
  0x3b   : > { %v7572_v8 = vor.u32 %v10709_v6, %v7571_v5  ;;  %v7573_v10 = vld [vmem:[#allocation5 + $0x68] sm:$0x70]  ;;  %v10700_v14 = vld [vmem:[#allocation5 + $0x1c] sm:$0xf0]  ;;  %v10696_v15 = vld [vmem:[#allocation5 + $0x4] sm:$0xf] }
  0x3c   : > { %v524_v12 = vsel %vm522_vm0, %v7564_v3, 0  ;;  %v7576_v13 = vor.u32 %v10705_v9, %v7573_v10  ;;  %v410_v16 = vld [vmem:[#allocation3] sm:$0xff]  ;;  %v527_v17 = vsel %vm522_vm0, %v7568_v7, 0  ;;  %v7532_v19 = vor.u32 %v10700_v14, %v7531_v11  ;;  %v7533_v20 = vld [vmem:[#allocation5 + $0x20] sm:$0xf0]  ;;  %s12845_s28 = smul.u32 12, %s337_s9 }
  0x3d   : > { %553 = vmatpush.bf16.msra.mxu0 %v524_v12  ;;  %v530_v18 = vsel %vm522_vm0, %v7572_v8, 0  ;;  %v7539_v21 = vld [vmem:[#allocation5 + $0x8] sm:$0xf]  ;;  %566 = vmatpush.bf16.msra.mxu1 %v527_v17  ;;  %v7536_v23 = vor.u32 %v10696_v15, %v7533_v20  ;;  %v10697_v25 = vld [vmem:[#allocation5 + $0xc] sm:$0xf]  ;;  %vm518_vm1 = vcmask 244736   ;;  %v12047_v31 = vpack.c.bf16 %v410_v16, %v410_v16 }
  0x3e   : > { %579 = vmatpush.bf16.msra.mxu2 %v530_v18  ;;  %v533_v22 = vsel %vm522_vm0, %v7576_v13, 0  ;;  %v10701_v24 = vld [vmem:[#allocation5 + $0x24] sm:$0xf0]  ;;  %v7541_v27 = vld [vmem:[#allocation5 + $0x28] sm:$0xf0]  ;;  %s12877_s29 = scalar_lea.vmem [#allocation10], %s12845_s28 }
  0x3f   : > { %592 = vmatpush.bf16.msra.mxu3 %v533_v22  ;;  %v7540_v26 = vor.u32 %v10701_v24, %v7539_v21  ;;  %v7579_v28 = vld [vmem:[#allocation5 + $0x50] sm:$0xf]  ;;  %v7544_v30 = vor.u32 %v10697_v25, %v7541_v27  ;;  %v10706_v33 = vld [vmem:[#allocation5 + $0x54] sm:$0xf]  ;;  %v7587_v35 = vld [vmem:[#allocation5 + $0x58] sm:$0xf] }
  0x40   : > { %v10710_v29 = vld [vmem:[#allocation5 + $0x6c] sm:$0x70]  ;;  %v7581_v34 = vld [vmem:[#allocation5 + $0x70] sm:$0x70]  ;;  %v10711_v37 = vld [vmem:[#allocation5 + $0x74] sm:$0x70] }
  0x41   : > { %v7580_v32 = vor.u32 %v10710_v29, %v7579_v28  ;;  %554 = vmatpush.bf16.msra.mxu0 %v7532_v19  ;;  %v7584_v36 = vor.u32 %v10706_v33, %v7581_v34  ;;  %v10707_v38 = vld [vmem:[#allocation5 + $0x5c] sm:$0xf]  ;;  %567 = vmatpush.bf16.msra.mxu1 %v7536_v23  ;;  %v7588_v41 = vor.u32 %v10711_v37, %v7587_v35  ;;  %v7547_v43 = vld [vmem:[#allocation5 + $0x10] sm:$0xf]  ;;  %v10698_v47 = vld [vmem:[#allocation5 + $0x14] sm:$0xf] }
  0x42   : > { %v7589_v39 = vld [vmem:[#allocation5 + $0x78] sm:$0x70]  ;;  %580 = vmatpush.bf16.msra.mxu2 %v7540_v26  ;;  %v10702_v44 = vld [vmem:[#allocation5 + $0x2c] sm:$0xf0]  ;;  %v7549_v48 = vld [vmem:[#allocation5 + $0x30] sm:$0xf0] }
  0x43   : > { %v536_v40 = vsel %vm522_vm0, %v7580_v32, 0  ;;  %v7592_v42 = vor.u32 %v10707_v38, %v7589_v39  ;;  %593 = vmatpush.bf16.msra.mxu3 %v7544_v30  ;;  %v539_v45 = vsel %vm522_vm0, %v7584_v36, 0  ;;  %v7548_v46 = vor.u32 %v10702_v44, %v7547_v43  ;;  %v7555_v52 = vld [vmem:[#allocation5 + $0x18] sm:$0xf]  ;;  %v10699_v54 = vld [vmem:[#allocation5 + $0x1c] sm:$0xf] }
  0x44   : > { %7593 = vmatmul.msk.bf16.vlgmr.msra.gmra.mxu0 %vm518_vm1, %v12047_v31  ;;  %v542_v49 = vsel %vm522_vm0, %v7588_v41, 0  ;;  %v7552_v51 = vor.u32 %v10698_v47, %v7549_v48  ;;  %v10703_v53 = vld [vmem:[#allocation5 + $0x34] sm:$0xf0]  ;;  %7594 = vmatmul.msk.bf16.vlgmr.msra.gmra.mxu1 %vm518_vm1, %v12047_v31  ;;  %v7557_v55 = vld [vmem:[#allocation5 + $0x38] sm:$0xf0]  ;;  %s394_s13 = smul.u32 192, %s11866_s24 }
  0x45   : > { %605 = vmatpush.bf16.msrb.mxu0 %v536_v40  ;;  %618 = vmatpush.bf16.msrb.mxu1 %v539_v45  ;;  %v545_v50 = vsel %vm522_vm0, %v7592_v42, 0  ;;  %v7947_v56 = vld [vmem:[%s12037_s21 + $0x2a0] sm:$0xf]  ;;  %v7556_v57 = vor.u32 %v10703_v53, %v7555_v52  ;;  %v10802_v58 = vld [vmem:[%s12037_s21 + $0x2cc] sm:$0xf0]  ;;  %v7560_v61 = vor.u32 %v10699_v54, %v7557_v55  ;;  %p401_p2 = scmp.lt.s32.totalorder %s11866_s24, 1 }
  0x46   : > { %7595 = vmatmul.msk.bf16.vlgmr.msra.gmra.mxu2 %vm518_vm1, %v12047_v31  ;;  %7596 = vmatmul.msk.bf16.vlgmr.msra.gmra.mxu3 %vm518_vm1, %v12047_v31  ;;  %v8331_v59 = vld [vmem:[%s12037_s21 + $0x5a0] sm:$0xf]  ;;  %v10898_v60 = vld [vmem:[%s12037_s21 + $0x5cc] sm:$0xf0]  ;;  %v7948_v62 = vor.u32 %v10802_v58, %v7947_v56  ;;  %p14128_p1 = scmp.lt.s32.totalorder %s394_s13, 383  ;;  %s14744_s27 = sld [smem:[#allocation19_spill]] }
  0x47   : > { %631 = vmatpush.bf16.msrb.mxu2 %v542_v49  ;;  %644 = vmatpush.bf16.msrb.mxu3 %v545_v50  ;;  %v8332_v63 = vor.u32 %v10898_v60, %v8331_v59  ;;  %v7899_v0 = vld [vmem:[%s12037_s21 + $0x240] sm:$0xf]  ;;  %v10790_v1 = vld [vmem:[%s12037_s21 + $0x26c] sm:$0xf0]  ;;  %s14757_s24 = smov (!%p401_p2, %s11866_s24), 1 }
  0x48   : > { %v8283_v2 = vld [vmem:[%s12037_s21 + $0x540] sm:$0xf]  ;;  %v10886_v3 = vld [vmem:[%s12037_s21 + $0x56c] sm:$0xf0]  ;;  %v7900_v6 = vor.u32 %v10790_v1, %v7899_v0  ;;  %s14755_s13 = smov (!%p14128_p1, %s394_s13), 383  ;;  %s7528_s14 = sshll.u32 %s14757_s24, 3 }
  0x49   : > { %606 = vmatpush.bf16.msrb.mxu0 %v7548_v46  ;;  %619 = vmatpush.bf16.msrb.mxu1 %v7552_v51  ;;  %v8715_v4 = vld [vmem:[%s12037_s21 + $0x8a0] sm:$0xf]  ;;  %v10994_v5 = vld [vmem:[%s12037_s21 + $0x8cc] sm:$0xf0]  ;;  %v8284_v7 = vor.u32 %v10886_v3, %v8283_v2  ;;  %s7527_s7 = sshll.u32 %s14755_s13, 3 }
  0x4a   : > { %v8716_v8 = vor.u32 %v10994_v5, %v8715_v4  ;;  %v9099_v9 = vld [vmem:[%s12037_s21 + $0xba0] sm:$0xf]  ;;  %v11090_v10 = vld [vmem:[%s12037_s21 + $0xbcc] sm:$0xf0]  ;;  %s14168_s30 = scalar_lea.vmem %s14682_s5, %s7527_s7 }
  0x4b   : > { %v7851_v11 = vld [vmem:[%s12037_s21 + $0x1e0] sm:$0xf]  ;;  %632 = vmatpush.bf16.msrb.mxu2 %v7556_v57  ;;  %v9100_v12 = vor.u32 %v11090_v10, %v9099_v9  ;;  %v10778_v13 = vld [vmem:[%s12037_s21 + $0x20c] sm:$0xf0]  ;;  %645 = vmatpush.bf16.msrb.mxu3 %v7560_v61 }
  0x4c   : > { %v8235_v14 = vld [vmem:[%s12037_s21 + $0x4e0] sm:$0xf]  ;;  %v10874_v15 = vld [vmem:[%s12037_s21 + $0x50c] sm:$0xf0]  ;;  %v7852_v21 = vor.u32 %v10778_v13, %v7851_v11  ;;  %s404_s15 = scalar_lea.vmem %s14744_s27, %s7528_s14 }
  0x4d   : > { %5465 = vmatpush.bf16.msra.mxu0 %v7948_v62  ;;  %5478 = vmatpush.bf16.msra.mxu1 %v8332_v63  ;;  %v8667_v16 = vld [vmem:[%s12037_s21 + $0x840] sm:$0xf]  ;;  %v10982_v17 = vld [vmem:[%s12037_s21 + $0x86c] sm:$0xf0]  ;;  %v8236_v22 = vor.u32 %v10874_v15, %v8235_v14 }
  0x4e   : > { %v9051_v18 = vld [vmem:[%s12037_s21 + $0xb40] sm:$0xf]  ;;  %v8668_v19 = vor.u32 %v10982_v17, %v8667_v16  ;;  %v11078_v20 = vld [vmem:[%s12037_s21 + $0xb6c] sm:$0xf0] }
  0x4f   : > { %5491 = vmatpush.bf16.msra.mxu2 %v8716_v8  ;;  %5504 = vmatpush.bf16.msra.mxu3 %v9100_v12  ;;  %v9052_v23 = vor.u32 %v11078_v20, %v9051_v18  ;;  %v8619_v24 = vld [vmem:[%s12037_s21 + $0x7e0] sm:$0xf]  ;;  %v10970_v25 = vld [vmem:[%s12037_s21 + $0x80c] sm:$0xf0] }
  0x50   : > { %v9003_v26 = vld [vmem:[%s12037_s21 + $0xae0] sm:$0xf]  ;;  %v11066_v27 = vld [vmem:[%s12037_s21 + $0xb0c] sm:$0xf0]  ;;  %v8620_v32 = vor.u32 %v10970_v25, %v8619_v24 }
  0x51   : > { %5466 = vmatpush.bf16.msra.mxu0 %v7900_v6  ;;  %5479 = vmatpush.bf16.msra.mxu1 %v8284_v7  ;;  %v7803_v28 = vld [vmem:[%s12037_s21 + $0x180] sm:$0xf]  ;;  %v10766_v29 = vld [vmem:[%s12037_s21 + $0x1ac] sm:$0xf0]  ;;  %v9004_v34 = vor.u32 %v11066_v27, %v9003_v26 }
  0x52   : > { %v8187_v30 = vld [vmem:[%s12037_s21 + $0x480] sm:$0xf]  ;;  %v10862_v33 = vld [vmem:[%s12037_s21 + $0x4ac] sm:$0xf0]  ;;  %v7804_v39 = vor.u32 %v10766_v29, %v7803_v28 }
  0x53   : > { %5492 = vmatpush.bf16.msra.mxu2 %v8668_v19  ;;  %5505 = vmatpush.bf16.msra.mxu3 %v9052_v23  ;;  %v8571_v35 = vld [vmem:[%s12037_s21 + $0x780] sm:$0xf]  ;;  %v10958_v36 = vld [vmem:[%s12037_s21 + $0x7ac] sm:$0xf0]  ;;  %v8188_v40 = vor.u32 %v10862_v33, %v8187_v30 }
  0x54   : > { %v8955_v37 = vld [vmem:[%s12037_s21 + $0xa80] sm:$0xf]  ;;  %v11054_v38 = vld [vmem:[%s12037_s21 + $0xaac] sm:$0xf0]  ;;  %v8572_v44 = vor.u32 %v10958_v36, %v8571_v35  ;;  %7597 = vmatmul.msk.bf16.vlgmr.msrb.gmra.mxu0 %vm518_vm1, %v12047_v31  ;;  %7598 = vmatmul.msk.bf16.vlgmr.msrb.gmra.mxu1 %vm518_vm1, %v12047_v31 }
  0x55   : > { %5467 = vmatpush.bf16.msra.mxu0 %v7852_v21  ;;  %5480 = vmatpush.bf16.msra.mxu1 %v8236_v22  ;;  %v7755_v41 = vld [vmem:[%s12037_s21 + $0x120] sm:$0xf]  ;;  %v10754_v42 = vld [vmem:[%s12037_s21 + $0x14c] sm:$0xf0]  ;;  %v8956_v46 = vor.u32 %v11054_v38, %v8955_v37 }
  0x56   : > { %v8139_v43 = vld [vmem:[%s12037_s21 + $0x420] sm:$0xf]  ;;  %v10850_v45 = vld [vmem:[%s12037_s21 + $0x44c] sm:$0xf0]  ;;  %7599 = vmatmul.msk.bf16.vlgmr.msrb.gmra.mxu2 %vm518_vm1, %v12047_v31  ;;  %7600 = vmatmul.msk.bf16.vlgmr.msrb.gmra.mxu3 %vm518_vm1, %v12047_v31  ;;  %v7756_v51 = vor.u32 %v10754_v42, %v7755_v41 }
  0x57   : > { %5493 = vmatpush.bf16.msra.mxu2 %v8620_v32  ;;  %5506 = vmatpush.bf16.msra.mxu3 %v9004_v34  ;;  %v8523_v47 = vld [vmem:[%s12037_s21 + $0x720] sm:$0xf]  ;;  %v10946_v48 = vld [vmem:[%s12037_s21 + $0x74c] sm:$0xf0]  ;;  %v8140_v52 = vor.u32 %v10850_v45, %v8139_v43 }
  0x58   : > { %v8907_v49 = vld [vmem:[%s12037_s21 + $0xa20] sm:$0xf]  ;;  %v11042_v50 = vld [vmem:[%s12037_s21 + $0xa4c] sm:$0xf0]  ;;  %v8524_v55 = vor.u32 %v10946_v48, %v8523_v47 }
  0x59   : > { %5468 = vmatpush.bf16.msra.mxu0 %v7804_v39  ;;  %5481 = vmatpush.bf16.msra.mxu1 %v8188_v40  ;;  %v7707_v53 = vld [vmem:[%s12037_s21 + $0xc0] sm:$0xf]  ;;  %v10742_v54 = vld [vmem:[%s12037_s21 + $0xec] sm:$0xf0]  ;;  %v8908_v58 = vor.u32 %v11042_v50, %v8907_v49 }
  0x5a   : > { %v8091_v56 = vld [vmem:[%s12037_s21 + $0x3c0] sm:$0xf]  ;;  %v10838_v57 = vld [vmem:[%s12037_s21 + $0x3ec] sm:$0xf0]  ;;  %v7708_v59 = vor.u32 %v10742_v54, %v7707_v53 }
  0x5b   : > { %5494 = vmatpush.bf16.msra.mxu2 %v8572_v44  ;;  %5507 = vmatpush.bf16.msra.mxu3 %v8956_v46  ;;  %v8092_v31 = vor.u32 %v10838_v57, %v8091_v56  ;;  %v7659_v60 = vld [vmem:[%s12037_s21 + $0x60] sm:$0xf]  ;;  %v10730_v61 = vld [vmem:[%s12037_s21 + $0x8c] sm:$0xf0] }
  0x5c   : > { %v8043_v62 = vld [vmem:[%s12037_s21 + $0x360] sm:$0xf]  ;;  %v10826_v63 = vld [vmem:[%s12037_s21 + $0x38c] sm:$0xf0]  ;;  %v7660_v0 = vor.u32 %v10730_v61, %v7659_v60 }
  0x5d   : > { %5469 = vmatpush.bf16.msra.mxu0 %v7756_v51  ;;  %5482 = vmatpush.bf16.msra.mxu1 %v8140_v52  ;;  %v8044_v1 = vor.u32 %v10826_v63, %v8043_v62  ;;  %v8475_v2 = vld [vmem:[%s12037_s21 + $0x6c0] sm:$0xf]  ;;  %v10934_v3 = vld [vmem:[%s12037_s21 + $0x6ec] sm:$0xf0] }
  0x5e   : > { %v8859_v4 = vld [vmem:[%s12037_s21 + $0x9c0] sm:$0xf]  ;;  %v8476_v5 = vor.u32 %v10934_v3, %v8475_v2  ;;  %v11030_v6 = vld [vmem:[%s12037_s21 + $0x9ec] sm:$0xf0] }
  0x5f   : > { %5495 = vmatpush.bf16.msra.mxu2 %v8524_v55  ;;  %5508 = vmatpush.bf16.msra.mxu3 %v8908_v58  ;;  %v8860_v7 = vor.u32 %v11030_v6, %v8859_v4  ;;  %v7611_v8 = vld [vmem:[%s12037_s21] sm:$0xf]  ;;  %v10718_v9 = vld [vmem:[%s12037_s21 + $0x2c] sm:$0xf0] }
  0x60   : > { %v7995_v10 = vld [vmem:[%s12037_s21 + $0x300] sm:$0xf]  ;;  %v7612_v11 = vor.u32 %v10718_v9, %v7611_v8  ;;  %v10814_v12 = vld [vmem:[%s12037_s21 + $0x32c] sm:$0xf0]  ;;  %v12165_v9 = vld [vmem:[#allocation7] sm:$0xff] }
  0x61   : > { %5470 = vmatpush.bf16.msra.mxu0 %v7708_v59  ;;  %5483 = vmatpush.bf16.msra.mxu1 %v8092_v31  ;;  %v9483_v13 = vld [vmem:[%s12037_s21 + $0xea0] sm:$0xf]  ;;  %v11186_v14 = vld [vmem:[%s12037_s21 + $0xecc] sm:$0xf0]  ;;  %v7996_v15 = vor.u32 %v10814_v12, %v7995_v10 }
  0x62   : > { %v9484_v16 = vor.u32 %v11186_v14, %v9483_v13  ;;  %v9867_v17 = vld [vmem:[%s12037_s21 + $0x11a0] sm:$0xf]  ;;  %v11282_v18 = vld [vmem:[%s12037_s21 + $0x11cc] sm:$0xf0] }
  0x63   : > { %5496 = vmatpush.bf16.msra.mxu2 %v8476_v5  ;;  %5509 = vmatpush.bf16.msra.mxu3 %v8860_v7  ;;  %v8427_v19 = vld [vmem:[%s12037_s21 + $0x660] sm:$0xf]  ;;  %v9868_v20 = vor.u32 %v11282_v18, %v9867_v17  ;;  %v10922_v21 = vld [vmem:[%s12037_s21 + $0x68c] sm:$0xf0] }
  0x64   : > { %v8811_v22 = vld [vmem:[%s12037_s21 + $0x960] sm:$0xf]  ;;  %v11018_v23 = vld [vmem:[%s12037_s21 + $0x98c] sm:$0xf0]  ;;  %v8428_v24 = vor.u32 %v10922_v21, %v8427_v19 }
  0x65   : > { %5471 = vmatpush.bf16.msra.mxu0 %v7660_v0  ;;  %5484 = vmatpush.bf16.msra.mxu1 %v8044_v1  ;;  %v8812_v25 = vor.u32 %v11018_v23, %v8811_v22  ;;  %v9435_v26 = vld [vmem:[%s12037_s21 + $0xe40] sm:$0xf]  ;;  %v11174_v27 = vld [vmem:[%s12037_s21 + $0xe6c] sm:$0xf0] }
  0x66   : > { %v9819_v28 = vld [vmem:[%s12037_s21 + $0x1140] sm:$0xf]  ;;  %v9436_v29 = vor.u32 %v11174_v27, %v9435_v26  ;;  %v11270_v30 = vld [vmem:[%s12037_s21 + $0x116c] sm:$0xf0]  ;;  %v431_v27 = vperm.slane %v12165_v9, 1 }
  0x67   : > { %5497 = vmatpush.bf16.msra.mxu2 %v8428_v24  ;;  %5510 = vmatpush.bf16.msra.mxu3 %v8812_v25  ;;  %v8379_v32 = vld [vmem:[%s12037_s21 + $0x600] sm:$0xf]  ;;  %v10910_v33 = vld [vmem:[%s12037_s21 + $0x62c] sm:$0xf0]  ;;  %v9820_v34 = vor.u32 %v11270_v30, %v9819_v28 }
  0x68   : > { %v8380_v35 = vor.u32 %v10910_v33, %v8379_v32  ;;  %v8763_v36 = vld [vmem:[%s12037_s21 + $0x900] sm:$0xf]  ;;  %v11006_v37 = vld [vmem:[%s12037_s21 + $0x92c] sm:$0xf0] }
  0x69   : > { %5472 = vmatpush.bf16.msra.mxu0 %v7612_v11  ;;  %5485 = vmatpush.bf16.msra.mxu1 %v7996_v15  ;;  %v10251_v38 = vld [vmem:[%s12037_s21 + $0x14a0] sm:$0xf]  ;;  %v8764_v39 = vor.u32 %v11006_v37, %v8763_v36  ;;  %v11378_v40 = vld [vmem:[%s12037_s21 + $0x14cc] sm:$0xf0] }
  0x6a   : > { %v10635_v41 = vld [vmem:[%s12037_s21 + $0x17a0] sm:$0xf]  ;;  %v11474_v42 = vld [vmem:[%s12037_s21 + $0x17cc] sm:$0xf0]  ;;  %v10252_v43 = vor.u32 %v11378_v40, %v10251_v38 }
  0x6b   : > { %5498 = vmatpush.bf16.msra.mxu2 %v8380_v35  ;;  %v10636_v44 = vor.u32 %v11474_v42, %v10635_v41  ;;  %v9387_v45 = vld [vmem:[%s12037_s21 + $0xde0] sm:$0xf]  ;;  %v11162_v46 = vld [vmem:[%s12037_s21 + $0xe0c] sm:$0xf0]  ;;  %5511 = vmatpush.bf16.msra.mxu3 %v8764_v39 }
  0x6c   : > { %v9771_v47 = vld [vmem:[%s12037_s21 + $0x10e0] sm:$0xf]  ;;  %v9388_v48 = vor.u32 %v11162_v46, %v9387_v45  ;;  %v11258_v49 = vld [vmem:[%s12037_s21 + $0x110c] sm:$0xf0]  ;;  %v432_v45 = vperm.slane %v12165_v9, 2 }
  0x6d   : > { %5517 = vmatpush.bf16.msrb.mxu0 %v9484_v16  ;;  %5530 = vmatpush.bf16.msrb.mxu1 %v9868_v20  ;;  %v9772_v50 = vor.u32 %v11258_v49, %v9771_v47  ;;  %v10203_v51 = vld [vmem:[%s12037_s21 + $0x1440] sm:$0xf]  ;;  %v11366_v52 = vld [vmem:[%s12037_s21 + $0x146c] sm:$0xf0]  ;;  %v430_v20 = vperm.slane %v12165_v9, 0 }
  0x6e   : > { %v10587_v53 = vld [vmem:[%s12037_s21 + $0x1740] sm:$0xf]  ;;  %v10204_v54 = vor.u32 %v11366_v52, %v10203_v51  ;;  %v11462_v55 = vld [vmem:[%s12037_s21 + $0x176c] sm:$0xf0] }
  0x6f   : > { %5543 = vmatpush.bf16.msrb.mxu2 %v10252_v43  ;;  %5556 = vmatpush.bf16.msrb.mxu3 %v10636_v44  ;;  %v10588_v56 = vor.u32 %v11462_v55, %v10587_v53  ;;  %v9339_v57 = vld [vmem:[%s12037_s21 + $0xd80] sm:$0xf]  ;;  %v11150_v58 = vld [vmem:[%s12037_s21 + $0xdac] sm:$0xf0] }
  0x70   : > { %v9723_v59 = vld [vmem:[%s12037_s21 + $0x1080] sm:$0xf]  ;;  %v9340_v31 = vor.u32 %v11150_v58, %v9339_v57  ;;  %v11246_v60 = vld [vmem:[%s12037_s21 + $0x10ac] sm:$0xf0] }
  0x71   : > { %5518 = vmatpush.bf16.msrb.mxu0 %v9436_v29  ;;  %5531 = vmatpush.bf16.msrb.mxu1 %v9820_v34  ;;  %v9724_v61 = vor.u32 %v11246_v60, %v9723_v59  ;;  %v10155_v62 = vld [vmem:[%s12037_s21 + $0x13e0] sm:$0xf]  ;;  %v11354_v63 = vld [vmem:[%s12037_s21 + $0x140c] sm:$0xf0] }
  0x72   : > { %v10539_v0 = vld [vmem:[%s12037_s21 + $0x16e0] sm:$0xf]  ;;  %v10156_v1 = vor.u32 %v11354_v63, %v10155_v62  ;;  %v11450_v2 = vld [vmem:[%s12037_s21 + $0x170c] sm:$0xf0] }
  0x73   : > { %5544 = vmatpush.bf16.msrb.mxu2 %v10204_v54  ;;  %5557 = vmatpush.bf16.msrb.mxu3 %v10588_v56  ;;  %v10540_v3 = vor.u32 %v11450_v2, %v10539_v0  ;;  %v9291_v4 = vld [vmem:[%s12037_s21 + $0xd20] sm:$0xf]  ;;  %v11138_v5 = vld [vmem:[%s12037_s21 + $0xd4c] sm:$0xf0]  ;;  %v433_v56 = vperm.slane %v12165_v9, 3 }
  0x74   : > { %v9675_v6 = vld [vmem:[%s12037_s21 + $0x1020] sm:$0xf]  ;;  %v9292_v7 = vor.u32 %v11138_v5, %v9291_v4  ;;  %v11234_v8 = vld [vmem:[%s12037_s21 + $0x104c] sm:$0xf0] }
  0x75   : > { %5519 = vmatpush.bf16.msrb.mxu0 %v9388_v48  ;;  %5532 = vmatpush.bf16.msrb.mxu1 %v9772_v50  ;;  %v9676_v10 = vor.u32 %v11234_v8, %v9675_v6  ;;  %v10107_v11 = vld [vmem:[%s12037_s21 + $0x1380] sm:$0xf]  ;;  %v11342_v12 = vld [vmem:[%s12037_s21 + $0x13ac] sm:$0xf0] }
  0x76   : > { %v10491_v13 = vld [vmem:[%s12037_s21 + $0x1680] sm:$0xf]  ;;  %v10108_v14 = vor.u32 %v11342_v12, %v10107_v11  ;;  %v11438_v15 = vld [vmem:[%s12037_s21 + $0x16ac] sm:$0xf0] }
  0x77   : > { %5545 = vmatpush.bf16.msrb.mxu2 %v10156_v1  ;;  %5558 = vmatpush.bf16.msrb.mxu3 %v10540_v3  ;;  %v10492_v16 = vor.u32 %v11438_v15, %v10491_v13  ;;  %v9243_v17 = vld [vmem:[%s12037_s21 + $0xcc0] sm:$0xf]  ;;  %v11126_v18 = vld [vmem:[%s12037_s21 + $0xcec] sm:$0xf0] }
  0x78   : > { %v9627_v19 = vld [vmem:[%s12037_s21 + $0xfc0] sm:$0xf]  ;;  %v9244_v21 = vor.u32 %v11126_v18, %v9243_v17  ;;  %v11222_v22 = vld [vmem:[%s12037_s21 + $0xfec] sm:$0xf0]  ;;  %v434_v18 = vperm.slane %v12165_v9, 4 }
  0x79   : > { %5520 = vmatpush.bf16.msrb.mxu0 %v9340_v31  ;;  %5533 = vmatpush.bf16.msrb.mxu1 %v9724_v61  ;;  %v9628_v23 = vor.u32 %v11222_v22, %v9627_v19  ;;  %v10059_v24 = vld [vmem:[%s12037_s21 + $0x1320] sm:$0xf]  ;;  %v11330_v25 = vld [vmem:[%s12037_s21 + $0x134c] sm:$0xf0]  ;;  %v435_v19 = vperm.slane %v12165_v9, 5 }
  0x7a   : > { %v10443_v26 = vld [vmem:[%s12037_s21 + $0x1620] sm:$0xf]  ;;  %v10060_v28 = vor.u32 %v11330_v25, %v10059_v24  ;;  %v11426_v29 = vld [vmem:[%s12037_s21 + $0x164c] sm:$0xf0]  ;;  %v12221_v24 = vld [vmem:[%s12037_s21 + $0x5d0] sm:$0xf0] }
  0x7b   : > { %5546 = vmatpush.bf16.msrb.mxu2 %v10108_v14  ;;  %5559 = vmatpush.bf16.msrb.mxu3 %v10492_v16  ;;  %v10444_v30 = vor.u32 %v11426_v29, %v10443_v26  ;;  %v9195_v32 = vld [vmem:[%s12037_s21 + $0xc60] sm:$0xf]  ;;  %v11114_v33 = vld [vmem:[%s12037_s21 + $0xc8c] sm:$0xf0]  ;;  %v12224_v25 = vld [vmem:[%s12037_s21 + $0x244] sm:$0xf] }
  0x7c   : > { %v9579_v34 = vld [vmem:[%s12037_s21 + $0xf60] sm:$0xf]  ;;  %v9196_v36 = vor.u32 %v11114_v33, %v9195_v32  ;;  %v11210_v37 = vld [vmem:[%s12037_s21 + $0xf8c] sm:$0xf0]  ;;  %v12230_v29 = vld [vmem:[%s12037_s21 + $0x544] sm:$0xf] }
  0x7d   : > { %5521 = vmatpush.bf16.msrb.mxu0 %v9292_v7  ;;  %5534 = vmatpush.bf16.msrb.mxu1 %v9676_v10  ;;  %v9580_v40 = vor.u32 %v11210_v37, %v9579_v34  ;;  %v10011_v41 = vld [vmem:[%s12037_s21 + $0x12c0] sm:$0xf]  ;;  %v11318_v42 = vld [vmem:[%s12037_s21 + $0x12ec] sm:$0xf0]  ;;  %v12236_v34 = vld [vmem:[%s12037_s21 + $0x8a4] sm:$0xf] }
  0x7e   : > { %v10395_v43 = vld [vmem:[%s12037_s21 + $0x15c0] sm:$0xf]  ;;  %v10012_v46 = vor.u32 %v11318_v42, %v10011_v41  ;;  %v11414_v47 = vld [vmem:[%s12037_s21 + $0x15ec] sm:$0xf0]  ;;  %v12246_v41 = vld [vmem:[%s12037_s21 + $0xba4] sm:$0xf] }
  0x7f   : > { %5547 = vmatpush.bf16.msrb.mxu2 %v10060_v28  ;;  %5560 = vmatpush.bf16.msrb.mxu3 %v10444_v30  ;;  %v10396_v49 = vor.u32 %v11414_v47, %v10395_v43  ;;  %v9147_v50 = vld [vmem:[%s12037_s21 + $0xc00] sm:$0xf]  ;;  %v11102_v51 = vld [vmem:[%s12037_s21 + $0xc2c] sm:$0xf0]  ;;  %v12227_v28 = vld [vmem:[%s12037_s21 + $0x270] sm:$0xf0] }
  0x80   : > { %v9148_v53 = vor.u32 %v11102_v51, %v9147_v50  ;;  %v9531_v54 = vld [vmem:[%s12037_s21 + $0xf00] sm:$0xf]  ;;  %v11198_v55 = vld [vmem:[%s12037_s21 + $0xf2c] sm:$0xf0]  ;;  %v12233_v30 = vld [vmem:[%s12037_s21 + $0x570] sm:$0xf0] }
  0x81   : > { %5522 = vmatpush.bf16.msrb.mxu0 %v9244_v21  ;;  %5535 = vmatpush.bf16.msrb.mxu1 %v9628_v23  ;;  %v9532_v57 = vor.u32 %v11198_v55, %v9531_v54  ;;  %v9963_v58 = vld [vmem:[%s12037_s21 + $0x1260] sm:$0xf]  ;;  %v11306_v59 = vld [vmem:[%s12037_s21 + $0x128c] sm:$0xf0]  ;;  %v12214_v21 = vld [vmem:[%s12037_s21 + $0x2d0] sm:$0xf0] }
  0x82   : > { %v9964_v60 = vor.u32 %v11306_v59, %v9963_v58  ;;  %v10347_v61 = vld [vmem:[%s12037_s21 + $0x1560] sm:$0xf]  ;;  %v11402_v62 = vld [vmem:[%s12037_s21 + $0x158c] sm:$0xf0]  ;;  %v12218_v23 = vld [vmem:[%s12037_s21 + $0x5a4] sm:$0xf] }
  0x83   : > { %5548 = vmatpush.bf16.msrb.mxu2 %v10012_v46  ;;  %5561 = vmatpush.bf16.msrb.mxu3 %v10396_v49  ;;  %v10348_v2 = vor.u32 %v11402_v62, %v10347_v61  ;;  %v9915_v5 = vld [vmem:[%s12037_s21 + $0x1200] sm:$0xf]  ;;  %v11294_v6 = vld [vmem:[%s12037_s21 + $0x122c] sm:$0xf0]  ;;  %v12249_v42 = vld [vmem:[%s12037_s21 + $0xbd0] sm:$0xf0]  ;;  %v7904_v46 = vor.u32 %v12224_v25, %v12227_v28 }
  0x84   : > { %v9916_v8 = vor.u32 %v11294_v6, %v9915_v5  ;;  %v10299_v10 = vld [vmem:[%s12037_s21 + $0x1500] sm:$0xf]  ;;  %v11390_v11 = vld [vmem:[%s12037_s21 + $0x152c] sm:$0xf0]  ;;  %v9104_v55 = vor.u32 %v12246_v41, %v12249_v42  ;;  %v12291_v6 = vld [vmem:[%s12037_s21 + $0x510] sm:$0xf0] }
  0x85   : > { %5523 = vmatpush.bf16.msrb.mxu0 %v9196_v36  ;;  %5536 = vmatpush.bf16.msrb.mxu1 %v9580_v40  ;;  %v10300_v14 = vor.u32 %v11390_v11, %v10299_v10 }
  0x87   : > { %5549 = vmatpush.bf16.msrb.mxu2 %v9964_v60  ;;  %5562 = vmatpush.bf16.msrb.mxu3 %v10348_v2 }
  0x89   : > { %5524 = vmatpush.bf16.msrb.mxu0 %v9148_v53  ;;  %5537 = vmatpush.bf16.msrb.mxu1 %v9532_v57  ;;  %v12273_v57 = vld [vmem:[%s12037_s21 + $0x210] sm:$0xf0] }
  0x8b   : > { %5550 = vmatpush.bf16.msrb.mxu2 %v9916_v8  ;;  %5563 = vmatpush.bf16.msrb.mxu3 %v10300_v14 }
  0xc1   : > { %v556_v35 = vpop.f32.mrf.mxu0  ;;  %v569_v39 = vpop.f32.mrf.mxu1 }
  0xc2   : > { %v557_v38 = vadd.f32 %v556_v35, %v430_v20  ;;  %v570_v44 = vadd.f32 %v569_v39, %v431_v27  ;;  %v12211_v20 = vld [vmem:[%s12037_s21 + $0x2a4] sm:$0xf]  ;;  %v12239_v35 = vld [vmem:[%s12037_s21 + $0x8d0] sm:$0xf0]  ;;  %v437_v39 = vperm.slane %v12165_v9, 7 }
  0xc3   : > { %v7952_v40 = vor.u32 %v12211_v20, %v12214_v21  ;;  %v8720_v51 = vor.u32 %v12236_v34, %v12239_v35  ;;  %v12478_v34 = vld [vmem:[%s12037_s21 + $0xf0] sm:$0xf0] }
  0xc4   : > { %v7601_v48 = vmul.f32 -1.442695, %v557_v38  ;;  %v7602_v52 = vmul.f32 -1.442695, %v570_v44  ;;  %v436_v38 = vperm.slane %v12165_v9, 6  ;;  %v8288_v9 = vor.u32 %v12230_v29, %v12233_v30 }
  0xc5   : > { %v12449_v30 = vld [vmem:[%s12037_s21 + $0xa84] sm:$0xf] }
  0xc6   : > { %11581 = vpow2.f32 %v7601_v48 }
  0xc7   : > { %11583 = vpow2.f32 %v7602_v52 }
  0xc9   : > { %v582_v31 = vpop.f32.mrf.mxu2  ;;  %v595_v0 = vpop.f32.mrf.mxu3 }
  0xca   : > { %v583_v63 = vadd.f32 %v582_v31, %v432_v45  ;;  %v558_v1 = vpop.f32.mrf.mxu0  ;;  %v596_v3 = vadd.f32 %v595_v0, %v433_v56  ;;  %v571_v4 = vpop.f32.mrf.mxu1  ;;  %v8336_v45 = vor.u32 %v12218_v23, %v12221_v24  ;;  %v12270_v56 = vld [vmem:[%s12037_s21 + $0x1e4] sm:$0xf] }
  0xcb   : > { %v7856_v5 = vor.u32 %v12270_v56, %v12273_v57  ;;  %v12398_v24 = vld [vmem:[%s12037_s21 + $0x124] sm:$0xf] }
  0xcc   : > { %v7603_v7 = vmul.f32 -1.442695, %v583_v63  ;;  %v11582_v12 = vpop.eup %11581  ;;  %v7604_v13 = vmul.f32 -1.442695, %v596_v3  ;;  %v12282_v63 = vld [vmem:[%s12037_s21 + $0x4e4] sm:$0xf] }
  0xcd   : > { %v11584_v15 = vpop.eup %11583  ;;  %v12203_v16 = vadd.f32 1.0, %v11582_v12 }
  0xce   : > { %11585 = vpow2.f32 %v7603_v7  ;;  %v12205_v17 = vadd.f32 1.0, %v11584_v15  ;;  %v12365_v15 = vld [vmem:[%s12037_s21 + $0x7e4] sm:$0xf] }
  0xcf   : > { %11587 = vpow2.f32 %v7604_v13  ;;  %v692_v48 = vand.u32 2147483647, %v12203_v16  ;;  %v694_v49 = vand.u32 2147483648, %v12203_v16  ;;  %vm688_vm2 = vweird.f32 %v12203_v16 }
  0xd0   : > { %11589 = vrcp.f32 %v12203_v16  ;;  %vm703_vm3 = vweird.f32 %v12205_v17  ;;  %v707_v60 = vand.u32 2147483647, %v12205_v17  ;;  %v709_v61 = vand.u32 2147483648, %v12205_v17 }
  0xd1   : > { %11591 = vrcp.f32 %v12205_v17  ;;  %v584_v22 = vpop.f32.mrf.mxu2  ;;  %v597_v26 = vpop.f32.mrf.mxu3  ;;  %vm12284_vm4 = vcmp.eq.f32.partialorder %v692_v48, 8.507059e+37  ;;  %v695_v1 = vor.u32 1.1754944e-38, %v694_v49  ;;  %v12317_v48 = vld [vmem:[%s12037_s21 + $0x844] sm:$0xf] }
  0xd2   : > { %v608_v27 = vpop.f32.mrf.mxu0  ;;  %v621_v33 = vpop.f32.mrf.mxu1  ;;  %vm12295_vm7 = vcmp.eq.f32.partialorder %v707_v60, 8.507059e+37  ;;  %v710_v26 = vor.u32 1.1754944e-38, %v709_v61 }
  0xd3   : > { %v609_v32 = vadd.f32 %v608_v27, %v434_v18  ;;  %v622_v37 = vadd.f32 %v621_v33, %v435_v19  ;;  %v8240_v19 = vor.u32 %v12282_v63, %v12291_v6 }
  0xd4   : > { %v11586_v36 = vpop.eup %11585 }
  0xd5   : > { %v11588_v43 = vpop.eup %11587  ;;  %v12251_v44 = vadd.f32 1.0, %v11586_v36  ;;  %v7605_v54 = vmul.f32 -1.442695, %v609_v32  ;;  %v7606_v59 = vmul.f32 -1.442695, %v622_v37 }
  0xd6   : > { %v11590_v47 = vpop.eup %11589  ;;  %v12261_v50 = vadd.f32 1.0, %v11588_v43 }
  0xd7   : > { %v11592_v52 = vpop.eup %11591  ;;  %v684_v53 = vmul.f32 %v11590_v47, %v12203_v16  ;;  %11593 = vrcp.f32 %v12251_v44  ;;  %vm689_vm5 = vweird.f32 %v11590_v47  ;;  %v722_v37 = vand.u32 2147483647, %v12251_v44 }
  0xd8   : > { %v699_v58 = vmul.f32 %v11592_v52, %v12205_v17  ;;  %11595 = vrcp.f32 %v12261_v50  ;;  %vm704_vm6 = vweird.f32 %v11592_v52  ;;  %vm690_vm8 = vmor %vm688_vm2, %vm689_vm5  ;;  %v724_v16 = vand.u32 2147483648, %v12251_v44 }
  0xd9   : > { %v685_v31 = vsub.f32 1.0, %v684_v53  ;;  %v634_v62 = vpop.f32.mrf.mxu2  ;;  %v647_v3 = vpop.f32.mrf.mxu3  ;;  %11597 = vpow2.f32 %v7605_v54  ;;  %vm705_vm9 = vmor %vm703_vm3, %vm704_vm6  ;;  %vm718_vm11 = vweird.f32 %v12251_v44  ;;  %vm723_vm14 = vcmp.eq.f32.partialorder %v722_v37, 8.507059e+37  ;;  %v12410_v37 = vld [vmem:[%s12037_s21 + $0x424] sm:$0xf] }
  0xda   : > { %v700_v2 = vsub.f32 1.0, %v699_v58  ;;  %v610_v4 = vpop.f32.mrf.mxu0  ;;  %v635_v8 = vadd.f32 %v634_v62, %v436_v38  ;;  %v623_v10 = vpop.f32.mrf.mxu1  ;;  %11599 = vpow2.f32 %v7606_v59  ;;  %v648_v12 = vadd.f32 %v647_v3, %v437_v39  ;;  %v12325_v58 = vld [vmem:[%s12037_s21 + $0x870] sm:$0xf0] }
  0xdb   : > { %v686_v7 = vmul.f32 %v11590_v47, %v685_v31  ;;  %v12331_v59 = vld [vmem:[%s12037_s21 + $0xb70] sm:$0xf0]  ;;  %v737_v4 = vand.u32 2147483647, %v12261_v50  ;;  %v12351_v10 = vld [vmem:[%s12037_s21 + $0x484] sm:$0xf]  ;;  %v8672_v20 = vor.u32 %v12317_v48, %v12325_v58  ;;  %vm733_vm15 = vweird.f32 %v12261_v50 }
  0xdc   : > { %v701_v11 = vmul.f32 %v11592_v52, %v700_v2  ;;  %v7607_v18 = vmul.f32 -1.442695, %v635_v8  ;;  %v7608_v32 = vmul.f32 -1.442695, %v648_v12  ;;  %v12339_v2 = vld [vmem:[%s12037_s21 + $0x184] sm:$0xf] }
  0xdd   : > { %v12293_v13 = vpop.eup %11593  ;;  %v687_v14 = vadd.f32 %v11590_v47, %v686_v7  ;;  %v12342_v3 = vld [vmem:[%s12037_s21 + $0x1b0] sm:$0xf0]  ;;  %v739_v7 = vand.u32 2147483648, %v12261_v50  ;;  %vm738_vm1 = vcmp.eq.f32.partialorder %v737_v4, 8.507059e+37 }
  0xde   : > { %v702_v22 = vadd.f32 %v11592_v52, %v701_v11  ;;  %v714_v27 = vmul.f32 %v12293_v13, %v12251_v44  ;;  %v12305_v33 = vpop.eup %11595  ;;  %11601 = vpow2.f32 %v7607_v18  ;;  %vm719_vm10 = vweird.f32 %v12293_v13  ;;  %v12368_v18 = vld [vmem:[%s12037_s21 + $0x810] sm:$0xf0] }
  0xdf   : > { %v691_v36 = vsel %vm690_vm8, %v11590_v47, %v687_v14  ;;  %v729_v47 = vmul.f32 %v12305_v33, %v12261_v50  ;;  %v11598_v17 = vpop.eup %11597  ;;  %11603 = vpow2.f32 %v7608_v32  ;;  %vm734_vm12 = vweird.f32 %v12305_v33  ;;  %v12362_v14 = vld [vmem:[%s12037_s21 + $0x4b0] sm:$0xf0]  ;;  %vm12374_vm13 = vmor %vm718_vm11, %vm719_vm10 }
  0xe0   : > { %v696_v38 = vsel %vm12284_vm4, %v695_v1, %v691_v36  ;;  %v706_v39 = vsel %vm705_vm9, %v11592_v52, %v702_v22  ;;  %v715_v43 = vsub.f32 1.0, %v714_v27  ;;  %v12328_v52 = vld [vmem:[%s12037_s21 + $0xb44] sm:$0xf]  ;;  %v11600_v31 = vpop.eup %11599  ;;  %v12336_v0 = vadd.f32 1.0, %v11598_v17  ;;  %v12390_v44 = vld [vmem:[%s12037_s21 + $0xb10] sm:$0xf0]  ;;  %vm735_vm0 = vmor %vm733_vm15, %vm734_vm12 }
  0xe1   : > { %v12319_v49 = vpack.c.bf16 %v696_v38, %v696_v38  ;;  %v711_v53 = vsel %vm12295_vm7, %v710_v26, %v706_v39  ;;  %v636_v54 = vpop.f32.mrf.mxu2  ;;  %v730_v62 = vsub.f32 1.0, %v729_v47  ;;  %v649_v1 = vpop.f32.mrf.mxu3  ;;  %v12347_v8 = vadd.f32 1.0, %v11600_v31  ;;  %v12413_v50 = vld [vmem:[%s12037_s21 + $0x450] sm:$0xf0] }
  0xe2   : > { %v12333_v60 = vpack.c.bf16 %v711_v53, %v711_v53  ;;  %v716_v61 = vmul.f32 %v12293_v13, %v715_v43  ;;  %11605 = vrcp.f32 %v12336_v0  ;;  %v725_v27 = vor.u32 1.1754944e-38, %v724_v16  ;;  %v12424_v53 = vld [vmem:[%s12037_s21 + $0x784] sm:$0xf]  ;;  %v12427_v54 = vld [vmem:[%s12037_s21 + $0x7b0] sm:$0xf0] }
  0xe3   : > { %5473 = vmatmul.bf16.vlgmr.msra.gmra.mxu0 %v12319_v49  ;;  %v731_v12 = vmul.f32 %v12305_v33, %v730_v62  ;;  %11607 = vrcp.f32 %v12347_v8  ;;  %v9056_v21 = vor.u32 %v12328_v52, %v12331_v59  ;;  %v740_v38 = vor.u32 1.1754944e-38, %v739_v7 }
  0xe4   : > { %v717_v11 = vadd.f32 %v12293_v13, %v716_v61  ;;  %5486 = vmatmul.bf16.vlgmr.msra.gmra.mxu1 %v12333_v60  ;;  %5569 = vmatpush.bf16.msra.mxu0 %v7952_v40  ;;  %v11602_v22 = vpop.eup %11601  ;;  %v12387_v40 = vld [vmem:[%s12037_s21 + $0xae4] sm:$0xf]  ;;  %v8192_v17 = vor.u32 %v12351_v10, %v12362_v14  ;;  %v8624_v25 = vor.u32 %v12365_v15, %v12368_v18  ;;  %v754_v4 = vand.u32 2147483648, %v12336_v0  ;;  %v8909_v18 = vld [vmem:[%s12037_s21 + $0xa50] sm:$0xf0] }
  0xe5   : > { %5582 = vmatpush.bf16.msra.mxu1 %v8336_v45  ;;  %v732_v23 = vadd.f32 %v12305_v33, %v731_v12  ;;  %v12401_v45 = vld [vmem:[%s12037_s21 + $0x150] sm:$0xf0]  ;;  %v11604_v36 = vpop.eup %11603  ;;  %v12405_v39 = vadd.f32 1.0, %v11602_v22  ;;  %v9008_v28 = vor.u32 %v12387_v40, %v12390_v44  ;;  %v8144_v29 = vor.u32 %v12410_v37, %v12413_v50  ;;  %v12466_v10 = vld [vmem:[%s12037_s21 + $0xc4] sm:$0xf] }
  0xe6   : > { %v721_v32 = vsel %vm12374_vm13, %v12293_v13, %v717_v11  ;;  %v7808_v13 = vor.u32 %v12339_v2, %v12342_v3  ;;  %v12441_v61 = vadd.f32 1.0, %v11604_v36  ;;  %v7760_v62 = vor.u32 %v12398_v24, %v12401_v45  ;;  %v12497_v22 = vld [vmem:[%s12037_s21 + $0x3f0] sm:$0xf0]  ;;  %v11036_v15 = vld [vmem:[%s12037_s21 + $0xa24] sm:$0xf] }
  0xe7   : > { %v726_v16 = vsel %vm723_vm14, %v725_v27, %v721_v32  ;;  %v736_v47 = vsel %vm735_vm0, %v12305_v33, %v732_v23  ;;  %11609 = vrcp.f32 %v12405_v39  ;;  %v752_v3 = vand.u32 2147483647, %v12336_v0  ;;  %v10724_v45 = vld [vmem:[%s12037_s21 + $0x64] sm:$0xf]  ;;  %v8477_v50 = vld [vmem:[%s12037_s21 + $0x6f0] sm:$0xf0] }
  0xe8   : > { %v12415_v43 = vpack.c.bf16 %v726_v16, %v726_v16  ;;  %5570 = vmatpush.bf16.msra.mxu0 %v7904_v46  ;;  %v741_v31 = vsel %vm738_vm1, %v740_v38, %v736_v47  ;;  %v12437_v46 = vpop.eup %11605  ;;  %v8576_v7 = vor.u32 %v12424_v53, %v12427_v54  ;;  %v767_v12 = vand.u32 2147483647, %v12347_v8  ;;  %v8525_v47 = vld [vmem:[%s12037_s21 + $0x750] sm:$0xf0]  ;;  %v10928_v37 = vld [vmem:[%s12037_s21 + $0x6c4] sm:$0xf] }
  0xe9   : > { %5583 = vmatpush.bf16.msra.mxu1 %v8288_v9  ;;  %v12439_v33 = vpack.c.bf16 %v741_v31, %v741_v31  ;;  %v12452_v9 = vld [vmem:[%s12037_s21 + $0xab0] sm:$0xf0]  ;;  %v12454_v1 = vpop.eup %11607  ;;  %v744_v2 = vmul.f32 %v12437_v46, %v12336_v0  ;;  %v769_v14 = vand.u32 2147483648, %v12347_v8  ;;  %11611 = vrcp.f32 %v12441_v61 }
  0xea   : > { %5499 = vmatmul.bf16.vlgmr.msra.gmra.mxu2 %v12415_v43  ;;  %v759_v11 = vmul.f32 %v12454_v1, %v12347_v8  ;;  %vm748_vm2 = vweird.f32 %v12336_v0  ;;  %vm749_vm3 = vweird.f32 %v12437_v46  ;;  %vm763_vm4 = vweird.f32 %v12347_v8 }
  0xeb   : > { %5595 = vmatpush.bf16.msra.mxu2 %v8720_v51  ;;  %5512 = vmatmul.bf16.vlgmr.msra.gmra.mxu3 %v12439_v33  ;;  %v745_v35 = vsub.f32 1.0, %v744_v2  ;;  %v8960_v51 = vor.u32 %v12449_v30, %v12452_v9  ;;  %vm764_vm5 = vweird.f32 %v12454_v1  ;;  %v784_v57 = vand.u32 2147483648, %v12405_v39  ;;  %vm12515_vm7 = vmor %vm748_vm2, %vm749_vm3  ;;  %v11276_v30 = vld [vmem:[%s12037_s21 + $0x11a4] sm:$0xf]  ;;  %v9869_v9 = vld [vmem:[%s12037_s21 + $0x11d0] sm:$0xf0] }
  0xec   : > { %5571 = vmatpush.bf16.msra.mxu0 %v7856_v5  ;;  %5608 = vmatpush.bf16.msra.mxu3 %v9104_v55  ;;  %v760_v56 = vsub.f32 1.0, %v759_v11  ;;  %v12494_v5 = vld [vmem:[%s12037_s21 + $0x3c4] sm:$0xf]  ;;  %vm12502_vm6 = vcmp.eq.f32.partialorder %v752_v3, 8.507059e+37  ;;  %v755_v63 = vor.u32 1.1754944e-38, %v754_v4  ;;  %v7712_v6 = vor.u32 %v12466_v10, %v12478_v34  ;;  %vm12531_vm9 = vmor %vm763_vm4, %vm764_vm5 }
  0xed   : > { %5584 = vmatpush.bf16.msra.mxu1 %v8240_v19  ;;  %v12499_v41 = vpop.eup %11609  ;;  %v746_v42 = vmul.f32 %v12437_v46, %v745_v35  ;;  %vm12520_vm8 = vcmp.eq.f32.partialorder %v767_v12, 8.507059e+37  ;;  %v770_v32 = vor.u32 1.1754944e-38, %v769_v14  ;;  %vm778_vm10 = vweird.f32 %v12405_v39  ;;  %v10820_v11 = vld [vmem:[%s12037_s21 + $0x364] sm:$0xf]  ;;  %v8045_v12 = vld [vmem:[%s12037_s21 + $0x390] sm:$0xf0] }
  0xee   : > { %v761_v26 = vmul.f32 %v12454_v1, %v760_v56  ;;  %v774_v48 = vmul.f32 %v12499_v41, %v12405_v39  ;;  %v8096_v23 = vor.u32 %v12494_v5, %v12497_v22  ;;  %vm779_vm11 = vweird.f32 %v12499_v41  ;;  %v8861_v34 = vld [vmem:[%s12037_s21 + $0x9f0] sm:$0xf0]  ;;  %v10712_v5 = vld [vmem:[%s12037_s21 + $0x4] sm:$0xf] }
  0xef   : > { %5596 = vmatpush.bf16.msra.mxu2 %v8672_v20  ;;  %v747_v58 = vadd.f32 %v12437_v46, %v746_v42  ;;  %v782_v20 = vand.u32 2147483647, %v12405_v39  ;;  %v12542_v36 = vpop.eup %11611  ;;  %v785_v38 = vor.u32 1.1754944e-38, %v784_v57  ;;  %vm793_vm12 = vweird.f32 %v12441_v61  ;;  %vm12578_vm13 = vmor %vm778_vm10, %vm779_vm11  ;;  %v7613_v22 = vld [vmem:[%s12037_s21 + $0x30] sm:$0xf0] }
  0xf0   : > { %5572 = vmatpush.bf16.msra.mxu0 %v7808_v13  ;;  %5609 = vmatpush.bf16.msra.mxu3 %v9056_v21  ;;  %v762_v8 = vadd.f32 %v12454_v1, %v761_v26  ;;  %v775_v16 = vsub.f32 1.0, %v774_v48  ;;  %v789_v52 = vmul.f32 %v12542_v36, %v12441_v61  ;;  %v797_v59 = vand.u32 2147483647, %v12441_v61  ;;  %v10940_v21 = vld [vmem:[%s12037_s21 + $0x724] sm:$0xf] }
  0xf1   : > { %5585 = vmatpush.bf16.msra.mxu1 %v8192_v17  ;;  %v751_v13 = vsel %vm12515_vm7, %v12437_v46, %v747_v58  ;;  %v799_v2 = vand.u32 2147483648, %v12441_v61  ;;  %vm794_vm14 = vweird.f32 %v12542_v36  ;;  %vm12594_vm15 = vcmp.eq.f32.partialorder %v782_v20, 8.507059e+37  ;;  %v10808_v42 = vld [vmem:[%s12037_s21 + $0x304] sm:$0xf]  ;;  %v7997_v55 = vld [vmem:[%s12037_s21 + $0x330] sm:$0xf0] }
  0xf2   : > { %v756_v17 = vsel %vm12502_vm6, %v755_v63, %v751_v13  ;;  %v766_v31 = vsel %vm12531_vm9, %v12454_v1, %v762_v8  ;;  %v776_v46 = vmul.f32 %v12499_v41, %v775_v16  ;;  %v790_v24 = vsub.f32 1.0, %v789_v52  ;;  %vm12614_vm0 = vmor %vm793_vm12, %vm794_vm14  ;;  %v11180_v63 = vld [vmem:[%s12037_s21 + $0xea4] sm:$0xf]  ;;  %v9485_v26 = vld [vmem:[%s12037_s21 + $0xed0] sm:$0xf0] }
  0xf3   : > { %5597 = vmatpush.bf16.msra.mxu2 %v8624_v25  ;;  %v12570_v25 = vpack.c.bf16 %v756_v17, %v756_v17  ;;  %v771_v3 = vsel %vm12520_vm8, %v770_v32, %v766_v31  ;;  %v8528_v44 = vor.u32 %v10940_v21, %v8525_v47  ;;  %v800_v14 = vor.u32 1.1754944e-38, %v799_v2  ;;  %v10916_v32 = vld [vmem:[%s12037_s21 + $0x664] sm:$0xf]  ;;  %v8429_v48 = vld [vmem:[%s12037_s21 + $0x690] sm:$0xf0] }
  0xf4   : > { %5573 = vmatpush.bf16.msra.mxu0 %v7760_v62  ;;  %5610 = vmatpush.bf16.msra.mxu3 %v9008_v28  ;;  %v7661_v62 = vld [vmem:[%s12037_s21 + $0x90] sm:$0xf0]  ;;  %v12591_v39 = vpack.c.bf16 %v771_v3, %v771_v3  ;;  %v777_v4 = vadd.f32 %v12499_v41, %v776_v46  ;;  %v791_v40 = vmul.f32 %v12542_v36, %v790_v24  ;;  %vm12624_vm1 = vcmp.eq.f32.partialorder %v797_v59, 8.507059e+37  ;;  %v11012_v8 = vld [vmem:[%s12037_s21 + $0x964] sm:$0xf] }
  0xf5   : > { %5586 = vmatpush.bf16.msra.mxu1 %v8144_v29  ;;  %5525 = vmatmul.bf16.vlgmr.msrb.gmra.mxu0 %v12570_v25  ;;  %v8912_v53 = vor.u32 %v11036_v15, %v8909_v18  ;;  %v7664_v54 = vor.u32 %v10724_v45, %v7661_v62  ;;  %v8048_v57 = vor.u32 %v10820_v11, %v8045_v12  ;;  %v8813_v16 = vld [vmem:[%s12037_s21 + $0x990] sm:$0xf0]  ;;  %v11264_v59 = vld [vmem:[%s12037_s21 + $0x1144] sm:$0xf] }
  0xf6   : > { %v781_v28 = vsel %vm12578_vm13, %v12499_v41, %v777_v4  ;;  %5538 = vmatmul.bf16.vlgmr.msrb.gmra.mxu1 %v12591_v39  ;;  %v792_v35 = vadd.f32 %v12542_v36, %v791_v40  ;;  %v8480_v19 = vor.u32 %v10928_v37, %v8477_v50  ;;  %v7616_v27 = vor.u32 %v10712_v5, %v7613_v22  ;;  %v9437_v52 = vld [vmem:[%s12037_s21 + $0xe70] sm:$0xf0]  ;;  %v10904_v47 = vld [vmem:[%s12037_s21 + $0x604] sm:$0xf] }
  0xf7   : > { %5598 = vmatpush.bf16.msra.mxu2 %v8576_v7  ;;  %v11024_v7 = vld [vmem:[%s12037_s21 + $0x9c4] sm:$0xf]  ;;  %v786_v61 = vsel %vm12594_vm15, %v785_v38, %v781_v28  ;;  %v8000_v20 = vor.u32 %v10808_v42, %v7997_v55  ;;  %v8432_v13 = vor.u32 %v10916_v32, %v8429_v48  ;;  %v9821_v21 = vld [vmem:[%s12037_s21 + $0x1170] sm:$0xf0]  ;;  %v8816_v31 = vor.u32 %v11012_v8, %v8813_v16 }
  0xf8   : > { %5574 = vmatpush.bf16.msra.mxu0 %v7712_v6  ;;  %5611 = vmatpush.bf16.msra.mxu3 %v8960_v51  ;;  %v12633_v41 = vpack.c.bf16 %v786_v61, %v786_v61  ;;  %v796_v6 = vsel %vm12614_vm0, %v12542_v36, %v792_v35  ;;  %v8864_v0 = vor.u32 %v11024_v7, %v8861_v34  ;;  %v11168_v38 = vld [vmem:[%s12037_s21 + $0xe44] sm:$0xf]  ;;  %v8381_v17 = vld [vmem:[%s12037_s21 + $0x630] sm:$0xf0] }
  0xf9   : > { %5587 = vmatpush.bf16.msra.mxu1 %v8096_v23  ;;  %v801_v51 = vsel %vm12624_vm1, %v800_v14, %v796_v6  ;;  %v9488_v23 = vor.u32 %v11180_v63, %v9485_v26  ;;  %v9872_v36 = vor.u32 %v11276_v30, %v9869_v9  ;;  %v11372_v46 = vld [vmem:[%s12037_s21 + $0x14a4] sm:$0xf]  ;;  %v10253_v2 = vld [vmem:[%s12037_s21 + $0x14d0] sm:$0xf0]  ;;  %v9440_v15 = vor.u32 %v11168_v38, %v9437_v52 }
  0xfa   : > { %5551 = vmatmul.bf16.vlgmr.msrb.gmra.mxu2 %v12633_v41  ;;  %v12649_v58 = vpack.c.bf16 %v801_v51, %v801_v51  ;;  %v9824_v18 = vor.u32 %v11264_v59, %v9821_v21  ;;  %v11000_v3 = vld [vmem:[%s12037_s21 + $0x904] sm:$0xf]  ;;  %v8765_v1 = vld [vmem:[%s12037_s21 + $0x930] sm:$0xf0]  ;;  %v8384_v45 = vor.u32 %v10904_v47, %v8381_v17  ;;  %v10256_v11 = vor.u32 %v11372_v46, %v10253_v2 }
  0xfb   : > { %5599 = vmatpush.bf16.msra.mxu2 %v8528_v44  ;;  %v11468_v24 = vld [vmem:[%s12037_s21 + $0x17a4] sm:$0xf]  ;;  %v10637_v62 = vld [vmem:[%s12037_s21 + $0x17d0] sm:$0xf0]  ;;  %v8768_v44 = vor.u32 %v11000_v3, %v8765_v1 }
  0xfc   : > { %5575 = vmatpush.bf16.msra.mxu0 %v7664_v54  ;;  %5612 = vmatpush.bf16.msra.mxu3 %v8912_v53  ;;  %v11156_v4 = vld [vmem:[%s12037_s21 + $0xde4] sm:$0xf]  ;;  %v9389_v10 = vld [vmem:[%s12037_s21 + $0xe10] sm:$0xf0]  ;;  %v10640_v37 = vor.u32 %v11468_v24, %v10637_v62 }
  0xfd   : > { %5588 = vmatpush.bf16.msra.mxu1 %v8048_v57  ;;  %5564 = vmatmul.bf16.vlgmr.msrb.gmra.mxu3 %v12649_v58  ;;  %v11252_v12 = vld [vmem:[%s12037_s21 + $0x10e4] sm:$0xf]  ;;  %v9773_v40 = vld [vmem:[%s12037_s21 + $0x1110] sm:$0xf0]  ;;  %v9392_v50 = vor.u32 %v11156_v4, %v9389_v10 }
  0xfe   : > { %v11360_v28 = vld [vmem:[%s12037_s21 + $0x1444] sm:$0xf]  ;;  %v10205_v29 = vld [vmem:[%s12037_s21 + $0x1470] sm:$0xf0]  ;;  %v9776_v53 = vor.u32 %v11252_v12, %v9773_v40 }
  0xff   : > { %5600 = vmatpush.bf16.msra.mxu2 %v8480_v19  ;;  %v11456_v14 = vld [vmem:[%s12037_s21 + $0x1744] sm:$0xf]  ;;  %v10589_v54 = vld [vmem:[%s12037_s21 + $0x1770] sm:$0xf0]  ;;  %v10208_v56 = vor.u32 %v11360_v28, %v10205_v29  ;;  %v7955_v29 = vld [vmem:[%s12037_s21 + $0x2a8] sm:$0xf] }
 0x100   : > { %5576 = vmatpush.bf16.msra.mxu0 %v7616_v27  ;;  %5613 = vmatpush.bf16.msra.mxu3 %v8864_v0  ;;  %v11144_v7 = vld [vmem:[%s12037_s21 + $0xd84] sm:$0xf]  ;;  %v9341_v34 = vld [vmem:[%s12037_s21 + $0xdb0] sm:$0xf0]  ;;  %v10592_v57 = vor.u32 %v11456_v14, %v10589_v54  ;;  %v10803_v14 = vld [vmem:[%s12037_s21 + $0x2d4] sm:$0xf0] }
 0x101   : > { %5589 = vmatpush.bf16.msra.mxu1 %v8000_v20  ;;  %v11240_v61 = vld [vmem:[%s12037_s21 + $0x1084] sm:$0xf]  ;;  %v9725_v35 = vld [vmem:[%s12037_s21 + $0x10b0] sm:$0xf0]  ;;  %v9344_v5 = vor.u32 %v11144_v7, %v9341_v34  ;;  %v8339_v54 = vld [vmem:[%s12037_s21 + $0x5a8] sm:$0xf] }
 0x102   : > { %v11348_v22 = vld [vmem:[%s12037_s21 + $0x13e4] sm:$0xf]  ;;  %v10157_v42 = vld [vmem:[%s12037_s21 + $0x1410] sm:$0xf0]  ;;  %v9728_v63 = vor.u32 %v11240_v61, %v9725_v35  ;;  %v10899_v7 = vld [vmem:[%s12037_s21 + $0x5d4] sm:$0xf0] }
 0x103   : > { %5601 = vmatpush.bf16.msra.mxu2 %v8432_v13  ;;  %v11444_v55 = vld [vmem:[%s12037_s21 + $0x16e4] sm:$0xf]  ;;  %v10541_v6 = vld [vmem:[%s12037_s21 + $0x1710] sm:$0xf0]  ;;  %v10160_v51 = vor.u32 %v11348_v22, %v10157_v42 }
 0x104   : > { %5621 = vmatpush.bf16.msrb.mxu0 %v9488_v23  ;;  %5614 = vmatpush.bf16.msra.mxu3 %v8816_v31  ;;  %v11132_v19 = vld [vmem:[%s12037_s21 + $0xd24] sm:$0xf]  ;;  %v9293_v26 = vld [vmem:[%s12037_s21 + $0xd50] sm:$0xf0]  ;;  %v10544_v27 = vor.u32 %v11444_v55, %v10541_v6  ;;  %v8340_v55 = vor.u32 %v10899_v7, %v8339_v54  ;;  %v10791_v6 = vld [vmem:[%s12037_s21 + $0x274] sm:$0xf0] }
 0x105   : > { %5634 = vmatpush.bf16.msrb.mxu1 %v9872_v36  ;;  %5577 = vmatmul.bf16.vlgmr.msra.gmra.mxu0 %v12319_v49  ;;  %v11228_v30 = vld [vmem:[%s12037_s21 + $0x1024] sm:$0xf]  ;;  %v9677_v9 = vld [vmem:[%s12037_s21 + $0x1050] sm:$0xf0]  ;;  %v9296_v32 = vor.u32 %v11132_v19, %v9293_v26  ;;  %v8291_v26 = vld [vmem:[%s12037_s21 + $0x548] sm:$0xf] }
 0x106   : > { %5590 = vmatmul.bf16.vlgmr.msra.gmra.mxu1 %v12333_v60  ;;  %v11336_v48 = vld [vmem:[%s12037_s21 + $0x1384] sm:$0xf]  ;;  %v10109_v0 = vld [vmem:[%s12037_s21 + $0x13b0] sm:$0xf0]  ;;  %v9680_v23 = vor.u32 %v11228_v30, %v9677_v9  ;;  %v10887_v30 = vld [vmem:[%s12037_s21 + $0x574] sm:$0xf0] }
 0x107   : > { %5602 = vmatpush.bf16.msra.mxu2 %v8384_v45  ;;  %v11432_v20 = vld [vmem:[%s12037_s21 + $0x1684] sm:$0xf]  ;;  %v10493_v36 = vld [vmem:[%s12037_s21 + $0x16b0] sm:$0xf0]  ;;  %v10112_v52 = vor.u32 %v11336_v48, %v10109_v0  ;;  %v10851_v54 = vld [vmem:[%s12037_s21 + $0x454] sm:$0xf0] }
 0x108   : > { %5622 = vmatpush.bf16.msrb.mxu0 %v9440_v15  ;;  %5615 = vmatpush.bf16.msra.mxu3 %v8768_v44  ;;  %v11120_v8 = vld [vmem:[%s12037_s21 + $0xcc4] sm:$0xf]  ;;  %v9245_v16 = vld [vmem:[%s12037_s21 + $0xcf0] sm:$0xf0]  ;;  %v10496_v59 = vor.u32 %v11432_v20, %v10493_v36  ;;  %v8723_v20 = vld [vmem:[%s12037_s21 + $0x8a8] sm:$0xf] }
 0x109   : > { %5635 = vmatpush.bf16.msrb.mxu1 %v9824_v18  ;;  %v11216_v38 = vld [vmem:[%s12037_s21 + $0xfc4] sm:$0xf]  ;;  %v9629_v13 = vld [vmem:[%s12037_s21 + $0xff0] sm:$0xf0]  ;;  %v9248_v21 = vor.u32 %v11120_v8, %v9245_v16  ;;  %v9107_v36 = vld [vmem:[%s12037_s21 + $0xba8] sm:$0xf]  ;;  %v8292_v8 = vor.u32 %v10887_v30, %v8291_v26 }
 0x10a   : > { %5603 = vmatmul.bf16.vlgmr.msra.gmra.mxu2 %v12415_v43  ;;  %v11324_v47 = vld [vmem:[%s12037_s21 + $0x1324] sm:$0xf]  ;;  %v10061_v17 = vld [vmem:[%s12037_s21 + $0x1350] sm:$0xf0]  ;;  %v9632_v46 = vor.u32 %v11216_v38, %v9629_v13  ;;  %v11091_v16 = vld [vmem:[%s12037_s21 + $0xbd4] sm:$0xf0] }
 0x10b   : > { %5647 = vmatpush.bf16.msrb.mxu2 %v10256_v11  ;;  %v11420_v31 = vld [vmem:[%s12037_s21 + $0x1624] sm:$0xf]  ;;  %v10445_v2 = vld [vmem:[%s12037_s21 + $0x1650] sm:$0xf0]  ;;  %v10064_v24 = vor.u32 %v11324_v47, %v10061_v17  ;;  %v7859_v38 = vld [vmem:[%s12037_s21 + $0x1e8] sm:$0xf] }
 0x10c   : > { %5660 = vmatpush.bf16.msrb.mxu3 %v10640_v37  ;;  %5623 = vmatpush.bf16.msrb.mxu0 %v9392_v50  ;;  %v11108_v15 = vld [vmem:[%s12037_s21 + $0xc64] sm:$0xf]  ;;  %v9197_v18 = vld [vmem:[%s12037_s21 + $0xc90] sm:$0xf0]  ;;  %v10448_v62 = vor.u32 %v11420_v31, %v10445_v2  ;;  %v10779_v13 = vld [vmem:[%s12037_s21 + $0x214] sm:$0xf0]  ;;  %v9108_v31 = vor.u32 %v11091_v16, %v9107_v36 }
 0x10d   : > { %5636 = vmatpush.bf16.msrb.mxu1 %v9776_v53  ;;  %5616 = vmatmul.bf16.vlgmr.msra.gmra.mxu3 %v12439_v33  ;;  %v11204_v3 = vld [vmem:[%s12037_s21 + $0xf64] sm:$0xf]  ;;  %v9581_v1 = vld [vmem:[%s12037_s21 + $0xf90] sm:$0xf0]  ;;  %v9200_v4 = vor.u32 %v11108_v15, %v9197_v18  ;;  %v8675_v2 = vld [vmem:[%s12037_s21 + $0x848] sm:$0xf] }
 0x10e   : > { %v11312_v45 = vld [vmem:[%s12037_s21 + $0x12c4] sm:$0xf]  ;;  %v10013_v10 = vld [vmem:[%s12037_s21 + $0x12f0] sm:$0xf0]  ;;  %v9584_v40 = vor.u32 %v11204_v3, %v9581_v1  ;;  %v10983_v15 = vld [vmem:[%s12037_s21 + $0x874] sm:$0xf0] }
 0x10f   : > { %5648 = vmatpush.bf16.msrb.mxu2 %v10208_v56  ;;  %v11408_v11 = vld [vmem:[%s12037_s21 + $0x15c4] sm:$0xf]  ;;  %v10397_v12 = vld [vmem:[%s12037_s21 + $0x15f0] sm:$0xf0]  ;;  %v10016_v53 = vor.u32 %v11312_v45, %v10013_v10  ;;  %v9059_v18 = vld [vmem:[%s12037_s21 + $0xb48] sm:$0xf]  ;;  %v8676_v10 = vor.u32 %v10983_v15, %v8675_v2 }
 0x110   : > { %5661 = vmatpush.bf16.msrb.mxu3 %v10592_v57  ;;  %5624 = vmatpush.bf16.msrb.mxu0 %v9344_v5  ;;  %v11096_v44 = vld [vmem:[%s12037_s21 + $0xc04] sm:$0xf]  ;;  %v9149_v37 = vld [vmem:[%s12037_s21 + $0xc30] sm:$0xf0]  ;;  %v10400_v34 = vor.u32 %v11408_v11, %v10397_v12  ;;  %v7956_v5 = vor.u32 %v10803_v14, %v7955_v29  ;;  %v11079_v1 = vld [vmem:[%s12037_s21 + $0xb74] sm:$0xf0] }
 0x111   : > { %5637 = vmatpush.bf16.msrb.mxu1 %v9728_v63  ;;  %v11192_v50 = vld [vmem:[%s12037_s21 + $0xf04] sm:$0xf]  ;;  %v9533_v28 = vld [vmem:[%s12037_s21 + $0xf30] sm:$0xf0]  ;;  %v9152_v61 = vor.u32 %v11096_v44, %v9149_v37  ;;  %v7907_v63 = vld [vmem:[%s12037_s21 + $0x248] sm:$0xf]  ;;  %v9060_v11 = vor.u32 %v11079_v1, %v9059_v18 }
 0x112   : > { %v11300_v35 = vld [vmem:[%s12037_s21 + $0x1264] sm:$0xf]  ;;  %v9965_v56 = vld [vmem:[%s12037_s21 + $0x1290] sm:$0xf0]  ;;  %v9536_v57 = vor.u32 %v11192_v50, %v9533_v28  ;;  %v7908_v0 = vor.u32 %v10791_v6, %v7907_v63  ;;  %v10767_v45 = vld [vmem:[%s12037_s21 + $0x1b4] sm:$0xf0] }
 0x113   : > { %5649 = vmatpush.bf16.msrb.mxu2 %v10160_v51  ;;  %v11396_v22 = vld [vmem:[%s12037_s21 + $0x1564] sm:$0xf]  ;;  %v10349_v42 = vld [vmem:[%s12037_s21 + $0x1590] sm:$0xf0]  ;;  %v9968_v19 = vor.u32 %v11300_v35, %v9965_v56  ;;  %v10971_v44 = vld [vmem:[%s12037_s21 + $0x814] sm:$0xf0] }
 0x114   : > { %5662 = vmatpush.bf16.msrb.mxu3 %v10544_v27  ;;  %5625 = vmatpush.bf16.msrb.mxu0 %v9296_v32  ;;  %v11288_v9 = vld [vmem:[%s12037_s21 + $0x1204] sm:$0xf]  ;;  %v10352_v51 = vor.u32 %v11396_v22, %v10349_v42  ;;  %v9917_v27 = vld [vmem:[%s12037_s21 + $0x1230] sm:$0xf0]  ;;  %v9011_v37 = vld [vmem:[%s12037_s21 + $0xae8] sm:$0xf] }
 0x115   : > { %5638 = vmatpush.bf16.msrb.mxu1 %v9680_v23  ;;  %v11384_v32 = vld [vmem:[%s12037_s21 + $0x1504] sm:$0xf]  ;;  %v10301_v48 = vld [vmem:[%s12037_s21 + $0x1530] sm:$0xf0]  ;;  %v10995_v23 = vld [vmem:[%s12037_s21 + $0x8d4] sm:$0xf0] }
 0x116   : > { %v10304_v47 = vor.u32 %v11384_v32, %v10301_v48  ;;  %v8724_v17 = vor.u32 %v10995_v23, %v8723_v20  ;;  %v11067_v28 = vld [vmem:[%s12037_s21 + $0xb14] sm:$0xf0]  ;;  %v7763_v29 = vld [vmem:[%s12037_s21 + $0x128] sm:$0xf] }
 0x117   : > { %5650 = vmatpush.bf16.msrb.mxu2 %v10112_v52  ;;  %v9920_v52 = vor.u32 %v11288_v9, %v9917_v27  ;;  %v10755_v14 = vld [vmem:[%s12037_s21 + $0x154] sm:$0xf0]  ;;  %v8579_v35 = vld [vmem:[%s12037_s21 + $0x788] sm:$0xf] }
 0x118   : > { %5663 = vmatpush.bf16.msrb.mxu3 %v10496_v59  ;;  %5626 = vmatpush.bf16.msrb.mxu0 %v9248_v21  ;;  %v8243_v59 = vld [vmem:[%s12037_s21 + $0x4e8] sm:$0xf]  ;;  %v10875_v21 = vld [vmem:[%s12037_s21 + $0x514] sm:$0xf0] }
 0x119   : > { %5639 = vmatpush.bf16.msrb.mxu1 %v9632_v46  ;;  %v7860_v46 = vor.u32 %v10779_v13, %v7859_v38  ;;  %v8244_v3 = vor.u32 %v10875_v21, %v8243_v59  ;;  %v10959_v56 = vld [vmem:[%s12037_s21 + $0x7b4] sm:$0xf0]  ;;  %v7715_v42 = vld [vmem:[%s12037_s21 + $0xc8] sm:$0xf] }
 0x11a   : > { %v11055_v22 = vld [vmem:[%s12037_s21 + $0xab4] sm:$0xf0]  ;;  %v8099_v63 = vld [vmem:[%s12037_s21 + $0x3c8] sm:$0xf] }
 0x11b   : > { %5651 = vmatpush.bf16.msrb.mxu2 %v10064_v24  ;;  %v7811_v24 = vld [vmem:[%s12037_s21 + $0x188] sm:$0xf]  ;;  %v10839_v6 = vld [vmem:[%s12037_s21 + $0x3f4] sm:$0xf0] }
 0x11c   : > { %5664 = vmatpush.bf16.msrb.mxu3 %v10448_v62  ;;  %5627 = vmatpush.bf16.msrb.mxu0 %v9200_v4  ;;  %v8195_v62 = vld [vmem:[%s12037_s21 + $0x488] sm:$0xf]  ;;  %v10863_v4 = vld [vmem:[%s12037_s21 + $0x4b4] sm:$0xf0]  ;;  %v7812_v12 = vor.u32 %v10767_v45, %v7811_v24  ;;  %v8100_v32 = vor.u32 %v10839_v6, %v8099_v63 }
 0x11d   : > { %5640 = vmatpush.bf16.msrb.mxu1 %v9584_v40  ;;  %v8627_v40 = vld [vmem:[%s12037_s21 + $0x7e8] sm:$0xf]  ;;  %v8196_v50 = vor.u32 %v10863_v4, %v8195_v62  ;;  %v11043_v48 = vld [vmem:[%s12037_s21 + $0xa54] sm:$0xf0] }
 0x11e   : > { %v8628_v7 = vor.u32 %v10971_v44, %v8627_v40  ;;  %v8531_v9 = vld [vmem:[%s12037_s21 + $0x728] sm:$0xf]  ;;  %v10731_v20 = vld [vmem:[%s12037_s21 + $0x94] sm:$0xf0] }
 0x11f   : > { %5652 = vmatpush.bf16.msrb.mxu2 %v10016_v53  ;;  %v8147_v53 = vld [vmem:[%s12037_s21 + $0x428] sm:$0xf]  ;;  %v10827_v36 = vld [vmem:[%s12037_s21 + $0x394] sm:$0xf0] }
 0x120   : > { %5665 = vmatpush.bf16.msrb.mxu3 %v10400_v34  ;;  %5628 = vmatpush.bf16.msrb.mxu0 %v9152_v61  ;;  %v9012_v34 = vor.u32 %v11067_v28, %v9011_v37  ;;  %v7764_v61 = vor.u32 %v10755_v14, %v7763_v29  ;;  %v8915_v27 = vld [vmem:[%s12037_s21 + $0xa28] sm:$0xf]  ;;  %v11031_v21 = vld [vmem:[%s12037_s21 + $0x9f4] sm:$0xf0] }
 0x121   : > { %5641 = vmatpush.bf16.msrb.mxu1 %v9536_v57  ;;  %v8963_v57 = vld [vmem:[%s12037_s21 + $0xa88] sm:$0xf]  ;;  %v8916_v38 = vor.u32 %v11043_v48, %v8915_v27  ;;  %v10815_v2 = vld [vmem:[%s12037_s21 + $0x334] sm:$0xf0] }
 0x122   : > { %v8964_v26 = vor.u32 %v11055_v22, %v8963_v57  ;;  %v8051_v23 = vld [vmem:[%s12037_s21 + $0x368] sm:$0xf]  ;;  %v11187_v18 = vld [vmem:[%s12037_s21 + $0xed4] sm:$0xf0] }
 0x123   : > { %5653 = vmatpush.bf16.msrb.mxu2 %v9968_v19  ;;  %5629 = vmatmul.bf16.vlgmr.msrb.gmra.mxu0 %v12570_v25  ;;  %v8580_v19 = vor.u32 %v10959_v56, %v8579_v35  ;;  %v8483_v16 = vld [vmem:[%s12037_s21 + $0x6c8] sm:$0xf]  ;;  %v11283_v24 = vld [vmem:[%s12037_s21 + $0x11d4] sm:$0xf0] }
 0x124   : > { %5673 = vmatpush.bf16.msra.mxu0 %v7956_v5  ;;  %5666 = vmatpush.bf16.msrb.mxu3 %v10352_v51  ;;  %v8148_v5 = vor.u32 %v10851_v54, %v8147_v53  ;;  %v10947_v51 = vld [vmem:[%s12037_s21 + $0x754] sm:$0xf0]  ;;  %v8867_v59 = vld [vmem:[%s12037_s21 + $0x9c8] sm:$0xf] }
 0x125   : > { %5686 = vmatpush.bf16.msra.mxu1 %v8340_v55  ;;  %v10743_v55 = vld [vmem:[%s12037_s21 + $0xf4] sm:$0xf0]  ;;  %v9491_v15 = vld [vmem:[%s12037_s21 + $0xea8] sm:$0xf]  ;;  %v8868_v45 = vor.u32 %v11031_v21, %v8867_v59 }
 0x126   : > { %5642 = vmatmul.bf16.vlgmr.msrb.gmra.mxu1 %v12591_v39  ;;  %v7716_v30 = vor.u32 %v10743_v55, %v7715_v42  ;;  %v9875_v1 = vld [vmem:[%s12037_s21 + $0x11a8] sm:$0xf]  ;;  %v11019_v44 = vld [vmem:[%s12037_s21 + $0x994] sm:$0xf0] }
 0x127   : > { %5654 = vmatpush.bf16.msrb.mxu2 %v9920_v52  ;;  %v10935_v52 = vld [vmem:[%s12037_s21 + $0x6f4] sm:$0xf0]  ;;  %v8435_v4 = vld [vmem:[%s12037_s21 + $0x668] sm:$0xf]  ;;  %v9876_v37 = vor.u32 %v11283_v24, %v9875_v1 }
 0x128   : > { %5674 = vmatpush.bf16.msra.mxu0 %v7908_v0  ;;  %5667 = vmatpush.bf16.msrb.mxu3 %v10304_v47  ;;  %v7667_v0 = vld [vmem:[%s12037_s21 + $0x68] sm:$0xf]  ;;  %v8052_v47 = vor.u32 %v10827_v36, %v8051_v23  ;;  %v11175_v28 = vld [vmem:[%s12037_s21 + $0xe74] sm:$0xf0] }
 0x129   : > { %5687 = vmatpush.bf16.msra.mxu1 %v8292_v8  ;;  %v8532_v8 = vor.u32 %v10947_v51, %v8531_v9  ;;  %v7668_v13 = vor.u32 %v10731_v20, %v7667_v0  ;;  %v8819_v40 = vld [vmem:[%s12037_s21 + $0x968] sm:$0xf]  ;;  %v11271_v53 = vld [vmem:[%s12037_s21 + $0x1174] sm:$0xf0] }
 0x12a   : > { %5655 = vmatmul.bf16.vlgmr.msrb.gmra.mxu2 %v12633_v41  ;;  %v9827_v14 = vld [vmem:[%s12037_s21 + $0x1148] sm:$0xf]  ;;  %v11007_v35 = vld [vmem:[%s12037_s21 + $0x934] sm:$0xf0] }
 0x12b   : > { %5699 = vmatpush.bf16.msra.mxu2 %v8724_v17  ;;  %5668 = vmatmul.bf16.vlgmr.msrb.gmra.mxu3 %v12649_v58  ;;  %v7619_v17 = vld [vmem:[%s12037_s21 + $0x8] sm:$0xf]  ;;  %v9828_v42 = vor.u32 %v11271_v53, %v9827_v14  ;;  %v11475_v55 = vld [vmem:[%s12037_s21 + $0x17d4] sm:$0xf0] }
 0x12c   : > { %5712 = vmatpush.bf16.msra.mxu3 %v9108_v31  ;;  %5675 = vmatpush.bf16.msra.mxu0 %v7860_v46  ;;  %v10719_v31 = vld [vmem:[%s12037_s21 + $0x34] sm:$0xf0]  ;;  %v8003_v46 = vld [vmem:[%s12037_s21 + $0x308] sm:$0xf] }
 0x12d   : > { %5688 = vmatpush.bf16.msra.mxu1 %v8244_v3  ;;  %v8484_v3 = vor.u32 %v10935_v52, %v8483_v16  ;;  %v7620_v62 = vor.u32 %v10719_v31, %v7619_v17  ;;  %v8387_v54 = vld [vmem:[%s12037_s21 + $0x608] sm:$0xf]  ;;  %v11163_v6 = vld [vmem:[%s12037_s21 + $0xe14] sm:$0xf0] }
 0x12e   : > { %v10259_v57 = vld [vmem:[%s12037_s21 + $0x14a8] sm:$0xf]  ;;  %v11367_v0 = vld [vmem:[%s12037_s21 + $0x1474] sm:$0xf0] }
 0x12f   : > { %5700 = vmatpush.bf16.msra.mxu2 %v8676_v10  ;;  %v10923_v10 = vld [vmem:[%s12037_s21 + $0x694] sm:$0xf0]  ;;  %v10643_v22 = vld [vmem:[%s12037_s21 + $0x17a8] sm:$0xf] }
 0x130   : > { %5713 = vmatpush.bf16.msra.mxu3 %v9060_v11  ;;  %5676 = vmatpush.bf16.msra.mxu0 %v7812_v12  ;;  %v8004_v11 = vor.u32 %v10815_v2, %v8003_v46  ;;  %v9492_v12 = vor.u32 %v11187_v18, %v9491_v15  ;;  %v8436_v29 = vor.u32 %v10923_v10, %v8435_v4  ;;  %v9395_v63 = vld [vmem:[%s12037_s21 + $0xde8] sm:$0xf]  ;;  %v11463_v36 = vld [vmem:[%s12037_s21 + $0x1774] sm:$0xf0] }
 0x131   : > { %5689 = vmatpush.bf16.msra.mxu1 %v8196_v50  ;;  %v9443_v50 = vld [vmem:[%s12037_s21 + $0xe48] sm:$0xf]  ;;  %v10644_v27 = vor.u32 %v11475_v55, %v10643_v22  ;;  %v11151_v16 = vld [vmem:[%s12037_s21 + $0xdb4] sm:$0xf0] }
 0x132   : > { %v9444_v56 = vor.u32 %v11175_v28, %v9443_v50  ;;  %v10211_v48 = vld [vmem:[%s12037_s21 + $0x1448] sm:$0xf]  ;;  %v11355_v17 = vld [vmem:[%s12037_s21 + $0x1414] sm:$0xf0] }
 0x133   : > { %5701 = vmatpush.bf16.msra.mxu2 %v8628_v7  ;;  %v8820_v7 = vor.u32 %v11019_v44, %v8819_v40  ;;  %v10595_v20 = vld [vmem:[%s12037_s21 + $0x1748] sm:$0xf]  ;;  %v10212_v52 = vor.u32 %v11367_v0, %v10211_v48  ;;  %v11451_v2 = vld [vmem:[%s12037_s21 + $0x1714] sm:$0xf0]  ;;  %v10797_v0 = vld [vmem:[%s12037_s21 + $0x2ac] sm:$0xf] }
 0x134   : > { %5714 = vmatpush.bf16.msra.mxu3 %v9012_v34  ;;  %5677 = vmatpush.bf16.msra.mxu0 %v7764_v61  ;;  %v10911_v34 = vld [vmem:[%s12037_s21 + $0x634] sm:$0xf0]  ;;  %v8771_v61 = vld [vmem:[%s12037_s21 + $0x908] sm:$0xf]  ;;  %v10596_v59 = vor.u32 %v11463_v36, %v10595_v20  ;;  %v7957_v20 = vld [vmem:[%s12037_s21 + $0x2d8] sm:$0xf0] }
 0x135   : > { %5690 = vmatpush.bf16.msra.mxu1 %v8148_v5  ;;  %v11379_v5 = vld [vmem:[%s12037_s21 + $0x14d4] sm:$0xf0]  ;;  %v8772_v9 = vor.u32 %v11007_v35, %v8771_v61  ;;  %v10547_v31 = vld [vmem:[%s12037_s21 + $0x16e8] sm:$0xf]  ;;  %v10893_v36 = vld [vmem:[%s12037_s21 + $0x5ac] sm:$0xf] }
 0x136   : > { %v10260_v51 = vor.u32 %v11379_v5, %v10259_v57  ;;  %v9299_v15 = vld [vmem:[%s12037_s21 + $0xd28] sm:$0xf]  ;;  %v11139_v18 = vld [vmem:[%s12037_s21 + $0xd54] sm:$0xf0] }
 0x137   : > { %5702 = vmatpush.bf16.msra.mxu2 %v8580_v19  ;;  %v8388_v19 = vor.u32 %v10911_v34, %v8387_v54  ;;  %v11235_v1 = vld [vmem:[%s12037_s21 + $0x1054] sm:$0xf0]  ;;  %v10115_v4 = vld [vmem:[%s12037_s21 + $0x1388] sm:$0xf] }
 0x138   : > { %5715 = vmatpush.bf16.msra.mxu3 %v8964_v26  ;;  %5678 = vmatpush.bf16.msra.mxu0 %v7716_v30  ;;  %v9779_v26 = vld [vmem:[%s12037_s21 + $0x10e8] sm:$0xf]  ;;  %v11259_v30 = vld [vmem:[%s12037_s21 + $0x1114] sm:$0xf0] }
 0x139   : > { %5691 = vmatpush.bf16.msra.mxu1 %v8100_v32  ;;  %v9396_v32 = vor.u32 %v11163_v6, %v9395_v63  ;;  %v9780_v23 = vor.u32 %v11259_v30, %v9779_v26  ;;  %v11343_v10 = vld [vmem:[%s12037_s21 + $0x13b4] sm:$0xf0]  ;;  %v9251_v44 = vld [vmem:[%s12037_s21 + $0xcc8] sm:$0xf] }
 0x13a   : > { %v11439_v40 = vld [vmem:[%s12037_s21 + $0x16b4] sm:$0xf0]  ;;  %v9635_v50 = vld [vmem:[%s12037_s21 + $0xfc8] sm:$0xf] }
 0x13b   : > { %5703 = vmatpush.bf16.msra.mxu2 %v8532_v8  ;;  %v9347_v8 = vld [vmem:[%s12037_s21 + $0xd88] sm:$0xf]  ;;  %v11223_v28 = vld [vmem:[%s12037_s21 + $0xff4] sm:$0xf0] }
 0x13c   : > { %5716 = vmatpush.bf16.msra.mxu3 %v8916_v38  ;;  %5679 = vmatpush.bf16.msra.mxu0 %v7668_v13  ;;  %v9731_v38 = vld [vmem:[%s12037_s21 + $0x1088] sm:$0xf]  ;;  %v11247_v13 = vld [vmem:[%s12037_s21 + $0x10b4] sm:$0xf0]  ;;  %v9348_v21 = vor.u32 %v11151_v16, %v9347_v8  ;;  %v9636_v61 = vor.u32 %v11223_v28, %v9635_v50  ;;  %v8341_v8 = vld [vmem:[%s12037_s21 + $0x5d8] sm:$0xf0] }
 0x13d   : > { %5692 = vmatpush.bf16.msra.mxu1 %v8052_v47  ;;  %v10163_v47 = vld [vmem:[%s12037_s21 + $0x13e8] sm:$0xf]  ;;  %v9732_v46 = vor.u32 %v11247_v13, %v9731_v38  ;;  %v11427_v35 = vld [vmem:[%s12037_s21 + $0x1654] sm:$0xf0]  ;;  %v10773_v50 = vld [vmem:[%s12037_s21 + $0x1ec] sm:$0xf] }
 0x13e   : > { %v10164_v24 = vor.u32 %v11355_v17, %v10163_v47  ;;  %v10067_v54 = vld [vmem:[%s12037_s21 + $0x1328] sm:$0xf]  ;;  %v11115_v57 = vld [vmem:[%s12037_s21 + $0xc94] sm:$0xf0]  ;;  %v7861_v28 = vld [vmem:[%s12037_s21 + $0x218] sm:$0xf0] }
 0x13f   : > { %5704 = vmatpush.bf16.msra.mxu2 %v8484_v3  ;;  %v9683_v3 = vld [vmem:[%s12037_s21 + $0x1028] sm:$0xf]  ;;  %v11211_v22 = vld [vmem:[%s12037_s21 + $0xf94] sm:$0xf0] }
 0x140   : > { %5717 = vmatpush.bf16.msra.mxu3 %v8868_v45  ;;  %5680 = vmatpush.bf16.msra.mxu0 %v7620_v62  ;;  %v10548_v45 = vor.u32 %v11451_v2, %v10547_v31  ;;  %v9300_v62 = vor.u32 %v11139_v18, %v9299_v15  ;;  %v10451_v34 = vld [vmem:[%s12037_s21 + $0x1628] sm:$0xf]  ;;  %v11415_v30 = vld [vmem:[%s12037_s21 + $0x15f4] sm:$0xf0]  ;;  %v8344_v31 = vor.u32 %v10893_v36, %v8341_v8  ;;  %v7909_v2 = vld [vmem:[%s12037_s21 + $0x278] sm:$0xf0] }
 0x141   : > { %5693 = vmatpush.bf16.msra.mxu1 %v8004_v11  ;;  %v10499_v11 = vld [vmem:[%s12037_s21 + $0x1688] sm:$0xf]  ;;  %v10452_v63 = vor.u32 %v11427_v35, %v10451_v34  ;;  %v11199_v48 = vld [vmem:[%s12037_s21 + $0xf34] sm:$0xf0]  ;;  %v10881_v15 = vld [vmem:[%s12037_s21 + $0x54c] sm:$0xf] }
 0x142   : > { %v10500_v14 = vor.u32 %v11439_v40, %v10499_v11  ;;  %v9587_v5 = vld [vmem:[%s12037_s21 + $0xf68] sm:$0xf]  ;;  %v11403_v17 = vld [vmem:[%s12037_s21 + $0x1594] sm:$0xf0]  ;;  %v11085_v40 = vld [vmem:[%s12037_s21 + $0xbac] sm:$0xf] }
 0x143   : > { %5705 = vmatpush.bf16.msra.mxu2 %v8436_v29  ;;  %5681 = vmatmul.bf16.vlgmr.msra.gmra.mxu0 %v12319_v49  ;;  %v10116_v29 = vor.u32 %v11343_v10, %v10115_v4  ;;  %v10019_v55 = vld [vmem:[%s12037_s21 + $0x12c8] sm:$0xf]  ;;  %v11391_v4 = vld [vmem:[%s12037_s21 + $0x1534] sm:$0xf0]  ;;  %v10989_v10 = vld [vmem:[%s12037_s21 + $0x8ac] sm:$0xf] }
 0x144   : > { %5725 = vmatpush.bf16.msrb.mxu0 %v9492_v12  ;;  %5718 = vmatpush.bf16.msra.mxu3 %v8820_v7  ;;  %v9684_v12 = vor.u32 %v11235_v1, %v9683_v3  ;;  %v11331_v7 = vld [vmem:[%s12037_s21 + $0x1354] sm:$0xf0]  ;;  %v10403_v26 = vld [vmem:[%s12037_s21 + $0x15c8] sm:$0xf]  ;;  %v8293_v3 = vld [vmem:[%s12037_s21 + $0x578] sm:$0xf0] }
 0x145   : > { %5738 = vmatpush.bf16.msrb.mxu1 %v9876_v37  ;;  %v11127_v37 = vld [vmem:[%s12037_s21 + $0xcf4] sm:$0xf0]  ;;  %v10404_v16 = vor.u32 %v11415_v30, %v10403_v26  ;;  %v9971_v13 = vld [vmem:[%s12037_s21 + $0x1268] sm:$0xf]  ;;  %v8197_v26 = vld [vmem:[%s12037_s21 + $0x4b8] sm:$0xf0] }
 0x146   : > { %5694 = vmatmul.bf16.vlgmr.msra.gmra.mxu1 %v12333_v60  ;;  %v9252_v53 = vor.u32 %v11127_v37, %v9251_v44  ;;  %v10355_v47 = vld [vmem:[%s12037_s21 + $0x1568] sm:$0xf]  ;;  %v9109_v44 = vld [vmem:[%s12037_s21 + $0xbd8] sm:$0xf0]  ;;  %v8296_v37 = vor.u32 %v10881_v15, %v8293_v3  ;;  %v10737_v3 = vld [vmem:[%s12037_s21 + $0xcc] sm:$0xf] }
 0x147   : > { %5706 = vmatpush.bf16.msra.mxu2 %v8388_v19  ;;  %v11319_v19 = vld [vmem:[%s12037_s21 + $0x12f4] sm:$0xf0]  ;;  %v9923_v1 = vld [vmem:[%s12037_s21 + $0x1208] sm:$0xf]  ;;  %v9112_v35 = vor.u32 %v11085_v40, %v9109_v44  ;;  %v9013_v8 = vld [vmem:[%s12037_s21 + $0xb18] sm:$0xf0] }
 0x148   : > { %5726 = vmatpush.bf16.msrb.mxu0 %v9444_v56  ;;  %5719 = vmatpush.bf16.msra.mxu3 %v8772_v9  ;;  %v9203_v56 = vld [vmem:[%s12037_s21 + $0xc68] sm:$0xf]  ;;  %v9588_v9 = vor.u32 %v11211_v22, %v9587_v5  ;;  %v8677_v5 = vld [vmem:[%s12037_s21 + $0x878] sm:$0xf0]  ;;  %v11073_v22 = vld [vmem:[%s12037_s21 + $0xb4c] sm:$0xf] }
 0x149   : > { %5739 = vmatpush.bf16.msrb.mxu1 %v9828_v42  ;;  %v10068_v42 = vor.u32 %v11331_v7, %v10067_v54  ;;  %v9204_v6 = vor.u32 %v11115_v57, %v9203_v56  ;;  %v8245_v54 = vld [vmem:[%s12037_s21 + $0x518] sm:$0xf0]  ;;  %v7864_v56 = vor.u32 %v10773_v50, %v7861_v28  ;;  %v10941_v40 = vld [vmem:[%s12037_s21 + $0x72c] sm:$0xf] }
 0x14a   : > { %5707 = vmatmul.bf16.vlgmr.msra.gmra.mxu2 %v12415_v43  ;;  %v8533_v44 = vld [vmem:[%s12037_s21 + $0x758] sm:$0xf0] }
 0x14b   : > { %5751 = vmatpush.bf16.msrb.mxu2 %v10260_v51  ;;  %5720 = vmatmul.bf16.vlgmr.msra.gmra.mxu3 %v12439_v33  ;;  %v9155_v51 = vld [vmem:[%s12037_s21 + $0xc08] sm:$0xf]  ;;  %v8917_v28 = vld [vmem:[%s12037_s21 + $0xa58] sm:$0xf0] }
 0x14c   : > { %5764 = vmatpush.bf16.msrb.mxu3 %v10644_v27  ;;  %5727 = vmatpush.bf16.msrb.mxu0 %v9396_v32  ;;  %v11103_v27 = vld [vmem:[%s12037_s21 + $0xc34] sm:$0xf0]  ;;  %v9539_v32 = vld [vmem:[%s12037_s21 + $0xf08] sm:$0xf] }
 0x14d   : > { %5740 = vmatpush.bf16.msrb.mxu1 %v9780_v23  ;;  %v10020_v23 = vor.u32 %v11319_v19, %v10019_v55  ;;  %v9156_v38 = vor.u32 %v11103_v27, %v9155_v51  ;;  %v9061_v55 = vld [vmem:[%s12037_s21 + $0xb78] sm:$0xf0]  ;;  %v10857_v19 = vld [vmem:[%s12037_s21 + $0x48c] sm:$0xf] }
 0x14e   : > { %v8200_v36 = vor.u32 %v10857_v19, %v8197_v26  ;;  %v7621_v19 = vld [vmem:[%s12037_s21 + $0x38] sm:$0xf0]  ;;  %v10809_v26 = vld [vmem:[%s12037_s21 + $0x30c] sm:$0xf] }
 0x14f   : > { %5752 = vmatpush.bf16.msrb.mxu2 %v10212_v52  ;;  %v11307_v52 = vld [vmem:[%s12037_s21 + $0x1294] sm:$0xf0] }
 0x150   : > { %5765 = vmatpush.bf16.msrb.mxu3 %v10596_v59  ;;  %5728 = vmatpush.bf16.msrb.mxu0 %v9348_v21  ;;  %v9540_v59 = vor.u32 %v11199_v48, %v9539_v32  ;;  %v7960_v21 = vor.u32 %v10797_v0, %v7957_v20  ;;  %v9972_v18 = vor.u32 %v11307_v52, %v9971_v13  ;;  %v10965_v0 = vld [vmem:[%s12037_s21 + $0x7ec] sm:$0xf]  ;;  %v8629_v20 = vld [vmem:[%s12037_s21 + $0x818] sm:$0xf0] }
 0x151   : > { %5741 = vmatpush.bf16.msrb.mxu1 %v9732_v46  ;;  %v10785_v46 = vld [vmem:[%s12037_s21 + $0x24c] sm:$0xf]  ;;  %v9064_v32 = vor.u32 %v11073_v22, %v9061_v55 }
 0x152   : > { %v7912_v11 = vor.u32 %v10785_v46, %v7909_v2  ;;  %v10845_v52 = vld [vmem:[%s12037_s21 + $0x42c] sm:$0xf]  ;;  %v8581_v46 = vld [vmem:[%s12037_s21 + $0x7b8] sm:$0xf0] }
 0x153   : > { %5753 = vmatpush.bf16.msrb.mxu2 %v10164_v24  ;;  %v11295_v24 = vld [vmem:[%s12037_s21 + $0x1234] sm:$0xf0]  ;;  %v11049_v2 = vld [vmem:[%s12037_s21 + $0xa8c] sm:$0xf] }
 0x154   : > { %5766 = vmatpush.bf16.msrb.mxu3 %v10548_v45  ;;  %5729 = vmatpush.bf16.msrb.mxu0 %v9300_v62  ;;  %v10356_v45 = vor.u32 %v11403_v17, %v10355_v47  ;;  %v10307_v62 = vld [vmem:[%s12037_s21 + $0x1508] sm:$0xf]  ;;  %v11025_v22 = vld [vmem:[%s12037_s21 + $0x9cc] sm:$0xf] }
 0x155   : > { %5742 = vmatpush.bf16.msrb.mxu1 %v9684_v12  ;;  %v8725_v12 = vld [vmem:[%s12037_s21 + $0x8d8] sm:$0xf0]  ;;  %v10308_v7 = vor.u32 %v11391_v4, %v10307_v62 }
 0x156   : > { %v8728_v34 = vor.u32 %v10989_v10, %v8725_v12 }
 0x157   : > { %5754 = vmatpush.bf16.msrb.mxu2 %v10116_v29  ;;  %v12880_v29 = vld [vmem:[%s12877_s29] sm:$0xff] }
 0x158   : > { %5767 = vmatpush.bf16.msrb.mxu3 %v10500_v14  ;;  %5730 = vmatpush.bf16.msrb.mxu0 %v9252_v53  ;;  %v9924_v14 = vor.u32 %v11295_v24, %v9923_v1  ;;  %v10869_v53 = vld [vmem:[%s12037_s21 + $0x4ec] sm:$0xf]  ;;  %v1601_v57 = vperm.slane %v12880_v29, 0  ;;  %v7717_v1 = vld [vmem:[%s12037_s21 + $0xf8] sm:$0xf0] }
 0x159   : > { %5743 = vmatpush.bf16.msrb.mxu1 %v9636_v61  ;;  %v10977_v61 = vld [vmem:[%s12037_s21 + $0x84c] sm:$0xf]  ;;  %v7720_v12 = vor.u32 %v10737_v3, %v7717_v1 }
 0x15a   : > { %v10833_v24 = vld [vmem:[%s12037_s21 + $0x3cc] sm:$0xf] }
 0x15b   : > { %5755 = vmatpush.bf16.msrb.mxu2 %v10068_v42  ;;  %v8248_v42 = vor.u32 %v10869_v53, %v8245_v54  ;;  %v7669_v53 = vld [vmem:[%s12037_s21 + $0x98] sm:$0xf0]  ;;  %v10821_v54 = vld [vmem:[%s12037_s21 + $0x36c] sm:$0xf] }
 0x15c   : > { %5768 = vmatpush.bf16.msrb.mxu3 %v10452_v63  ;;  %5731 = vmatpush.bf16.msrb.mxu0 %v9204_v6  ;;  %v10761_v63 = vld [vmem:[%s12037_s21 + $0x18c] sm:$0xf]  ;;  %v7813_v6 = vld [vmem:[%s12037_s21 + $0x1b8] sm:$0xf0] }
 0x15d   : > { %5744 = vmatpush.bf16.msrb.mxu1 %v9588_v9  ;;  %v8680_v9 = vor.u32 %v10977_v61, %v8677_v5  ;;  %v7816_v48 = vor.u32 %v10761_v63, %v7813_v6  ;;  %v10929_v61 = vld [vmem:[%s12037_s21 + $0x6cc] sm:$0xf]  ;;  %v8485_v5 = vld [vmem:[%s12037_s21 + $0x6f8] sm:$0xf0] }
 0x15e   : > { %v10713_v6 = vld [vmem:[%s12037_s21 + $0xc] sm:$0xf] }
 0x15f   : > { %5756 = vmatpush.bf16.msrb.mxu2 %v10020_v23  ;;  %v11061_v23 = vld [vmem:[%s12037_s21 + $0xaec] sm:$0xf] }
 0x160   : > { %5769 = vmatpush.bf16.msrb.mxu3 %v10404_v16  ;;  %5732 = vmatpush.bf16.msrb.mxu0 %v9156_v38  ;;  %v5474_v30 = vpop.f32.mrf.mxu0  ;;  %v10749_v16 = vld [vmem:[%s12037_s21 + $0x12c] sm:$0xf]  ;;  %v7765_v38 = vld [vmem:[%s12037_s21 + $0x158] sm:$0xf0]  ;;  %v9016_v47 = vor.u32 %v11061_v23, %v9013_v8 }
 0x161   : > { %5745 = vmatpush.bf16.msrb.mxu1 %v9540_v59  ;;  %v5475_v51 = vadd.f32 %v5474_v30, %v1601_v57  ;;  %v5487_v27 = vpop.f32.mrf.mxu1  ;;  %v8149_v59 = vld [vmem:[%s12037_s21 + $0x458] sm:$0xf0]  ;;  %v7768_v17 = vor.u32 %v10749_v16, %v7765_v38  ;;  %v10917_v8 = vld [vmem:[%s12037_s21 + $0x66c] sm:$0xf] }
 0x162   : > { %v8152_v15 = vor.u32 %v10845_v52, %v8149_v59  ;;  %v8437_v16 = vld [vmem:[%s12037_s21 + $0x698] sm:$0xf0]  ;;  %v11013_v52 = vld [vmem:[%s12037_s21 + $0x96c] sm:$0xf] }
 0x163   : > { %5757 = vmatpush.bf16.msrb.mxu2 %v9972_v18  ;;  %5733 = vmatmul.bf16.vlgmr.msrb.gmra.mxu0 %v12570_v25  ;;  %v5488_v13 = vadd.f32 %v5487_v27, %v5475_v51  ;;  %v8965_v18 = vld [vmem:[%s12037_s21 + $0xab8] sm:$0xf0]  ;;  %v11181_v51 = vld [vmem:[%s12037_s21 + $0xeac] sm:$0xf] }
 0x164   : > { %5777 = vmatpush.bf16.msra.mxu0 %v7960_v21  ;;  %5770 = vmatpush.bf16.msrb.mxu3 %v10356_v45  ;;  %v8632_v21 = vor.u32 %v10965_v0, %v8629_v20  ;;  %v8101_v45 = vld [vmem:[%s12037_s21 + $0x3f8] sm:$0xf0]  ;;  %v11277_v0 = vld [vmem:[%s12037_s21 + $0x11ac] sm:$0xf] }
 0x165   : > { %5790 = vmatpush.bf16.msra.mxu1 %v8344_v31  ;;  %v10953_v31 = vld [vmem:[%s12037_s21 + $0x78c] sm:$0xf]  ;;  %v8104_v50 = vor.u32 %v10833_v24, %v8101_v45  ;;  %v9493_v27 = vld [vmem:[%s12037_s21 + $0xed8] sm:$0xf0] }
 0x166   : > { %5746 = vmatmul.bf16.vlgmr.msrb.gmra.mxu1 %v12591_v39  ;;  %v8584_v4 = vor.u32 %v10953_v31, %v8581_v46  ;;  %v9877_v20 = vld [vmem:[%s12037_s21 + $0x11d8] sm:$0xf0]  ;;  %v8440_v46 = vor.u32 %v10917_v8, %v8437_v16 }
 0x167   : > { %5758 = vmatpush.bf16.msrb.mxu2 %v9924_v14  ;;  %v10725_v14 = vld [vmem:[%s12037_s21 + $0x6c] sm:$0xf]  ;;  %v8821_v59 = vld [vmem:[%s12037_s21 + $0x998] sm:$0xf0] }
 0x168   : > { %5778 = vmatpush.bf16.msra.mxu0 %v7912_v11  ;;  %5771 = vmatpush.bf16.msrb.mxu3 %v10308_v7  ;;  %v5476_v62 = vpop.f32.mrf.mxu0  ;;  %v8968_v11 = vor.u32 %v11049_v2, %v8965_v18  ;;  %v8053_v7 = vld [vmem:[%s12037_s21 + $0x398] sm:$0xf0]  ;;  %v7672_v57 = vor.u32 %v10725_v14, %v7669_v53  ;;  %v11265_v2 = vld [vmem:[%s12037_s21 + $0x114c] sm:$0xf]  ;;  %v8824_v45 = vor.u32 %v11013_v52, %v8821_v59 }
 0x169   : > { %5791 = vmatpush.bf16.msra.mxu1 %v8296_v37  ;;  %v5489_v10 = vpop.f32.mrf.mxu1  ;;  %v11037_v37 = vld [vmem:[%s12037_s21 + $0xa2c] sm:$0xf]  ;;  %v8056_v63 = vor.u32 %v10821_v54, %v8053_v7  ;;  %v8389_v62 = vld [vmem:[%s12037_s21 + $0x638] sm:$0xf0] }
 0x16a   : > { %5759 = vmatmul.bf16.vlgmr.msrb.gmra.mxu2 %v12633_v41  ;;  %v10905_v18 = vld [vmem:[%s12037_s21 + $0x60c] sm:$0xf]  ;;  %v8773_v10 = vld [vmem:[%s12037_s21 + $0x938] sm:$0xf0] }
 0x16b   : > { %5803 = vmatpush.bf16.msra.mxu2 %v8728_v34  ;;  %5772 = vmatmul.bf16.vlgmr.msrb.gmra.mxu3 %v12649_v58  ;;  %v8536_v34 = vor.u32 %v10941_v40, %v8533_v44  ;;  %v10261_v40 = vld [vmem:[%s12037_s21 + $0x14d8] sm:$0xf0]  ;;  %v11469_v44 = vld [vmem:[%s12037_s21 + $0x17ac] sm:$0xf]  ;;  %v8392_v7 = vor.u32 %v10905_v18, %v8389_v62 }
 0x16c   : > { %5816 = vmatpush.bf16.msra.mxu3 %v9112_v35  ;;  %5779 = vmatpush.bf16.msra.mxu0 %v7864_v56  ;;  %v8920_v56 = vor.u32 %v11037_v37, %v8917_v28  ;;  %v10645_v14 = vld [vmem:[%s12037_s21 + $0x17d8] sm:$0xf0]  ;;  %v11157_v53 = vld [vmem:[%s12037_s21 + $0xdec] sm:$0xf] }
 0x16d   : > { %5792 = vmatpush.bf16.msra.mxu1 %v8248_v42  ;;  %v5500_v35 = vpop.f32.mrf.mxu2  ;;  %v8869_v42 = vld [vmem:[%s12037_s21 + $0x9f8] sm:$0xf0]  ;;  %v11337_v18 = vld [vmem:[%s12037_s21 + $0x138c] sm:$0xf] }
 0x16e   : > { %v5501_v55 = vadd.f32 %v5500_v35, %v5488_v13  ;;  %v5513_v30 = vpop.f32.mrf.mxu3  ;;  %v8872_v23 = vor.u32 %v11025_v22, %v8869_v42  ;;  %v9496_v13 = vor.u32 %v11181_v51, %v9493_v27  ;;  %v9397_v54 = vld [vmem:[%s12037_s21 + $0xe18] sm:$0xf0]  ;;  %v11361_v22 = vld [vmem:[%s12037_s21 + $0x144c] sm:$0xf] }
 0x16f   : > { %5804 = vmatpush.bf16.msra.mxu2 %v8680_v9  ;;  %v8005_v9 = vld [vmem:[%s12037_s21 + $0x338] sm:$0xf0] }
 0x170   : > { %5817 = vmatpush.bf16.msra.mxu3 %v9064_v32  ;;  %5780 = vmatpush.bf16.msra.mxu0 %v7816_v48  ;;  %v5514_v32 = vadd.f32 %v5513_v30, %v5501_v55  ;;  %v8488_v48 = vor.u32 %v10929_v61, %v8485_v5  ;;  %v8008_v38 = vor.u32 %v10809_v26, %v8005_v9  ;;  %v9781_v61 = vld [vmem:[%s12037_s21 + $0x1118] sm:$0xf0]  ;;  %v11457_v55 = vld [vmem:[%s12037_s21 + $0x174c] sm:$0xf] }
 0x171   : > { %5793 = vmatpush.bf16.msra.mxu1 %v8200_v36  ;;  %v7624_v36 = vor.u32 %v10713_v6, %v7621_v19  ;;  %v9400_v5 = vor.u32 %v11157_v53, %v9397_v54  ;;  %v10213_v42 = vld [vmem:[%s12037_s21 + $0x1478] sm:$0xf0]  ;;  %v11145_v19 = vld [vmem:[%s12037_s21 + $0xd8c] sm:$0xf] }
 0x172   : > { %v5526_v31 = vpop.f32.mrf.mxu0  ;;  %v10597_v6 = vld [vmem:[%s12037_s21 + $0x1778] sm:$0xf0]  ;;  %v11241_v9 = vld [vmem:[%s12037_s21 + $0x108c] sm:$0xf] }
 0x173   : > { %5805 = vmatpush.bf16.msra.mxu2 %v8632_v21  ;;  %v9880_v21 = vor.u32 %v11277_v0, %v9877_v20  ;;  %v5527_v3 = vadd.f32 %v5526_v31, %v5514_v32  ;;  %v5539_v1 = vpop.f32.mrf.mxu1  ;;  %v9349_v26 = vld [vmem:[%s12037_s21 + $0xdb8] sm:$0xf0]  ;;  %v10216_v32 = vor.u32 %v11361_v22, %v10213_v42  ;;  %v11349_v20 = vld [vmem:[%s12037_s21 + $0x13ec] sm:$0xf] }
 0x174   : > { %5818 = vmatpush.bf16.msra.mxu3 %v9016_v47  ;;  %5781 = vmatpush.bf16.msra.mxu0 %v7768_v17  ;;  %v11169_v47 = vld [vmem:[%s12037_s21 + $0xe4c] sm:$0xf]  ;;  %v9445_v17 = vld [vmem:[%s12037_s21 + $0xe78] sm:$0xf0]  ;;  %v9352_v0 = vor.u32 %v11145_v19, %v9349_v26 }
 0x175   : > { %5794 = vmatpush.bf16.msra.mxu1 %v8152_v15  ;;  %v9829_v15 = vld [vmem:[%s12037_s21 + $0x1178] sm:$0xf0]  ;;  %v5502_v24 = vpop.f32.mrf.mxu2  ;;  %v5540_v37 = vadd.f32 %v5539_v1, %v5527_v3  ;;  %v11433_v1 = vld [vmem:[%s12037_s21 + $0x168c] sm:$0xf] }
 0x176   : > { %v9832_v28 = vor.u32 %v11265_v2, %v9829_v15  ;;  %v9733_v51 = vld [vmem:[%s12037_s21 + $0x10b8] sm:$0xf0]  ;;  %v11325_v53 = vld [vmem:[%s12037_s21 + $0x132c] sm:$0xf] }
 0x177   : > { %5806 = vmatpush.bf16.msra.mxu2 %v8584_v4  ;;  %v11001_v4 = vld [vmem:[%s12037_s21 + $0x90c] sm:$0xf]  ;;  %v9736_v16 = vor.u32 %v11241_v9, %v9733_v51  ;;  %v9301_v52 = vld [vmem:[%s12037_s21 + $0xd58] sm:$0xf0] }
 0x178   : > { %5819 = vmatpush.bf16.msra.mxu3 %v8968_v11  ;;  %5782 = vmatpush.bf16.msra.mxu0 %v7720_v12  ;;  %v9448_v11 = vor.u32 %v11169_v47, %v9445_v17  ;;  %v11373_v12 = vld [vmem:[%s12037_s21 + $0x14ac] sm:$0xf]  ;;  %v8776_v35 = vor.u32 %v11001_v4, %v8773_v10  ;;  %v9685_v47 = vld [vmem:[%s12037_s21 + $0x1058] sm:$0xf0]  ;;  %v1602_v17 = vperm.slane %v12880_v29, 1 }
 0x179   : > { %5795 = vmatpush.bf16.msra.mxu1 %v8104_v50  ;;  %v5515_v50 = vpop.f32.mrf.mxu3  ;;  %v10117_v3 = vld [vmem:[%s12037_s21 + $0x13b8] sm:$0xf0]  ;;  %v11121_v4 = vld [vmem:[%s12037_s21 + $0xccc] sm:$0xf] }
 0x17a   : > { %v5528_v30 = vpop.f32.mrf.mxu0  ;;  %v10501_v62 = vld [vmem:[%s12037_s21 + $0x16b8] sm:$0xf0]  ;;  %v10120_v50 = vor.u32 %v11337_v18, %v10117_v3  ;;  %v11205_v22 = vld [vmem:[%s12037_s21 + $0xf6c] sm:$0xf] }
 0x17b   : > { %5807 = vmatpush.bf16.msra.mxu2 %v8536_v34  ;;  %v11253_v34 = vld [vmem:[%s12037_s21 + $0x10ec] sm:$0xf]  ;;  %v5541_v27 = vpop.f32.mrf.mxu1  ;;  %v9253_v10 = vld [vmem:[%s12037_s21 + $0xcf8] sm:$0xf0] }
 0x17c   : > { %5820 = vmatpush.bf16.msra.mxu3 %v8920_v56  ;;  %5783 = vmatpush.bf16.msra.mxu0 %v7672_v57  ;;  %v10264_v56 = vor.u32 %v11373_v12, %v10261_v40  ;;  %v10648_v57 = vor.u32 %v11469_v44, %v10645_v14  ;;  %v11217_v12 = vld [vmem:[%s12037_s21 + $0xfcc] sm:$0xf]  ;;  %v9637_v40 = vld [vmem:[%s12037_s21 + $0xff8] sm:$0xf0]  ;;  %v9256_v14 = vor.u32 %v11121_v4, %v9253_v10  ;;  %v8299_v10 = vld [vmem:[%s12037_s21 + $0x550] sm:$0xf] }
 0x17d   : > { %5796 = vmatpush.bf16.msra.mxu1 %v8056_v63  ;;  %v9784_v63 = vor.u32 %v11253_v34, %v9781_v61  ;;  %v5552_v8 = vpop.f32.mrf.mxu2  ;;  %v10069_v54 = vld [vmem:[%s12037_s21 + $0x1358] sm:$0xf0]  ;;  %v11409_v9 = vld [vmem:[%s12037_s21 + $0x15cc] sm:$0xf] }
 0x17e   : > { %v5553_v59 = vadd.f32 %v5552_v8, %v5540_v37  ;;  %v9589_v42 = vld [vmem:[%s12037_s21 + $0xf98] sm:$0xf0]  ;;  %v10804_v8 = vld [vmem:[%s12037_s21 + $0x2dc] sm:$0xf0] }
 0x17f   : > { %5808 = vmatpush.bf16.msra.mxu2 %v8488_v48  ;;  %v10600_v48 = vor.u32 %v11457_v55, %v10597_v6  ;;  %v10072_v55 = vor.u32 %v11325_v53, %v10069_v54  ;;  %v10021_v30 = vld [vmem:[%s12037_s21 + $0x12f8] sm:$0xf0]  ;;  %v9592_v27 = vor.u32 %v11205_v22, %v9589_v42  ;;  %v8731_v54 = vld [vmem:[%s12037_s21 + $0x8b0] sm:$0xf]  ;;  %v10876_v42 = vld [vmem:[%s12037_s21 + $0x51c] sm:$0xf0] }
 0x180   : > { %5821 = vmatpush.bf16.msra.mxu3 %v8872_v23  ;;  %5784 = vmatpush.bf16.msra.mxu0 %v7624_v36  ;;  %v10165_v23 = vld [vmem:[%s12037_s21 + $0x1418] sm:$0xf0]  ;;  %v11445_v36 = vld [vmem:[%s12037_s21 + $0x16ec] sm:$0xf]  ;;  %v8251_v22 = vld [vmem:[%s12037_s21 + $0x4f0] sm:$0xf] }
 0x181   : > { %5797 = vmatpush.bf16.msra.mxu1 %v8008_v38  ;;  %v10549_v38 = vld [vmem:[%s12037_s21 + $0x1718] sm:$0xf0]  ;;  %v10168_v31 = vor.u32 %v11349_v20, %v10165_v23 }
 0x182   : > { %v10552_v2 = vor.u32 %v11445_v36, %v10549_v38  ;;  %v10405_v51 = vld [vmem:[%s12037_s21 + $0x15f8] sm:$0xf0]  ;;  %v7963_v36 = vld [vmem:[%s12037_s21 + $0x2b0] sm:$0xf] }
 0x183   : > { %5809 = vmatpush.bf16.msra.mxu2 %v8440_v46  ;;  %5785 = vmatmul.bf16.vlgmr.msra.gmra.mxu0 %v12319_v49  ;;  %v5565_v46 = vpop.f32.mrf.mxu3  ;;  %v5591_v37 = vpop.f32.mrf.mxu1  ;;  %v9541_v23 = vld [vmem:[%s12037_s21 + $0xf38] sm:$0xf0] }
 0x184   : > { %5829 = vmatpush.bf16.msrb.mxu0 %v9496_v13  ;;  %5822 = vmatpush.bf16.msra.mxu3 %v8824_v45  ;;  %v11133_v13 = vld [vmem:[%s12037_s21 + $0xd2c] sm:$0xf]  ;;  %v12977_v24 = vadd.f32 %v5565_v46, %v5553_v59  ;;  %v10408_v59 = vor.u32 %v11409_v9, %v10405_v51  ;;  %v10357_v18 = vld [vmem:[%s12037_s21 + $0x1598] sm:$0xf0]  ;;  %v10984_v9 = vld [vmem:[%s12037_s21 + $0x87c] sm:$0xf0] }
 0x185   : > { %5842 = vmatpush.bf16.msrb.mxu1 %v9880_v21  ;;  %v11229_v21 = vld [vmem:[%s12037_s21 + $0x102c] sm:$0xf]  ;;  %v9304_v15 = vor.u32 %v11133_v13, %v9301_v52  ;;  %v5554_v61 = vpop.f32.mrf.mxu2  ;;  %v8347_v13 = vld [vmem:[%s12037_s21 + $0x5b0] sm:$0xf]  ;;  %v10900_v52 = vld [vmem:[%s12037_s21 + $0x5dc] sm:$0xf0] }
 0x186   : > { %5798 = vmatmul.bf16.vlgmr.msra.gmra.mxu1 %v12333_v60  ;;  %v9688_v45 = vor.u32 %v11229_v21, %v9685_v47  ;;  %v11301_v47 = vld [vmem:[%s12037_s21 + $0x126c] sm:$0xf]  ;;  %v9067_v51 = vld [vmem:[%s12037_s21 + $0xb50] sm:$0xf] }
 0x187   : > { %5810 = vmatpush.bf16.msra.mxu2 %v8392_v7  ;;  %v11421_v7 = vld [vmem:[%s12037_s21 + $0x162c] sm:$0xf] }
 0x188   : > { %5830 = vmatpush.bf16.msrb.mxu0 %v9448_v11  ;;  %5823 = vmatpush.bf16.msra.mxu3 %v8776_v35  ;;  %v5578_v11 = vpop.f32.mrf.mxu0  ;;  %v9640_v35 = vor.u32 %v11217_v12, %v9637_v40  ;;  %v11289_v12 = vld [vmem:[%s12037_s21 + $0x120c] sm:$0xf] }
 0x189   : > { %5843 = vmatpush.bf16.msrb.mxu1 %v9832_v28  ;;  %v5579_v44 = vadd.f32 %v5578_v11, %v1602_v17  ;;  %v10504_v28 = vor.u32 %v11433_v1, %v10501_v62  ;;  %v9973_v17 = vld [vmem:[%s12037_s21 + $0x1298] sm:$0xf0]  ;;  %v8348_v1 = vor.u32 %v10900_v52, %v8347_v13  ;;  %v10792_v62 = vld [vmem:[%s12037_s21 + $0x27c] sm:$0xf0]  ;;  %v8635_v13 = vld [vmem:[%s12037_s21 + $0x7f0] sm:$0xf] }
 0x18a   : > { %5811 = vmatmul.bf16.vlgmr.msra.gmra.mxu2 %v12415_v43  ;;  %v9976_v4 = vor.u32 %v11301_v47, %v9973_v17  ;;  %v10888_v11 = vld [vmem:[%s12037_s21 + $0x57c] sm:$0xf0]  ;;  %v7771_v17 = vld [vmem:[%s12037_s21 + $0x130] sm:$0xf] }
 0x18b   : > { %5855 = vmatpush.bf16.msrb.mxu2 %v10264_v56  ;;  %5824 = vmatmul.bf16.vlgmr.msra.gmra.mxu3 %v12439_v33  ;;  %v5592_v34 = vadd.f32 %v5591_v37, %v5579_v44  ;;  %v10453_v56 = vld [vmem:[%s12037_s21 + $0x1658] sm:$0xf0]  ;;  %v5567_v6 = vpop.f32.mrf.mxu3  ;;  %v8300_v61 = vor.u32 %v10888_v11, %v8299_v10  ;;  %v10972_v52 = vld [vmem:[%s12037_s21 + $0x81c] sm:$0xf0]  ;;  %v8971_v11 = vld [vmem:[%s12037_s21 + $0xa90] sm:$0xf] }
 0x18c   : > { %5868 = vmatpush.bf16.msrb.mxu3 %v10648_v57  ;;  %5831 = vmatpush.bf16.msrb.mxu0 %v9400_v5  ;;  %v11109_v57 = vld [vmem:[%s12037_s21 + $0xc6c] sm:$0xf]  ;;  %v9205_v5 = vld [vmem:[%s12037_s21 + $0xc98] sm:$0xf0]  ;;  %v10456_v19 = vor.u32 %v11421_v7, %v10453_v56  ;;  %v10996_v7 = vld [vmem:[%s12037_s21 + $0x8dc] sm:$0xf0] }
 0x18d   : > { %5844 = vmatpush.bf16.msrb.mxu1 %v9784_v63  ;;  %v11313_v63 = vld [vmem:[%s12037_s21 + $0x12cc] sm:$0xf]  ;;  %v9208_v26 = vor.u32 %v11109_v57, %v9205_v5  ;;  %v9925_v37 = vld [vmem:[%s12037_s21 + $0x1238] sm:$0xf0]  ;;  %v7867_v56 = vld [vmem:[%s12037_s21 + $0x1f0] sm:$0xf] }
 0x18e   : > { %v10024_v38 = vor.u32 %v11313_v63, %v10021_v30  ;;  %v10780_v57 = vld [vmem:[%s12037_s21 + $0x21c] sm:$0xf0]  ;;  %v9928_v5 = vor.u32 %v11289_v12, %v9925_v37  ;;  %v8732_v63 = vor.u32 %v10996_v7, %v8731_v54  ;;  %v8683_v30 = vld [vmem:[%s12037_s21 + $0x850] sm:$0xf] }
 0x18f   : > { %5856 = vmatpush.bf16.msrb.mxu2 %v10216_v32  ;;  %v11097_v32 = vld [vmem:[%s12037_s21 + $0xc0c] sm:$0xf]  ;;  %v11068_v47 = vld [vmem:[%s12037_s21 + $0xb1c] sm:$0xf0] }
 0x190   : > { %5869 = vmatpush.bf16.msrb.mxu3 %v10600_v48  ;;  %5832 = vmatpush.bf16.msrb.mxu0 %v9352_v0  ;;  %v9157_v48 = vld [vmem:[%s12037_s21 + $0xc38] sm:$0xf0]  ;;  %v11193_v0 = vld [vmem:[%s12037_s21 + $0xf0c] sm:$0xf]  ;;  %v5580_v20 = vpop.f32.mrf.mxu0  ;;  %v10960_v10 = vld [vmem:[%s12037_s21 + $0x7bc] sm:$0xf0] }
 0x191   : > { %5845 = vmatpush.bf16.msrb.mxu1 %v9736_v16  ;;  %v5593_v16 = vpop.f32.mrf.mxu1  ;;  %v9160_v21 = vor.u32 %v11097_v32, %v9157_v48  ;;  %v9544_v46 = vor.u32 %v11193_v0, %v9541_v23  ;;  %v11080_v32 = vld [vmem:[%s12037_s21 + $0xb7c] sm:$0xf0]  ;;  %v7819_v48 = vld [vmem:[%s12037_s21 + $0x190] sm:$0xf] }
 0x192   : > { %v10768_v0 = vld [vmem:[%s12037_s21 + $0x1bc] sm:$0xf0]  ;;  %v8203_v20 = vld [vmem:[%s12037_s21 + $0x490] sm:$0xf]  ;;  %v9068_v16 = vor.u32 %v11080_v32, %v9067_v51 }
 0x193   : > { %5857 = vmatpush.bf16.msrb.mxu2 %v10168_v31  ;;  %v5604_v31 = vpop.f32.mrf.mxu2  ;;  %v5617_v40 = vpop.f32.mrf.mxu3  ;;  %v10864_v23 = vld [vmem:[%s12037_s21 + $0x4bc] sm:$0xf0] }
 0x194   : > { %5870 = vmatpush.bf16.msrb.mxu3 %v10552_v2  ;;  %5833 = vmatpush.bf16.msrb.mxu0 %v9304_v15  ;;  %v7964_v2 = vor.u32 %v10804_v8, %v7963_v36  ;;  %v11397_v15 = vld [vmem:[%s12037_s21 + $0x156c] sm:$0xf]  ;;  %v5605_v3 = vadd.f32 %v5604_v31, %v5592_v34  ;;  %v9115_v34 = vld [vmem:[%s12037_s21 + $0xbb0] sm:$0xf]  ;;  %v8684_v8 = vor.u32 %v10984_v9, %v8683_v30  ;;  %v10756_v31 = vld [vmem:[%s12037_s21 + $0x15c] sm:$0xf0] }
 0x195   : > { %5846 = vmatpush.bf16.msrb.mxu1 %v9688_v45  ;;  %v7915_v45 = vld [vmem:[%s12037_s21 + $0x250] sm:$0xf]  ;;  %v10360_v44 = vor.u32 %v11397_v15, %v10357_v18  ;;  %v8636_v18 = vor.u32 %v10972_v52, %v8635_v13  ;;  %v10744_v37 = vld [vmem:[%s12037_s21 + $0xfc] sm:$0xf0] }
 0x196   : > { %v7916_v53 = vor.u32 %v10792_v62, %v7915_v45  ;;  %v7772_v62 = vor.u32 %v10756_v31, %v7771_v17  ;;  %v10936_v51 = vld [vmem:[%s12037_s21 + $0x6fc] sm:$0xf0]  ;;  %v9883_v13 = vld [vmem:[%s12037_s21 + $0x11b0] sm:$0xf] }
 0x197   : > { %5858 = vmatpush.bf16.msrb.mxu2 %v10120_v50  ;;  %v11385_v50 = vld [vmem:[%s12037_s21 + $0x150c] sm:$0xf]  ;;  %v11032_v32 = vld [vmem:[%s12037_s21 + $0x9fc] sm:$0xf0]  ;;  %v8443_v17 = vld [vmem:[%s12037_s21 + $0x670] sm:$0xf] }
 0x198   : > { %5871 = vmatpush.bf16.msrb.mxu3 %v10504_v28  ;;  %5834 = vmatpush.bf16.msrb.mxu0 %v9256_v14  ;;  %v10309_v28 = vld [vmem:[%s12037_s21 + $0x1538] sm:$0xf0]  ;;  %v5618_v14 = vadd.f32 %v5617_v40, %v5605_v3  ;;  %v11056_v40 = vld [vmem:[%s12037_s21 + $0xabc] sm:$0xf0] }
 0x199   : > { %5847 = vmatpush.bf16.msrb.mxu1 %v9640_v35  ;;  %v11092_v35 = vld [vmem:[%s12037_s21 + $0xbdc] sm:$0xf0]  ;;  %v8972_v54 = vor.u32 %v11056_v40, %v8971_v11 }
 0x19a   : > { %v11284_v52 = vld [vmem:[%s12037_s21 + $0x11dc] sm:$0xf0] }
 0x19b   : > { %5859 = vmatpush.bf16.msrb.mxu2 %v10072_v55  ;;  %v10312_v55 = vor.u32 %v11385_v50, %v10309_v28  ;;  %v5606_v6 = vpop.f32.mrf.mxu2  ;;  %v5619_v36 = vpop.f32.mrf.mxu3  ;;  %v8107_v28 = vld [vmem:[%s12037_s21 + $0x3d0] sm:$0xf]  ;;  %v10924_v31 = vld [vmem:[%s12037_s21 + $0x69c] sm:$0xf0] }
 0x19c   : > { %5872 = vmatpush.bf16.msrb.mxu3 %v10456_v19  ;;  %5835 = vmatpush.bf16.msrb.mxu0 %v9208_v26  ;;  %v9116_v19 = vor.u32 %v11092_v35, %v9115_v34  ;;  %v7868_v26 = vor.u32 %v10780_v57, %v7867_v56  ;;  %v8539_v34 = vld [vmem:[%s12037_s21 + $0x730] sm:$0xf]  ;;  %v11044_v57 = vld [vmem:[%s12037_s21 + $0xa5c] sm:$0xf0]  ;;  %v8444_v11 = vor.u32 %v10924_v31, %v8443_v17 }
 0x19d   : > { %5848 = vmatpush.bf16.msrb.mxu1 %v9592_v27  ;;  %v8252_v27 = vor.u32 %v10876_v42, %v8251_v22  ;;  %v8923_v35 = vld [vmem:[%s12037_s21 + $0xa30] sm:$0xf]  ;;  %v10732_v22 = vld [vmem:[%s12037_s21 + $0x9c] sm:$0xf0] }
 0x19e   : > { %v8059_v42 = vld [vmem:[%s12037_s21 + $0x370] sm:$0xf]  ;;  %v8924_v30 = vor.u32 %v11044_v57, %v8923_v35  ;;  %v10816_v36 = vld [vmem:[%s12037_s21 + $0x33c] sm:$0xf0] }
 0x19f   : > { %5860 = vmatpush.bf16.msrb.mxu2 %v10024_v38  ;;  %v7820_v38 = vor.u32 %v10768_v0, %v7819_v48  ;;  %v7627_v0 = vld [vmem:[%s12037_s21 + $0x10] sm:$0xf]  ;;  %v11272_v40 = vld [vmem:[%s12037_s21 + $0x117c] sm:$0xf0] }
 0x1a0   : > { %5873 = vmatpush.bf16.msrb.mxu3 %v10408_v59  ;;  %5836 = vmatpush.bf16.msrb.mxu0 %v9160_v21  ;;  %v9019_v59 = vld [vmem:[%s12037_s21 + $0xaf0] sm:$0xf]  ;;  %v8204_v21 = vor.u32 %v10864_v23, %v8203_v20  ;;  %v5630_v15 = vpop.f32.mrf.mxu0  ;;  %v10720_v20 = vld [vmem:[%s12037_s21 + $0x3c] sm:$0xf0] }
 0x1a1   : > { %5849 = vmatpush.bf16.msrb.mxu1 %v9544_v46  ;;  %v8155_v46 = vld [vmem:[%s12037_s21 + $0x430] sm:$0xf]  ;;  %v5631_v3 = vadd.f32 %v5630_v15, %v5618_v14  ;;  %v9020_v45 = vor.u32 %v11068_v47, %v9019_v59  ;;  %v10840_v14 = vld [vmem:[%s12037_s21 + $0x3fc] sm:$0xf0]  ;;  %v7628_v47 = vor.u32 %v10720_v20, %v7627_v0 }
 0x1a2   : > { %v8108_v56 = vor.u32 %v10840_v14, %v8107_v28  ;;  %v8011_v23 = vld [vmem:[%s12037_s21 + $0x310] sm:$0xf]  ;;  %v11008_v14 = vld [vmem:[%s12037_s21 + $0x93c] sm:$0xf0] }
 0x1a3   : > { %5861 = vmatpush.bf16.msrb.mxu2 %v9976_v4  ;;  %5837 = vmatmul.bf16.vlgmr.msrb.gmra.mxu0 %v12570_v25  ;;  %v8587_v4 = vld [vmem:[%s12037_s21 + $0x790] sm:$0xf]  ;;  %v8012_v15 = vor.u32 %v10816_v36, %v8011_v23  ;;  %v11476_v35 = vld [vmem:[%s12037_s21 + $0x17dc] sm:$0xf0] }
 0x1a4   : > { %5881 = vmatpush.bf16.msra.mxu0 %v7964_v2  ;;  %5874 = vmatpush.bf16.msrb.mxu3 %v10360_v44  ;;  %v10852_v2 = vld [vmem:[%s12037_s21 + $0x45c] sm:$0xf0]  ;;  %v7723_v44 = vld [vmem:[%s12037_s21 + $0xd0] sm:$0xf] }
 0x1a5   : > { %5894 = vmatpush.bf16.msra.mxu1 %v8348_v1  ;;  %v5643_v1 = vpop.f32.mrf.mxu1  ;;  %v8156_v12 = vor.u32 %v10852_v2, %v8155_v46  ;;  %v7724_v7 = vor.u32 %v10744_v37, %v7723_v44  ;;  %v8395_v44 = vld [vmem:[%s12037_s21 + $0x610] sm:$0xf]  ;;  %v11164_v57 = vld [vmem:[%s12037_s21 + $0xe1c] sm:$0xf0] }
 0x1a6   : > { %5850 = vmatmul.bf16.vlgmr.msrb.gmra.mxu1 %v12591_v39  ;;  %v5644_v50 = vadd.f32 %v5643_v1, %v5631_v3  ;;  %v8827_v3 = vld [vmem:[%s12037_s21 + $0x970] sm:$0xf]  ;;  %v11020_v1 = vld [vmem:[%s12037_s21 + $0x99c] sm:$0xf0] }
 0x1a7   : > { %5862 = vmatpush.bf16.msrb.mxu2 %v9928_v5  ;;  %v7675_v5 = vld [vmem:[%s12037_s21 + $0x70] sm:$0xf]  ;;  %v8828_v37 = vor.u32 %v11020_v1, %v8827_v3  ;;  %v11152_v20 = vld [vmem:[%s12037_s21 + $0xdbc] sm:$0xf0] }
 0x1a8   : > { %5882 = vmatpush.bf16.msra.mxu0 %v7916_v53  ;;  %5875 = vmatpush.bf16.msrb.mxu3 %v10312_v55  ;;  %v8588_v53 = vor.u32 %v10960_v10, %v8587_v4  ;;  %v10828_v55 = vld [vmem:[%s12037_s21 + $0x39c] sm:$0xf0]  ;;  %v7676_v9 = vor.u32 %v10732_v22, %v7675_v5  ;;  %v8779_v28 = vld [vmem:[%s12037_s21 + $0x910] sm:$0xf] }
 0x1a9   : > { %5895 = vmatpush.bf16.msra.mxu1 %v8300_v61  ;;  %v10948_v61 = vld [vmem:[%s12037_s21 + $0x75c] sm:$0xf0]  ;;  %v8060_v48 = vor.u32 %v10828_v55, %v8059_v42  ;;  %v9787_v22 = vld [vmem:[%s12037_s21 + $0x10f0] sm:$0xf] }
 0x1aa   : > { %5863 = vmatmul.bf16.vlgmr.msrb.gmra.mxu2 %v12633_v41  ;;  %v8540_v6 = vor.u32 %v10948_v61, %v8539_v34  ;;  %v11176_v4 = vld [vmem:[%s12037_s21 + $0xe7c] sm:$0xf0]  ;;  %v10651_v34 = vld [vmem:[%s12037_s21 + $0x17b0] sm:$0xf] }
 0x1ab   : > { %5907 = vmatpush.bf16.msra.mxu2 %v8732_v63  ;;  %5876 = vmatmul.bf16.vlgmr.msrb.gmra.mxu3 %v12649_v58  ;;  %v5632_v63 = vpop.f32.mrf.mxu0  ;;  %v11260_v42 = vld [vmem:[%s12037_s21 + $0x111c] sm:$0xf0]  ;;  %v9355_v0 = vld [vmem:[%s12037_s21 + $0xd90] sm:$0xf] }
 0x1ac   : > { %5920 = vmatpush.bf16.msra.mxu3 %v9116_v19  ;;  %5883 = vmatpush.bf16.msra.mxu0 %v7868_v26  ;;  %v8491_v19 = vld [vmem:[%s12037_s21 + $0x6d0] sm:$0xf]  ;;  %v8780_v63 = vor.u32 %v11008_v14, %v8779_v28  ;;  %v11248_v36 = vld [vmem:[%s12037_s21 + $0x10bc] sm:$0xf0] }
 0x1ad   : > { %5896 = vmatpush.bf16.msra.mxu1 %v8252_v27  ;;  %v5645_v26 = vpop.f32.mrf.mxu1  ;;  %v8875_v27 = vld [vmem:[%s12037_s21 + $0x9d0] sm:$0xf]  ;;  %v5656_v59 = vpop.f32.mrf.mxu2  ;;  %v11452_v17 = vld [vmem:[%s12037_s21 + $0x171c] sm:$0xf0] }
 0x1ae   : > { %v5657_v46 = vadd.f32 %v5656_v59, %v5644_v50  ;;  %v5669_v2 = vpop.f32.mrf.mxu3  ;;  %v10912_v50 = vld [vmem:[%s12037_s21 + $0x63c] sm:$0xf0]  ;;  %v10652_v26 = vor.u32 %v11476_v35, %v10651_v34  ;;  %v9739_v23 = vld [vmem:[%s12037_s21 + $0x1090] sm:$0xf] }
 0x1af   : > { %5908 = vmatpush.bf16.msra.mxu2 %v8684_v8  ;;  %v9499_v8 = vld [vmem:[%s12037_s21 + $0xeb0] sm:$0xf]  ;;  %v8396_v5 = vor.u32 %v10912_v50, %v8395_v44  ;;  %v11356_v59 = vld [vmem:[%s12037_s21 + $0x141c] sm:$0xf0] }
 0x1b0   : > { %5921 = vmatpush.bf16.msra.mxu3 %v9068_v16  ;;  %5884 = vmatpush.bf16.msra.mxu0 %v7820_v38  ;;  %v11188_v16 = vld [vmem:[%s12037_s21 + $0xedc] sm:$0xf0]  ;;  %v8492_v38 = vor.u32 %v10936_v51, %v8491_v19  ;;  %v13078_v10 = vadd.f32 %v5669_v2, %v5657_v46  ;;  %v9307_v31 = vld [vmem:[%s12037_s21 + $0xd30] sm:$0xf] }
 0x1b1   : > { %5897 = vmatpush.bf16.msra.mxu1 %v8204_v21  ;;  %v8876_v21 = vor.u32 %v11032_v32, %v8875_v27  ;;  %v11368_v51 = vld [vmem:[%s12037_s21 + $0x147c] sm:$0xf0]  ;;  %v10603_v27 = vld [vmem:[%s12037_s21 + $0x1750] sm:$0xf]  ;;  %v9788_v32 = vor.u32 %v11260_v42, %v9787_v22 }
 0x1b2   : > { %v11140_v46 = vld [vmem:[%s12037_s21 + $0xd5c] sm:$0xf0]  ;;  %v9643_v14 = vld [vmem:[%s12037_s21 + $0xfd0] sm:$0xf] }
 0x1b3   : > { %5909 = vmatpush.bf16.msra.mxu2 %v8636_v18  ;;  %v9500_v18 = vor.u32 %v11188_v16, %v9499_v8  ;;  %v1603_v16 = vperm.slane %v12880_v29, 2  ;;  %v9691_v29 = vld [vmem:[%s12037_s21 + $0x1030] sm:$0xf]  ;;  %v11236_v2 = vld [vmem:[%s12037_s21 + $0x105c] sm:$0xf0] }
 0x1b4   : > { %5922 = vmatpush.bf16.msra.mxu3 %v9020_v45  ;;  %5885 = vmatpush.bf16.msra.mxu0 %v7772_v62  ;;  %v9884_v45 = vor.u32 %v11284_v52, %v9883_v13  ;;  %v9451_v62 = vld [vmem:[%s12037_s21 + $0xe50] sm:$0xf]  ;;  %v9356_v13 = vor.u32 %v11152_v20, %v9355_v0  ;;  %v11440_v44 = vld [vmem:[%s12037_s21 + $0x16bc] sm:$0xf0] }
 0x1b5   : > { %5898 = vmatpush.bf16.msra.mxu1 %v8156_v12  ;;  %v9835_v12 = vld [vmem:[%s12037_s21 + $0x1150] sm:$0xf]  ;;  %v5658_v55 = vpop.f32.mrf.mxu2  ;;  %v11128_v50 = vld [vmem:[%s12037_s21 + $0xcfc] sm:$0xf0] }
 0x1b6   : > { %v9836_v61 = vor.u32 %v11272_v40, %v9835_v12  ;;  %v5671_v19 = vpop.f32.mrf.mxu3  ;;  %v10171_v52 = vld [vmem:[%s12037_s21 + $0x13f0] sm:$0xf]  ;;  %v9692_v40 = vor.u32 %v11236_v2, %v9691_v29  ;;  %v11332_v35 = vld [vmem:[%s12037_s21 + $0x135c] sm:$0xf0] }
 0x1b7   : > { %5910 = vmatpush.bf16.msra.mxu2 %v8588_v53  ;;  %v9452_v53 = vor.u32 %v11176_v4, %v9451_v62  ;;  %v9308_v62 = vor.u32 %v11140_v46, %v9307_v31  ;;  %v10123_v4 = vld [vmem:[%s12037_s21 + $0x1390] sm:$0xf]  ;;  %v11116_v42 = vld [vmem:[%s12037_s21 + $0xc9c] sm:$0xf0] }
 0x1b8   : > { %5923 = vmatpush.bf16.msra.mxu3 %v8972_v54  ;;  %5886 = vmatpush.bf16.msra.mxu0 %v7724_v7  ;;  %v10267_v54 = vld [vmem:[%s12037_s21 + $0x14b0] sm:$0xf]  ;;  %v11380_v7 = vld [vmem:[%s12037_s21 + $0x14dc] sm:$0xf0] }
 0x1b9   : > { %5899 = vmatpush.bf16.msra.mxu1 %v8108_v56  ;;  %v9403_v56 = vld [vmem:[%s12037_s21 + $0xdf0] sm:$0xf]  ;;  %v11308_v46 = vld [vmem:[%s12037_s21 + $0x129c] sm:$0xf0] }
 0x1ba   : > { %v10507_v12 = vld [vmem:[%s12037_s21 + $0x1690] sm:$0xf] }
 0x1bb   : > { %5911 = vmatpush.bf16.msra.mxu2 %v8540_v6  ;;  %v10268_v6 = vor.u32 %v11380_v7, %v10267_v54  ;;  %v10508_v7 = vor.u32 %v11440_v44, %v10507_v12  ;;  %v9211_v22 = vld [vmem:[%s12037_s21 + $0xc70] sm:$0xf]  ;;  %v8301_v44 = vld [vmem:[%s12037_s21 + $0x580] sm:$0xf0] }
 0x1bc   : > { %5924 = vmatpush.bf16.msra.mxu3 %v8924_v30  ;;  %5887 = vmatpush.bf16.msra.mxu0 %v7676_v9  ;;  %v9404_v30 = vor.u32 %v11164_v57, %v9403_v56  ;;  %v10219_v9 = vld [vmem:[%s12037_s21 + $0x1450] sm:$0xf] }
 0x1bd   : > { %5900 = vmatpush.bf16.msra.mxu1 %v8060_v48  ;;  %v11464_v48 = vld [vmem:[%s12037_s21 + $0x177c] sm:$0xf0]  ;;  %v10220_v8 = vor.u32 %v11368_v51, %v10219_v9  ;;  %v10459_v56 = vld [vmem:[%s12037_s21 + $0x1630] sm:$0xf]  ;;  %v9212_v51 = vor.u32 %v11116_v42, %v9211_v22  ;;  %v10870_v42 = vld [vmem:[%s12037_s21 + $0x4f4] sm:$0xf] }
 0x1be   : > { %v9595_v55 = vld [vmem:[%s12037_s21 + $0xf70] sm:$0xf] }
 0x1bf   : > { %5912 = vmatpush.bf16.msra.mxu2 %v8492_v38  ;;  %v10604_v38 = vor.u32 %v11464_v48, %v10603_v27  ;;  %v11320_v27 = vld [vmem:[%s12037_s21 + $0x12fc] sm:$0xf0]  ;;  %v9163_v20 = vld [vmem:[%s12037_s21 + $0xc10] sm:$0xf] }
 0x1c0   : > { %5925 = vmatpush.bf16.msra.mxu3 %v8876_v21  ;;  %5888 = vmatpush.bf16.msra.mxu0 %v7628_v47  ;;  %v10555_v21 = vld [vmem:[%s12037_s21 + $0x16f0] sm:$0xf]  ;;  %v9740_v47 = vor.u32 %v11248_v36, %v9739_v23  ;;  %v11416_v48 = vld [vmem:[%s12037_s21 + $0x15fc] sm:$0xf0] }
 0x1c1   : > { %5901 = vmatpush.bf16.msra.mxu1 %v8012_v15  ;;  %v5682_v15 = vpop.f32.mrf.mxu0  ;;  %v11104_v23 = vld [vmem:[%s12037_s21 + $0xc3c] sm:$0xf0]  ;;  %v9547_v36 = vld [vmem:[%s12037_s21 + $0xf10] sm:$0xf] }
 0x1c2   : > { %v5683_v3 = vadd.f32 %v5682_v15, %v1603_v16  ;;  %v10798_v16 = vld [vmem:[%s12037_s21 + $0x2b4] sm:$0xf]  ;;  %v9979_v31 = vld [vmem:[%s12037_s21 + $0x1270] sm:$0xf] }
 0x1c3   : > { %5913 = vmatpush.bf16.msra.mxu2 %v8444_v11  ;;  %5889 = vmatmul.bf16.vlgmr.msra.gmra.mxu0 %v12319_v49  ;;  %v5695_v1 = vpop.f32.mrf.mxu1  ;;  %v11344_v11 = vld [vmem:[%s12037_s21 + $0x13bc] sm:$0xf0]  ;;  %v9980_v12 = vor.u32 %v11308_v46, %v9979_v31  ;;  %v10750_v31 = vld [vmem:[%s12037_s21 + $0x134] sm:$0xf]  ;;  %v7773_v46 = vld [vmem:[%s12037_s21 + $0x160] sm:$0xf0] }
 0x1c4   : > { %5933 = vmatpush.bf16.msrb.mxu0 %v9500_v18  ;;  %5926 = vmatpush.bf16.msra.mxu3 %v8828_v37  ;;  %v10172_v18 = vor.u32 %v11356_v59, %v10171_v52  ;;  %v9259_v37 = vld [vmem:[%s12037_s21 + $0xcd0] sm:$0xf]  ;;  %v5696_v28 = vadd.f32 %v5695_v1, %v5683_v3  ;;  %v10124_v54 = vor.u32 %v11344_v11, %v10123_v4  ;;  %v10894_v52 = vld [vmem:[%s12037_s21 + $0x5b4] sm:$0xf]  ;;  %v8349_v59 = vld [vmem:[%s12037_s21 + $0x5e0] sm:$0xf0] }
 0x1c5   : > { %5946 = vmatpush.bf16.msrb.mxu1 %v9884_v45  ;;  %v10556_v45 = vor.u32 %v11452_v17, %v10555_v21  ;;  %v9260_v34 = vor.u32 %v11128_v50, %v9259_v37  ;;  %v9164_v17 = vor.u32 %v11104_v23, %v9163_v20  ;;  %v10363_v3 = vld [vmem:[%s12037_s21 + $0x1570] sm:$0xf]  ;;  %v11404_v1 = vld [vmem:[%s12037_s21 + $0x159c] sm:$0xf0]  ;;  %v7917_v4 = vld [vmem:[%s12037_s21 + $0x280] sm:$0xf0] }
 0x1c6   : > { %5902 = vmatmul.bf16.vlgmr.msra.gmra.mxu1 %v12333_v60  ;;  %v9931_v37 = vld [vmem:[%s12037_s21 + $0x1210] sm:$0xf]  ;;  %v10364_v50 = vor.u32 %v11404_v1, %v10363_v3  ;;  %v10762_v20 = vld [vmem:[%s12037_s21 + $0x194] sm:$0xf]  ;;  %v7821_v23 = vld [vmem:[%s12037_s21 + $0x1c0] sm:$0xf0] }
 0x1c7   : > { %5914 = vmatpush.bf16.msra.mxu2 %v8396_v5  ;;  %v11428_v5 = vld [vmem:[%s12037_s21 + $0x165c] sm:$0xf0] }
 0x1c8   : > { %5934 = vmatpush.bf16.msrb.mxu0 %v9452_v53  ;;  %5927 = vmatpush.bf16.msra.mxu3 %v8780_v63  ;;  %v11224_v53 = vld [vmem:[%s12037_s21 + $0xffc] sm:$0xf0]  ;;  %v10460_v9 = vor.u32 %v11428_v5, %v10459_v56  ;;  %v9117_v56 = vld [vmem:[%s12037_s21 + $0xbe0] sm:$0xf0] }
 0x1c9   : > { %5947 = vmatpush.bf16.msrb.mxu1 %v9836_v61  ;;  %v10075_v61 = vld [vmem:[%s12037_s21 + $0x1330] sm:$0xf]  ;;  %v9644_v57 = vor.u32 %v11224_v53, %v9643_v14  ;;  %v11212_v63 = vld [vmem:[%s12037_s21 + $0xf9c] sm:$0xf0]  ;;  %v7869_v5 = vld [vmem:[%s12037_s21 + $0x220] sm:$0xf0] }
 0x1ca   : > { %5915 = vmatmul.bf16.vlgmr.msra.gmra.mxu2 %v12415_v43  ;;  %v10076_v19 = vor.u32 %v11332_v35, %v10075_v61  ;;  %v9596_v0 = vor.u32 %v11212_v63, %v9595_v55  ;;  %v10315_v14 = vld [vmem:[%s12037_s21 + $0x1510] sm:$0xf]  ;;  %v11392_v53 = vld [vmem:[%s12037_s21 + $0x153c] sm:$0xf0]  ;;  %v11086_v61 = vld [vmem:[%s12037_s21 + $0xbb4] sm:$0xf] }
 0x1cb   : > { %5959 = vmatpush.bf16.msrb.mxu2 %v10268_v6  ;;  %5928 = vmatmul.bf16.vlgmr.msra.gmra.mxu3 %v12439_v33  ;;  %v5684_v6 = vpop.f32.mrf.mxu0  ;;  %v8253_v55 = vld [vmem:[%s12037_s21 + $0x520] sm:$0xf0] }
 0x1cc   : > { %5972 = vmatpush.bf16.msrb.mxu3 %v10652_v26  ;;  %5935 = vmatpush.bf16.msrb.mxu0 %v9404_v30  ;;  %v10027_v26 = vld [vmem:[%s12037_s21 + $0x12d0] sm:$0xf]  ;;  %v5697_v30 = vpop.f32.mrf.mxu1  ;;  %v10316_v6 = vor.u32 %v11392_v53, %v10315_v14  ;;  %v8109_v53 = vld [vmem:[%s12037_s21 + $0x400] sm:$0xf0] }
 0x1cd   : > { %5948 = vmatpush.bf16.msrb.mxu1 %v9788_v32  ;;  %v10411_v32 = vld [vmem:[%s12037_s21 + $0x15d0] sm:$0xf]  ;;  %v5708_v21 = vpop.f32.mrf.mxu2  ;;  %v9120_v30 = vor.u32 %v11086_v61, %v9117_v56  ;;  %v10942_v61 = vld [vmem:[%s12037_s21 + $0x734] sm:$0xf] }
 0x1ce   : > { %v5709_v29 = vadd.f32 %v5708_v21, %v5696_v28  ;;  %v5721_v2 = vpop.f32.mrf.mxu3  ;;  %v11296_v28 = vld [vmem:[%s12037_s21 + $0x123c] sm:$0xf0]  ;;  %v11062_v21 = vld [vmem:[%s12037_s21 + $0xaf4] sm:$0xf] }
 0x1cf   : > { %5960 = vmatpush.bf16.msrb.mxu2 %v10220_v8  ;;  %v11200_v8 = vld [vmem:[%s12037_s21 + $0xf3c] sm:$0xf0]  ;;  %v9932_v22 = vor.u32 %v11296_v28, %v9931_v37  ;;  %v8973_v37 = vld [vmem:[%s12037_s21 + $0xac0] sm:$0xf0]  ;;  %v11038_v56 = vld [vmem:[%s12037_s21 + $0xa34] sm:$0xf] }
 0x1d0   : > { %5973 = vmatpush.bf16.msrb.mxu3 %v10604_v38  ;;  %5936 = vmatpush.bf16.msrb.mxu0 %v9356_v13  ;;  %v7965_v38 = vld [vmem:[%s12037_s21 + $0x2e0] sm:$0xf0]  ;;  %v10028_v13 = vor.u32 %v11320_v27, %v10027_v26  ;;  %v9548_v15 = vor.u32 %v11200_v8, %v9547_v36  ;;  %v13149_v11 = vadd.f32 %v5721_v2, %v5709_v29  ;;  %v10858_v36 = vld [vmem:[%s12037_s21 + $0x494] sm:$0xf] }
 0x1d1   : > { %5949 = vmatpush.bf16.msrb.mxu1 %v9740_v47  ;;  %v10412_v47 = vor.u32 %v11416_v48, %v10411_v32  ;;  %v8685_v27 = vld [vmem:[%s12037_s21 + $0x880] sm:$0xf0]  ;;  %v11074_v32 = vld [vmem:[%s12037_s21 + $0xb54] sm:$0xf]  ;;  %v8256_v48 = vor.u32 %v10870_v42, %v8253_v55 }
 0x1d2   : > { %v8205_v8 = vld [vmem:[%s12037_s21 + $0x4c0] sm:$0xf0]  ;;  %v10846_v29 = vld [vmem:[%s12037_s21 + $0x434] sm:$0xf] }
 0x1d3   : > { %5961 = vmatpush.bf16.msrb.mxu2 %v10172_v18  ;;  %v7968_v18 = vor.u32 %v10798_v16, %v7965_v38  ;;  %v8157_v2 = vld [vmem:[%s12037_s21 + $0x460] sm:$0xf0]  ;;  %v10822_v55 = vld [vmem:[%s12037_s21 + $0x374] sm:$0xf] }
 0x1d4   : > { %5974 = vmatpush.bf16.msrb.mxu3 %v10556_v45  ;;  %5937 = vmatpush.bf16.msrb.mxu0 %v9308_v62  ;;  %v8352_v45 = vor.u32 %v10894_v52, %v8349_v59  ;;  %v10786_v62 = vld [vmem:[%s12037_s21 + $0x254] sm:$0xf]  ;;  %v8637_v59 = vld [vmem:[%s12037_s21 + $0x820] sm:$0xf0] }
 0x1d5   : > { %5950 = vmatpush.bf16.msrb.mxu1 %v9692_v40  ;;  %v10882_v40 = vld [vmem:[%s12037_s21 + $0x554] sm:$0xf]  ;;  %v5710_v63 = vpop.f32.mrf.mxu2  ;;  %v7725_v28 = vld [vmem:[%s12037_s21 + $0x100] sm:$0xf0] }
 0x1d6   : > { %v8304_v35 = vor.u32 %v10882_v40, %v8301_v44  ;;  %v5723_v26 = vpop.f32.mrf.mxu3  ;;  %v10966_v52 = vld [vmem:[%s12037_s21 + $0x7f4] sm:$0xf]  ;;  %v8160_v44 = vor.u32 %v10846_v29, %v8157_v2  ;;  %v7677_v42 = vld [vmem:[%s12037_s21 + $0xa0] sm:$0xf0] }
 0x1d7   : > { %5962 = vmatpush.bf16.msrb.mxu2 %v10124_v54  ;;  %v7920_v54 = vor.u32 %v10786_v62, %v7917_v4  ;;  %v7776_v62 = vor.u32 %v10750_v31, %v7773_v46  ;;  %v10954_v4 = vld [vmem:[%s12037_s21 + $0x794] sm:$0xf]  ;;  %v8061_v63 = vld [vmem:[%s12037_s21 + $0x3a0] sm:$0xf0] }
 0x1d8   : > { %5975 = vmatpush.bf16.msrb.mxu3 %v10508_v7  ;;  %5938 = vmatpush.bf16.msrb.mxu0 %v9260_v34  ;;  %v10990_v7 = vld [vmem:[%s12037_s21 + $0x8b4] sm:$0xf]  ;;  %v8733_v34 = vld [vmem:[%s12037_s21 + $0x8e0] sm:$0xf0] }
 0x1d9   : > { %5951 = vmatpush.bf16.msrb.mxu1 %v9644_v57  ;;  %v10774_v57 = vld [vmem:[%s12037_s21 + $0x1f4] sm:$0xf]  ;;  %v8445_v46 = vld [vmem:[%s12037_s21 + $0x6a0] sm:$0xf0] }
 0x1da   : > { %v11050_v40 = vld [vmem:[%s12037_s21 + $0xa94] sm:$0xf] }
 0x1db   : > { %5963 = vmatpush.bf16.msrb.mxu2 %v10076_v19  ;;  %v8736_v19 = vor.u32 %v10990_v7, %v8733_v34  ;;  %v8976_v7 = vor.u32 %v11050_v40, %v8973_v37  ;;  %v10930_v26 = vld [vmem:[%s12037_s21 + $0x6d4] sm:$0xf]  ;;  %v9837_v37 = vld [vmem:[%s12037_s21 + $0x1180] sm:$0xf0] }
 0x1dc   : > { %5976 = vmatpush.bf16.msrb.mxu3 %v10460_v9  ;;  %5939 = vmatpush.bf16.msrb.mxu0 %v9212_v51  ;;  %v7872_v9 = vor.u32 %v10774_v57, %v7869_v5  ;;  %v10978_v51 = vld [vmem:[%s12037_s21 + $0x854] sm:$0xf]  ;;  %v8925_v5 = vld [vmem:[%s12037_s21 + $0xa60] sm:$0xf0] }
 0x1dd   : > { %5952 = vmatpush.bf16.msrb.mxu1 %v9596_v0  ;;  %v9069_v0 = vld [vmem:[%s12037_s21 + $0xb80] sm:$0xf0]  ;;  %v8688_v16 = vor.u32 %v10978_v51, %v8685_v27  ;;  %v10918_v31 = vld [vmem:[%s12037_s21 + $0x674] sm:$0xf] }
 0x1de   : > { %v9072_v38 = vor.u32 %v11074_v32, %v9069_v0  ;;  %v8493_v27 = vld [vmem:[%s12037_s21 + $0x700] sm:$0xf0]  ;;  %v11026_v32 = vld [vmem:[%s12037_s21 + $0x9d4] sm:$0xf]  ;;  %v8064_v0 = vor.u32 %v10822_v55, %v8061_v63  ;;  %v8448_v40 = vor.u32 %v10918_v31, %v8445_v46 }
 0x1df   : > { %5964 = vmatpush.bf16.msrb.mxu2 %v10028_v13  ;;  %v7824_v13 = vor.u32 %v10762_v20, %v7821_v23  ;;  %v10714_v20 = vld [vmem:[%s12037_s21 + $0x14] sm:$0xf]  ;;  %v7629_v23 = vld [vmem:[%s12037_s21 + $0x40] sm:$0xf0] }
 0x1e0   : > { %5977 = vmatpush.bf16.msrb.mxu3 %v10412_v47  ;;  %5940 = vmatpush.bf16.msrb.mxu0 %v9164_v17  ;;  %v8208_v47 = vor.u32 %v10858_v36, %v8205_v8  ;;  %v9021_v17 = vld [vmem:[%s12037_s21 + $0xb20] sm:$0xf0]  ;;  %v10810_v36 = vld [vmem:[%s12037_s21 + $0x314] sm:$0xf] }
 0x1e1   : > { %5953 = vmatpush.bf16.msrb.mxu1 %v9548_v15  ;;  %v5734_v15 = vpop.f32.mrf.mxu0  ;;  %v8013_v8 = vld [vmem:[%s12037_s21 + $0x340] sm:$0xf0] }
 0x1e2   : > { %v5735_v3 = vadd.f32 %v5734_v15, %v13149_v11  ;;  %v10834_v11 = vld [vmem:[%s12037_s21 + $0x3d4] sm:$0xf]  ;;  %v8016_v15 = vor.u32 %v10810_v36, %v8013_v8  ;;  %v9789_v55 = vld [vmem:[%s12037_s21 + $0x1120] sm:$0xf0] }
 0x1e3   : > { %5965 = vmatpush.bf16.msrb.mxu2 %v9980_v12  ;;  %5941 = vmatmul.bf16.vlgmr.msrb.gmra.mxu0 %v12570_v25  ;;  %v5747_v1 = vpop.f32.mrf.mxu1  ;;  %v8589_v12 = vld [vmem:[%s12037_s21 + $0x7c0] sm:$0xf0]  ;;  %v8112_v57 = vor.u32 %v10834_v11, %v8109_v53  ;;  %v11002_v11 = vld [vmem:[%s12037_s21 + $0x914] sm:$0xf] }
 0x1e4   : > { %5985 = vmatpush.bf16.msra.mxu0 %v7968_v18  ;;  %5978 = vmatpush.bf16.msrb.mxu3 %v10364_v50  ;;  %v8640_v18 = vor.u32 %v10966_v52, %v8637_v59  ;;  %v10738_v50 = vld [vmem:[%s12037_s21 + $0xd4] sm:$0xf]  ;;  %v5748_v14 = vadd.f32 %v5747_v1, %v5735_v3  ;;  %v9885_v59 = vld [vmem:[%s12037_s21 + $0x11e0] sm:$0xf0] }
 0x1e5   : > { %5998 = vmatpush.bf16.msra.mxu1 %v8352_v45  ;;  %v9024_v45 = vor.u32 %v11062_v21, %v9021_v17  ;;  %v7728_v34 = vor.u32 %v10738_v50, %v7725_v28  ;;  %v11278_v52 = vld [vmem:[%s12037_s21 + $0x11b4] sm:$0xf]  ;;  %v7632_v17 = vor.u32 %v10714_v20, %v7629_v23  ;;  %v8829_v1 = vld [vmem:[%s12037_s21 + $0x9a0] sm:$0xf0] }
 0x1e6   : > { %5954 = vmatmul.bf16.vlgmr.msrb.gmra.mxu1 %v12591_v39  ;;  %v11014_v3 = vld [vmem:[%s12037_s21 + $0x974] sm:$0xf]  ;;  %v8781_v53 = vld [vmem:[%s12037_s21 + $0x940] sm:$0xf0] }
 0x1e7   : > { %5966 = vmatpush.bf16.msrb.mxu2 %v9932_v22  ;;  %v10726_v22 = vld [vmem:[%s12037_s21 + $0x74] sm:$0xf]  ;;  %v8832_v28 = vor.u32 %v11014_v3, %v8829_v1  ;;  %v9357_v23 = vld [vmem:[%s12037_s21 + $0xdc0] sm:$0xf0] }
 0x1e8   : > { %5986 = vmatpush.bf16.msra.mxu0 %v7920_v54  ;;  %5979 = vmatpush.bf16.msrb.mxu3 %v10316_v6  ;;  %v8592_v54 = vor.u32 %v10954_v4, %v8589_v12  ;;  %v7680_v51 = vor.u32 %v10726_v22, %v7677_v42  ;;  %v9453_v4 = vld [vmem:[%s12037_s21 + $0xe80] sm:$0xf0]  ;;  %v10906_v50 = vld [vmem:[%s12037_s21 + $0x614] sm:$0xf] }
 0x1e9   : > { %5999 = vmatpush.bf16.msra.mxu1 %v8304_v35  ;;  %v8541_v35 = vld [vmem:[%s12037_s21 + $0x760] sm:$0xf0]  ;;  %v5736_v6 = vpop.f32.mrf.mxu0  ;;  %v11254_v42 = vld [vmem:[%s12037_s21 + $0x10f4] sm:$0xf] }
 0x1ea   : > { %5967 = vmatmul.bf16.vlgmr.msrb.gmra.mxu2 %v12633_v41  ;;  %v8784_v6 = vor.u32 %v11002_v11, %v8781_v53  ;;  %v11146_v20 = vld [vmem:[%s12037_s21 + $0xd94] sm:$0xf]  ;;  %v9741_v8 = vld [vmem:[%s12037_s21 + $0x10c0] sm:$0xf0] }
 0x1eb   : > { %6011 = vmatpush.bf16.msra.mxu2 %v8736_v19  ;;  %5980 = vmatmul.bf16.vlgmr.msrb.gmra.mxu3 %v12649_v58  ;;  %v8544_v19 = vor.u32 %v10942_v61, %v8541_v35  ;;  %v11470_v61 = vld [vmem:[%s12037_s21 + $0x17b4] sm:$0xf]  ;;  %v10557_v46 = vld [vmem:[%s12037_s21 + $0x1720] sm:$0xf0] }
 0x1ec   : > { %6024 = vmatpush.bf16.msra.mxu3 %v9120_v30  ;;  %5987 = vmatpush.bf16.msra.mxu0 %v7872_v9  ;;  %v5749_v30 = vpop.f32.mrf.mxu1  ;;  %v8928_v9 = vor.u32 %v11038_v56, %v8925_v5  ;;  %v10653_v56 = vld [vmem:[%s12037_s21 + $0x17e0] sm:$0xf0]  ;;  %v11242_v36 = vld [vmem:[%s12037_s21 + $0x1094] sm:$0xf] }
 0x1ed   : > { %6000 = vmatpush.bf16.msra.mxu1 %v8256_v48  ;;  %v8877_v48 = vld [vmem:[%s12037_s21 + $0xa00] sm:$0xf0]  ;;  %v5760_v21 = vpop.f32.mrf.mxu2  ;;  %v10656_v30 = vor.u32 %v11470_v61, %v10653_v56  ;;  %v9744_v31 = vor.u32 %v11242_v36, %v9741_v8  ;;  %v11122_v11 = vld [vmem:[%s12037_s21 + $0xcd4] sm:$0xf] }
 0x1ee   : > { %v5761_v29 = vadd.f32 %v5760_v21, %v5748_v14  ;;  %v5773_v2 = vpop.f32.mrf.mxu3  ;;  %v8397_v14 = vld [vmem:[%s12037_s21 + $0x640] sm:$0xf0]  ;;  %v11350_v21 = vld [vmem:[%s12037_s21 + $0x13f4] sm:$0xf] }
 0x1ef   : > { %6012 = vmatpush.bf16.msra.mxu2 %v8688_v16  ;;  %v11182_v16 = vld [vmem:[%s12037_s21 + $0xeb4] sm:$0xf]  ;;  %v9405_v5 = vld [vmem:[%s12037_s21 + $0xe20] sm:$0xf0]  ;;  %v8400_v22 = vor.u32 %v10906_v50, %v8397_v14 }
 0x1f0   : > { %6025 = vmatpush.bf16.msra.mxu3 %v9072_v38  ;;  %5988 = vmatpush.bf16.msra.mxu0 %v7824_v13  ;;  %v9501_v38 = vld [vmem:[%s12037_s21 + $0xee0] sm:$0xf0]  ;;  %v8496_v13 = vor.u32 %v10930_v26, %v8493_v27  ;;  %v13220_v12 = vadd.f32 %v5773_v2, %v5761_v29  ;;  %v11134_v29 = vld [vmem:[%s12037_s21 + $0xd34] sm:$0xf] }
 0x1f1   : > { %6001 = vmatpush.bf16.msra.mxu1 %v8208_v47  ;;  %v8880_v47 = vor.u32 %v11026_v32, %v8877_v48  ;;  %v10221_v27 = vld [vmem:[%s12037_s21 + $0x1480] sm:$0xf0]  ;;  %v11458_v32 = vld [vmem:[%s12037_s21 + $0x1754] sm:$0xf]  ;;  %v9792_v48 = vor.u32 %v11254_v42, %v9789_v55 }
 0x1f2   : > { %v9309_v2 = vld [vmem:[%s12037_s21 + $0xd60] sm:$0xf0]  ;;  %v11434_v50 = vld [vmem:[%s12037_s21 + $0x1694] sm:$0xf] }
 0x1f3   : > { %6013 = vmatpush.bf16.msra.mxu2 %v8640_v18  ;;  %v9504_v18 = vor.u32 %v11182_v16, %v9501_v38  ;;  %v13247_v38 = vld [vmem:[%s12877_s29] sm:$0xff]  ;;  %v11098_v8 = vld [vmem:[%s12037_s21 + $0xc14] sm:$0xf] }
 0x1f4   : > { %6026 = vmatpush.bf16.msra.mxu3 %v9024_v45  ;;  %5989 = vmatpush.bf16.msra.mxu0 %v7776_v62  ;;  %v9888_v45 = vor.u32 %v11278_v52, %v9885_v59  ;;  %v11170_v62 = vld [vmem:[%s12037_s21 + $0xe54] sm:$0xf]  ;;  %v9360_v59 = vor.u32 %v11146_v20, %v9357_v23  ;;  %v10509_v14 = vld [vmem:[%s12037_s21 + $0x16c0] sm:$0xf0] }
 0x1f5   : > { %6002 = vmatpush.bf16.msra.mxu1 %v8160_v44  ;;  %v11266_v44 = vld [vmem:[%s12037_s21 + $0x1154] sm:$0xf]  ;;  %v5762_v63 = vpop.f32.mrf.mxu2  ;;  %v9261_v53 = vld [vmem:[%s12037_s21 + $0xd00] sm:$0xf0] }
 0x1f6   : > { %v9840_v35 = vor.u32 %v11266_v44, %v9837_v37  ;;  %v5775_v26 = vpop.f32.mrf.mxu3  ;;  %v11338_v44 = vld [vmem:[%s12037_s21 + $0x1394] sm:$0xf]  ;;  %v10125_v37 = vld [vmem:[%s12037_s21 + $0x13c0] sm:$0xf0]  ;;  %v9264_v56 = vor.u32 %v11122_v11, %v9261_v53  ;;  %v8307_v11 = vld [vmem:[%s12037_s21 + $0x558] sm:$0xf] }
 0x1f7   : > { %6014 = vmatpush.bf16.msra.mxu2 %v8592_v54  ;;  %v9456_v54 = vor.u32 %v11170_v62, %v9453_v4  ;;  %v10128_v61 = vor.u32 %v11338_v44, %v10125_v37  ;;  %v10461_v55 = vld [vmem:[%s12037_s21 + $0x1660] sm:$0xf0]  ;;  %v11110_v63 = vld [vmem:[%s12037_s21 + $0xc74] sm:$0xf]  ;;  %v7923_v37 = vld [vmem:[%s12037_s21 + $0x258] sm:$0xf] }
 0x1f8   : > { %6027 = vmatpush.bf16.msra.mxu3 %v8976_v7  ;;  %5990 = vmatpush.bf16.msra.mxu0 %v7728_v34  ;;  %v11374_v7 = vld [vmem:[%s12037_s21 + $0x14b4] sm:$0xf]  ;;  %v10269_v34 = vld [vmem:[%s12037_s21 + $0x14e0] sm:$0xf0]  ;;  %v10889_v53 = vld [vmem:[%s12037_s21 + $0x584] sm:$0xf0] }
 0x1f9   : > { %6003 = vmatpush.bf16.msra.mxu1 %v8112_v57  ;;  %v11158_v57 = vld [vmem:[%s12037_s21 + $0xdf4] sm:$0xf]  ;;  %v9597_v26 = vld [vmem:[%s12037_s21 + $0xfa0] sm:$0xf0] }
 0x1fa   : > { %v11410_v20 = vld [vmem:[%s12037_s21 + $0x15d4] sm:$0xf]  ;;  %v10413_v23 = vld [vmem:[%s12037_s21 + $0x1600] sm:$0xf0] }
 0x1fb   : > { %6015 = vmatpush.bf16.msra.mxu2 %v8544_v19  ;;  %v10272_v19 = vor.u32 %v11374_v7, %v10269_v34  ;;  %v11218_v7 = vld [vmem:[%s12037_s21 + $0xfd4] sm:$0xf]  ;;  %v9645_v34 = vld [vmem:[%s12037_s21 + $0x1000] sm:$0xf0] }
 0x1fc   : > { %6028 = vmatpush.bf16.msra.mxu3 %v8928_v9  ;;  %5991 = vmatpush.bf16.msra.mxu0 %v7680_v51  ;;  %v9408_v9 = vor.u32 %v11158_v57, %v9405_v5  ;;  %v11362_v51 = vld [vmem:[%s12037_s21 + $0x1454] sm:$0xf]  ;;  %v10077_v5 = vld [vmem:[%s12037_s21 + $0x1360] sm:$0xf0]  ;;  %v9648_v42 = vor.u32 %v11218_v7, %v9645_v34 }
 0x1fd   : > { %6004 = vmatpush.bf16.msra.mxu1 %v8064_v0  ;;  %v10605_v0 = vld [vmem:[%s12037_s21 + $0x1780] sm:$0xf0]  ;;  %v10224_v16 = vor.u32 %v11362_v51, %v10221_v27  ;;  %v11326_v57 = vld [vmem:[%s12037_s21 + $0x1334] sm:$0xf] }
 0x1fe   : > { %v10608_v52 = vor.u32 %v11458_v32, %v10605_v0  ;;  %v11314_v51 = vld [vmem:[%s12037_s21 + $0x12d4] sm:$0xf]  ;;  %v10029_v0 = vld [vmem:[%s12037_s21 + $0x1300] sm:$0xf0] }
 0x1ff   : > { %6016 = vmatpush.bf16.msra.mxu2 %v8496_v13  ;;  %v1604_v13 = vperm.slane %v13247_v38, 3  ;;  %v9933_v34 = vld [vmem:[%s12037_s21 + $0x1240] sm:$0xf0] }
 0x200   : > { %6029 = vmatpush.bf16.msra.mxu3 %v8880_v47  ;;  %5992 = vmatpush.bf16.msra.mxu0 %v7632_v17  ;;  %v10173_v47 = vld [vmem:[%s12037_s21 + $0x1420] sm:$0xf0]  ;;  %v11446_v17 = vld [vmem:[%s12037_s21 + $0x16f4] sm:$0xf]  ;;  %v5786_v3 = vpop.f32.mrf.mxu0 }
 0x201   : > { %6005 = vmatpush.bf16.msra.mxu1 %v8016_v15  ;;  %v11230_v15 = vld [vmem:[%s12037_s21 + $0x1034] sm:$0xf]  ;;  %v10176_v1 = vor.u32 %v11350_v21, %v10173_v47  ;;  %v10560_v4 = vor.u32 %v11446_v17, %v10557_v46  ;;  %v10805_v21 = vld [vmem:[%s12037_s21 + $0x2e4] sm:$0xf0]  ;;  %v10032_v47 = vor.u32 %v11314_v51, %v10029_v0  ;;  %v8355_v17 = vld [vmem:[%s12037_s21 + $0x5b8] sm:$0xf] }
 0x203   : > { %6017 = vmatpush.bf16.msra.mxu2 %v8448_v40  ;;  %5993 = vmatmul.bf16.vlgmr.msra.gmra.mxu0 %v12319_v49  ;;  %v5799_v62 = vpop.f32.mrf.mxu1  ;;  %v9312_v40 = vor.u32 %v11134_v29, %v9309_v2  ;;  %v10416_v29 = vor.u32 %v11410_v20, %v10413_v23  ;;  %v8691_v20 = vld [vmem:[%s12037_s21 + $0x858] sm:$0xf]  ;;  %v10985_v23 = vld [vmem:[%s12037_s21 + $0x884] sm:$0xf0] }
 0x204   : > { %6037 = vmatpush.bf16.msrb.mxu0 %v9504_v18  ;;  %6030 = vmatpush.bf16.msra.mxu3 %v8832_v28  ;;  %v9693_v18 = vld [vmem:[%s12037_s21 + $0x1060] sm:$0xf0] }
 0x205   : > { %6050 = vmatpush.bf16.msrb.mxu1 %v9888_v45  ;;  %v5787_v45 = vadd.f32 %v5786_v3, %v1604_v13  ;;  %v9696_v28 = vor.u32 %v11230_v15, %v9693_v18  ;;  %v11194_v13 = vld [vmem:[%s12037_s21 + $0xf14] sm:$0xf]  ;;  %v9981_v18 = vld [vmem:[%s12037_s21 + $0x12a0] sm:$0xf0] }
 0x206   : > { %6006 = vmatmul.bf16.vlgmr.msra.gmra.mxu1 %v12333_v60  ;;  %v11302_v15 = vld [vmem:[%s12037_s21 + $0x1274] sm:$0xf] }
 0x207   : > { %6018 = vmatpush.bf16.msra.mxu2 %v8400_v22  ;;  %v11422_v22 = vld [vmem:[%s12037_s21 + $0x1634] sm:$0xf] }
 0x208   : > { %6038 = vmatpush.bf16.msrb.mxu0 %v9456_v54  ;;  %6031 = vmatpush.bf16.msra.mxu3 %v8784_v6  ;;  %v5800_v54 = vadd.f32 %v5799_v62, %v5787_v45  ;;  %v9213_v6 = vld [vmem:[%s12037_s21 + $0xca0] sm:$0xf0]  ;;  %v10464_v32 = vor.u32 %v11422_v22, %v10461_v55  ;;  %v9123_v22 = vld [vmem:[%s12037_s21 + $0xbb8] sm:$0xf]  ;;  %v11093_v55 = vld [vmem:[%s12037_s21 + $0xbe4] sm:$0xf0] }
 0x209   : > { %6051 = vmatpush.bf16.msrb.mxu1 %v9840_v35  ;;  %v10512_v35 = vor.u32 %v11434_v50, %v10509_v14  ;;  %v10793_v50 = vld [vmem:[%s12037_s21 + $0x284] sm:$0xf0]  ;;  %v9984_v14 = vor.u32 %v11302_v15, %v9981_v18 }
 0x20a   : > { %6019 = vmatmul.bf16.vlgmr.msra.gmra.mxu2 %v12415_v43  ;;  %v11069_v18 = vld [vmem:[%s12037_s21 + $0xb24] sm:$0xf0] }
 0x20b   : > { %6063 = vmatpush.bf16.msrb.mxu2 %v10272_v19  ;;  %6032 = vmatmul.bf16.vlgmr.msra.gmra.mxu3 %v12439_v33  ;;  %v11206_v19 = vld [vmem:[%s12037_s21 + $0xf74] sm:$0xf]  ;;  %v5801_v27 = vpop.f32.mrf.mxu1 }
 0x20c   : > { %6076 = vmatpush.bf16.msrb.mxu3 %v10656_v30  ;;  %6039 = vmatpush.bf16.msrb.mxu0 %v9408_v9  ;;  %v5788_v30 = vpop.f32.mrf.mxu0  ;;  %v10080_v9 = vor.u32 %v11326_v57, %v10077_v5  ;;  %v9600_v36 = vor.u32 %v11206_v19, %v9597_v26  ;;  %v8739_v57 = vld [vmem:[%s12037_s21 + $0x8b8] sm:$0xf]  ;;  %v10997_v5 = vld [vmem:[%s12037_s21 + $0x8e4] sm:$0xf0] }
 0x20d   : > { %6052 = vmatpush.bf16.msrb.mxu1 %v9792_v48  ;;  %v9216_v48 = vor.u32 %v11110_v63, %v9213_v6  ;;  %v5812_v46 = vpop.f32.mrf.mxu2  ;;  %v7875_v63 = vld [vmem:[%s12037_s21 + $0x1f8] sm:$0xf]  ;;  %v10781_v6 = vld [vmem:[%s12037_s21 + $0x224] sm:$0xf0]  ;;  %v8740_v27 = vor.u32 %v10997_v5, %v8739_v57 }
 0x20e   : > { %v5813_v3 = vadd.f32 %v5812_v46, %v5800_v54  ;;  %v11290_v54 = vld [vmem:[%s12037_s21 + $0x1214] sm:$0xf]  ;;  %v8259_v26 = vld [vmem:[%s12037_s21 + $0x4f8] sm:$0xf]  ;;  %v10877_v30 = vld [vmem:[%s12037_s21 + $0x524] sm:$0xf0]  ;;  %v7876_v0 = vor.u32 %v10781_v6, %v7875_v63 }
 0x20f   : > { %6064 = vmatpush.bf16.msrb.mxu2 %v10224_v16  ;;  %v9165_v16 = vld [vmem:[%s12037_s21 + $0xc40] sm:$0xf0]  ;;  %v9936_v19 = vor.u32 %v11290_v54, %v9933_v34  ;;  %v8643_v46 = vld [vmem:[%s12037_s21 + $0x7f8] sm:$0xf]  ;;  %v11057_v34 = vld [vmem:[%s12037_s21 + $0xac4] sm:$0xf0] }
 0x210   : > { %6077 = vmatpush.bf16.msrb.mxu3 %v10608_v52  ;;  %6040 = vmatpush.bf16.msrb.mxu0 %v9360_v59  ;;  %v9549_v52 = vld [vmem:[%s12037_s21 + $0xf40] sm:$0xf0]  ;;  %v7971_v59 = vld [vmem:[%s12037_s21 + $0x2b8] sm:$0xf]  ;;  %v9168_v2 = vor.u32 %v11098_v8, %v9165_v16  ;;  %v8260_v8 = vor.u32 %v10877_v30, %v8259_v26  ;;  %v11081_v16 = vld [vmem:[%s12037_s21 + $0xb84] sm:$0xf0] }
 0x211   : > { %6053 = vmatpush.bf16.msrb.mxu1 %v9744_v31  ;;  %v10901_v31 = vld [vmem:[%s12037_s21 + $0x5e4] sm:$0xf0]  ;;  %v9552_v45 = vor.u32 %v11194_v13, %v9549_v52  ;;  %v7972_v62 = vor.u32 %v10805_v21, %v7971_v59  ;;  %v7827_v13 = vld [vmem:[%s12037_s21 + $0x198] sm:$0xf] }
 0x212   : > { %v8356_v44 = vor.u32 %v10901_v31, %v8355_v17  ;;  %v10769_v52 = vld [vmem:[%s12037_s21 + $0x1c4] sm:$0xf0]  ;;  %v8211_v59 = vld [vmem:[%s12037_s21 + $0x498] sm:$0xf] }
 0x213   : > { %6065 = vmatpush.bf16.msrb.mxu2 %v10176_v1  ;;  %v5825_v1 = vpop.f32.mrf.mxu3  ;;  %v10865_v21 = vld [vmem:[%s12037_s21 + $0x4c4] sm:$0xf0]  ;;  %v7828_v31 = vor.u32 %v10769_v52, %v7827_v13  ;;  %v8979_v54 = vld [vmem:[%s12037_s21 + $0xa98] sm:$0xf] }
 0x214   : > { %6078 = vmatpush.bf16.msrb.mxu3 %v10560_v4  ;;  %6041 = vmatpush.bf16.msrb.mxu0 %v9312_v40  ;;  %v11398_v4 = vld [vmem:[%s12037_s21 + $0x1574] sm:$0xf]  ;;  %v10365_v40 = vld [vmem:[%s12037_s21 + $0x15a0] sm:$0xf0]  ;;  %v8212_v15 = vor.u32 %v10865_v21, %v8211_v59  ;;  %v10841_v57 = vld [vmem:[%s12037_s21 + $0x404] sm:$0xf0] }
 0x215   : > { %6054 = vmatpush.bf16.msrb.mxu1 %v9696_v28  ;;  %v13294_v28 = vadd.f32 %v5825_v1, %v5813_v3  ;;  %v10368_v7 = vor.u32 %v11398_v4, %v10365_v40  ;;  %v7779_v3 = vld [vmem:[%s12037_s21 + $0x138] sm:$0xf]  ;;  %v10757_v1 = vld [vmem:[%s12037_s21 + $0x164] sm:$0xf0] }
 0x216   : > { %v10949_v63 = vld [vmem:[%s12037_s21 + $0x764] sm:$0xf0]  ;;  %v8931_v6 = vld [vmem:[%s12037_s21 + $0xa38] sm:$0xf] }
 0x217   : > { %6066 = vmatpush.bf16.msrb.mxu2 %v10128_v61  ;;  %v11386_v61 = vld [vmem:[%s12037_s21 + $0x1514] sm:$0xf]  ;;  %v11045_v26 = vld [vmem:[%s12037_s21 + $0xa64] sm:$0xf0]  ;;  %v7683_v30 = vld [vmem:[%s12037_s21 + $0x78] sm:$0xf] }
 0x218   : > { %6079 = vmatpush.bf16.msrb.mxu3 %v10512_v35  ;;  %6042 = vmatpush.bf16.msrb.mxu0 %v9264_v56  ;;  %v10317_v35 = vld [vmem:[%s12037_s21 + $0x1540] sm:$0xf0]  ;;  %v7924_v56 = vor.u32 %v10793_v50, %v7923_v37  ;;  %v11033_v13 = vld [vmem:[%s12037_s21 + $0xa04] sm:$0xf0]  ;;  %v7635_v59 = vld [vmem:[%s12037_s21 + $0x18] sm:$0xf] }
 0x219   : > { %6055 = vmatpush.bf16.msrb.mxu1 %v9648_v42  ;;  %v8308_v42 = vor.u32 %v10889_v53, %v8307_v11  ;;  %v10320_v51 = vor.u32 %v11386_v61, %v10317_v35  ;;  %v8595_v11 = vld [vmem:[%s12037_s21 + $0x798] sm:$0xf]  ;;  %v10961_v53 = vld [vmem:[%s12037_s21 + $0x7c4] sm:$0xf0] }
 0x21a   : > { %v7731_v61 = vld [vmem:[%s12037_s21 + $0xd8] sm:$0xf]  ;;  %v10745_v35 = vld [vmem:[%s12037_s21 + $0x104] sm:$0xf0]  ;;  %v8596_v5 = vor.u32 %v10961_v53, %v8595_v11 }
 0x21b   : > { %6067 = vmatpush.bf16.msrb.mxu2 %v10080_v9  ;;  %v5814_v9 = vpop.f32.mrf.mxu2  ;;  %v10721_v21 = vld [vmem:[%s12037_s21 + $0x44] sm:$0xf0]  ;;  %v9459_v53 = vld [vmem:[%s12037_s21 + $0xe58] sm:$0xf] }
 0x21c   : > { %6080 = vmatpush.bf16.msrb.mxu3 %v10464_v32  ;;  %6043 = vmatpush.bf16.msrb.mxu0 %v9216_v48  ;;  %v5827_v32 = vpop.f32.mrf.mxu3  ;;  %v9124_v48 = vor.u32 %v11093_v55, %v9123_v22  ;;  %v8980_v22 = vor.u32 %v11057_v34, %v8979_v54  ;;  %v8547_v55 = vld [vmem:[%s12037_s21 + $0x738] sm:$0xf]  ;;  %v10733_v9 = vld [vmem:[%s12037_s21 + $0xa4] sm:$0xf0] }
 0x21d   : > { %6056 = vmatpush.bf16.msrb.mxu1 %v9600_v36  ;;  %v9075_v36 = vld [vmem:[%s12037_s21 + $0xb58] sm:$0xf]  ;;  %v11177_v54 = vld [vmem:[%s12037_s21 + $0xe84] sm:$0xf0] }
 0x21e   : > { %v9076_v17 = vor.u32 %v11081_v16, %v9075_v36  ;;  %v7684_v36 = vor.u32 %v10733_v9, %v7683_v30  ;;  %v8883_v16 = vld [vmem:[%s12037_s21 + $0x9d8] sm:$0xf]  ;;  %v11165_v9 = vld [vmem:[%s12037_s21 + $0xe24] sm:$0xf0] }
 0x21f   : > { %6068 = vmatpush.bf16.msrb.mxu2 %v10032_v47  ;;  %v8692_v47 = vor.u32 %v10985_v23, %v8691_v20  ;;  %v8932_v23 = vor.u32 %v11045_v26, %v8931_v6  ;;  %v10659_v6 = vld [vmem:[%s12037_s21 + $0x17b8] sm:$0xf]  ;;  %v11477_v26 = vld [vmem:[%s12037_s21 + $0x17e4] sm:$0xf0] }
 0x220   : > { %6081 = vmatpush.bf16.msrb.mxu3 %v10416_v29  ;;  %6044 = vmatpush.bf16.msrb.mxu0 %v9168_v2  ;;  %v10973_v29 = vld [vmem:[%s12037_s21 + $0x824] sm:$0xf0]  ;;  %v9027_v2 = vld [vmem:[%s12037_s21 + $0xaf8] sm:$0xf]  ;;  %v5838_v4 = vpop.f32.mrf.mxu0 }
 0x221   : > { %6057 = vmatpush.bf16.msrb.mxu1 %v9552_v45  ;;  %v8163_v45 = vld [vmem:[%s12037_s21 + $0x438] sm:$0xf]  ;;  %v8644_v40 = vor.u32 %v10973_v29, %v8643_v46  ;;  %v9028_v50 = vor.u32 %v11069_v18, %v9027_v2  ;;  %v11189_v46 = vld [vmem:[%s12037_s21 + $0xee4] sm:$0xf0] }
 0x222   : > { %v9891_v2 = vld [vmem:[%s12037_s21 + $0x11b8] sm:$0xf] }
 0x223   : > { %6069 = vmatpush.bf16.msrb.mxu2 %v9984_v14  ;;  %6045 = vmatmul.bf16.vlgmr.msrb.gmra.mxu0 %v12570_v25  ;;  %v5851_v37 = vpop.f32.mrf.mxu1  ;;  %v7780_v14 = vor.u32 %v10757_v1, %v7779_v3  ;;  %v8884_v3 = vor.u32 %v11033_v13, %v8883_v16  ;;  %v7636_v1 = vor.u32 %v10721_v21, %v7635_v59  ;;  %v9411_v30 = vld [vmem:[%s12037_s21 + $0xdf8] sm:$0xf]  ;;  %v11369_v13 = vld [vmem:[%s12037_s21 + $0x1484] sm:$0xf0] }
 0x224   : > { %6089 = vmatpush.bf16.msra.mxu0 %v7972_v62  ;;  %6082 = vmatpush.bf16.msrb.mxu3 %v10368_v7  ;;  %v10853_v62 = vld [vmem:[%s12037_s21 + $0x464] sm:$0xf0]  ;;  %v10227_v16 = vld [vmem:[%s12037_s21 + $0x1458] sm:$0xf] }
 0x225   : > { %6102 = vmatpush.bf16.msra.mxu1 %v8356_v44  ;;  %v5839_v44 = vadd.f32 %v5838_v4, %v13294_v28  ;;  %v8164_v7 = vor.u32 %v10853_v62, %v8163_v45  ;;  %v8115_v28 = vld [vmem:[%s12037_s21 + $0x3d8] sm:$0xf]  ;;  %v10925_v62 = vld [vmem:[%s12037_s21 + $0x6a4] sm:$0xf0] }
 0x226   : > { %6058 = vmatmul.bf16.vlgmr.msrb.gmra.mxu1 %v12591_v39  ;;  %v8451_v45 = vld [vmem:[%s12037_s21 + $0x678] sm:$0xf]  ;;  %v11465_v21 = vld [vmem:[%s12037_s21 + $0x1784] sm:$0xf0] }
 0x227   : > { %6070 = vmatpush.bf16.msrb.mxu2 %v9936_v19  ;;  %v8116_v19 = vor.u32 %v10841_v57, %v8115_v28  ;;  %v8452_v34 = vor.u32 %v10925_v62, %v8451_v45  ;;  %v10913_v57 = vld [vmem:[%s12037_s21 + $0x644] sm:$0xf0]  ;;  %v10563_v45 = vld [vmem:[%s12037_s21 + $0x16f8] sm:$0xf] }
 0x228   : > { %6090 = vmatpush.bf16.msra.mxu0 %v7924_v56  ;;  %6083 = vmatpush.bf16.msrb.mxu3 %v10320_v51  ;;  %v5852_v56 = vadd.f32 %v5851_v37, %v5839_v44  ;;  %v8067_v51 = vld [vmem:[%s12037_s21 + $0x378] sm:$0xf]  ;;  %v5840_v32 = vpop.f32.mrf.mxu0 }
 0x229   : > { %6103 = vmatpush.bf16.msra.mxu1 %v8308_v42  ;;  %v7732_v42 = vor.u32 %v10745_v35, %v7731_v61  ;;  %v9843_v61 = vld [vmem:[%s12037_s21 + $0x1158] sm:$0xf]  ;;  %v11273_v35 = vld [vmem:[%s12037_s21 + $0x1184] sm:$0xf0] }
 0x22a   : > { %6071 = vmatmul.bf16.vlgmr.msrb.gmra.mxu2 %v12633_v41  ;;  %v11261_v32 = vld [vmem:[%s12037_s21 + $0x1124] sm:$0xf0] }
 0x22b   : > { %6115 = vmatpush.bf16.msra.mxu2 %v8740_v27  ;;  %6084 = vmatmul.bf16.vlgmr.msrb.gmra.mxu3 %v12649_v58  ;;  %v10829_v27 = vld [vmem:[%s12037_s21 + $0x3a4] sm:$0xf0]  ;;  %v5853_v20 = vpop.f32.mrf.mxu1 }
 0x22c   : > { %6128 = vmatpush.bf16.msra.mxu3 %v9124_v48  ;;  %6091 = vmatpush.bf16.msra.mxu0 %v7876_v0  ;;  %v8548_v48 = vor.u32 %v10949_v63, %v8547_v55  ;;  %v8499_v0 = vld [vmem:[%s12037_s21 + $0x6d8] sm:$0xf]  ;;  %v8068_v52 = vor.u32 %v10829_v27, %v8067_v51  ;;  %v11381_v63 = vld [vmem:[%s12037_s21 + $0x14e4] sm:$0xf0] }
 0x22d   : > { %6104 = vmatpush.bf16.msra.mxu1 %v8260_v8  ;;  %v10937_v8 = vld [vmem:[%s12037_s21 + $0x704] sm:$0xf0]  ;;  %v5864_v18 = vpop.f32.mrf.mxu2  ;;  %v10275_v55 = vld [vmem:[%s12037_s21 + $0x14b8] sm:$0xf] }
 0x22e   : > { %v8500_v29 = vor.u32 %v10937_v8, %v8499_v0  ;;  %v5865_v4 = vadd.f32 %v5864_v18, %v5852_v56  ;;  %v8403_v56 = vld [vmem:[%s12037_s21 + $0x618] sm:$0xf]  ;;  %v10276_v20 = vor.u32 %v11381_v63, %v10275_v55  ;;  %v9412_v8 = vor.u32 %v11165_v9, %v9411_v30  ;;  %v11225_v63 = vld [vmem:[%s12037_s21 + $0x1004] sm:$0xf0] }
 0x22f   : > { %6116 = vmatpush.bf16.msra.mxu2 %v8692_v47  ;;  %v8019_v47 = vld [vmem:[%s12037_s21 + $0x318] sm:$0xf]  ;;  %v8404_v51 = vor.u32 %v10913_v57, %v8403_v56  ;;  %v11441_v57 = vld [vmem:[%s12037_s21 + $0x16c4] sm:$0xf0] }
 0x230   : > { %6129 = vmatpush.bf16.msra.mxu3 %v9076_v17  ;;  %6092 = vmatpush.bf16.msra.mxu0 %v7828_v31  ;;  %v10817_v17 = vld [vmem:[%s12037_s21 + $0x344] sm:$0xf0]  ;;  %v9507_v31 = vld [vmem:[%s12037_s21 + $0xeb8] sm:$0xf] }
 0x231   : > { %6105 = vmatpush.bf16.msra.mxu1 %v8212_v15  ;;  %v11285_v15 = vld [vmem:[%s12037_s21 + $0x11e4] sm:$0xf0]  ;;  %v8020_v44 = vor.u32 %v10817_v17, %v8019_v47  ;;  %v9508_v37 = vor.u32 %v11189_v46, %v9507_v31  ;;  %v9795_v27 = vld [vmem:[%s12037_s21 + $0x10f8] sm:$0xf] }
 0x232   : > { %v9892_v11 = vor.u32 %v11285_v15, %v9891_v2  ;;  %v9796_v59 = vor.u32 %v11261_v32, %v9795_v27  ;;  %v9363_v47 = vld [vmem:[%s12037_s21 + $0xd98] sm:$0xf]  ;;  %v11153_v17 = vld [vmem:[%s12037_s21 + $0xdc4] sm:$0xf0]  ;;  %v1605_v2 = vperm.slane %v13247_v38, 4 }
 0x233   : > { %6117 = vmatpush.bf16.msra.mxu2 %v8644_v40  ;;  %v5877_v40 = vpop.f32.mrf.mxu3  ;;  %v9747_v31 = vld [vmem:[%s12037_s21 + $0x1098] sm:$0xf]  ;;  %v11249_v46 = vld [vmem:[%s12037_s21 + $0x10c4] sm:$0xf0]  ;;  %v9364_v18 = vor.u32 %v11153_v17, %v9363_v47 }
 0x234   : > { %6130 = vmatpush.bf16.msra.mxu3 %v9028_v50  ;;  %6093 = vmatpush.bf16.msra.mxu0 %v7780_v14  ;;  %v8835_v50 = vld [vmem:[%s12037_s21 + $0x978] sm:$0xf]  ;;  %v11021_v14 = vld [vmem:[%s12037_s21 + $0x9a4] sm:$0xf0]  ;;  %v9748_v62 = vor.u32 %v11249_v46, %v9747_v31 }
 0x235   : > { %6106 = vmatpush.bf16.msra.mxu1 %v8164_v7  ;;  %v13365_v7 = vadd.f32 %v5877_v40, %v5865_v4  ;;  %v8836_v28 = vor.u32 %v11021_v14, %v8835_v50  ;;  %v11453_v4 = vld [vmem:[%s12037_s21 + $0x1724] sm:$0xf0]  ;;  %v9315_v40 = vld [vmem:[%s12037_s21 + $0xd38] sm:$0xf] }
 0x236   : > { %v9699_v38 = vld [vmem:[%s12037_s21 + $0x1038] sm:$0xf]  ;;  %v11333_v9 = vld [vmem:[%s12037_s21 + $0x1364] sm:$0xf0] }
 0x237   : > { %6118 = vmatpush.bf16.msra.mxu2 %v8596_v5  ;;  %v8787_v5 = vld [vmem:[%s12037_s21 + $0x918] sm:$0xf]  ;;  %v11429_v32 = vld [vmem:[%s12037_s21 + $0x1664] sm:$0xf0] }
 0x238   : > { %6131 = vmatpush.bf16.msra.mxu3 %v8980_v22  ;;  %6094 = vmatpush.bf16.msra.mxu0 %v7732_v42  ;;  %v11009_v22 = vld [vmem:[%s12037_s21 + $0x944] sm:$0xf0]  ;;  %v9460_v42 = vor.u32 %v11177_v54, %v9459_v53  ;;  %v10564_v54 = vor.u32 %v11453_v4, %v10563_v45  ;;  %v10515_v56 = vld [vmem:[%s12037_s21 + $0x1698] sm:$0xf]  ;;  %v10895_v45 = vld [vmem:[%s12037_s21 + $0x5bc] sm:$0xf] }
 0x239   : > { %6107 = vmatpush.bf16.msra.mxu1 %v8116_v19  ;;  %v9844_v19 = vor.u32 %v11273_v35, %v9843_v61  ;;  %v8788_v0 = vor.u32 %v11009_v22, %v8787_v5  ;;  %v10131_v61 = vld [vmem:[%s12037_s21 + $0x1398] sm:$0xf]  ;;  %v11345_v35 = vld [vmem:[%s12037_s21 + $0x13c4] sm:$0xf0] }
 0x23a   : > { %v9267_v5 = vld [vmem:[%s12037_s21 + $0xcd8] sm:$0xf]  ;;  %v11129_v22 = vld [vmem:[%s12037_s21 + $0xd04] sm:$0xf0] }
 0x23b   : > { %6119 = vmatpush.bf16.msra.mxu2 %v8548_v48  ;;  %v5866_v48 = vpop.f32.mrf.mxu2  ;;  %v9651_v55 = vld [vmem:[%s12037_s21 + $0xfd8] sm:$0xf]  ;;  %v11417_v17 = vld [vmem:[%s12037_s21 + $0x1604] sm:$0xf0] }
 0x23c   : > { %6132 = vmatpush.bf16.msra.mxu3 %v8932_v23  ;;  %6095 = vmatpush.bf16.msra.mxu0 %v7684_v36  ;;  %v5879_v23 = vpop.f32.mrf.mxu3  ;;  %v10660_v36 = vor.u32 %v11477_v26, %v10659_v6  ;;  %v10132_v6 = vor.u32 %v11345_v35, %v10131_v61  ;;  %v9268_v26 = vor.u32 %v11129_v22, %v9267_v5  ;;  %v10083_v30 = vld [vmem:[%s12037_s21 + $0x1338] sm:$0xf]  ;;  %v10787_v35 = vld [vmem:[%s12037_s21 + $0x25c] sm:$0xf]  ;;  %v8309_v22 = vld [vmem:[%s12037_s21 + $0x588] sm:$0xf0] }
 0x23d   : > { %6108 = vmatpush.bf16.msra.mxu1 %v8068_v52  ;;  %v10611_v52 = vld [vmem:[%s12037_s21 + $0x1758] sm:$0xf]  ;;  %v9652_v27 = vor.u32 %v11225_v63, %v9651_v55  ;;  %v11213_v23 = vld [vmem:[%s12037_s21 + $0xfa4] sm:$0xf0]  ;;  %v10883_v5 = vld [vmem:[%s12037_s21 + $0x55c] sm:$0xf] }
 0x23e   : > { %v10612_v15 = vor.u32 %v11465_v21, %v10611_v52  ;;  %v9219_v48 = vld [vmem:[%s12037_s21 + $0xc78] sm:$0xf]  ;;  %v11321_v21 = vld [vmem:[%s12037_s21 + $0x1304] sm:$0xf0] }
 0x23f   : > { %6120 = vmatpush.bf16.msra.mxu2 %v8500_v29  ;;  %v10228_v29 = vor.u32 %v11369_v13, %v10227_v16  ;;  %v10035_v16 = vld [vmem:[%s12037_s21 + $0x12d8] sm:$0xf]  ;;  %v11297_v63 = vld [vmem:[%s12037_s21 + $0x1244] sm:$0xf0] }
 0x240   : > { %6133 = vmatpush.bf16.msra.mxu3 %v8884_v3  ;;  %6096 = vmatpush.bf16.msra.mxu0 %v7636_v1  ;;  %v10179_v3 = vld [vmem:[%s12037_s21 + $0x13f8] sm:$0xf]  ;;  %v11357_v1 = vld [vmem:[%s12037_s21 + $0x1424] sm:$0xf0]  ;;  %v5890_v50 = vpop.f32.mrf.mxu0 }
 0x241   : > { %6109 = vmatpush.bf16.msra.mxu1 %v8020_v44  ;;  %v11141_v44 = vld [vmem:[%s12037_s21 + $0xd64] sm:$0xf0]  ;;  %v10180_v14 = vor.u32 %v11357_v1, %v10179_v3  ;;  %v10419_v47 = vld [vmem:[%s12037_s21 + $0x15d8] sm:$0xf]  ;;  %v7973_v3 = vld [vmem:[%s12037_s21 + $0x2e8] sm:$0xf0]  ;;  %v10036_v1 = vor.u32 %v11321_v21, %v10035_v16 }
 0x242   : > { %v9171_v46 = vld [vmem:[%s12037_s21 + $0xc18] sm:$0xf] }
 0x243   : > { %6121 = vmatpush.bf16.msra.mxu2 %v8452_v34  ;;  %6097 = vmatmul.bf16.vlgmr.msra.gmra.mxu0 %v12319_v49  ;;  %v5903_v53 = vpop.f32.mrf.mxu1  ;;  %v9316_v34 = vor.u32 %v11141_v44, %v9315_v40  ;;  %v10420_v40 = vor.u32 %v11417_v17, %v10419_v47  ;;  %v10979_v47 = vld [vmem:[%s12037_s21 + $0x85c] sm:$0xf]  ;;  %v8693_v17 = vld [vmem:[%s12037_s21 + $0x888] sm:$0xf0] }
 0x244   : > { %6141 = vmatpush.bf16.msrb.mxu0 %v9508_v37  ;;  %6134 = vmatpush.bf16.msra.mxu3 %v8836_v28  ;;  %v11237_v37 = vld [vmem:[%s12037_s21 + $0x1064] sm:$0xf0] }
 0x245   : > { %6154 = vmatpush.bf16.msrb.mxu1 %v9892_v11  ;;  %v5891_v11 = vadd.f32 %v5890_v50, %v1605_v2  ;;  %v9700_v28 = vor.u32 %v11237_v37, %v9699_v38  ;;  %v9555_v2 = vld [vmem:[%s12037_s21 + $0xf18] sm:$0xf]  ;;  %v11309_v37 = vld [vmem:[%s12037_s21 + $0x12a4] sm:$0xf0] }
 0x246   : > { %6110 = vmatmul.bf16.vlgmr.msra.gmra.mxu1 %v12333_v60  ;;  %v9987_v38 = vld [vmem:[%s12037_s21 + $0x1278] sm:$0xf] }
 0x247   : > { %6122 = vmatpush.bf16.msra.mxu2 %v8404_v51  ;;  %v10467_v51 = vld [vmem:[%s12037_s21 + $0x1638] sm:$0xf] }
 0x248   : > { %6142 = vmatpush.bf16.msrb.mxu0 %v9460_v42  ;;  %6135 = vmatpush.bf16.msra.mxu3 %v8788_v0  ;;  %v5904_v42 = vadd.f32 %v5903_v53, %v5891_v11  ;;  %v11117_v0 = vld [vmem:[%s12037_s21 + $0xca4] sm:$0xf0]  ;;  %v10468_v52 = vor.u32 %v11429_v32, %v10467_v51  ;;  %v11087_v51 = vld [vmem:[%s12037_s21 + $0xbbc] sm:$0xf]  ;;  %v9125_v32 = vld [vmem:[%s12037_s21 + $0xbe8] sm:$0xf0] }
 0x249   : > { %6155 = vmatpush.bf16.msrb.mxu1 %v9844_v19  ;;  %v10516_v19 = vor.u32 %v11441_v57, %v10515_v56  ;;  %v7925_v56 = vld [vmem:[%s12037_s21 + $0x288] sm:$0xf0]  ;;  %v9988_v57 = vor.u32 %v11309_v37, %v9987_v38 }
 0x24a   : > { %6123 = vmatmul.bf16.vlgmr.msra.gmra.mxu2 %v12415_v43  ;;  %v9029_v37 = vld [vmem:[%s12037_s21 + $0xb28] sm:$0xf0] }
 0x24b   : > { %6167 = vmatpush.bf16.msrb.mxu2 %v10276_v20  ;;  %6136 = vmatmul.bf16.vlgmr.msra.gmra.mxu3 %v12439_v33  ;;  %v9603_v20 = vld [vmem:[%s12037_s21 + $0xf78] sm:$0xf]  ;;  %v5905_v13 = vpop.f32.mrf.mxu1 }
 0x24c   : > { %6180 = vmatpush.bf16.msrb.mxu3 %v10660_v36  ;;  %6143 = vmatpush.bf16.msrb.mxu0 %v9412_v8  ;;  %v5892_v36 = vpop.f32.mrf.mxu0  ;;  %v10084_v8 = vor.u32 %v11333_v9, %v10083_v30  ;;  %v9604_v31 = vor.u32 %v11213_v23, %v9603_v20  ;;  %v10991_v30 = vld [vmem:[%s12037_s21 + $0x8bc] sm:$0xf]  ;;  %v8741_v9 = vld [vmem:[%s12037_s21 + $0x8e8] sm:$0xf0] }
 0x24d   : > { %6156 = vmatpush.bf16.msrb.mxu1 %v9796_v59  ;;  %v9220_v59 = vor.u32 %v11117_v0, %v9219_v48  ;;  %v5916_v4 = vpop.f32.mrf.mxu2  ;;  %v10775_v48 = vld [vmem:[%s12037_s21 + $0x1fc] sm:$0xf]  ;;  %v7877_v0 = vld [vmem:[%s12037_s21 + $0x228] sm:$0xf0]  ;;  %v8744_v13 = vor.u32 %v10991_v30, %v8741_v9 }
 0x24e   : > { %v5917_v50 = vadd.f32 %v5916_v4, %v5904_v42  ;;  %v9939_v42 = vld [vmem:[%s12037_s21 + $0x1218] sm:$0xf]  ;;  %v10871_v23 = vld [vmem:[%s12037_s21 + $0x4fc] sm:$0xf]  ;;  %v8261_v36 = vld [vmem:[%s12037_s21 + $0x528] sm:$0xf0]  ;;  %v7880_v21 = vor.u32 %v10775_v48, %v7877_v0 }
 0x24f   : > { %6168 = vmatpush.bf16.msrb.mxu2 %v10228_v29  ;;  %v11105_v29 = vld [vmem:[%s12037_s21 + $0xc44] sm:$0xf0]  ;;  %v9940_v20 = vor.u32 %v11297_v63, %v9939_v42  ;;  %v10967_v4 = vld [vmem:[%s12037_s21 + $0x7fc] sm:$0xf]  ;;  %v8981_v63 = vld [vmem:[%s12037_s21 + $0xac8] sm:$0xf0] }
 0x250   : > { %6181 = vmatpush.bf16.msrb.mxu3 %v10612_v15  ;;  %6144 = vmatpush.bf16.msrb.mxu0 %v9364_v18  ;;  %v11201_v15 = vld [vmem:[%s12037_s21 + $0xf44] sm:$0xf0]  ;;  %v10799_v18 = vld [vmem:[%s12037_s21 + $0x2bc] sm:$0xf]  ;;  %v9172_v44 = vor.u32 %v11105_v29, %v9171_v46  ;;  %v8264_v46 = vor.u32 %v10871_v23, %v8261_v36  ;;  %v9077_v29 = vld [vmem:[%s12037_s21 + $0xb88] sm:$0xf0] }
 0x251   : > { %6157 = vmatpush.bf16.msrb.mxu1 %v9748_v62  ;;  %v8357_v62 = vld [vmem:[%s12037_s21 + $0x5e8] sm:$0xf0]  ;;  %v9556_v11 = vor.u32 %v11201_v15, %v9555_v2  ;;  %v7976_v53 = vor.u32 %v10799_v18, %v7973_v3  ;;  %v10763_v2 = vld [vmem:[%s12037_s21 + $0x19c] sm:$0xf] }
 0x252   : > { %v8360_v61 = vor.u32 %v10895_v45, %v8357_v62  ;;  %v7829_v15 = vld [vmem:[%s12037_s21 + $0x1c8] sm:$0xf0]  ;;  %v10859_v18 = vld [vmem:[%s12037_s21 + $0x49c] sm:$0xf] }
 0x253   : > { %6169 = vmatpush.bf16.msrb.mxu2 %v10180_v14  ;;  %v5929_v14 = vpop.f32.mrf.mxu3  ;;  %v8213_v3 = vld [vmem:[%s12037_s21 + $0x4c8] sm:$0xf0]  ;;  %v7832_v62 = vor.u32 %v10763_v2, %v7829_v15  ;;  %v11051_v42 = vld [vmem:[%s12037_s21 + $0xa9c] sm:$0xf] }
 0x254   : > { %6182 = vmatpush.bf16.msrb.mxu3 %v10564_v54  ;;  %6145 = vmatpush.bf16.msrb.mxu0 %v9316_v34  ;;  %v10371_v54 = vld [vmem:[%s12037_s21 + $0x1578] sm:$0xf]  ;;  %v11405_v34 = vld [vmem:[%s12037_s21 + $0x15a4] sm:$0xf0]  ;;  %v8216_v38 = vor.u32 %v10859_v18, %v8213_v3  ;;  %v8117_v30 = vld [vmem:[%s12037_s21 + $0x408] sm:$0xf0] }
 0x255   : > { %6158 = vmatpush.bf16.msrb.mxu1 %v9700_v28  ;;  %v13436_v28 = vadd.f32 %v5929_v14, %v5917_v50  ;;  %v10372_v55 = vor.u32 %v11405_v34, %v10371_v54  ;;  %v10751_v50 = vld [vmem:[%s12037_s21 + $0x13c] sm:$0xf]  ;;  %v7781_v14 = vld [vmem:[%s12037_s21 + $0x168] sm:$0xf0] }
 0x256   : > { %v8549_v48 = vld [vmem:[%s12037_s21 + $0x768] sm:$0xf0]  ;;  %v11039_v0 = vld [vmem:[%s12037_s21 + $0xa3c] sm:$0xf] }
 0x257   : > { %6170 = vmatpush.bf16.msrb.mxu2 %v10132_v6  ;;  %v10323_v6 = vld [vmem:[%s12037_s21 + $0x1518] sm:$0xf]  ;;  %v8933_v23 = vld [vmem:[%s12037_s21 + $0xa68] sm:$0xf0]  ;;  %v10727_v36 = vld [vmem:[%s12037_s21 + $0x7c] sm:$0xf] }
 0x258   : > { %6183 = vmatpush.bf16.msrb.mxu3 %v10516_v19  ;;  %6146 = vmatpush.bf16.msrb.mxu0 %v9268_v26  ;;  %v11393_v19 = vld [vmem:[%s12037_s21 + $0x1544] sm:$0xf0]  ;;  %v7928_v26 = vor.u32 %v10787_v35, %v7925_v56  ;;  %v8885_v2 = vld [vmem:[%s12037_s21 + $0xa08] sm:$0xf0]  ;;  %v10715_v18 = vld [vmem:[%s12037_s21 + $0x1c] sm:$0xf] }
 0x259   : > { %6159 = vmatpush.bf16.msrb.mxu1 %v9652_v27  ;;  %v8312_v27 = vor.u32 %v10883_v5, %v8309_v22  ;;  %v10324_v16 = vor.u32 %v11393_v19, %v10323_v6  ;;  %v10955_v5 = vld [vmem:[%s12037_s21 + $0x79c] sm:$0xf]  ;;  %v8597_v22 = vld [vmem:[%s12037_s21 + $0x7c8] sm:$0xf0] }
 0x25a   : > { %v10739_v6 = vld [vmem:[%s12037_s21 + $0xdc] sm:$0xf]  ;;  %v7733_v19 = vld [vmem:[%s12037_s21 + $0x108] sm:$0xf0]  ;;  %v8600_v9 = vor.u32 %v10955_v5, %v8597_v22 }
 0x25b   : > { %6171 = vmatpush.bf16.msrb.mxu2 %v10084_v8  ;;  %v5918_v8 = vpop.f32.mrf.mxu2  ;;  %v7637_v3 = vld [vmem:[%s12037_s21 + $0x48] sm:$0xf0]  ;;  %v11171_v22 = vld [vmem:[%s12037_s21 + $0xe5c] sm:$0xf] }
 0x25c   : > { %6184 = vmatpush.bf16.msrb.mxu3 %v10468_v52  ;;  %6147 = vmatpush.bf16.msrb.mxu0 %v9220_v59  ;;  %v5931_v52 = vpop.f32.mrf.mxu3  ;;  %v9128_v59 = vor.u32 %v11087_v51, %v9125_v32  ;;  %v8984_v51 = vor.u32 %v11051_v42, %v8981_v63  ;;  %v10943_v32 = vld [vmem:[%s12037_s21 + $0x73c] sm:$0xf]  ;;  %v7685_v8 = vld [vmem:[%s12037_s21 + $0xa8] sm:$0xf0] }
 0x25d   : > { %6160 = vmatpush.bf16.msrb.mxu1 %v9604_v31  ;;  %v11075_v31 = vld [vmem:[%s12037_s21 + $0xb5c] sm:$0xf]  ;;  %v9461_v42 = vld [vmem:[%s12037_s21 + $0xe88] sm:$0xf0] }
 0x25e   : > { %v9080_v45 = vor.u32 %v11075_v31, %v9077_v29  ;;  %v7688_v31 = vor.u32 %v10727_v36, %v7685_v8  ;;  %v11027_v29 = vld [vmem:[%s12037_s21 + $0x9dc] sm:$0xf]  ;;  %v9413_v8 = vld [vmem:[%s12037_s21 + $0xe28] sm:$0xf0] }
 0x25f   : > { %6172 = vmatpush.bf16.msrb.mxu2 %v10036_v1  ;;  %v8696_v1 = vor.u32 %v10979_v47, %v8693_v17  ;;  %v8936_v17 = vor.u32 %v11039_v0, %v8933_v23  ;;  %v11471_v0 = vld [vmem:[%s12037_s21 + $0x17bc] sm:$0xf]  ;;  %v10661_v23 = vld [vmem:[%s12037_s21 + $0x17e8] sm:$0xf0] }
 0x260   : > { %6185 = vmatpush.bf16.msrb.mxu3 %v10420_v40  ;;  %6148 = vmatpush.bf16.msrb.mxu0 %v9172_v44  ;;  %v8645_v40 = vld [vmem:[%s12037_s21 + $0x828] sm:$0xf0]  ;;  %v11063_v44 = vld [vmem:[%s12037_s21 + $0xafc] sm:$0xf]  ;;  %v5942_v54 = vpop.f32.mrf.mxu0 }
 0x261   : > { %6161 = vmatpush.bf16.msrb.mxu1 %v9556_v11  ;;  %v10847_v11 = vld [vmem:[%s12037_s21 + $0x43c] sm:$0xf]  ;;  %v8648_v34 = vor.u32 %v10967_v4, %v8645_v40  ;;  %v9032_v56 = vor.u32 %v11063_v44, %v9029_v37  ;;  %v9509_v4 = vld [vmem:[%s12037_s21 + $0xee8] sm:$0xf0] }
 0x262   : > { %v11279_v44 = vld [vmem:[%s12037_s21 + $0x11bc] sm:$0xf] }
 0x263   : > { %6173 = vmatpush.bf16.msrb.mxu2 %v9988_v57  ;;  %6149 = vmatmul.bf16.vlgmr.msrb.gmra.mxu0 %v12570_v25  ;;  %v5955_v35 = vpop.f32.mrf.mxu1  ;;  %v7784_v57 = vor.u32 %v10751_v50, %v7781_v14  ;;  %v8888_v50 = vor.u32 %v11027_v29, %v8885_v2  ;;  %v7640_v14 = vor.u32 %v10715_v18, %v7637_v3  ;;  %v11159_v36 = vld [vmem:[%s12037_s21 + $0xdfc] sm:$0xf]  ;;  %v10229_v2 = vld [vmem:[%s12037_s21 + $0x1488] sm:$0xf0] }
 0x264   : > { %6193 = vmatpush.bf16.msra.mxu0 %v7976_v53  ;;  %6186 = vmatpush.bf16.msrb.mxu3 %v10372_v55  ;;  %v8165_v53 = vld [vmem:[%s12037_s21 + $0x468] sm:$0xf0]  ;;  %v11363_v29 = vld [vmem:[%s12037_s21 + $0x145c] sm:$0xf] }
 0x265   : > { %6206 = vmatpush.bf16.msra.mxu1 %v8360_v61  ;;  %v5943_v61 = vadd.f32 %v5942_v54, %v13436_v28  ;;  %v8168_v55 = vor.u32 %v10847_v11, %v8165_v53  ;;  %v10835_v28 = vld [vmem:[%s12037_s21 + $0x3dc] sm:$0xf]  ;;  %v8453_v53 = vld [vmem:[%s12037_s21 + $0x6a8] sm:$0xf0] }
 0x266   : > { %6162 = vmatmul.bf16.vlgmr.msrb.gmra.mxu1 %v12591_v39  ;;  %v10919_v11 = vld [vmem:[%s12037_s21 + $0x67c] sm:$0xf]  ;;  %v10613_v3 = vld [vmem:[%s12037_s21 + $0x1788] sm:$0xf0] }
 0x267   : > { %6174 = vmatpush.bf16.msrb.mxu2 %v9940_v20  ;;  %v8120_v20 = vor.u32 %v10835_v28, %v8117_v30  ;;  %v8456_v63 = vor.u32 %v10919_v11, %v8453_v53  ;;  %v8405_v30 = vld [vmem:[%s12037_s21 + $0x648] sm:$0xf0]  ;;  %v11447_v53 = vld [vmem:[%s12037_s21 + $0x16fc] sm:$0xf] }
 0x268   : > { %6194 = vmatpush.bf16.msra.mxu0 %v7928_v26  ;;  %6187 = vmatpush.bf16.msrb.mxu3 %v10324_v16  ;;  %v5956_v26 = vadd.f32 %v5955_v35, %v5943_v61  ;;  %v10823_v16 = vld [vmem:[%s12037_s21 + $0x37c] sm:$0xf]  ;;  %v5944_v52 = vpop.f32.mrf.mxu0  ;;  %v10181_v11 = vld [vmem:[%s12037_s21 + $0x1428] sm:$0xf0] }
 0x269   : > { %6207 = vmatpush.bf16.msra.mxu1 %v8312_v27  ;;  %v7736_v27 = vor.u32 %v10739_v6, %v7733_v19  ;;  %v11267_v6 = vld [vmem:[%s12037_s21 + $0x115c] sm:$0xf]  ;;  %v9845_v19 = vld [vmem:[%s12037_s21 + $0x1188] sm:$0xf0] }
 0x26a   : > { %6175 = vmatmul.bf16.vlgmr.msrb.gmra.mxu2 %v12633_v41  ;;  %v9797_v52 = vld [vmem:[%s12037_s21 + $0x1128] sm:$0xf0] }
 0x26b   : > { %6219 = vmatpush.bf16.msra.mxu2 %v8744_v13  ;;  %6188 = vmatmul.bf16.vlgmr.msrb.gmra.mxu3 %v12649_v58  ;;  %v8069_v13 = vld [vmem:[%s12037_s21 + $0x3a8] sm:$0xf0]  ;;  %v5957_v47 = vpop.f32.mrf.mxu1 }
 0x26c   : > { %6232 = vmatpush.bf16.msra.mxu3 %v9128_v59  ;;  %6195 = vmatpush.bf16.msra.mxu0 %v7880_v21  ;;  %v8552_v59 = vor.u32 %v10943_v32, %v8549_v48  ;;  %v10931_v21 = vld [vmem:[%s12037_s21 + $0x6dc] sm:$0xf]  ;;  %v8072_v15 = vor.u32 %v10823_v16, %v8069_v13  ;;  %v10277_v48 = vld [vmem:[%s12037_s21 + $0x14e8] sm:$0xf0] }
 0x26d   : > { %6208 = vmatpush.bf16.msra.mxu1 %v8264_v46  ;;  %v8501_v46 = vld [vmem:[%s12037_s21 + $0x708] sm:$0xf0]  ;;  %v5968_v37 = vpop.f32.mrf.mxu2  ;;  %v11375_v32 = vld [vmem:[%s12037_s21 + $0x14bc] sm:$0xf] }
 0x26e   : > { %v8504_v40 = vor.u32 %v10931_v21, %v8501_v46  ;;  %v5969_v54 = vadd.f32 %v5968_v37, %v5956_v26  ;;  %v10907_v26 = vld [vmem:[%s12037_s21 + $0x61c] sm:$0xf]  ;;  %v10280_v47 = vor.u32 %v11375_v32, %v10277_v48  ;;  %v9416_v46 = vor.u32 %v11159_v36, %v9413_v8  ;;  %v9269_v32 = vld [vmem:[%s12037_s21 + $0xd08] sm:$0xf0] }
 0x26f   : > { %6220 = vmatpush.bf16.msra.mxu2 %v8696_v1  ;;  %v10811_v1 = vld [vmem:[%s12037_s21 + $0x31c] sm:$0xf]  ;;  %v8408_v16 = vor.u32 %v10907_v26, %v8405_v30 }
 0x270   : > { %6233 = vmatpush.bf16.msra.mxu3 %v9080_v45  ;;  %6196 = vmatpush.bf16.msra.mxu0 %v7832_v62  ;;  %v8021_v45 = vld [vmem:[%s12037_s21 + $0x348] sm:$0xf0]  ;;  %v11183_v62 = vld [vmem:[%s12037_s21 + $0xebc] sm:$0xf] }
 0x271   : > { %6209 = vmatpush.bf16.msra.mxu1 %v8216_v38  ;;  %v9893_v38 = vld [vmem:[%s12037_s21 + $0x11e8] sm:$0xf0]  ;;  %v8024_v61 = vor.u32 %v10811_v1, %v8021_v45  ;;  %v9512_v35 = vor.u32 %v11183_v62, %v9509_v4  ;;  %v11255_v13 = vld [vmem:[%s12037_s21 + $0x10fc] sm:$0xf] }
 0x272   : > { %v9896_v5 = vor.u32 %v11279_v44, %v9893_v38  ;;  %v9800_v18 = vor.u32 %v11255_v13, %v9797_v52  ;;  %v11147_v1 = vld [vmem:[%s12037_s21 + $0xd9c] sm:$0xf]  ;;  %v9365_v45 = vld [vmem:[%s12037_s21 + $0xdc8] sm:$0xf0] }
 0x273   : > { %6221 = vmatpush.bf16.msra.mxu2 %v8648_v34  ;;  %v5981_v34 = vpop.f32.mrf.mxu3  ;;  %v11243_v62 = vld [vmem:[%s12037_s21 + $0x109c] sm:$0xf]  ;;  %v9749_v4 = vld [vmem:[%s12037_s21 + $0x10c8] sm:$0xf0] }
 0x274   : > { %6234 = vmatpush.bf16.msra.mxu3 %v9032_v56  ;;  %6197 = vmatpush.bf16.msra.mxu0 %v7784_v57  ;;  %v11015_v56 = vld [vmem:[%s12037_s21 + $0x97c] sm:$0xf]  ;;  %v8837_v57 = vld [vmem:[%s12037_s21 + $0x9a8] sm:$0xf0] }
 0x275   : > { %6210 = vmatpush.bf16.msra.mxu1 %v8168_v55  ;;  %v13507_v55 = vadd.f32 %v5981_v34, %v5969_v54  ;;  %v8840_v28 = vor.u32 %v11015_v56, %v8837_v57  ;;  %v11662_v44 = vld [vmem:[%s12877_s29] sm:$0xff]  ;;  %v9752_v54 = vor.u32 %v11243_v62, %v9749_v4  ;;  %v11231_v56 = vld [vmem:[%s12037_s21 + $0x103c] sm:$0xf] }
 0x276   : > { %v1606_v38 = vperm.slane %v11662_v44, 5  ;;  %v10565_v34 = vld [vmem:[%s12037_s21 + $0x1728] sm:$0xf0]  ;;  %v11339_v26 = vld [vmem:[%s12037_s21 + $0x139c] sm:$0xf] }
 0x277   : > { %6222 = vmatpush.bf16.msra.mxu2 %v8600_v9  ;;  %v11003_v9 = vld [vmem:[%s12037_s21 + $0x91c] sm:$0xf]  ;;  %v9701_v57 = vld [vmem:[%s12037_s21 + $0x1068] sm:$0xf0] }
 0x278   : > { %6235 = vmatpush.bf16.msra.mxu3 %v8984_v51  ;;  %6198 = vmatpush.bf16.msra.mxu0 %v7736_v27  ;;  %v8789_v51 = vld [vmem:[%s12037_s21 + $0x948] sm:$0xf0]  ;;  %v9464_v27 = vor.u32 %v11171_v22, %v9461_v42  ;;  %v11435_v30 = vld [vmem:[%s12037_s21 + $0x169c] sm:$0xf] }
 0x279   : > { %6211 = vmatpush.bf16.msra.mxu1 %v8120_v20  ;;  %v9848_v20 = vor.u32 %v11267_v6, %v9845_v19  ;;  %v8792_v21 = vor.u32 %v11003_v9, %v8789_v51  ;;  %v10568_v6 = vor.u32 %v11447_v53, %v10565_v34  ;;  %v9704_v9 = vor.u32 %v11231_v56, %v9701_v57  ;;  %v10517_v51 = vld [vmem:[%s12037_s21 + $0x16c8] sm:$0xf0]  ;;  %v11423_v52 = vld [vmem:[%s12037_s21 + $0x163c] sm:$0xf]  ;;  %v10902_v34 = vld [vmem:[%s12037_s21 + $0x5ec] sm:$0xf0] }
 0x27a   : > { %v10520_v36 = vor.u32 %v11435_v30, %v10517_v51  ;;  %v10085_v13 = vld [vmem:[%s12037_s21 + $0x1368] sm:$0xf0]  ;;  %v11411_v62 = vld [vmem:[%s12037_s21 + $0x15dc] sm:$0xf]  ;;  %v7931_v30 = vld [vmem:[%s12037_s21 + $0x260] sm:$0xf] }
 0x27b   : > { %6223 = vmatpush.bf16.msra.mxu2 %v8552_v59  ;;  %v5970_v59 = vpop.f32.mrf.mxu2  ;;  %v10421_v4 = vld [vmem:[%s12037_s21 + $0x1608] sm:$0xf0]  ;;  %v11099_v44 = vld [vmem:[%s12037_s21 + $0xc1c] sm:$0xf] }
 0x27c   : > { %6236 = vmatpush.bf16.msra.mxu3 %v8936_v17  ;;  %6199 = vmatpush.bf16.msra.mxu0 %v7688_v31  ;;  %v5983_v17 = vpop.f32.mrf.mxu3  ;;  %v10664_v31 = vor.u32 %v11471_v0, %v10661_v23  ;;  %v11219_v0 = vld [vmem:[%s12037_s21 + $0xfdc] sm:$0xf] }
 0x27d   : > { %6212 = vmatpush.bf16.msra.mxu1 %v8072_v15  ;;  %v11459_v15 = vld [vmem:[%s12037_s21 + $0x175c] sm:$0xf]  ;;  %v9221_v17 = vld [vmem:[%s12037_s21 + $0xca8] sm:$0xf0] }
 0x27e   : > { %v10616_v37 = vor.u32 %v11459_v15, %v10613_v3  ;;  %v11315_v15 = vld [vmem:[%s12037_s21 + $0x12dc] sm:$0xf] }
 0x27f   : > { %6224 = vmatpush.bf16.msra.mxu2 %v8504_v40  ;;  %v10232_v40 = vor.u32 %v11363_v29, %v10229_v2  ;;  %v11303_v57 = vld [vmem:[%s12037_s21 + $0x127c] sm:$0xf] }
 0x280   : > { %6237 = vmatpush.bf16.msra.mxu3 %v8888_v50  ;;  %6200 = vmatpush.bf16.msra.mxu0 %v7640_v14  ;;  %v9368_v50 = vor.u32 %v11147_v1, %v9365_v45  ;;  %v11351_v14 = vld [vmem:[%s12037_s21 + $0x13fc] sm:$0xf]  ;;  %v10037_v45 = vld [vmem:[%s12037_s21 + $0x1308] sm:$0xf0] }
 0x281   : > { %6213 = vmatpush.bf16.msra.mxu1 %v8024_v61  ;;  %v11135_v61 = vld [vmem:[%s12037_s21 + $0xd3c] sm:$0xf]  ;;  %v10184_v22 = vor.u32 %v11351_v14, %v10181_v11  ;;  %v7979_v14 = vld [vmem:[%s12037_s21 + $0x2c0] sm:$0xf]  ;;  %v10806_v11 = vld [vmem:[%s12037_s21 + $0x2ec] sm:$0xf0]  ;;  %v10040_v53 = vor.u32 %v11315_v15, %v10037_v45 }
 0x283   : > { %6225 = vmatpush.bf16.msra.mxu2 %v8456_v63  ;;  %6201 = vmatmul.bf16.vlgmr.msra.gmra.mxu0 %v12319_v49  ;;  %v6007_v63 = vpop.f32.mrf.mxu1 }
 0x284   : > { %6245 = vmatpush.bf16.msrb.mxu0 %v9512_v35  ;;  %6238 = vmatpush.bf16.msra.mxu3 %v8840_v28  ;;  %v9317_v35 = vld [vmem:[%s12037_s21 + $0xd68] sm:$0xf0] }
 0x285   : > { %6258 = vmatpush.bf16.msrb.mxu1 %v9896_v5  ;;  %v5994_v5 = vpop.f32.mrf.mxu0  ;;  %v9320_v19 = vor.u32 %v11135_v61, %v9317_v35  ;;  %v10133_v28 = vld [vmem:[%s12037_s21 + $0x13c8] sm:$0xf0]  ;;  %v10424_v35 = vor.u32 %v11411_v62, %v10421_v4  ;;  %v8699_v4 = vld [vmem:[%s12037_s21 + $0x860] sm:$0xf] }
 0x286   : > { %6214 = vmatmul.bf16.vlgmr.msra.gmra.mxu1 %v12333_v60  ;;  %v5995_v42 = vadd.f32 %v5994_v5, %v1606_v38  ;;  %v10136_v23 = vor.u32 %v11339_v26, %v10133_v28  ;;  %v9173_v38 = vld [vmem:[%s12037_s21 + $0xc48] sm:$0xf0] }
 0x287   : > { %6226 = vmatpush.bf16.msra.mxu2 %v8408_v16  ;;  %v11327_v16 = vld [vmem:[%s12037_s21 + $0x133c] sm:$0xf]  ;;  %v9176_v56 = vor.u32 %v11099_v44, %v9173_v38  ;;  %v9989_v5 = vld [vmem:[%s12037_s21 + $0x12a8] sm:$0xf0]  ;;  %v9083_v44 = vld [vmem:[%s12037_s21 + $0xb60] sm:$0xf] }
 0x288   : > { %6246 = vmatpush.bf16.msrb.mxu0 %v9464_v27  ;;  %6239 = vmatpush.bf16.msra.mxu3 %v8792_v21  ;;  %v11123_v27 = vld [vmem:[%s12037_s21 + $0xcdc] sm:$0xf]  ;;  %v6008_v48 = vadd.f32 %v6007_v63, %v5995_v42  ;;  %v10469_v21 = vld [vmem:[%s12037_s21 + $0x1668] sm:$0xf0]  ;;  %v10088_v2 = vor.u32 %v11327_v16, %v10085_v13  ;;  %v8747_v13 = vld [vmem:[%s12037_s21 + $0x8c0] sm:$0xf] }
 0x289   : > { %6259 = vmatpush.bf16.msrb.mxu1 %v9848_v20  ;;  %v9653_v20 = vld [vmem:[%s12037_s21 + $0x1008] sm:$0xf0]  ;;  %v9272_v8 = vor.u32 %v11123_v27, %v9269_v32  ;;  %v10472_v3 = vor.u32 %v11423_v52, %v10469_v21  ;;  %v9992_v27 = vor.u32 %v11303_v57, %v9989_v5  ;;  %v8315_v32 = vld [vmem:[%s12037_s21 + $0x560] sm:$0xf]  ;;  %v10998_v52 = vld [vmem:[%s12037_s21 + $0x8ec] sm:$0xf0] }
 0x28a   : > { %6227 = vmatmul.bf16.vlgmr.msra.gmra.mxu2 %v12415_v43  ;;  %v9656_v59 = vor.u32 %v11219_v0, %v9653_v20  ;;  %v10373_v26 = vld [vmem:[%s12037_s21 + $0x15a8] sm:$0xf0]  ;;  %v11291_v0 = vld [vmem:[%s12037_s21 + $0x121c] sm:$0xf]  ;;  %v9035_v57 = vld [vmem:[%s12037_s21 + $0xb00] sm:$0xf] }
 0x28b   : > { %6271 = vmatpush.bf16.msrb.mxu2 %v10280_v47  ;;  %6240 = vmatmul.bf16.vlgmr.msra.gmra.mxu3 %v12439_v33  ;;  %v11111_v47 = vld [vmem:[%s12037_s21 + $0xc7c] sm:$0xf] }
 0x28c   : > { %6284 = vmatpush.bf16.msrb.mxu3 %v10664_v31  ;;  %6247 = vmatpush.bf16.msrb.mxu0 %v9416_v46  ;;  %v11207_v31 = vld [vmem:[%s12037_s21 + $0xf7c] sm:$0xf]  ;;  %v9605_v46 = vld [vmem:[%s12037_s21 + $0xfa8] sm:$0xf0]  ;;  %v9224_v1 = vor.u32 %v11111_v47, %v9221_v17  ;;  %v11094_v47 = vld [vmem:[%s12037_s21 + $0xbec] sm:$0xf0] }
 0x28d   : > { %6260 = vmatpush.bf16.msrb.mxu1 %v9800_v18  ;;  %v5996_v29 = vpop.f32.mrf.mxu0  ;;  %v6009_v18 = vpop.f32.mrf.mxu1  ;;  %v7883_v17 = vld [vmem:[%s12037_s21 + $0x200] sm:$0xf] }
 0x28e   : > { %v6020_v61 = vpop.f32.mrf.mxu2  ;;  %v6033_v42 = vpop.f32.mrf.mxu3  ;;  %v8267_v29 = vld [vmem:[%s12037_s21 + $0x500] sm:$0xf] }
 0x28f   : > { %6272 = vmatpush.bf16.msrb.mxu2 %v10232_v40  ;;  %v9608_v40 = vor.u32 %v11207_v31, %v9605_v46  ;;  %v10782_v31 = vld [vmem:[%s12037_s21 + $0x22c] sm:$0xf0] }
 0x290   : > { %6285 = vmatpush.bf16.msrb.mxu3 %v10616_v37  ;;  %6248 = vmatpush.bf16.msrb.mxu0 %v9368_v50  ;;  %v11195_v37 = vld [vmem:[%s12037_s21 + $0xf1c] sm:$0xf]  ;;  %v9557_v50 = vld [vmem:[%s12037_s21 + $0xf48] sm:$0xf0]  ;;  %v7884_v62 = vor.u32 %v10782_v31, %v7883_v17  ;;  %v8555_v17 = vld [vmem:[%s12037_s21 + $0x740] sm:$0xf] }
 0x291   : > { %6261 = vmatpush.bf16.msrb.mxu1 %v9752_v54  ;;  %v8363_v54 = vld [vmem:[%s12037_s21 + $0x5c0] sm:$0xf]  ;;  %v9560_v63 = vor.u32 %v11195_v37, %v9557_v50  ;;  %v11082_v37 = vld [vmem:[%s12037_s21 + $0xb8c] sm:$0xf0] }
 0x292   : > { %v8364_v28 = vor.u32 %v10902_v34, %v8363_v54  ;;  %v7835_v50 = vld [vmem:[%s12037_s21 + $0x1a0] sm:$0xf]  ;;  %v9084_v34 = vor.u32 %v11082_v37, %v9083_v44  ;;  %v10950_v31 = vld [vmem:[%s12037_s21 + $0x76c] sm:$0xf0] }
 0x293   : > { %6273 = vmatpush.bf16.msrb.mxu2 %v10184_v22  ;;  %v6021_v22 = vadd.f32 %v6020_v61, %v6008_v48  ;;  %v10890_v48 = vld [vmem:[%s12037_s21 + $0x58c] sm:$0xf0] }
 0x294   : > { %6286 = vmatpush.bf16.msrb.mxu3 %v10568_v6  ;;  %6249 = vmatpush.bf16.msrb.mxu0 %v9320_v19  ;;  %v7980_v6 = vor.u32 %v10806_v11, %v7979_v14  ;;  %v11399_v19 = vld [vmem:[%s12037_s21 + $0x157c] sm:$0xf]  ;;  %v8316_v21 = vor.u32 %v10890_v48, %v8315_v32  ;;  %v10770_v14 = vld [vmem:[%s12037_s21 + $0x1cc] sm:$0xf0]  ;;  %v8219_v11 = vld [vmem:[%s12037_s21 + $0x4a0] sm:$0xf] }
 0x295   : > { %6262 = vmatpush.bf16.msrb.mxu1 %v9704_v9  ;;  %v10794_v9 = vld [vmem:[%s12037_s21 + $0x28c] sm:$0xf0]  ;;  %v13578_v51 = vadd.f32 %v6033_v42, %v6021_v22  ;;  %v10376_v20 = vor.u32 %v11399_v19, %v10373_v26  ;;  %v7836_v61 = vor.u32 %v10770_v14, %v7835_v50  ;;  %v7787_v42 = vld [vmem:[%s12037_s21 + $0x140] sm:$0xf] }
 0x296   : > { %v7932_v16 = vor.u32 %v10794_v9, %v7931_v30  ;;  %v6022_v15 = vpop.f32.mrf.mxu2  ;;  %v11070_v22 = vld [vmem:[%s12037_s21 + $0xb2c] sm:$0xf0]  ;;  %v8603_v48 = vld [vmem:[%s12037_s21 + $0x7a0] sm:$0xf] }
 0x297   : > { %6274 = vmatpush.bf16.msrb.mxu2 %v10136_v23  ;;  %v9941_v23 = vld [vmem:[%s12037_s21 + $0x1248] sm:$0xf0]  ;;  %v10854_v19 = vld [vmem:[%s12037_s21 + $0x46c] sm:$0xf0]  ;;  %v7691_v15 = vld [vmem:[%s12037_s21 + $0x80] sm:$0xf] }
 0x298   : > { %6287 = vmatpush.bf16.msrb.mxu3 %v10520_v36  ;;  %6250 = vmatpush.bf16.msrb.mxu0 %v9272_v8  ;;  %v11387_v36 = vld [vmem:[%s12037_s21 + $0x151c] sm:$0xf]  ;;  %v10325_v8 = vld [vmem:[%s12037_s21 + $0x1548] sm:$0xf0]  ;;  %v9944_v46 = vor.u32 %v11291_v0, %v9941_v23  ;;  %v10962_v0 = vld [vmem:[%s12037_s21 + $0x7cc] sm:$0xf0] }
 0x299   : > { %6263 = vmatpush.bf16.msrb.mxu1 %v9656_v59  ;;  %v9131_v59 = vld [vmem:[%s12037_s21 + $0xbc0] sm:$0xf]  ;;  %v10328_v18 = vor.u32 %v11387_v36, %v10325_v8  ;;  %v11058_v36 = vld [vmem:[%s12037_s21 + $0xacc] sm:$0xf0] }
 0x29a   : > { %v9132_v45 = vor.u32 %v11094_v47, %v9131_v59  ;;  %v7739_v8 = vld [vmem:[%s12037_s21 + $0xe0] sm:$0xf]  ;;  %v8604_v59 = vor.u32 %v10962_v0, %v8603_v48  ;;  %v10938_v37 = vld [vmem:[%s12037_s21 + $0x70c] sm:$0xf0] }
 0x29b   : > { %6275 = vmatpush.bf16.msrb.mxu2 %v10088_v2  ;;  %v10878_v2 = vld [vmem:[%s12037_s21 + $0x52c] sm:$0xf0]  ;;  %v8891_v50 = vld [vmem:[%s12037_s21 + $0x9e0] sm:$0xf] }
 0x29c   : > { %6288 = vmatpush.bf16.msrb.mxu3 %v10472_v3  ;;  %6251 = vmatpush.bf16.msrb.mxu0 %v9224_v1  ;;  %v8748_v3 = vor.u32 %v10998_v52, %v8747_v13  ;;  %v6035_v1 = vpop.f32.mrf.mxu3  ;;  %v8268_v38 = vor.u32 %v10878_v2, %v8267_v29  ;;  %v10842_v52 = vld [vmem:[%s12037_s21 + $0x40c] sm:$0xf0] }
 0x29d   : > { %6264 = vmatpush.bf16.msrb.mxu1 %v9608_v40  ;;  %v10986_v40 = vld [vmem:[%s12037_s21 + $0x88c] sm:$0xf0] }
 0x29e   : > { %v8700_v54 = vor.u32 %v10986_v40, %v8699_v4  ;;  %v11046_v2 = vld [vmem:[%s12037_s21 + $0xa6c] sm:$0xf0]  ;;  %v8507_v4 = vld [vmem:[%s12037_s21 + $0x6e0] sm:$0xf] }
 0x29f   : > { %6276 = vmatpush.bf16.msrb.mxu2 %v10040_v53  ;;  %v10866_v53 = vld [vmem:[%s12037_s21 + $0x4cc] sm:$0xf0] }
 0x2a0   : > { %6289 = vmatpush.bf16.msrb.mxu3 %v10424_v35  ;;  %6252 = vmatpush.bf16.msrb.mxu0 %v9176_v56  ;;  %v8651_v35 = vld [vmem:[%s12037_s21 + $0x800] sm:$0xf]  ;;  %v10974_v56 = vld [vmem:[%s12037_s21 + $0x82c] sm:$0xf0]  ;;  %v8220_v5 = vor.u32 %v10866_v53, %v8219_v11  ;;  %v6046_v26 = vpop.f32.mrf.mxu0 }
 0x2a1   : > { %6265 = vmatpush.bf16.msrb.mxu1 %v9560_v63  ;;  %v10758_v63 = vld [vmem:[%s12037_s21 + $0x16c] sm:$0xf0]  ;;  %v6047_v30 = vadd.f32 %v6046_v26, %v13578_v51  ;;  %v8123_v51 = vld [vmem:[%s12037_s21 + $0x3e0] sm:$0xf] }
 0x2a2   : > { %v7788_v32 = vor.u32 %v10758_v63, %v7787_v42  ;;  %v8124_v29 = vor.u32 %v10842_v52, %v8123_v51  ;;  %v10830_v1 = vld [vmem:[%s12037_s21 + $0x3ac] sm:$0xf0]  ;;  %v7643_v53 = vld [vmem:[%s12037_s21 + $0x20] sm:$0xf] }
 0x2a3   : > { %6277 = vmatpush.bf16.msrb.mxu2 %v9992_v27  ;;  %6253 = vmatmul.bf16.vlgmr.msrb.gmra.mxu0 %v12570_v25  ;;  %v6059_v9 = vpop.f32.mrf.mxu1  ;;  %v9036_v27 = vor.u32 %v11070_v22, %v9035_v57  ;;  %v11034_v14 = vld [vmem:[%s12037_s21 + $0xa0c] sm:$0xf0]  ;;  %v8508_v57 = vor.u32 %v10938_v37, %v8507_v4  ;;  %v8411_v51 = vld [vmem:[%s12037_s21 + $0x620] sm:$0xf] }
 0x2a4   : > { %6297 = vmatpush.bf16.msra.mxu0 %v7980_v6  ;;  %6290 = vmatpush.bf16.msrb.mxu3 %v10376_v20  ;;  %v8171_v6 = vld [vmem:[%s12037_s21 + $0x440] sm:$0xf]  ;;  %v6060_v13 = vadd.f32 %v6059_v9, %v6047_v30  ;;  %v11286_v22 = vld [vmem:[%s12037_s21 + $0x11ec] sm:$0xf0]  ;;  %v8892_v63 = vor.u32 %v11034_v14, %v8891_v50 }
 0x2a5   : > { %6310 = vmatpush.bf16.msra.mxu1 %v8364_v28  ;;  %v8652_v28 = vor.u32 %v10974_v56, %v8651_v35  ;;  %v8987_v20 = vld [vmem:[%s12037_s21 + $0xaa0] sm:$0xf]  ;;  %v8172_v23 = vor.u32 %v10854_v19, %v8171_v6  ;;  %v11190_v56 = vld [vmem:[%s12037_s21 + $0xeec] sm:$0xf0] }
 0x2a6   : > { %6266 = vmatmul.bf16.vlgmr.msrb.gmra.mxu1 %v12591_v39  ;;  %v9515_v35 = vld [vmem:[%s12037_s21 + $0xec0] sm:$0xf]  ;;  %v10926_v26 = vld [vmem:[%s12037_s21 + $0x6ac] sm:$0xf0] }
 0x2a7   : > { %6278 = vmatpush.bf16.msrb.mxu2 %v9944_v46  ;;  %v8939_v46 = vld [vmem:[%s12037_s21 + $0xa40] sm:$0xf]  ;;  %v11022_v48 = vld [vmem:[%s12037_s21 + $0x9ac] sm:$0xf0] }
 0x2a8   : > { %6298 = vmatpush.bf16.msra.mxu0 %v7932_v16  ;;  %6291 = vmatpush.bf16.msrb.mxu3 %v10328_v18  ;;  %v10746_v16 = vld [vmem:[%s12037_s21 + $0x10c] sm:$0xf0]  ;;  %v8940_v44 = vor.u32 %v11046_v2, %v8939_v46  ;;  %v8459_v19 = vld [vmem:[%s12037_s21 + $0x680] sm:$0xf] }
 0x2a9   : > { %6311 = vmatpush.bf16.msra.mxu1 %v8316_v21  ;;  %v8988_v21 = vor.u32 %v11058_v36, %v8987_v20  ;;  %v7740_v47 = vor.u32 %v10746_v16, %v7739_v8  ;;  %v10734_v18 = vld [vmem:[%s12037_s21 + $0xac] sm:$0xf0]  ;;  %v9467_v20 = vld [vmem:[%s12037_s21 + $0xe60] sm:$0xf]  ;;  %v8460_v8 = vor.u32 %v10926_v26, %v8459_v19 }
 0x2aa   : > { %6279 = vmatmul.bf16.vlgmr.msrb.gmra.mxu2 %v12633_v41  ;;  %v9851_v16 = vld [vmem:[%s12037_s21 + $0x1160] sm:$0xf]  ;;  %v11382_v46 = vld [vmem:[%s12037_s21 + $0x14ec] sm:$0xf0] }
 0x2ab   : > { %6323 = vmatpush.bf16.msra.mxu2 %v8748_v3  ;;  %6292 = vmatmul.bf16.vlgmr.msrb.gmra.mxu3 %v12649_v58  ;;  %v8075_v3 = vld [vmem:[%s12037_s21 + $0x380] sm:$0xf]  ;;  %v6061_v40 = vpop.f32.mrf.mxu1 }
 0x2ac   : > { %6336 = vmatpush.bf16.msra.mxu3 %v9132_v45  ;;  %6299 = vmatpush.bf16.msra.mxu0 %v7884_v62  ;;  %v6048_v45 = vpop.f32.mrf.mxu0  ;;  %v8556_v62 = vor.u32 %v10950_v31, %v8555_v17  ;;  %v8076_v11 = vor.u32 %v10830_v1, %v8075_v3  ;;  %v10283_v31 = vld [vmem:[%s12037_s21 + $0x14c0] sm:$0xf]  ;;  %v11166_v3 = vld [vmem:[%s12037_s21 + $0xe2c] sm:$0xf0] }
 0x2ad   : > { %6312 = vmatpush.bf16.msra.mxu1 %v8268_v38  ;;  %v7692_v38 = vor.u32 %v10734_v18, %v7691_v15  ;;  %v6072_v42 = vpop.f32.mrf.mxu2  ;;  %v11478_v15 = vld [vmem:[%s12037_s21 + $0x17ec] sm:$0xf0]  ;;  %v9419_v18 = vld [vmem:[%s12037_s21 + $0xe00] sm:$0xf] }
 0x2ae   : > { %v6085_v30 = vpop.f32.mrf.mxu3  ;;  %v9803_v45 = vld [vmem:[%s12037_s21 + $0x1100] sm:$0xf]  ;;  %v9420_v50 = vor.u32 %v11166_v3, %v9419_v18  ;;  %v11334_v18 = vld [vmem:[%s12037_s21 + $0x136c] sm:$0xf0] }
 0x2af   : > { %6324 = vmatpush.bf16.msra.mxu2 %v8700_v54  ;;  %v10722_v54 = vld [vmem:[%s12037_s21 + $0x4c] sm:$0xf0]  ;;  %v10235_v14 = vld [vmem:[%s12037_s21 + $0x1460] sm:$0xf] }
 0x2b0   : > { %6337 = vmatpush.bf16.msra.mxu3 %v9084_v34  ;;  %6300 = vmatpush.bf16.msra.mxu0 %v7836_v61  ;;  %v8027_v34 = vld [vmem:[%s12037_s21 + $0x320] sm:$0xf]  ;;  %v10818_v61 = vld [vmem:[%s12037_s21 + $0x34c] sm:$0xf0]  ;;  %v7644_v6 = vor.u32 %v10722_v54, %v7643_v53 }
 0x2b1   : > { %6313 = vmatpush.bf16.msra.mxu1 %v8220_v5  ;;  %v9899_v5 = vld [vmem:[%s12037_s21 + $0x11c0] sm:$0xf]  ;;  %v8028_v9 = vor.u32 %v10818_v61, %v8027_v34  ;;  %v11466_v34 = vld [vmem:[%s12037_s21 + $0x178c] sm:$0xf0] }
 0x2b2   : > { %v9900_v0 = vor.u32 %v11286_v22, %v9899_v5  ;;  %v10619_v53 = vld [vmem:[%s12037_s21 + $0x1760] sm:$0xf] }
 0x2b3   : > { %6325 = vmatpush.bf16.msra.mxu2 %v8652_v28  ;;  %v6073_v28 = vadd.f32 %v6072_v42, %v6060_v13  ;;  %v11274_v13 = vld [vmem:[%s12037_s21 + $0x118c] sm:$0xf0]  ;;  %v9371_v61 = vld [vmem:[%s12037_s21 + $0xda0] sm:$0xf]  ;;  %v10620_v22 = vor.u32 %v11466_v34, %v10619_v53 }
 0x2b4   : > { %6338 = vmatpush.bf16.msra.mxu3 %v9036_v27  ;;  %6301 = vmatpush.bf16.msra.mxu0 %v7788_v32  ;;  %v9516_v27 = vor.u32 %v11190_v56, %v9515_v35  ;;  %v8843_v32 = vld [vmem:[%s12037_s21 + $0x980] sm:$0xf]  ;;  %v9852_v2 = vor.u32 %v11274_v13, %v9851_v16  ;;  %v11154_v35 = vld [vmem:[%s12037_s21 + $0xdcc] sm:$0xf0] }
 0x2b5   : > { %6314 = vmatpush.bf16.msra.mxu1 %v8172_v23  ;;  %v11178_v23 = vld [vmem:[%s12037_s21 + $0xe8c] sm:$0xf0]  ;;  %v13649_v36 = vadd.f32 %v6085_v30, %v6073_v28  ;;  %v8844_v52 = vor.u32 %v11022_v48, %v8843_v32  ;;  %v6074_v4 = vpop.f32.mrf.mxu2  ;;  %v9755_v56 = vld [vmem:[%s12037_s21 + $0x10a0] sm:$0xf]  ;;  %v9372_v42 = vor.u32 %v11154_v35, %v9371_v61 }
 0x2b6   : > { %v9468_v17 = vor.u32 %v11178_v23, %v9467_v20  ;;  %v10571_v19 = vld [vmem:[%s12037_s21 + $0x1700] sm:$0xf]  ;;  %v11454_v28 = vld [vmem:[%s12037_s21 + $0x172c] sm:$0xf0] }
 0x2b7   : > { %6326 = vmatpush.bf16.msra.mxu2 %v8604_v59  ;;  %v10914_v59 = vld [vmem:[%s12037_s21 + $0x64c] sm:$0xf0]  ;;  %v9323_v30 = vld [vmem:[%s12037_s21 + $0xd40] sm:$0xf]  ;;  %v10572_v23 = vor.u32 %v11454_v28, %v10571_v19  ;;  %v10896_v19 = vld [vmem:[%s12037_s21 + $0x5c4] sm:$0xf] }
 0x2b8   : > { %6339 = vmatpush.bf16.msra.mxu3 %v8988_v21  ;;  %6302 = vmatpush.bf16.msra.mxu0 %v7740_v47  ;;  %v8795_v21 = vld [vmem:[%s12037_s21 + $0x920] sm:$0xf]  ;;  %v11010_v47 = vld [vmem:[%s12037_s21 + $0x94c] sm:$0xf0]  ;;  %v8412_v1 = vor.u32 %v10914_v59, %v8411_v51 }
 0x2b9   : > { %6315 = vmatpush.bf16.msra.mxu1 %v8124_v29  ;;  %v10667_v29 = vld [vmem:[%s12037_s21 + $0x17c0] sm:$0xf]  ;;  %v8796_v40 = vor.u32 %v11010_v47, %v8795_v21  ;;  %v11238_v32 = vld [vmem:[%s12037_s21 + $0x106c] sm:$0xf0] }
 0x2ba   : > { %v10668_v37 = vor.u32 %v11478_v15, %v10667_v29  ;;  %v10139_v16 = vld [vmem:[%s12037_s21 + $0x13a0] sm:$0xf]  ;;  %v11346_v13 = vld [vmem:[%s12037_s21 + $0x13cc] sm:$0xf0] }
 0x2bb   : > { %6327 = vmatpush.bf16.msra.mxu2 %v8556_v62  ;;  %v11262_v62 = vld [vmem:[%s12037_s21 + $0x112c] sm:$0xf0]  ;;  %v10523_v51 = vld [vmem:[%s12037_s21 + $0x16a0] sm:$0xf] }
 0x2bc   : > { %6340 = vmatpush.bf16.msra.mxu3 %v8940_v44  ;;  %6303 = vmatpush.bf16.msra.mxu0 %v7692_v38  ;;  %v10284_v44 = vor.u32 %v11382_v46, %v10283_v31  ;;  %v6087_v38 = vpop.f32.mrf.mxu3  ;;  %v9804_v54 = vor.u32 %v11262_v62, %v9803_v45  ;;  %v11442_v59 = vld [vmem:[%s12037_s21 + $0x16cc] sm:$0xf0]  ;;  %v9275_v21 = vld [vmem:[%s12037_s21 + $0xce0] sm:$0xf]  ;;  %v10140_v46 = vor.u32 %v11346_v13, %v10139_v16 }
 0x2bd   : > { %6316 = vmatpush.bf16.msra.mxu1 %v8076_v11  ;;  %v11370_v11 = vld [vmem:[%s12037_s21 + $0x148c] sm:$0xf0]  ;;  %v10524_v29 = vor.u32 %v11442_v59, %v10523_v51  ;;  %v10091_v15 = vld [vmem:[%s12037_s21 + $0x1340] sm:$0xf]  ;;  %v7933_v59 = vld [vmem:[%s12037_s21 + $0x290] sm:$0xf0] }
 0x2be   : > { %v10236_v5 = vor.u32 %v11370_v11, %v10235_v14  ;;  %v11130_v47 = vld [vmem:[%s12037_s21 + $0xd0c] sm:$0xf0]  ;;  %v10475_v3 = vld [vmem:[%s12037_s21 + $0x1640] sm:$0xf] }
 0x2bf   : > { %6328 = vmatpush.bf16.msra.mxu2 %v8508_v57  ;;  %v11250_v57 = vld [vmem:[%s12037_s21 + $0x10cc] sm:$0xf0]  ;;  %v9227_v62 = vld [vmem:[%s12037_s21 + $0xc80] sm:$0xf] }
 0x2c0   : > { %6341 = vmatpush.bf16.msra.mxu3 %v8892_v63  ;;  %6304 = vmatpush.bf16.msra.mxu0 %v7644_v6  ;;  %v10187_v63 = vld [vmem:[%s12037_s21 + $0x1400] sm:$0xf]  ;;  %v11358_v6 = vld [vmem:[%s12037_s21 + $0x142c] sm:$0xf0]  ;;  %v9756_v26 = vor.u32 %v11250_v57, %v9755_v56  ;;  %v13685_v48 = vpop.f32.mrf.mxu0 }
 0x2c1   : > { %6317 = vmatpush.bf16.msra.mxu1 %v8028_v9  ;;  %v11142_v9 = vld [vmem:[%s12037_s21 + $0xd6c] sm:$0xf0]  ;;  %v10427_v34 = vld [vmem:[%s12037_s21 + $0x15e0] sm:$0xf] }
 0x2c2   : > { %v11226_v31 = vld [vmem:[%s12037_s21 + $0x100c] sm:$0xf0]  ;;  %v9179_v56 = vld [vmem:[%s12037_s21 + $0xc20] sm:$0xf] }
 0x2c3   : > { %6329 = vmatpush.bf16.msra.mxu2 %v8460_v8  ;;  %6305 = vmatmul.bf16.vlgmr.msra.gmra.mxu0 %v12319_v49  ;;  %v13687_v20 = vpop.f32.mrf.mxu1  ;;  %v9324_v8 = vor.u32 %v11142_v9, %v9323_v30  ;;  %v11430_v45 = vld [vmem:[%s12037_s21 + $0x166c] sm:$0xf0]  ;;  %v10379_v16 = vld [vmem:[%s12037_s21 + $0x1580] sm:$0xf] }
 0x2c4   : > { %6349 = vmatpush.bf16.msrb.mxu0 %v9516_v27  ;;  %6342 = vmatpush.bf16.msra.mxu3 %v8844_v52  ;;  %v9707_v27 = vld [vmem:[%s12037_s21 + $0x1040] sm:$0xf]  ;;  %v11118_v4 = vld [vmem:[%s12037_s21 + $0xcac] sm:$0xf0]  ;;  %v10476_v11 = vor.u32 %v11430_v45, %v10475_v3  ;;  %v10992_v3 = vld [vmem:[%s12037_s21 + $0x8c4] sm:$0xf] }
 0x2c5   : > { %6362 = vmatpush.bf16.msrb.mxu1 %v9900_v0  ;;  %v10188_v0 = vor.u32 %v11358_v6, %v10187_v63  ;;  %v9708_v52 = vor.u32 %v11238_v32, %v9707_v27  ;;  %v9228_v53 = vor.u32 %v11118_v4, %v9227_v62  ;;  %v11418_v61 = vld [vmem:[%s12037_s21 + $0x160c] sm:$0xf0]  ;;  %v7981_v63 = vld [vmem:[%s12037_s21 + $0x2f0] sm:$0xf0]  ;;  %v9995_v27 = vld [vmem:[%s12037_s21 + $0x1280] sm:$0xf] }
 0x2c6   : > { %6318 = vmatmul.bf16.vlgmr.msra.gmra.mxu1 %v12333_v60  ;;  %v11106_v57 = vld [vmem:[%s12037_s21 + $0xc4c] sm:$0xf0]  ;;  %v10428_v30 = vor.u32 %v11418_v61, %v10427_v34  ;;  %v11088_v45 = vld [vmem:[%s12037_s21 + $0xbc4] sm:$0xf]  ;;  %v9133_v4 = vld [vmem:[%s12037_s21 + $0xbf0] sm:$0xf0] }
 0x2c7   : > { %6330 = vmatpush.bf16.msra.mxu2 %v8412_v1  ;;  %v9180_v9 = vor.u32 %v11106_v57, %v9179_v56  ;;  %v11310_v32 = vld [vmem:[%s12037_s21 + $0x12ac] sm:$0xf0]  ;;  %v9136_v34 = vor.u32 %v11088_v45, %v9133_v4  ;;  %v8701_v56 = vld [vmem:[%s12037_s21 + $0x890] sm:$0xf0]  ;;  %v11076_v57 = vld [vmem:[%s12037_s21 + $0xb64] sm:$0xf] }
 0x2c8   : > { %6350 = vmatpush.bf16.msrb.mxu0 %v9468_v17  ;;  %6343 = vmatpush.bf16.msra.mxu3 %v8796_v40  ;;  %v9659_v17 = vld [vmem:[%s12037_s21 + $0xfe0] sm:$0xf]  ;;  %v6100_v38 = vpop.f32.mrf.mxu0  ;;  %v11406_v13 = vld [vmem:[%s12037_s21 + $0x15ac] sm:$0xf0]  ;;  %v7741_v45 = vld [vmem:[%s12037_s21 + $0x110] sm:$0xf0] }
 0x2c9   : > { %6363 = vmatpush.bf16.msrb.mxu1 %v9852_v2  ;;  %v9276_v2 = vor.u32 %v11130_v47, %v9275_v21  ;;  %v9660_v1 = vor.u32 %v11226_v31, %v9659_v17  ;;  %v9611_v40 = vld [vmem:[%s12037_s21 + $0xf80] sm:$0xf]  ;;  %v9996_v21 = vor.u32 %v11310_v32, %v9995_v27  ;;  %v10884_v47 = vld [vmem:[%s12037_s21 + $0x564] sm:$0xf]  ;;  %v8317_v17 = vld [vmem:[%s12037_s21 + $0x590] sm:$0xf0] }
 0x2ca   : > { %6331 = vmatmul.bf16.vlgmr.msra.gmra.mxu2 %v12415_v43  ;;  %v9947_v31 = vld [vmem:[%s12037_s21 + $0x1220] sm:$0xf]  ;;  %v8320_v62 = vor.u32 %v10884_v47, %v8317_v17  ;;  %v10968_v27 = vld [vmem:[%s12037_s21 + $0x804] sm:$0xf]  ;;  %v8653_v32 = vld [vmem:[%s12037_s21 + $0x830] sm:$0xf0] }
 0x2cb   : > { %6375 = vmatpush.bf16.msrb.mxu2 %v10284_v44  ;;  %6344 = vmatmul.bf16.vlgmr.msra.gmra.mxu3 %v12439_v33  ;;  %v11214_v44 = vld [vmem:[%s12037_s21 + $0xfac] sm:$0xf0]  ;;  %v6113_v14 = vpop.f32.mrf.mxu1  ;;  %v8656_v47 = vor.u32 %v10968_v27, %v8653_v32  ;;  %v8125_v4 = vld [vmem:[%s12037_s21 + $0x410] sm:$0xf0]  ;;  %v10812_v32 = vld [vmem:[%s12037_s21 + $0x324] sm:$0xf] }
 0x2cc   : > { %6388 = vmatpush.bf16.msrb.mxu3 %v10668_v37  ;;  %6351 = vmatpush.bf16.msrb.mxu0 %v9420_v50  ;;  %v10092_v37 = vor.u32 %v11334_v18, %v10091_v15  ;;  %v10043_v50 = vld [vmem:[%s12037_s21 + $0x12e0] sm:$0xf]  ;;  %v9612_v35 = vor.u32 %v11214_v44, %v9611_v40  ;;  %v11394_v15 = vld [vmem:[%s12037_s21 + $0x154c] sm:$0xf0]  ;;  %v10776_v40 = vld [vmem:[%s12037_s21 + $0x204] sm:$0xf] }
 0x2cd   : > { %6364 = vmatpush.bf16.msrb.mxu1 %v9804_v54  ;;  %v11322_v54 = vld [vmem:[%s12037_s21 + $0x130c] sm:$0xf0]  ;;  %v13717_v28 = vpop.f32.mrf.mxu2  ;;  %v7885_v44 = vld [vmem:[%s12037_s21 + $0x230] sm:$0xf0] }
 0x2ce   : > { %v10044_v6 = vor.u32 %v11322_v54, %v10043_v50  ;;  %v8269_v50 = vld [vmem:[%s12037_s21 + $0x530] sm:$0xf0]  ;;  %v7888_v61 = vor.u32 %v10776_v40, %v7885_v44 }
 0x2cf   : > { %6376 = vmatpush.bf16.msrb.mxu2 %v10236_v5  ;;  %v9563_v5 = vld [vmem:[%s12037_s21 + $0xf20] sm:$0xf]  ;;  %v7645_v27 = vld [vmem:[%s12037_s21 + $0x50] sm:$0xf0] }
 0x2d0   : > { %6389 = vmatpush.bf16.msrb.mxu3 %v10620_v22  ;;  %6352 = vmatpush.bf16.msrb.mxu0 %v9372_v42  ;;  %v11202_v22 = vld [vmem:[%s12037_s21 + $0xf4c] sm:$0xf0]  ;;  %v10800_v42 = vld [vmem:[%s12037_s21 + $0x2c4] sm:$0xf] }
 0x2d1   : > { %6365 = vmatpush.bf16.msrb.mxu1 %v9756_v26  ;;  %v8365_v26 = vld [vmem:[%s12037_s21 + $0x5f0] sm:$0xf0] }
 0x2d2   : > { %v8368_v51 = vor.u32 %v10896_v19, %v8365_v26  ;;  %v8221_v19 = vld [vmem:[%s12037_s21 + $0x4d0] sm:$0xf0] }
 0x2d3   : > { %6377 = vmatpush.bf16.msrb.mxu2 %v10188_v0  ;;  %v13721_v0 = vpop.f32.mrf.mxu3 }
 0x2d4   : > { %6390 = vmatpush.bf16.msrb.mxu3 %v10572_v23  ;;  %6353 = vmatpush.bf16.msrb.mxu0 %v9324_v8  ;;  %v9564_v23 = vor.u32 %v11202_v22, %v9563_v5  ;;  %v7984_v8 = vor.u32 %v10800_v42, %v7981_v63  ;;  %v9085_v22 = vld [vmem:[%s12037_s21 + $0xb90] sm:$0xf0]  ;;  %v10764_v42 = vld [vmem:[%s12037_s21 + $0x1a4] sm:$0xf] }
 0x2d5   : > { %6366 = vmatpush.bf16.msrb.mxu1 %v9708_v52  ;;  %v10788_v52 = vld [vmem:[%s12037_s21 + $0x264] sm:$0xf]  ;;  %v6126_v14 = vpop.f32.mrf.mxu2  ;;  %v7837_v63 = vld [vmem:[%s12037_s21 + $0x1d0] sm:$0xf0] }
 0x2d6   : > { %v7936_v18 = vor.u32 %v10788_v52, %v7933_v59  ;;  %v10848_v52 = vld [vmem:[%s12037_s21 + $0x444] sm:$0xf]  ;;  %v8173_v59 = vld [vmem:[%s12037_s21 + $0x470] sm:$0xf0] }
 0x2d7   : > { %6378 = vmatpush.bf16.msrb.mxu2 %v10140_v46  ;;  %v10380_v46 = vor.u32 %v11406_v13, %v10379_v16  ;;  %v9037_v16 = vld [vmem:[%s12037_s21 + $0xb30] sm:$0xf0]  ;;  %v10752_v13 = vld [vmem:[%s12037_s21 + $0x144] sm:$0xf] }
 0x2d8   : > { %6391 = vmatpush.bf16.msrb.mxu3 %v10524_v29  ;;  %6354 = vmatpush.bf16.msrb.mxu0 %v9276_v2  ;;  %v11298_v29 = vld [vmem:[%s12037_s21 + $0x124c] sm:$0xf0]  ;;  %v10331_v2 = vld [vmem:[%s12037_s21 + $0x1520] sm:$0xf]  ;;  %v11040_v14 = vld [vmem:[%s12037_s21 + $0xa44] sm:$0xf] }
 0x2d9   : > { %6367 = vmatpush.bf16.msrb.mxu1 %v9660_v1  ;;  %v8749_v1 = vld [vmem:[%s12037_s21 + $0x8f0] sm:$0xf0]  ;;  %v9948_v38 = vor.u32 %v11298_v29, %v9947_v31  ;;  %v10956_v29 = vld [vmem:[%s12037_s21 + $0x7a4] sm:$0xf] }
 0x2db   : > { %6379 = vmatpush.bf16.msrb.mxu2 %v10092_v37  ;;  %v10872_v37 = vld [vmem:[%s12037_s21 + $0x504] sm:$0xf]  ;;  %v6139_v54 = vpop.f32.mrf.mxu3 }
 0x2dc   : > { %6392 = vmatpush.bf16.msrb.mxu3 %v10476_v11  ;;  %6355 = vmatpush.bf16.msrb.mxu0 %v9228_v53  ;;  %v10332_v11 = vor.u32 %v11394_v15, %v10331_v2  ;;  %v8752_v53 = vor.u32 %v10992_v3, %v8749_v1  ;;  %v8272_v5 = vor.u32 %v10872_v37, %v8269_v50  ;;  %v8605_v2 = vld [vmem:[%s12037_s21 + $0x7d0] sm:$0xf0]  ;;  %v11052_v15 = vld [vmem:[%s12037_s21 + $0xaa4] sm:$0xf] }
 0x2dd   : > { %6368 = vmatpush.bf16.msrb.mxu1 %v9612_v35  ;;  %v10980_v35 = vld [vmem:[%s12037_s21 + $0x864] sm:$0xf]  ;;  %v8989_v3 = vld [vmem:[%s12037_s21 + $0xad0] sm:$0xf0]  ;;  %v8608_v40 = vor.u32 %v10956_v29, %v8605_v2 }
 0x2de   : > { %v8704_v26 = vor.u32 %v10980_v35, %v8701_v56  ;;  %v10740_v1 = vld [vmem:[%s12037_s21 + $0xe4] sm:$0xf]  ;;  %v8992_v44 = vor.u32 %v11052_v15, %v8989_v3  ;;  %v8557_v50 = vld [vmem:[%s12037_s21 + $0x770] sm:$0xf0] }
 0x2df   : > { %6380 = vmatpush.bf16.msrb.mxu2 %v10044_v6  ;;  %v10860_v6 = vld [vmem:[%s12037_s21 + $0x4a4] sm:$0xf]  ;;  %v8077_v35 = vld [vmem:[%s12037_s21 + $0x3b0] sm:$0xf0] }
 0x2e0   : > { %6393 = vmatpush.bf16.msrb.mxu3 %v10428_v30  ;;  %6356 = vmatpush.bf16.msrb.mxu0 %v9180_v9  ;;  %v9088_v30 = vor.u32 %v11076_v57, %v9085_v22  ;;  %v7840_v9 = vor.u32 %v10764_v42, %v7837_v63  ;;  %v10944_v37 = vld [vmem:[%s12037_s21 + $0x744] sm:$0xf]  ;;  %v8461_v29 = vld [vmem:[%s12037_s21 + $0x6b0] sm:$0xf0] }
 0x2e1   : > { %6369 = vmatpush.bf16.msrb.mxu1 %v9564_v23  ;;  %v11064_v23 = vld [vmem:[%s12037_s21 + $0xb04] sm:$0xf]  ;;  %v8560_v57 = vor.u32 %v10944_v37, %v8557_v50 }
 0x2e2   : > { %v9040_v31 = vor.u32 %v11064_v23, %v9037_v16  ;;  %v10728_v54 = vld [vmem:[%s12037_s21 + $0x84] sm:$0xf]  ;;  %v8029_v23 = vld [vmem:[%s12037_s21 + $0x350] sm:$0xf0] }
 0x2e3   : > { %6381 = vmatpush.bf16.msrb.mxu2 %v9996_v21  ;;  %6357 = vmatmul.bf16.vlgmr.msrb.gmra.mxu0 %v12570_v25  ;;  %v13761_v21 = vpop.f32.mrf.mxu0  ;;  %v13763_v17 = vpop.f32.mrf.mxu1  ;;  %v9517_v16 = vld [vmem:[%s12037_s21 + $0xef0] sm:$0xf0]  ;;  %v8032_v15 = vor.u32 %v10812_v32, %v8029_v23  ;;  %v11016_v3 = vld [vmem:[%s12037_s21 + $0x984] sm:$0xf] }
 0x2e4   : > { %6401 = vmatpush.bf16.msra.mxu0 %v7984_v8  ;;  %6394 = vmatpush.bf16.msrb.mxu3 %v10380_v46  ;;  %v8224_v8 = vor.u32 %v10860_v6, %v8221_v19  ;;  %v8509_v6 = vld [vmem:[%s12037_s21 + $0x710] sm:$0xf0]  ;;  %v11028_v19 = vld [vmem:[%s12037_s21 + $0x9e4] sm:$0xf] }
 0x2e5   : > { %6414 = vmatpush.bf16.msra.mxu1 %v8368_v51  ;;  %v7789_v51 = vld [vmem:[%s12037_s21 + $0x170] sm:$0xf0]  ;;  %v10908_v37 = vld [vmem:[%s12037_s21 + $0x624] sm:$0xf] }
 0x2e6   : > { %6370 = vmatmul.bf16.vlgmr.msrb.gmra.mxu1 %v12591_v39  ;;  %v7792_v46 = vor.u32 %v10752_v13, %v7789_v51  ;;  %v11280_v51 = vld [vmem:[%s12037_s21 + $0x11c4] sm:$0xf] }
 0x2e7   : > { %6382 = vmatpush.bf16.msrb.mxu2 %v9948_v38  ;;  %v7744_v38 = vor.u32 %v10740_v1, %v7741_v45  ;;  %v8845_v1 = vld [vmem:[%s12037_s21 + $0x9b0] sm:$0xf0]  ;;  %v11364_v23 = vld [vmem:[%s12037_s21 + $0x1464] sm:$0xf] }
 0x2e8   : > { %6402 = vmatpush.bf16.msra.mxu0 %v7936_v18  ;;  %6395 = vmatpush.bf16.msrb.mxu3 %v10332_v11  ;;  %v8176_v18 = vor.u32 %v10848_v52, %v8173_v59  ;;  %v9901_v52 = vld [vmem:[%s12037_s21 + $0x11f0] sm:$0xf0]  ;;  %v8848_v50 = vor.u32 %v11016_v3, %v8845_v1 }
 0x2e9   : > { %6415 = vmatpush.bf16.msra.mxu1 %v8320_v62  ;;  %v10836_v62 = vld [vmem:[%s12037_s21 + $0x3e4] sm:$0xf]  ;;  %v9904_v45 = vor.u32 %v11280_v51, %v9901_v52  ;;  %v10621_v51 = vld [vmem:[%s12037_s21 + $0x1790] sm:$0xf0] }
 0x2ea   : > { %6383 = vmatmul.bf16.vlgmr.msrb.gmra.mxu2 %v12633_v41  ;;  %v8128_v11 = vor.u32 %v10836_v62, %v8125_v4  ;;  %v11172_v62 = vld [vmem:[%s12037_s21 + $0xe64] sm:$0xf]  ;;  %v9469_v4 = vld [vmem:[%s12037_s21 + $0xe90] sm:$0xf0] }
 0x2eb   : > { %6427 = vmatpush.bf16.msra.mxu2 %v8752_v53  ;;  %6396 = vmatmul.bf16.vlgmr.msrb.gmra.mxu3 %v12649_v58  ;;  %v8941_v53 = vld [vmem:[%s12037_s21 + $0xa70] sm:$0xf0]  ;;  %v6152_v56 = vpop.f32.mrf.mxu0  ;;  %v6165_v22 = vpop.f32.mrf.mxu1  ;;  %v11148_v52 = vld [vmem:[%s12037_s21 + $0xda4] sm:$0xf] }
 0x2ec   : > { %6440 = vmatpush.bf16.msra.mxu3 %v9136_v34  ;;  %6403 = vmatpush.bf16.msra.mxu0 %v7888_v61  ;;  %v7693_v34 = vld [vmem:[%s12037_s21 + $0xb0] sm:$0xf0]  ;;  %v10824_v61 = vld [vmem:[%s12037_s21 + $0x384] sm:$0xf]  ;;  %v8944_v42 = vor.u32 %v11040_v14, %v8941_v53 }
 0x2ed   : > { %6416 = vmatpush.bf16.msra.mxu1 %v8272_v5  ;;  %v10932_v5 = vld [vmem:[%s12037_s21 + $0x6e4] sm:$0xf]  ;;  %v7696_v63 = vor.u32 %v10728_v54, %v7693_v34  ;;  %v13793_v59 = vpop.f32.mrf.mxu2  ;;  %v8413_v14 = vld [vmem:[%s12037_s21 + $0x650] sm:$0xf0]  ;;  %v9472_v54 = vor.u32 %v11172_v62, %v9469_v4 }
 0x2ee   : > { %v8512_v13 = vor.u32 %v10932_v5, %v8509_v6  ;;  %v13797_v2 = vpop.f32.mrf.mxu3  ;;  %v8797_v53 = vld [vmem:[%s12037_s21 + $0x950] sm:$0xf0]  ;;  %v11376_v34 = vld [vmem:[%s12037_s21 + $0x14c4] sm:$0xf] }
 0x2ef   : > { %6428 = vmatpush.bf16.msra.mxu2 %v8704_v26  ;;  %v8893_v26 = vld [vmem:[%s12037_s21 + $0xa10] sm:$0xf0]  ;;  %v11160_v5 = vld [vmem:[%s12037_s21 + $0xe04] sm:$0xf] }
 0x2f0   : > { %6441 = vmatpush.bf16.msra.mxu3 %v9088_v30  ;;  %6404 = vmatpush.bf16.msra.mxu0 %v7840_v9  ;;  %v8080_v30 = vor.u32 %v10824_v61, %v8077_v35  ;;  %v10716_v9 = vld [vmem:[%s12037_s21 + $0x24] sm:$0xf]  ;;  %v10285_v61 = vld [vmem:[%s12037_s21 + $0x14f0] sm:$0xf0] }
 0x2f1   : > { %6417 = vmatpush.bf16.msra.mxu1 %v8224_v8  ;;  %v11184_v8 = vld [vmem:[%s12037_s21 + $0xec4] sm:$0xf]  ;;  %v9421_v22 = vld [vmem:[%s12037_s21 + $0xe30] sm:$0xf0] }
 0x2f2   : > { %v11472_v35 = vld [vmem:[%s12037_s21 + $0x17c4] sm:$0xf]  ;;  %v9805_v6 = vld [vmem:[%s12037_s21 + $0x1130] sm:$0xf0]  ;;  %v9424_v32 = vor.u32 %v11160_v5, %v9421_v22 }
 0x2f3   : > { %6429 = vmatpush.bf16.msra.mxu2 %v8656_v47  ;;  %v8896_v47 = vor.u32 %v11028_v19, %v8893_v26  ;;  %v10189_v62 = vld [vmem:[%s12037_s21 + $0x1430] sm:$0xf0]  ;;  %v11448_v4 = vld [vmem:[%s12037_s21 + $0x1704] sm:$0xf] }
 0x2f4   : > { %6442 = vmatpush.bf16.msra.mxu3 %v9040_v31  ;;  %6405 = vmatpush.bf16.msra.mxu0 %v7792_v46  ;;  %v7648_v31 = vor.u32 %v10716_v9, %v7645_v27  ;;  %v10920_v46 = vld [vmem:[%s12037_s21 + $0x684] sm:$0xf] }
 0x2f5   : > { %6418 = vmatpush.bf16.msra.mxu1 %v8176_v18  ;;  %v9520_v18 = vor.u32 %v11184_v8, %v9517_v16  ;;  %v6178_v19 = vpop.f32.mrf.mxu2  ;;  %v10237_v8 = vld [vmem:[%s12037_s21 + $0x1490] sm:$0xf0]  ;;  %v11460_v16 = vld [vmem:[%s12037_s21 + $0x1764] sm:$0xf] }
 0x2f6   : > { %v6191_v9 = vpop.f32.mrf.mxu3  ;;  %v10624_v3 = vor.u32 %v11460_v16, %v10621_v51  ;;  %v11436_v5 = vld [vmem:[%s12037_s21 + $0x16a4] sm:$0xf]  ;;  %v10477_v51 = vld [vmem:[%s12037_s21 + $0x1670] sm:$0xf0] }
 0x2f7   : > { %6430 = vmatpush.bf16.msra.mxu2 %v8608_v40  ;;  %v8464_v40 = vor.u32 %v10920_v46, %v8461_v29  ;;  %v9757_v46 = vld [vmem:[%s12037_s21 + $0x10d0] sm:$0xf0]  ;;  %v10240_v29 = vor.u32 %v11364_v23, %v10237_v8  ;;  %v11328_v23 = vld [vmem:[%s12037_s21 + $0x1344] sm:$0xf] }
 0x2f8   : > { %6443 = vmatpush.bf16.msra.mxu3 %v8992_v44  ;;  %6406 = vmatpush.bf16.msra.mxu0 %v7744_v38  ;;  %v11268_v44 = vld [vmem:[%s12037_s21 + $0x1164] sm:$0xf]  ;;  %v9853_v38 = vld [vmem:[%s12037_s21 + $0x1190] sm:$0xf0] }
 0x2f9   : > { %6419 = vmatpush.bf16.msra.mxu1 %v8128_v11  ;;  %v11004_v11 = vld [vmem:[%s12037_s21 + $0x924] sm:$0xf]  ;;  %v9856_v56 = vor.u32 %v11268_v44, %v9853_v38  ;;  %v10573_v44 = vld [vmem:[%s12037_s21 + $0x1730] sm:$0xf0] }
 0x2fa   : > { %v8800_v26 = vor.u32 %v11004_v11, %v8797_v53  ;;  %v11136_v38 = vld [vmem:[%s12037_s21 + $0xd44] sm:$0xf]  ;;  %v10093_v8 = vld [vmem:[%s12037_s21 + $0x1370] sm:$0xf0] }
 0x2fb   : > { %6431 = vmatpush.bf16.msra.mxu2 %v8560_v57  ;;  %v10669_v57 = vld [vmem:[%s12037_s21 + $0x17f0] sm:$0xf0]  ;;  %v11424_v16 = vld [vmem:[%s12037_s21 + $0x1644] sm:$0xf] }
 0x2fc   : > { %6444 = vmatpush.bf16.msra.mxu3 %v8944_v42  ;;  %6407 = vmatpush.bf16.msra.mxu0 %v7696_v63  ;;  %v8416_v42 = vor.u32 %v10908_v37, %v8413_v14  ;;  %v11256_v63 = vld [vmem:[%s12037_s21 + $0x1104] sm:$0xf]  ;;  %v10672_v27 = vor.u32 %v11472_v35, %v10669_v57  ;;  %v9325_v37 = vld [vmem:[%s12037_s21 + $0xd70] sm:$0xf0] }
 0x2fd   : > { %6420 = vmatpush.bf16.msra.mxu1 %v8080_v30  ;;  %v10288_v30 = vor.u32 %v11376_v34, %v10285_v61  ;;  %v9709_v14 = vld [vmem:[%s12037_s21 + $0x1070] sm:$0xf0]  ;;  %v10576_v61 = vor.u32 %v11448_v4, %v10573_v44  ;;  %v9328_v35 = vor.u32 %v11136_v38, %v9325_v37  ;;  %v11412_v4 = vld [vmem:[%s12037_s21 + $0x15e4] sm:$0xf] }
 0x2fe   : > { %v10141_v57 = vld [vmem:[%s12037_s21 + $0x13d0] sm:$0xf0]  ;;  %v11100_v38 = vld [vmem:[%s12037_s21 + $0xc24] sm:$0xf] }
 0x2ff   : > { %6432 = vmatpush.bf16.msra.mxu2 %v8512_v13  ;;  %v9808_v13 = vor.u32 %v11256_v63, %v9805_v6  ;;  %v11124_v63 = vld [vmem:[%s12037_s21 + $0xce4] sm:$0xf]  ;;  %v9277_v6 = vld [vmem:[%s12037_s21 + $0xd10] sm:$0xf0] }
 0x300   : > { %6445 = vmatpush.bf16.msra.mxu3 %v8896_v47  ;;  %6408 = vmatpush.bf16.msra.mxu0 %v7648_v31  ;;  %v9373_v47 = vld [vmem:[%s12037_s21 + $0xdd0] sm:$0xf0]  ;;  %v11244_v31 = vld [vmem:[%s12037_s21 + $0x10a4] sm:$0xf]  ;;  %v6202_v11 = vpop.f32.mrf.mxu0 }
 0x301   : > { %6421 = vmatpush.bf16.msra.mxu1 %v8032_v15  ;;  %v11663_v15 = vld [vmem:[%s12877_s29] sm:$0xff]  ;;  %v9376_v1 = vor.u32 %v11148_v52, %v9373_v47  ;;  %v9229_v47 = vld [vmem:[%s12037_s21 + $0xcb0] sm:$0xf0] }
 0x302   : > { %v11112_v52 = vld [vmem:[%s12037_s21 + $0xc84] sm:$0xf]  ;;  %v9181_v37 = vld [vmem:[%s12037_s21 + $0xc50] sm:$0xf0] }
 0x303   : > { %6433 = vmatpush.bf16.msra.mxu2 %v8464_v40  ;;  %6409 = vmatmul.bf16.vlgmr.msra.gmra.mxu0 %v12319_v49  ;;  %v9760_v40 = vor.u32 %v11244_v31, %v9757_v46  ;;  %v6215_v34 = vpop.f32.mrf.mxu1  ;;  %v11208_v31 = vld [vmem:[%s12037_s21 + $0xf84] sm:$0xf]  ;;  %v9613_v46 = vld [vmem:[%s12037_s21 + $0xfb0] sm:$0xf0] }
 0x304   : > { %6453 = vmatpush.bf16.msrb.mxu0 %v9520_v18  ;;  %6446 = vmatpush.bf16.msra.mxu3 %v8848_v50  ;;  %v1608_v18 = vperm.slane %v11663_v15, 7  ;;  %v11232_v50 = vld [vmem:[%s12037_s21 + $0x1044] sm:$0xf]  ;;  %v10096_v15 = vor.u32 %v11328_v23, %v10093_v8  ;;  %v9616_v44 = vor.u32 %v11208_v31, %v9613_v46  ;;  %v10795_v23 = vld [vmem:[%s12037_s21 + $0x294] sm:$0xf0] }
 0x305   : > { %6466 = vmatpush.bf16.msrb.mxu1 %v9904_v45  ;;  %v11352_v45 = vld [vmem:[%s12037_s21 + $0x1404] sm:$0xf]  ;;  %v9712_v22 = vor.u32 %v11232_v50, %v9709_v14  ;;  %v9565_v14 = vld [vmem:[%s12037_s21 + $0xf50] sm:$0xf0] }
 0x306   : > { %6422 = vmatmul.bf16.vlgmr.msra.gmra.mxu1 %v12333_v60  ;;  %v10192_v53 = vor.u32 %v11352_v45, %v10189_v62  ;;  %v9232_v45 = vor.u32 %v11112_v52, %v9229_v47  ;;  %v10045_v62 = vld [vmem:[%s12037_s21 + $0x1310] sm:$0xf0]  ;;  %v11196_v50 = vld [vmem:[%s12037_s21 + $0xf24] sm:$0xf] }
 0x307   : > { %6434 = vmatpush.bf16.msra.mxu2 %v8416_v42  ;;  %v10525_v42 = vld [vmem:[%s12037_s21 + $0x16d0] sm:$0xf0]  ;;  %v11388_v31 = vld [vmem:[%s12037_s21 + $0x1524] sm:$0xf] }
 0x308   : > { %6454 = vmatpush.bf16.msrb.mxu0 %v9472_v54  ;;  %6447 = vmatpush.bf16.msra.mxu3 %v8800_v26  ;;  %v6203_v54 = vadd.f32 %v6202_v11, %v1608_v18  ;;  %v11220_v26 = vld [vmem:[%s12037_s21 + $0xfe4] sm:$0xf]  ;;  %v7987_v11 = vld [vmem:[%s12037_s21 + $0x2c8] sm:$0xf]  ;;  %v9949_v47 = vld [vmem:[%s12037_s21 + $0x1250] sm:$0xf0] }
 0x309   : > { %6467 = vmatpush.bf16.msrb.mxu1 %v9856_v56  ;;  %v11340_v56 = vld [vmem:[%s12037_s21 + $0x13a4] sm:$0xf]  ;;  %v10333_v46 = vld [vmem:[%s12037_s21 + $0x1550] sm:$0xf0] }
 0x30a   : > { %6435 = vmatmul.bf16.vlgmr.msra.gmra.mxu2 %v12415_v43  ;;  %v6216_v19 = vadd.f32 %v6215_v34, %v6203_v54  ;;  %v10144_v9 = vor.u32 %v11340_v56, %v10141_v57  ;;  %v11316_v18 = vld [vmem:[%s12037_s21 + $0x12e4] sm:$0xf]  ;;  %v8371_v34 = vld [vmem:[%s12037_s21 + $0x5c8] sm:$0xf]  ;;  %v9184_v57 = vor.u32 %v11100_v38, %v9181_v37  ;;  %v10879_v38 = vld [vmem:[%s12037_s21 + $0x534] sm:$0xf0] }
 0x30b   : > { %6479 = vmatpush.bf16.msrb.mxu2 %v10288_v30  ;;  %6448 = vmatmul.bf16.vlgmr.msra.gmra.mxu3 %v12439_v33  ;;  %v9661_v30 = vld [vmem:[%s12037_s21 + $0x1010] sm:$0xf0]  ;;  %v10048_v54 = vor.u32 %v11316_v18, %v10045_v62  ;;  %v10999_v18 = vld [vmem:[%s12037_s21 + $0x8f4] sm:$0xf0]  ;;  %v7891_v62 = vld [vmem:[%s12037_s21 + $0x208] sm:$0xf] }
 0x30c   : > { %6492 = vmatpush.bf16.msrb.mxu3 %v10672_v27  ;;  %6455 = vmatpush.bf16.msrb.mxu0 %v9424_v32  ;;  %v10528_v27 = vor.u32 %v11436_v5, %v10525_v42  ;;  %v9280_v32 = vor.u32 %v11124_v63, %v9277_v6  ;;  %v11304_v5 = vld [vmem:[%s12037_s21 + $0x1284] sm:$0xf]  ;;  %v9568_v6 = vor.u32 %v11196_v50, %v9565_v14 }
 0x30d   : > { %6468 = vmatpush.bf16.msrb.mxu1 %v9808_v13  ;;  %v9664_v13 = vor.u32 %v11220_v26, %v9661_v30  ;;  %v11400_v30 = vld [vmem:[%s12037_s21 + $0x1584] sm:$0xf]  ;;  %v10336_v50 = vor.u32 %v11388_v31, %v10333_v46 }
 0x30e   : > { %v6241_v63 = vpop.f32.mrf.mxu3 }
 0x30f   : > { %6480 = vmatpush.bf16.msrb.mxu2 %v10240_v29  ;;  %v6204_v29 = vpop.f32.mrf.mxu0 }
 0x310   : > { %6493 = vmatpush.bf16.msrb.mxu3 %v10624_v3  ;;  %6456 = vmatpush.bf16.msrb.mxu0 %v9376_v1  ;;  %v6217_v3 = vpop.f32.mrf.mxu1  ;;  %v10480_v1 = vor.u32 %v11424_v16, %v10477_v51  ;;  %v11292_v51 = vld [vmem:[%s12037_s21 + $0x1224] sm:$0xf] }
 0x311   : > { %6469 = vmatpush.bf16.msrb.mxu1 %v9760_v40  ;;  %v10429_v40 = vld [vmem:[%s12037_s21 + $0x1610] sm:$0xf0]  ;;  %v9139_v3 = vld [vmem:[%s12037_s21 + $0xbc8] sm:$0xf] }
 0x312   : > { %v10432_v56 = vor.u32 %v11412_v4, %v10429_v40  ;;  %v10783_v4 = vld [vmem:[%s12037_s21 + $0x234] sm:$0xf0]  ;;  %v9952_v40 = vor.u32 %v11292_v51, %v9949_v47  ;;  %v8179_v51 = vld [vmem:[%s12037_s21 + $0x448] sm:$0xf] }
 0x313   : > { %6481 = vmatpush.bf16.msrb.mxu2 %v10192_v53  ;;  %v10807_v53 = vld [vmem:[%s12037_s21 + $0x2f4] sm:$0xf0] }
 0x314   : > { %6494 = vmatpush.bf16.msrb.mxu3 %v10576_v61  ;;  %6457 = vmatpush.bf16.msrb.mxu0 %v9328_v35  ;;  %v10903_v61 = vld [vmem:[%s12037_s21 + $0x5f4] sm:$0xf0]  ;;  %v6228_v35 = vpop.f32.mrf.mxu2  ;;  %v7988_v26 = vor.u32 %v10807_v53, %v7987_v11 }
 0x315   : > { %6470 = vmatpush.bf16.msrb.mxu1 %v9712_v22  ;;  %v9997_v22 = vld [vmem:[%s12037_s21 + $0x12b0] sm:$0xf0]  ;;  %v6229_v42 = vadd.f32 %v6228_v35, %v6216_v19  ;;  %v8323_v19 = vld [vmem:[%s12037_s21 + $0x568] sm:$0xf] }
 0x316   : > { %v10000_v16 = vor.u32 %v11304_v5, %v9997_v22  ;;  %v6243_v11 = vpop.f32.mrf.mxu3  ;;  %v9091_v35 = vld [vmem:[%s12037_s21 + $0xb68] sm:$0xf]  ;;  %v10771_v22 = vld [vmem:[%s12037_s21 + $0x1d4] sm:$0xf0] }
 0x317   : > { %6482 = vmatpush.bf16.msrb.mxu2 %v10144_v9  ;;  %v10381_v9 = vld [vmem:[%s12037_s21 + $0x15b0] sm:$0xf0]  ;;  %v13872_v8 = vadd.f32 %v6241_v63, %v6229_v42  ;;  %v7843_v5 = vld [vmem:[%s12037_s21 + $0x1a8] sm:$0xf]  ;;  %v10867_v63 = vld [vmem:[%s12037_s21 + $0x4d4] sm:$0xf0] }
 0x318   : > { %6495 = vmatpush.bf16.msrb.mxu3 %v10528_v27  ;;  %6458 = vmatpush.bf16.msrb.mxu0 %v9280_v32  ;;  %v8372_v27 = vor.u32 %v10903_v61, %v8371_v34  ;;  %v7939_v32 = vld [vmem:[%s12037_s21 + $0x268] sm:$0xf]  ;;  %v10384_v52 = vor.u32 %v11400_v30, %v10381_v9  ;;  %v10987_v61 = vld [vmem:[%s12037_s21 + $0x894] sm:$0xf0]  ;;  %v7844_v30 = vor.u32 %v10771_v22, %v7843_v5 }
 0x319   : > { %6471 = vmatpush.bf16.msrb.mxu1 %v9664_v13  ;;  %v10891_v13 = vld [vmem:[%s12037_s21 + $0x594] sm:$0xf0]  ;;  %v7940_v29 = vor.u32 %v10795_v23, %v7939_v32  ;;  %v8707_v34 = vld [vmem:[%s12037_s21 + $0x868] sm:$0xf] }
 0x31a   : > { %v8227_v42 = vld [vmem:[%s12037_s21 + $0x4a8] sm:$0xf]  ;;  %v10831_v22 = vld [vmem:[%s12037_s21 + $0x3b4] sm:$0xf0] }
 0x31b   : > { %6483 = vmatpush.bf16.msrb.mxu2 %v10096_v15  ;;  %v8755_v15 = vld [vmem:[%s12037_s21 + $0x8c8] sm:$0xf]  ;;  %v8228_v23 = vor.u32 %v10867_v63, %v8227_v42 }
 0x31c   : > { %6496 = vmatpush.bf16.msrb.mxu3 %v10480_v1  ;;  %6459 = vmatpush.bf16.msrb.mxu0 %v9232_v45  ;;  %v8324_v1 = vor.u32 %v10891_v13, %v8323_v19  ;;  %v11095_v45 = vld [vmem:[%s12037_s21 + $0xbf4] sm:$0xf0]  ;;  %v6230_v37 = vpop.f32.mrf.mxu2  ;;  %v8756_v14 = vor.u32 %v10999_v18, %v8755_v15  ;;  %v8659_v9 = vld [vmem:[%s12037_s21 + $0x808] sm:$0xf] }
 0x31d   : > { %6472 = vmatpush.bf16.msrb.mxu1 %v9616_v44  ;;  %v8275_v44 = vld [vmem:[%s12037_s21 + $0x508] sm:$0xf]  ;;  %v9140_v53 = vor.u32 %v11095_v45, %v9139_v3  ;;  %v10759_v13 = vld [vmem:[%s12037_s21 + $0x174] sm:$0xf0] }
 0x31e   : > { %v9043_v32 = vld [vmem:[%s12037_s21 + $0xb08] sm:$0xf]  ;;  %v10843_v37 = vld [vmem:[%s12037_s21 + $0x414] sm:$0xf0] }
 0x31f   : > { %6484 = vmatpush.bf16.msrb.mxu2 %v10048_v54  ;;  %v7892_v54 = vor.u32 %v10783_v4, %v7891_v62  ;;  %v7795_v19 = vld [vmem:[%s12037_s21 + $0x148] sm:$0xf]  ;;  %v11059_v4 = vld [vmem:[%s12037_s21 + $0xad4] sm:$0xf0] }
 0x320   : > { %6497 = vmatpush.bf16.msrb.mxu3 %v10432_v56  ;;  %6460 = vmatpush.bf16.msrb.mxu0 %v9184_v57  ;;  %v8276_v56 = vor.u32 %v10879_v38, %v8275_v44  ;;  %v11083_v57 = vld [vmem:[%s12037_s21 + $0xb94] sm:$0xf0]  ;;  %v6254_v47 = vpop.f32.mrf.mxu0  ;;  %v7796_v18 = vor.u32 %v10759_v13, %v7795_v19  ;;  %v8611_v3 = vld [vmem:[%s12037_s21 + $0x7a8] sm:$0xf] }
 0x321   : > { %6473 = vmatpush.bf16.msrb.mxu1 %v9568_v6  ;;  %v8708_v6 = vor.u32 %v10987_v61, %v8707_v34  ;;  %v6255_v46 = vadd.f32 %v6254_v47, %v13872_v8  ;;  %v8995_v45 = vld [vmem:[%s12037_s21 + $0xaa8] sm:$0xf]  ;;  %v10747_v44 = vld [vmem:[%s12037_s21 + $0x114] sm:$0xf0] }
 0x322   : > { %v8131_v8 = vld [vmem:[%s12037_s21 + $0x3e8] sm:$0xf]  ;;  %v10723_v13 = vld [vmem:[%s12037_s21 + $0x54] sm:$0xf0] }
 0x323   : > { %6485 = vmatpush.bf16.msrb.mxu2 %v10000_v16  ;;  %6461 = vmatmul.bf16.vlgmr.msrb.gmra.mxu0 %v12570_v25  ;;  %v11071_v16 = vld [vmem:[%s12037_s21 + $0xb34] sm:$0xf0]  ;;  %v8947_v34 = vld [vmem:[%s12037_s21 + $0xa48] sm:$0xf]  ;;  %v8132_v61 = vor.u32 %v10843_v37, %v8131_v8 }
 0x324   : > { %6505 = vmatpush.bf16.msra.mxu0 %v7988_v26  ;;  %6498 = vmatpush.bf16.msrb.mxu3 %v10384_v52  ;;  %v9092_v26 = vor.u32 %v11083_v57, %v9091_v35  ;;  %v10855_v52 = vld [vmem:[%s12037_s21 + $0x474] sm:$0xf0]  ;;  %v9044_v15 = vor.u32 %v11071_v16, %v9043_v32  ;;  %v8083_v5 = vld [vmem:[%s12037_s21 + $0x388] sm:$0xf] }
 0x325   : > { %6518 = vmatpush.bf16.msra.mxu1 %v8372_v27  ;;  %v10975_v27 = vld [vmem:[%s12037_s21 + $0x834] sm:$0xf0]  ;;  %v8180_v62 = vor.u32 %v10855_v52, %v8179_v51  ;;  %v8899_v32 = vld [vmem:[%s12037_s21 + $0x9e8] sm:$0xf]  ;;  %v8084_v16 = vor.u32 %v10831_v22, %v8083_v5 }
 0x326   : > { %6474 = vmatmul.bf16.vlgmr.msrb.gmra.mxu1 %v12591_v39  ;;  %v8660_v31 = vor.u32 %v10975_v27, %v8659_v9  ;;  %v11047_v35 = vld [vmem:[%s12037_s21 + $0xa74] sm:$0xf0]  ;;  %v7651_v19 = vld [vmem:[%s12037_s21 + $0x28] sm:$0xf] }
 0x327   : > { %6486 = vmatpush.bf16.msrb.mxu2 %v9952_v40  ;;  %v7747_v40 = vld [vmem:[%s12037_s21 + $0xe8] sm:$0xf]  ;;  %v10735_v57 = vld [vmem:[%s12037_s21 + $0xb4] sm:$0xf0] }
 0x328   : > { %6506 = vmatpush.bf16.msra.mxu0 %v7940_v29  ;;  %6499 = vmatpush.bf16.msrb.mxu3 %v10336_v50  ;;  %v6267_v29 = vpop.f32.mrf.mxu1  ;;  %v7748_v11 = vor.u32 %v10747_v44, %v7747_v40  ;;  %v6256_v42 = vpop.f32.mrf.mxu0  ;;  %v10939_v27 = vld [vmem:[%s12037_s21 + $0x714] sm:$0xf0]  ;;  %v8035_v51 = vld [vmem:[%s12037_s21 + $0x328] sm:$0xf] }
 0x329   : > { %6519 = vmatpush.bf16.msra.mxu1 %v8324_v1  ;;  %v10963_v1 = vld [vmem:[%s12037_s21 + $0x7d4] sm:$0xf0]  ;;  %v6268_v38 = vadd.f32 %v6267_v29, %v6255_v46  ;;  %v9523_v47 = vld [vmem:[%s12037_s21 + $0xec8] sm:$0xf] }
 0x32a   : > { %6487 = vmatmul.bf16.vlgmr.msrb.gmra.mxu2 %v12633_v41  ;;  %v8612_v50 = vor.u32 %v10963_v1, %v8611_v3  ;;  %v10819_v52 = vld [vmem:[%s12037_s21 + $0x354] sm:$0xf0]  ;;  %v9907_v29 = vld [vmem:[%s12037_s21 + $0x11c8] sm:$0xf]  ;;  %v7652_v1 = vor.u32 %v10723_v13, %v7651_v19 }
 0x32b   : > { %6531 = vmatpush.bf16.msra.mxu2 %v8756_v14  ;;  %6500 = vmatmul.bf16.vlgmr.msrb.gmra.mxu3 %v12649_v58  ;;  %v8996_v14 = vor.u32 %v11059_v4, %v8995_v45  ;;  %v8467_v45 = vld [vmem:[%s12037_s21 + $0x688] sm:$0xf]  ;;  %v8036_v44 = vor.u32 %v10819_v52, %v8035_v51  ;;  %v11011_v22 = vld [vmem:[%s12037_s21 + $0x954] sm:$0xf0] }
 0x32c   : > { %6544 = vmatpush.bf16.msra.mxu3 %v9140_v53  ;;  %6507 = vmatpush.bf16.msra.mxu0 %v7892_v54  ;;  %v8563_v53 = vld [vmem:[%s12037_s21 + $0x748] sm:$0xf]  ;;  %v10951_v54 = vld [vmem:[%s12037_s21 + $0x774] sm:$0xf0] }
 0x32d   : > { %6520 = vmatpush.bf16.msra.mxu1 %v8276_v56  ;;  %v7699_v56 = vld [vmem:[%s12037_s21 + $0x88] sm:$0xf]  ;;  %v8564_v63 = vor.u32 %v10951_v54, %v8563_v53  ;;  %v11179_v53 = vld [vmem:[%s12037_s21 + $0xe94] sm:$0xf0] }
 0x32e   : > { %v7700_v9 = vor.u32 %v10735_v57, %v7699_v56  ;;  %v6293_v40 = vpop.f32.mrf.mxu3  ;;  %v8851_v37 = vld [vmem:[%s12037_s21 + $0x988] sm:$0xf]  ;;  %v10915_v57 = vld [vmem:[%s12037_s21 + $0x654] sm:$0xf0] }
 0x32f   : > { %6532 = vmatpush.bf16.msra.mxu2 %v8708_v6  ;;  %v8515_v6 = vld [vmem:[%s12037_s21 + $0x6e8] sm:$0xf]  ;;  %v11263_v19 = vld [vmem:[%s12037_s21 + $0x1134] sm:$0xf0] }
 0x330   : > { %6545 = vmatpush.bf16.msra.mxu3 %v9092_v26  ;;  %6508 = vmatpush.bf16.msra.mxu0 %v7844_v30  ;;  %v6269_v26 = vpop.f32.mrf.mxu1  ;;  %v8948_v30 = vor.u32 %v11047_v35, %v8947_v34  ;;  %v8516_v46 = vor.u32 %v10939_v27, %v8515_v6  ;;  %v8419_v35 = vld [vmem:[%s12037_s21 + $0x628] sm:$0xf]  ;;  %v11383_v6 = vld [vmem:[%s12037_s21 + $0x14f4] sm:$0xf0] }
 0x331   : > { %6521 = vmatpush.bf16.msra.mxu1 %v8228_v23  ;;  %v11035_v23 = vld [vmem:[%s12037_s21 + $0xa14] sm:$0xf0]  ;;  %v8803_v5 = vld [vmem:[%s12037_s21 + $0x928] sm:$0xf] }
 0x332   : > { %v8900_v3 = vor.u32 %v11035_v23, %v8899_v32  ;;  %v10675_v26 = vld [vmem:[%s12037_s21 + $0x17c8] sm:$0xf]  ;;  %v11167_v32 = vld [vmem:[%s12037_s21 + $0xe34] sm:$0xf0]  ;;  %v8420_v23 = vor.u32 %v10915_v57, %v8419_v35  ;;  %v8804_v51 = vor.u32 %v11011_v22, %v8803_v5 }
 0x333   : > { %6533 = vmatpush.bf16.msra.mxu2 %v8660_v31  ;;  %v11191_v31 = vld [vmem:[%s12037_s21 + $0xef4] sm:$0xf0]  ;;  %v9427_v27 = vld [vmem:[%s12037_s21 + $0xe08] sm:$0xf] }
 0x334   : > { %6546 = vmatpush.bf16.msra.mxu3 %v9044_v15  ;;  %6509 = vmatpush.bf16.msra.mxu0 %v7796_v18  ;;  %v11287_v15 = vld [vmem:[%s12037_s21 + $0x11f4] sm:$0xf0]  ;;  %v6280_v18 = vpop.f32.mrf.mxu2  ;;  %v9524_v8 = vor.u32 %v11191_v31, %v9523_v47  ;;  %v10243_v47 = vld [vmem:[%s12037_s21 + $0x1468] sm:$0xf] }
 0x335   : > { %6522 = vmatpush.bf16.msra.mxu1 %v8180_v62  ;;  %v10927_v62 = vld [vmem:[%s12037_s21 + $0x6b4] sm:$0xf0]  ;;  %v6281_v4 = vadd.f32 %v6280_v18, %v6268_v38  ;;  %v9859_v38 = vld [vmem:[%s12037_s21 + $0x1168] sm:$0xf] }
 0x336   : > { %v8468_v34 = vor.u32 %v10927_v62, %v8467_v45  ;;  %v6295_v31 = vpop.f32.mrf.mxu3  ;;  %v10627_v18 = vld [vmem:[%s12037_s21 + $0x1768] sm:$0xf]  ;;  %v11467_v45 = vld [vmem:[%s12037_s21 + $0x1794] sm:$0xf0] }
 0x337   : > { %6534 = vmatpush.bf16.msra.mxu2 %v8612_v50  ;;  %v11023_v50 = vld [vmem:[%s12037_s21 + $0x9b4] sm:$0xf0]  ;;  %v13943_v54 = vadd.f32 %v6293_v40, %v6281_v4  ;;  %v9379_v62 = vld [vmem:[%s12037_s21 + $0xda8] sm:$0xf] }
 0x338   : > { %6547 = vmatpush.bf16.msra.mxu3 %v8996_v14  ;;  %6510 = vmatpush.bf16.msra.mxu0 %v7748_v11  ;;  %v9908_v14 = vor.u32 %v11287_v15, %v9907_v29  ;;  %v9475_v11 = vld [vmem:[%s12037_s21 + $0xe68] sm:$0xf]  ;;  %v8852_v56 = vor.u32 %v11023_v50, %v8851_v37  ;;  %v9428_v29 = vor.u32 %v11167_v32, %v9427_v27  ;;  %v11371_v15 = vld [vmem:[%s12037_s21 + $0x1494] sm:$0xf0] }
 0x339   : > { %6523 = vmatpush.bf16.msra.mxu1 %v8132_v61  ;;  %v11275_v61 = vld [vmem:[%s12037_s21 + $0x1194] sm:$0xf0]  ;;  %v9476_v42 = vor.u32 %v11179_v53, %v9475_v11  ;;  %v9763_v40 = vld [vmem:[%s12037_s21 + $0x10a8] sm:$0xf]  ;;  %v10628_v50 = vor.u32 %v11467_v45, %v10627_v18 }
 0x33a   : > { %v11155_v4 = vld [vmem:[%s12037_s21 + $0xdd4] sm:$0xf0]  ;;  %v10195_v11 = vld [vmem:[%s12037_s21 + $0x1408] sm:$0xf] }
 0x33b   : > { %6535 = vmatpush.bf16.msra.mxu2 %v8564_v63  ;;  %v10291_v63 = vld [vmem:[%s12037_s21 + $0x14c8] sm:$0xf]  ;;  %v11359_v53 = vld [vmem:[%s12037_s21 + $0x1434] sm:$0xf0] }
 0x33c   : > { %6548 = vmatpush.bf16.msra.mxu3 %v8948_v30  ;;  %6511 = vmatpush.bf16.msra.mxu0 %v7700_v9  ;;  %v9860_v30 = vor.u32 %v11275_v61, %v9859_v38  ;;  %v11479_v9 = vld [vmem:[%s12037_s21 + $0x17f4] sm:$0xf0]  ;;  %v6282_v13 = vpop.f32.mrf.mxu2  ;;  %v10292_v52 = vor.u32 %v11383_v6, %v10291_v63  ;;  %v9331_v35 = vld [vmem:[%s12037_s21 + $0xd48] sm:$0xf] }
 0x33d   : > { %6524 = vmatpush.bf16.msra.mxu1 %v8084_v16  ;;  %v9811_v16 = vld [vmem:[%s12037_s21 + $0x1108] sm:$0xf]  ;;  %v11455_v61 = vld [vmem:[%s12037_s21 + $0x1734] sm:$0xf0] }
 0x33e   : > { %v9715_v57 = vld [vmem:[%s12037_s21 + $0x1048] sm:$0xf]  ;;  %v11239_v5 = vld [vmem:[%s12037_s21 + $0x1074] sm:$0xf0] }
 0x33f   : > { %6536 = vmatpush.bf16.msra.mxu2 %v8516_v46  ;;  %v10676_v46 = vor.u32 %v11479_v9, %v10675_v26  ;;  %v10147_v9 = vld [vmem:[%s12037_s21 + $0x13a8] sm:$0xf]  ;;  %v11347_v27 = vld [vmem:[%s12037_s21 + $0x13d4] sm:$0xf0] }
 0x340   : > { %6549 = vmatpush.bf16.msra.mxu3 %v8900_v3  ;;  %6512 = vmatpush.bf16.msra.mxu0 %v7652_v1  ;;  %v13965_v3 = vld [vmem:[%s12877_s29 + $0x8] sm:$0xf]  ;;  %v9812_v1 = vor.u32 %v11263_v19, %v9811_v16  ;;  %v6306_v22 = vpop.f32.mrf.mxu0  ;;  %v11443_v16 = vld [vmem:[%s12037_s21 + $0x16d4] sm:$0xf0]  ;;  %v10148_v31 = vor.u32 %v11347_v27, %v10147_v9  ;;  %v8373_v9 = vld [vmem:[%s12037_s21 + $0x5f8] sm:$0xf0] }
 0x341   : > { %6525 = vmatpush.bf16.msra.mxu1 %v8036_v44  ;;  %v11251_v44 = vld [vmem:[%s12037_s21 + $0x10d4] sm:$0xf0]  ;;  %v1609_v37 = vperm.slane %v13965_v3, 0  ;;  %v10531_v32 = vld [vmem:[%s12037_s21 + $0x16a8] sm:$0xf] }
 0x342   : > { %v9764_v38 = vor.u32 %v11251_v44, %v9763_v40  ;;  %v9283_v19 = vld [vmem:[%s12037_s21 + $0xce8] sm:$0xf]  ;;  %v11131_v13 = vld [vmem:[%s12037_s21 + $0xd14] sm:$0xf0] }
 0x343   : > { %6537 = vmatpush.bf16.msra.mxu2 %v8468_v34  ;;  %6513 = vmatmul.bf16.vlgmr.msra.gmra.mxu0 %v12319_v49  ;;  %v10579_v34 = vld [vmem:[%s12037_s21 + $0x1708] sm:$0xf]  ;;  %v6307_v63 = vadd.f32 %v6306_v22, %v1609_v37  ;;  %v6319_v6 = vpop.f32.mrf.mxu1  ;;  %v11335_v18 = vld [vmem:[%s12037_s21 + $0x1374] sm:$0xf0] }
 0x344   : > { %6557 = vmatpush.bf16.msrb.mxu0 %v9524_v8  ;;  %6550 = vmatpush.bf16.msra.mxu3 %v8852_v56  ;;  %v10244_v8 = vor.u32 %v11371_v15, %v10243_v47  ;;  %v11143_v56 = vld [vmem:[%s12037_s21 + $0xd74] sm:$0xf0]  ;;  %v10580_v26 = vor.u32 %v11455_v61, %v10579_v34  ;;  %v10099_v15 = vld [vmem:[%s12037_s21 + $0x1348] sm:$0xf] }
 0x345   : > { %6570 = vmatpush.bf16.msrb.mxu1 %v9908_v14  ;;  %v9380_v14 = vor.u32 %v11155_v4, %v9379_v62  ;;  %v11227_v47 = vld [vmem:[%s12037_s21 + $0x1014] sm:$0xf0]  ;;  %v9235_v4 = vld [vmem:[%s12037_s21 + $0xc88] sm:$0xf] }
 0x346   : > { %6526 = vmatmul.bf16.vlgmr.msra.gmra.mxu1 %v12333_v60  ;;  %v11431_v62 = vld [vmem:[%s12037_s21 + $0x1674] sm:$0xf0]  ;;  %v9619_v44 = vld [vmem:[%s12037_s21 + $0xf88] sm:$0xf] }
 0x347   : > { %6538 = vmatpush.bf16.msra.mxu2 %v8420_v23  ;;  %v9716_v23 = vor.u32 %v11239_v5, %v9715_v57  ;;  %v11119_v40 = vld [vmem:[%s12037_s21 + $0xcb4] sm:$0xf0]  ;;  %v10435_v61 = vld [vmem:[%s12037_s21 + $0x15e8] sm:$0xf] }
 0x348   : > { %6558 = vmatpush.bf16.msrb.mxu0 %v9476_v42  ;;  %6551 = vmatpush.bf16.msra.mxu3 %v8804_v51  ;;  %v10196_v42 = vor.u32 %v11359_v53, %v10195_v11  ;;  %v6320_v51 = vadd.f32 %v6319_v6, %v6307_v63  ;;  %v6308_v37 = vpop.f32.mrf.mxu0  ;;  %v9236_v34 = vor.u32 %v11119_v40, %v9235_v4  ;;  %v9187_v57 = vld [vmem:[%s12037_s21 + $0xc28] sm:$0xf]  ;;  %v11107_v5 = vld [vmem:[%s12037_s21 + $0xc54] sm:$0xf0]  ;;  %v10801_v63 = vld [vmem:[%s12037_s21 + $0x2cc] sm:$0xf] }
 0x349   : > { %6571 = vmatpush.bf16.msrb.mxu1 %v9860_v30  ;;  %v9332_v30 = vor.u32 %v11143_v56, %v9331_v35  ;;  %v11419_v35 = vld [vmem:[%s12037_s21 + $0x1614] sm:$0xf0]  ;;  %v9571_v22 = vld [vmem:[%s12037_s21 + $0xf28] sm:$0xf]  ;;  %v7989_v6 = vld [vmem:[%s12037_s21 + $0x2f8] sm:$0xf0] }
 0x34a   : > { %6539 = vmatmul.bf16.vlgmr.msra.gmra.mxu2 %v12415_v43  ;;  %v8325_v4 = vld [vmem:[%s12037_s21 + $0x598] sm:$0xf0]  ;;  %v9955_v40 = vld [vmem:[%s12037_s21 + $0x1228] sm:$0xf] }
 0x34b   : > { %6583 = vmatpush.bf16.msrb.mxu2 %v10292_v52  ;;  %6552 = vmatmul.bf16.vlgmr.msra.gmra.mxu3 %v12439_v33  ;;  %v9667_v52 = vld [vmem:[%s12037_s21 + $0xfe8] sm:$0xf]  ;;  %v6321_v11 = vpop.f32.mrf.mxu1 }
 0x34c   : > { %6596 = vmatpush.bf16.msrb.mxu3 %v10676_v46  ;;  %6559 = vmatpush.bf16.msrb.mxu0 %v9428_v29  ;;  %v10532_v46 = vor.u32 %v11443_v16, %v10531_v32  ;;  %v9284_v29 = vor.u32 %v11131_v13, %v9283_v19  ;;  %v9668_v45 = vor.u32 %v11227_v47, %v9667_v52  ;;  %v10003_v16 = vld [vmem:[%s12037_s21 + $0x1288] sm:$0xf]  ;;  %v11311_v19 = vld [vmem:[%s12037_s21 + $0x12b4] sm:$0xf0]  ;;  %v10993_v11 = vld [vmem:[%s12037_s21 + $0x8cc] sm:$0xf] }
 0x34d   : > { %6572 = vmatpush.bf16.msrb.mxu1 %v9812_v1  ;;  %v10483_v1 = vld [vmem:[%s12037_s21 + $0x1648] sm:$0xf]  ;;  %v6332_v27 = vpop.f32.mrf.mxu2  ;;  %v10436_v32 = vor.u32 %v11419_v35, %v10435_v61  ;;  %v9141_v61 = vld [vmem:[%s12037_s21 + $0xbf8] sm:$0xf0]  ;;  %v10777_v35 = vld [vmem:[%s12037_s21 + $0x20c] sm:$0xf] }
 0x34e   : > { %v10484_v53 = vor.u32 %v11431_v62, %v10483_v1  ;;  %v6333_v13 = vadd.f32 %v6332_v27, %v6320_v51  ;;  %v6345_v52 = vpop.f32.mrf.mxu3  ;;  %v7941_v1 = vld [vmem:[%s12037_s21 + $0x298] sm:$0xf0]  ;;  %v10004_v62 = vor.u32 %v11311_v19, %v10003_v16  ;;  %v10885_v51 = vld [vmem:[%s12037_s21 + $0x56c] sm:$0xf]  ;;  %v10339_v37 = vld [vmem:[%s12037_s21 + $0x1528] sm:$0xf] }
 0x34f   : > { %6584 = vmatpush.bf16.msrb.mxu2 %v10244_v8  ;;  %v11215_v8 = vld [vmem:[%s12037_s21 + $0xfb4] sm:$0xf0]  ;;  %v10981_v27 = vld [vmem:[%s12037_s21 + $0x86c] sm:$0xf]  ;;  %v9093_v19 = vld [vmem:[%s12037_s21 + $0xb98] sm:$0xf0] }
 0x350   : > { %6597 = vmatpush.bf16.msrb.mxu3 %v10628_v50  ;;  %6560 = vmatpush.bf16.msrb.mxu0 %v9380_v14  ;;  %v10100_v50 = vor.u32 %v11335_v18, %v10099_v15  ;;  %v10051_v14 = vld [vmem:[%s12037_s21 + $0x12e8] sm:$0xf]  ;;  %v9620_v56 = vor.u32 %v11215_v8, %v9619_v44  ;;  %v10789_v18 = vld [vmem:[%s12037_s21 + $0x26c] sm:$0xf]  ;;  %v11299_v8 = vld [vmem:[%s12037_s21 + $0x1254] sm:$0xf0] }
 0x351   : > { %6573 = vmatpush.bf16.msrb.mxu1 %v9764_v38  ;;  %v11323_v38 = vld [vmem:[%s12037_s21 + $0x1314] sm:$0xf0] }
 0x353   : > { %6585 = vmatpush.bf16.msrb.mxu2 %v10196_v42  ;;  %v11203_v42 = vld [vmem:[%s12037_s21 + $0xf54] sm:$0xf0] }
 0x354   : > { %6598 = vmatpush.bf16.msrb.mxu3 %v10580_v26  ;;  %6561 = vmatpush.bf16.msrb.mxu0 %v9332_v30  ;;  %v10052_v26 = vor.u32 %v11323_v38, %v10051_v14  ;;  %v10897_v30 = vld [vmem:[%s12037_s21 + $0x5cc] sm:$0xf]  ;;  %v9572_v47 = vor.u32 %v11203_v42, %v9571_v22  ;;  %v7944_v14 = vor.u32 %v10789_v18, %v7941_v1  ;;  %v8277_v22 = vld [vmem:[%s12037_s21 + $0x538] sm:$0xf0] }
 0x355   : > { %6574 = vmatpush.bf16.msrb.mxu1 %v9716_v23  ;;  %v9188_v23 = vor.u32 %v11107_v5, %v9187_v57  ;;  %v8376_v15 = vor.u32 %v10897_v30, %v8373_v9  ;;  %v8328_v38 = vor.u32 %v10885_v51, %v8325_v4  ;;  %v9956_v57 = vor.u32 %v11299_v8, %v9955_v40  ;;  %v10873_v5 = vld [vmem:[%s12037_s21 + $0x50c] sm:$0xf]  ;;  %v6334_v42 = vpop.f32.mrf.mxu2  ;;  %v8661_v1 = vld [vmem:[%s12037_s21 + $0x838] sm:$0xf0] }
 0x356   : > { %v8280_v16 = vor.u32 %v10873_v5, %v8277_v22  ;;  %v10969_v18 = vld [vmem:[%s12037_s21 + $0x80c] sm:$0xf]  ;;  %v9045_v4 = vld [vmem:[%s12037_s21 + $0xb38] sm:$0xf0] }
 0x357   : > { %6586 = vmatpush.bf16.msrb.mxu2 %v10148_v31  ;;  %v7992_v31 = vor.u32 %v10801_v63, %v7989_v6  ;;  %v10753_v40 = vld [vmem:[%s12037_s21 + $0x14c] sm:$0xf]  ;;  %v8997_v5 = vld [vmem:[%s12037_s21 + $0xad8] sm:$0xf0] }
 0x358   : > { %6599 = vmatpush.bf16.msrb.mxu3 %v10532_v46  ;;  %6562 = vmatpush.bf16.msrb.mxu0 %v9284_v29  ;;  %v10387_v46 = vld [vmem:[%s12037_s21 + $0x1588] sm:$0xf]  ;;  %v11407_v29 = vld [vmem:[%s12037_s21 + $0x15b4] sm:$0xf0]  ;;  %v10849_v8 = vld [vmem:[%s12037_s21 + $0x44c] sm:$0xf] }
 0x359   : > { %6575 = vmatpush.bf16.msrb.mxu1 %v9668_v45  ;;  %v14017_v45 = vadd.f32 %v6345_v52, %v6333_v13  ;;  %v10388_v44 = vor.u32 %v11407_v29, %v10387_v46  ;;  %v10765_v13 = vld [vmem:[%s12037_s21 + $0x1ac] sm:$0xf]  ;;  %v7845_v52 = vld [vmem:[%s12037_s21 + $0x1d8] sm:$0xf0] }
 0x35a   : > { %v10741_v22 = vld [vmem:[%s12037_s21 + $0xec] sm:$0xf]  ;;  %v7749_v42 = vld [vmem:[%s12037_s21 + $0x118] sm:$0xf0] }
 0x35b   : > { %6587 = vmatpush.bf16.msrb.mxu2 %v10100_v50  ;;  %v11395_v50 = vld [vmem:[%s12037_s21 + $0x1554] sm:$0xf0] }
 0x35c   : > { %6600 = vmatpush.bf16.msrb.mxu3 %v10484_v53  ;;  %6563 = vmatpush.bf16.msrb.mxu0 %v9236_v34  ;;  %v8757_v53 = vld [vmem:[%s12037_s21 + $0x8f8] sm:$0xf0]  ;;  %v11089_v34 = vld [vmem:[%s12037_s21 + $0xbcc] sm:$0xf]  ;;  %v10340_v63 = vor.u32 %v11395_v50, %v10339_v37 }
 0x35d   : > { %6576 = vmatpush.bf16.msrb.mxu1 %v9620_v56  ;;  %v7893_v56 = vld [vmem:[%s12037_s21 + $0x238] sm:$0xf0]  ;;  %v8760_v6 = vor.u32 %v10993_v11, %v8757_v53  ;;  %v9144_v30 = vor.u32 %v11089_v34, %v9141_v61  ;;  %v10957_v61 = vld [vmem:[%s12037_s21 + $0x7ac] sm:$0xf] }
 0x35e   : > { %v7896_v9 = vor.u32 %v10777_v35, %v7893_v56  ;;  %v8181_v37 = vld [vmem:[%s12037_s21 + $0x478] sm:$0xf0]  ;;  %v11053_v56 = vld [vmem:[%s12037_s21 + $0xaac] sm:$0xf] }
 0x35f   : > { %6588 = vmatpush.bf16.msrb.mxu2 %v10052_v26  ;;  %v6347_v26 = vpop.f32.mrf.mxu3  ;;  %v8613_v35 = vld [vmem:[%s12037_s21 + $0x7d8] sm:$0xf0] }
 0x360   : > { %6601 = vmatpush.bf16.msrb.mxu3 %v10436_v32  ;;  %6564 = vmatpush.bf16.msrb.mxu0 %v9188_v23  ;;  %v8709_v32 = vld [vmem:[%s12037_s21 + $0x898] sm:$0xf0]  ;;  %v11077_v23 = vld [vmem:[%s12037_s21 + $0xb6c] sm:$0xf]  ;;  %v6358_v50 = vpop.f32.mrf.mxu0  ;;  %v8616_v26 = vor.u32 %v10957_v61, %v8613_v35 }
 0x361   : > { %6577 = vmatpush.bf16.msrb.mxu1 %v9572_v47  ;;  %v10861_v47 = vld [vmem:[%s12037_s21 + $0x4ac] sm:$0xf]  ;;  %v8712_v46 = vor.u32 %v10981_v27, %v8709_v32  ;;  %v9096_v29 = vor.u32 %v11077_v23, %v9093_v19  ;;  %v6359_v11 = vadd.f32 %v6358_v50, %v14017_v45  ;;  %v8565_v32 = vld [vmem:[%s12037_s21 + $0x778] sm:$0xf0] }
 0x362   : > { %v10837_v45 = vld [vmem:[%s12037_s21 + $0x3ec] sm:$0xf]  ;;  %v8949_v19 = vld [vmem:[%s12037_s21 + $0xa78] sm:$0xf0] }
 0x363   : > { %6589 = vmatpush.bf16.msrb.mxu2 %v10004_v62  ;;  %6565 = vmatmul.bf16.vlgmr.msrb.gmra.mxu0 %v12570_v25  ;;  %v11065_v62 = vld [vmem:[%s12037_s21 + $0xb0c] sm:$0xf]  ;;  %v6371_v53 = vpop.f32.mrf.mxu1  ;;  %v9909_v61 = vld [vmem:[%s12037_s21 + $0x11f8] sm:$0xf0] }
 0x364   : > { %6609 = vmatpush.bf16.msra.mxu0 %v7992_v31  ;;  %6602 = vmatpush.bf16.msrb.mxu3 %v10388_v44  ;;  %v8229_v31 = vld [vmem:[%s12037_s21 + $0x4d8] sm:$0xf0]  ;;  %v9048_v34 = vor.u32 %v11065_v62, %v9045_v4  ;;  %v10945_v27 = vld [vmem:[%s12037_s21 + $0x74c] sm:$0xf] }
 0x365   : > { %6622 = vmatpush.bf16.msra.mxu1 %v8376_v15  ;;  %v7848_v15 = vor.u32 %v10765_v13, %v7845_v52  ;;  %v8232_v51 = vor.u32 %v10861_v47, %v8229_v31  ;;  %v7797_v44 = vld [vmem:[%s12037_s21 + $0x178] sm:$0xf0]  ;;  %v11041_v23 = vld [vmem:[%s12037_s21 + $0xa4c] sm:$0xf] }
 0x366   : > { %6578 = vmatmul.bf16.vlgmr.msrb.gmra.mxu1 %v12591_v39  ;;  %v10729_v13 = vld [vmem:[%s12037_s21 + $0x8c] sm:$0xf]  ;;  %v7701_v52 = vld [vmem:[%s12037_s21 + $0xb8] sm:$0xf0] }
 0x367   : > { %6590 = vmatpush.bf16.msrb.mxu2 %v9956_v57  ;;  %v8184_v57 = vor.u32 %v10849_v8, %v8181_v37  ;;  %v10825_v47 = vld [vmem:[%s12037_s21 + $0x38c] sm:$0xf]  ;;  %v8085_v31 = vld [vmem:[%s12037_s21 + $0x3b8] sm:$0xf0]  ;;  %v7704_v62 = vor.u32 %v10729_v13, %v7701_v52 }
 0x368   : > { %6610 = vmatpush.bf16.msra.mxu0 %v7944_v14  ;;  %6603 = vmatpush.bf16.msrb.mxu3 %v10340_v63  ;;  %v8664_v14 = vor.u32 %v10969_v18, %v8661_v1  ;;  %v6372_v63 = vadd.f32 %v6371_v53, %v6359_v11  ;;  %v8952_v1 = vor.u32 %v11041_v23, %v8949_v19  ;;  %v11029_v4 = vld [vmem:[%s12037_s21 + $0x9ec] sm:$0xf]  ;;  %v7653_v37 = vld [vmem:[%s12037_s21 + $0x58] sm:$0xf0] }
 0x369   : > { %6623 = vmatpush.bf16.msra.mxu1 %v8328_v38  ;;  %v7800_v38 = vor.u32 %v10753_v40, %v7797_v44  ;;  %v8901_v40 = vld [vmem:[%s12037_s21 + $0xa18] sm:$0xf0]  ;;  %v8088_v44 = vor.u32 %v10825_v47, %v8085_v31  ;;  %v10717_v8 = vld [vmem:[%s12037_s21 + $0x2c] sm:$0xf] }
 0x36a   : > { %6591 = vmatmul.bf16.vlgmr.msrb.gmra.mxu2 %v12633_v41  ;;  %v10813_v50 = vld [vmem:[%s12037_s21 + $0x32c] sm:$0xf]  ;;  %v9525_v53 = vld [vmem:[%s12037_s21 + $0xef8] sm:$0xf0] }
 0x36b   : > { %6635 = vmatpush.bf16.msra.mxu2 %v8760_v6  ;;  %6604 = vmatmul.bf16.vlgmr.msrb.gmra.mxu3 %v12649_v58  ;;  %v8133_v6 = vld [vmem:[%s12037_s21 + $0x418] sm:$0xf0]  ;;  %v6373_v18 = vpop.f32.mrf.mxu1  ;;  %v11185_v11 = vld [vmem:[%s12037_s21 + $0xecc] sm:$0xf] }
 0x36c   : > { %6648 = vmatpush.bf16.msra.mxu3 %v9144_v30  ;;  %6611 = vmatpush.bf16.msra.mxu0 %v7896_v9  ;;  %v9000_v30 = vor.u32 %v11053_v56, %v8997_v5  ;;  %v7752_v9 = vor.u32 %v10741_v22, %v7749_v42  ;;  %v8904_v56 = vor.u32 %v11029_v4, %v8901_v40  ;;  %v10921_v5 = vld [vmem:[%s12037_s21 + $0x68c] sm:$0xf]  ;;  %v8469_v22 = vld [vmem:[%s12037_s21 + $0x6b8] sm:$0xf0] }
 0x36d   : > { %6624 = vmatpush.bf16.msra.mxu1 %v8280_v16  ;;  %v8136_v16 = vor.u32 %v10837_v45, %v8133_v6  ;;  %v6384_v35 = vpop.f32.mrf.mxu2  ;;  %v9477_v23 = vld [vmem:[%s12037_s21 + $0xe98] sm:$0xf0]  ;;  %v8472_v19 = vor.u32 %v10921_v5, %v8469_v22  ;;  %v10909_v52 = vld [vmem:[%s12037_s21 + $0x62c] sm:$0xf] }
 0x36e   : > { %v6385_v42 = vadd.f32 %v6384_v35, %v6372_v63  ;;  %v6397_v45 = vpop.f32.mrf.mxu3  ;;  %v11269_v63 = vld [vmem:[%s12037_s21 + $0x116c] sm:$0xf]  ;;  %v9861_v13 = vld [vmem:[%s12037_s21 + $0x1198] sm:$0xf0] }
 0x36f   : > { %6636 = vmatpush.bf16.msra.mxu2 %v8712_v46  ;;  %v6360_v46 = vpop.f32.mrf.mxu0  ;;  %v8421_v31 = vld [vmem:[%s12037_s21 + $0x658] sm:$0xf0]  ;;  %v11377_v18 = vld [vmem:[%s12037_s21 + $0x14cc] sm:$0xf] }
 0x370   : > { %6649 = vmatpush.bf16.msra.mxu3 %v9096_v29  ;;  %6612 = vmatpush.bf16.msra.mxu0 %v7848_v15  ;;  %v8568_v29 = vor.u32 %v10945_v27, %v8565_v32  ;;  %v10933_v15 = vld [vmem:[%s12037_s21 + $0x6ec] sm:$0xf]  ;;  %v10677_v4 = vld [vmem:[%s12037_s21 + $0x17f8] sm:$0xf0] }
 0x371   : > { %6625 = vmatpush.bf16.msra.mxu1 %v8232_v51  ;;  %v8517_v51 = vld [vmem:[%s12037_s21 + $0x718] sm:$0xf0]  ;;  %v11173_v32 = vld [vmem:[%s12037_s21 + $0xe6c] sm:$0xf] }
 0x372   : > { %v11005_v46 = vld [vmem:[%s12037_s21 + $0x92c] sm:$0xf]  ;;  %v10245_v35 = vld [vmem:[%s12037_s21 + $0x1498] sm:$0xf0] }
 0x373   : > { %6637 = vmatpush.bf16.msra.mxu2 %v8664_v14  ;;  %v8037_v14 = vld [vmem:[%s12037_s21 + $0x358] sm:$0xf0]  ;;  %v11161_v40 = vld [vmem:[%s12037_s21 + $0xe0c] sm:$0xf] }
 0x374   : > { %6650 = vmatpush.bf16.msra.mxu3 %v9048_v34  ;;  %6613 = vmatpush.bf16.msra.mxu0 %v7800_v38  ;;  %v8520_v34 = vor.u32 %v10933_v15, %v8517_v51  ;;  %v11281_v38 = vld [vmem:[%s12037_s21 + $0x11cc] sm:$0xf]  ;;  %v8040_v6 = vor.u32 %v10813_v50, %v8037_v14  ;;  %v9480_v15 = vor.u32 %v11173_v32, %v9477_v23  ;;  %v9813_v50 = vld [vmem:[%s12037_s21 + $0x1138] sm:$0xf0] }
 0x375   : > { %6626 = vmatpush.bf16.msra.mxu1 %v8184_v57  ;;  %v7656_v57 = vor.u32 %v10717_v8, %v7653_v37  ;;  %v9912_v27 = vor.u32 %v11281_v38, %v9909_v61  ;;  %v9864_v51 = vor.u32 %v11269_v63, %v9861_v13  ;;  %v8424_v8 = vor.u32 %v10909_v52, %v8421_v31  ;;  %v11257_v37 = vld [vmem:[%s12037_s21 + $0x110c] sm:$0xf]  ;;  %v6386_v14 = vpop.f32.mrf.mxu2  ;;  %v10629_v5 = vld [vmem:[%s12037_s21 + $0x1798] sm:$0xf0] }
 0x376   : > { %v11149_v22 = vld [vmem:[%s12037_s21 + $0xdac] sm:$0xf]  ;;  %v10197_v32 = vld [vmem:[%s12037_s21 + $0x1438] sm:$0xf0]  ;;  %v10681_v14 = vmul.f32 -1.442695, %v12977_v24 }
 0x377   : > { %6638 = vmatpush.bf16.msra.mxu2 %v8616_v26  ;;  %v9528_v26 = vor.u32 %v11185_v11, %v9525_v53  ;;  %v11449_v23 = vld [vmem:[%s12037_s21 + $0x170c] sm:$0xf]  ;;  %v10581_v63 = vld [vmem:[%s12037_s21 + $0x1738] sm:$0xf0] }
 0x378   : > { %6651 = vmatpush.bf16.msra.mxu3 %v9000_v30  ;;  %6614 = vmatpush.bf16.msra.mxu0 %v7752_v9  ;;  %v11017_v30 = vld [vmem:[%s12037_s21 + $0x98c] sm:$0xf]  ;;  %v8853_v9 = vld [vmem:[%s12037_s21 + $0x9b8] sm:$0xf0]  ;;  %11613 = vpow2.f32 %v10681_v14 }
 0x379   : > { %6627 = vmatpush.bf16.msra.mxu1 %v8136_v16  ;;  %v14088_v16 = vadd.f32 %v6397_v45, %v6385_v42  ;;  %v8856_v47 = vor.u32 %v11017_v30, %v8853_v9  ;;  %v11245_v42 = vld [vmem:[%s12037_s21 + $0x10ac] sm:$0xf]  ;;  %v9765_v45 = vld [vmem:[%s12037_s21 + $0x10d8] sm:$0xf0] }
 0x37a   : > { %v11137_v13 = vld [vmem:[%s12037_s21 + $0xd4c] sm:$0xf] }
 0x37b   : > { %6639 = vmatpush.bf16.msra.mxu2 %v8568_v29  ;;  %v8805_v29 = vld [vmem:[%s12037_s21 + $0x958] sm:$0xf0]  ;;  %v11233_v52 = vld [vmem:[%s12037_s21 + $0x104c] sm:$0xf] }
 0x37c   : > { %6652 = vmatpush.bf16.msra.mxu3 %v8952_v1  ;;  %6615 = vmatpush.bf16.msra.mxu0 %v7704_v62  ;;  %v10293_v1 = vld [vmem:[%s12037_s21 + $0x14f8] sm:$0xf0]  ;;  %v11473_v62 = vld [vmem:[%s12037_s21 + $0x17cc] sm:$0xf]  ;;  %v8808_v11 = vor.u32 %v11005_v46, %v8805_v29 }
 0x37d   : > { %6628 = vmatpush.bf16.msra.mxu1 %v8088_v44  ;;  %v9429_v44 = vld [vmem:[%s12037_s21 + $0xe38] sm:$0xf0]  ;;  %v10296_v53 = vor.u32 %v11377_v18, %v10293_v1  ;;  %v10680_v38 = vor.u32 %v11473_v62, %v10677_v4  ;;  %v11341_v18 = vld [vmem:[%s12037_s21 + $0x13ac] sm:$0xf] }
 0x37e   : > { %v9432_v61 = vor.u32 %v11161_v40, %v9429_v44  ;;  %v10149_v1 = vld [vmem:[%s12037_s21 + $0x13d8] sm:$0xf0]  ;;  %v11437_v62 = vld [vmem:[%s12037_s21 + $0x16ac] sm:$0xf] }
 0x37f   : > { %6640 = vmatpush.bf16.msra.mxu2 %v8520_v34  ;;  %v6399_v34 = vpop.f32.mrf.mxu3  ;;  %v10533_v4 = vld [vmem:[%s12037_s21 + $0x16d8] sm:$0xf0]  ;;  %v11125_v40 = vld [vmem:[%s12037_s21 + $0xcec] sm:$0xf] }
 0x380   : > { %6653 = vmatpush.bf16.msra.mxu3 %v8904_v56  ;;  %6616 = vmatpush.bf16.msra.mxu0 %v7656_v57  ;;  %v11461_v56 = vld [vmem:[%s12037_s21 + $0x176c] sm:$0xf]  ;;  %v9816_v57 = vor.u32 %v11257_v37, %v9813_v50  ;;  %v6410_v31 = vpop.f32.mrf.mxu0  ;;  %v9285_v44 = vld [vmem:[%s12037_s21 + $0xd18] sm:$0xf0]  ;;  %v10536_v34 = vor.u32 %v11437_v62, %v10533_v4 }
 0x381   : > { %6629 = vmatpush.bf16.msra.mxu1 %v8040_v6  ;;  %v10632_v30 = vor.u32 %v11461_v56, %v10629_v5  ;;  %v11221_v37 = vld [vmem:[%s12037_s21 + $0xfec] sm:$0xf]  ;;  %v9669_v50 = vld [vmem:[%s12037_s21 + $0x1018] sm:$0xf0] }
 0x382   : > { %v9672_v24 = vor.u32 %v11221_v37, %v9669_v50  ;;  %v11113_v56 = vld [vmem:[%s12037_s21 + $0xc8c] sm:$0xf] }
 0x383   : > { %6641 = vmatpush.bf16.msra.mxu2 %v8472_v19  ;;  %6617 = vmatmul.bf16.vlgmr.msra.gmra.mxu0 %v12319_v49  ;;  %v11365_v49 = vld [vmem:[%s12037_s21 + $0x146c] sm:$0xf]  ;;  %v9768_v19 = vor.u32 %v11245_v42, %v9765_v45  ;;  %v6423_v29 = vpop.f32.mrf.mxu1 }
 0x384   : > { %6661 = vmatpush.bf16.msrb.mxu0 %v9528_v26  ;;  %6654 = vmatpush.bf16.msra.mxu3 %v8856_v47  ;;  %v10248_v6 = vor.u32 %v11365_v49, %v10245_v35  ;;  %v1610_v26 = vperm.slane %v13965_v3, 1  ;;  %v9333_v3 = vld [vmem:[%s12037_s21 + $0xd78] sm:$0xf0]  ;;  %v11425_v35 = vld [vmem:[%s12037_s21 + $0x164c] sm:$0xf] }
 0x385   : > { %6674 = vmatpush.bf16.msrb.mxu1 %v9912_v27  ;;  %v11353_v27 = vld [vmem:[%s12037_s21 + $0x140c] sm:$0xf]  ;;  %v9717_v47 = vld [vmem:[%s12037_s21 + $0x1078] sm:$0xf0] }
 0x386   : > { %6630 = vmatmul.bf16.vlgmr.msra.gmra.mxu1 %v12333_v60  ;;  %v9381_v60 = vld [vmem:[%s12037_s21 + $0xdd8] sm:$0xf0]  ;;  %v10200_v46 = vor.u32 %v11353_v27, %v10197_v32  ;;  %v11209_v5 = vld [vmem:[%s12037_s21 + $0xf8c] sm:$0xf] }
 0x387   : > { %6642 = vmatpush.bf16.msra.mxu2 %v8424_v8  ;;  %v9384_v9 = vor.u32 %v11149_v22, %v9381_v60  ;;  %v10101_v49 = vld [vmem:[%s12037_s21 + $0x1378] sm:$0xf0]  ;;  %v11413_v27 = vld [vmem:[%s12037_s21 + $0x15ec] sm:$0xf] }
 0x388   : > { %6662 = vmatpush.bf16.msrb.mxu0 %v9480_v15  ;;  %6655 = vmatpush.bf16.msra.mxu3 %v8808_v11  ;;  %v9336_v15 = vor.u32 %v11137_v13, %v9333_v3  ;;  %v10682_v11 = vmul.f32 -1.442695, %v13078_v10  ;;  %v10485_v10 = vld [vmem:[%s12037_s21 + $0x1678] sm:$0xf0]  ;;  %v6412_v60 = vpop.f32.mrf.mxu0  ;;  %v11197_v13 = vld [vmem:[%s12037_s21 + $0xf2c] sm:$0xf] }
 0x389   : > { %6675 = vmatpush.bf16.msrb.mxu1 %v9864_v51  ;;  %v9720_v51 = vor.u32 %v11233_v52, %v9717_v47  ;;  %v9621_v22 = vld [vmem:[%s12037_s21 + $0xfb8] sm:$0xf0]  ;;  %v10683_v47 = vmul.f32 -1.442695, %v13220_v12  ;;  %v11401_v4 = vld [vmem:[%s12037_s21 + $0x158c] sm:$0xf] }
 0x38a   : > { %6643 = vmatmul.bf16.vlgmr.msra.gmra.mxu2 %v12415_v43  ;;  %v6411_v43 = vadd.f32 %v6410_v31, %v1610_v26  ;;  %11615 = vpow2.f32 %v10682_v11  ;;  %v9624_v32 = vor.u32 %v11209_v5, %v9621_v22  ;;  %v9573_v3 = vld [vmem:[%s12037_s21 + $0xf58] sm:$0xf0]  ;;  %v6972_v50 = vld [vmem:[%s14168_s30 + $0xf8] sm:$0xff] }
 0x38b   : > { %6687 = vmatpush.bf16.msrb.mxu2 %v10296_v53  ;;  %6656 = vmatmul.bf16.vlgmr.msra.gmra.mxu3 %v12439_v33  ;;  %v10584_v33 = vor.u32 %v11449_v23, %v10581_v63  ;;  %v10152_v53 = vor.u32 %v11341_v18, %v10149_v1  ;;  %v6425_v45 = vpop.f32.mrf.mxu1  ;;  %v10437_v23 = vld [vmem:[%s12037_s21 + $0x1618] sm:$0xf0]  ;;  %v10684_v18 = vmul.f32 -1.442695, %v13365_v7  ;;  %11617 = vpow2.f32 %v10683_v47  ;;  %v11664_v7 = vld [vmem:[%s12877_s29] sm:$0xff] }
 0x38c   : > { %6700 = vmatpush.bf16.msrb.mxu3 %v10680_v38  ;;  %6663 = vmatpush.bf16.msrb.mxu0 %v9432_v61  ;;  %v6424_v8 = vadd.f32 %v6423_v29, %v6411_v43  ;;  %v9288_v38 = vor.u32 %v11125_v40, %v9285_v44  ;;  %v11329_v61 = vld [vmem:[%s12037_s21 + $0x134c] sm:$0xf]  ;;  %v9189_v63 = vld [vmem:[%s12037_s21 + $0xc58] sm:$0xf0]  ;;  %v6967_v47 = vld [vmem:[%s14168_s30 + $0xd0] sm:$0xff] }
 0x38d   : > { %6676 = vmatpush.bf16.msrb.mxu1 %v9816_v57  ;;  %v9237_v57 = vld [vmem:[%s12037_s21 + $0xcb8] sm:$0xf0]  ;;  %v10104_v42 = vor.u32 %v11329_v61, %v10101_v49  ;;  %v6436_v31 = vpop.f32.mrf.mxu2  ;;  %v11305_v29 = vld [vmem:[%s12037_s21 + $0x128c] sm:$0xf]  ;;  %11619 = vpow2.f32 %v10684_v18  ;;  %v6985_v18 = vld [vmem:[%s14168_s30 + $0x160] sm:$0xff] }
 0x38e   : > { %v9240_v26 = vor.u32 %v11113_v56, %v9237_v57  ;;  %v6437_v1 = vadd.f32 %v6436_v31, %v6424_v8  ;;  %v6449_v62 = vpop.f32.mrf.mxu3  ;;  %v10389_v12 = vld [vmem:[%s12037_s21 + $0x15b8] sm:$0xf0]  ;;  %v6956_v40 = vld [vmem:[%s14168_s30 + $0x78] sm:$0xff]  ;;  %v1607_v8 = vperm.slane %v11664_v7, 6  ;;  %v6983_v7 = vld [vmem:[%s14168_s30 + $0x150] sm:$0xff] }
 0x38f   : > { %6688 = vmatpush.bf16.msrb.mxu2 %v10248_v6  ;;  %v10488_v6 = vor.u32 %v11425_v35, %v10485_v10  ;;  %v11389_v61 = vld [vmem:[%s12037_s21 + $0x152c] sm:$0xf]  ;;  %v10341_v49 = vld [vmem:[%s12037_s21 + $0x1558] sm:$0xf0]  ;;  %v6971_v10 = vld [vmem:[%s14168_s30 + $0xf0] sm:$0xff] }
 0x390   : > { %6701 = vmatpush.bf16.msrb.mxu3 %v10632_v30  ;;  %6664 = vmatpush.bf16.msrb.mxu0 %v9384_v9  ;;  %v11317_v30 = vld [vmem:[%s12037_s21 + $0x12ec] sm:$0xf]  ;;  %v10053_v9 = vld [vmem:[%s12037_s21 + $0x1318] sm:$0xf0]  ;;  %v14177_v37 = vadd.f32 %v6449_v62, %v6437_v1  ;;  %v6099_v56 = vadd.f32 %v13685_v48, %v1607_v8  ;;  %v6953_v48 = vld [vmem:[%s14168_s30 + $0x60] sm:$0xff] }
 0x391   : > { %6677 = vmatpush.bf16.msrb.mxu1 %v9768_v19  ;;  %v11101_v19 = vld [vmem:[%s12037_s21 + $0xc2c] sm:$0xf]  ;;  %v10056_v52 = vor.u32 %v11317_v30, %v10053_v9  ;;  %v6954_v5 = vld [vmem:[%s14168_s30 + $0x68] sm:$0xff]  ;;  %v7001_v1 = vld [vmem:[%s14168_s30 + $0x1e0] sm:$0xff] }
 0x392   : > { %v9192_v43 = vor.u32 %v11101_v19, %v9189_v63  ;;  %v6970_v22 = vld [vmem:[%s14168_s30 + $0xe8] sm:$0xff]  ;;  %v7004_v30 = vld [vmem:[%s14168_s30 + $0x1f8] sm:$0xff]  ;;  %v6112_v9 = vadd.f32 %v13687_v20, %v6099_v56  ;;  %v7003_v20 = vld [vmem:[%s14168_s30 + $0x1f0] sm:$0xff] }
 0x393   : > { %6689 = vmatpush.bf16.msrb.mxu2 %v10200_v46  ;;  %v10440_v46 = vor.u32 %v11413_v27, %v10437_v23  ;;  %v6968_v23 = vld [vmem:[%s14168_s30 + $0xd8] sm:$0xff]  ;;  %v6999_v8 = vld [vmem:[%s14168_s30 + $0x1d0] sm:$0xff] }
 0x394   : > { %6702 = vmatpush.bf16.msrb.mxu3 %v10584_v33  ;;  %6665 = vmatpush.bf16.msrb.mxu0 %v9336_v15  ;;  %v10005_v33 = vld [vmem:[%s12037_s21 + $0x12b8] sm:$0xf0]  ;;  %v11614_v15 = vpop.eup %11613  ;;  %v6125_v63 = vadd.f32 %v13717_v28, %v6112_v9  ;;  %v6996_v9 = vld [vmem:[%s14168_s30 + $0x1b8] sm:$0xff] }
 0x395   : > { %6678 = vmatpush.bf16.msrb.mxu1 %v9720_v51  ;;  %v9576_v51 = vor.u32 %v11197_v13, %v9573_v3  ;;  %v11616_v44 = vpop.eup %11615  ;;  %v10008_v14 = vor.u32 %v11305_v29, %v10005_v33  ;;  %v14180_v11 = vadd.f32 1.0, %v11614_v15  ;;  %v6438_v57 = vpop.f32.mrf.mxu2  ;;  %v6987_v13 = vld [vmem:[%s14168_s30 + $0x170] sm:$0xff]  ;;  %v6986_v28 = vld [vmem:[%s14168_s30 + $0x168] sm:$0xff] }
 0x396   : > { %v14187_v35 = vadd.f32 1.0, %v11616_v44  ;;  %v6451_v45 = vpop.f32.mrf.mxu3  ;;  %v6966_v29 = vld [vmem:[%s14168_s30 + $0xc8] sm:$0xff]  ;;  %v6138_v15 = vadd.f32 %v13721_v0, %v6125_v63  ;;  %v6984_v0 = vld [vmem:[%s14168_s30 + $0x158] sm:$0xff] }
 0x397   : > { %6690 = vmatpush.bf16.msrb.mxu2 %v10152_v53  ;;  %v10392_v53 = vor.u32 %v11401_v4, %v10389_v12  ;;  %11621 = vrcp.f32 %v14180_v11  ;;  %v6965_v4 = vld [vmem:[%s14168_s30 + $0xc0] sm:$0xff]  ;;  %v6948_v44 = vld [vmem:[%s14168_s30 + $0x38] sm:$0xff]  ;;  %vm6766_vm4 = vweird.f32 %v14180_v11 }
 0x398   : > { %6703 = vmatpush.bf16.msrb.mxu3 %v10536_v34  ;;  %6666 = vmatpush.bf16.msrb.mxu0 %v9288_v38  ;;  %v11293_v34 = vld [vmem:[%s12037_s21 + $0x122c] sm:$0xf]  ;;  %v9957_v38 = vld [vmem:[%s12037_s21 + $0x1258] sm:$0xf0]  ;;  %11623 = vrcp.f32 %v14187_v35  ;;  %v6151_v12 = vadd.f32 %v13761_v21, %v6138_v15  ;;  %v6981_v45 = vld [vmem:[%s14168_s30 + $0x140] sm:$0xff]  ;;  %vm6781_vm6 = vweird.f32 %v14187_v35 }
 0x399   : > { %6679 = vmatpush.bf16.msrb.mxu1 %v9672_v24  ;;  %v6955_v24 = vld [vmem:[%s14168_s30 + $0x70] sm:$0xff]  ;;  %v9960_v60 = vor.u32 %v11293_v34, %v9957_v38  ;;  %v6960_v63 = vld [vmem:[%s14168_s30 + $0x98] sm:$0xff]  ;;  %v6978_v15 = vld [vmem:[%s14168_s30 + $0x128] sm:$0xff] }
 0x39a   : > { %v6947_v34 = vld [vmem:[%s14168_s30 + $0x30] sm:$0xff] }
 0x39b   : > { %6691 = vmatpush.bf16.msrb.mxu2 %v10104_v42  ;;  %v10344_v42 = vor.u32 %v11389_v61, %v10341_v49  ;;  %v6963_v38 = vld [vmem:[%s14168_s30 + $0xb0] sm:$0xff]  ;;  %v6164_v49 = vadd.f32 %v13763_v17, %v6151_v12  ;;  %v10685_v17 = vmul.f32 -1.442695, %v13507_v55  ;;  %v6945_v55 = vld [vmem:[%s14168_s30 + $0x20] sm:$0xff] }
 0x39c   : > { %6704 = vmatpush.bf16.msrb.mxu3 %v10488_v6  ;;  %6667 = vmatpush.bf16.msrb.mxu0 %v9240_v26  ;;  %v6969_v6 = vld [vmem:[%s14168_s30 + $0xe0] sm:$0xff] }
 0x39d   : > { %6680 = vmatpush.bf16.msrb.mxu1 %v9624_v32  ;;  %v6952_v32 = vld [vmem:[%s14168_s30 + $0x58] sm:$0xff] }
 0x39f   : > { %6692 = vmatpush.bf16.msrb.mxu2 %v10056_v52  ;;  %v6951_v52 = vld [vmem:[%s14168_s30 + $0x50] sm:$0xff] }
 0x3a0   : > { %6705 = vmatpush.bf16.msrb.mxu3 %v10440_v46  ;;  %6668 = vmatpush.bf16.msrb.mxu0 %v9192_v43  ;;  %v7002_v46 = vld [vmem:[%s14168_s30 + $0x1e8] sm:$0xff]  ;;  %v14222_v43 = vpop.f32.mrf.mxu0 }
 0x3a1   : > { %6681 = vmatpush.bf16.msrb.mxu1 %v9576_v51  ;;  %v6949_v51 = vld [vmem:[%s14168_s30 + $0x40] sm:$0xff] }
 0x3a3   : > { %6693 = vmatpush.bf16.msrb.mxu2 %v10008_v14  ;;  %6669 = vmatmul.bf16.vlgmr.msrb.gmra.mxu0 %v12570_v25  ;;  %v11618_v25 = vpop.eup %11617 }
 0x3a4   : > { %7133 = vmatpush.msra.mxu0 %v6956_v40  ;;  %6706 = vmatpush.bf16.msrb.mxu3 %v10392_v53  ;;  %v11620_v26 = vpop.eup %11619  ;;  %v14203_v27 = vadd.f32 1.0, %v11618_v25  ;;  %v7000_v40 = vld [vmem:[%s14168_s30 + $0x1d8] sm:$0xff]  ;;  %v6997_v25 = vld [vmem:[%s14168_s30 + $0x1c0] sm:$0xff] }
 0x3a5   : > { %7153 = vmatpush.msra.mxu1 %v6972_v50  ;;  %v14207_v19 = vadd.f32 1.0, %v11620_v26  ;;  %v14212_v3 = vpop.eup %11621  ;;  %v6964_v50 = vld [vmem:[%s14168_s30 + $0xb8] sm:$0xff]  ;;  %v10686_v26 = vmul.f32 -1.442695, %v13649_v36  ;;  %v6772_v36 = vand.u32 2147483648, %v14180_v11 }
 0x3a6   : > { %6682 = vmatmul.bf16.vlgmr.msrb.gmra.mxu1 %v12591_v39  ;;  %7134 = vmatpush.msra.mxu0 %v6955_v24  ;;  %v6988_v39 = vld [vmem:[%s14168_s30 + $0x178] sm:$0xff]  ;;  %v14218_v31 = vpop.eup %11623  ;;  %11625 = vrcp.f32 %v14203_v27  ;;  %v6762_v33 = vmul.f32 %v14212_v3, %v14180_v11  ;;  %v6982_v24 = vld [vmem:[%s14168_s30 + $0x148] sm:$0xff]  ;;  %vm6767_vm2 = vweird.f32 %v14212_v3  ;;  %vm6796_vm12 = vweird.f32 %v14203_v27 }
 0x3a7   : > { %7154 = vmatpush.msra.mxu1 %v6971_v10  ;;  %6694 = vmatpush.bf16.msrb.mxu2 %v9960_v60  ;;  %11627 = vrcp.f32 %v14207_v19  ;;  %v6777_v62 = vmul.f32 %v14218_v31, %v14187_v35  ;;  %v6998_v10 = vld [vmem:[%s14168_s30 + $0x1c8] sm:$0xff]  ;;  %vm6782_vm3 = vweird.f32 %v14218_v31  ;;  %vm14303_vm5 = vmor %vm6766_vm4, %vm6767_vm2  ;;  %vm6811_vm14 = vweird.f32 %v14207_v19 }
 0x3a8   : > { %7135 = vmatpush.msra.mxu0 %v6954_v5  ;;  %6707 = vmatpush.bf16.msrb.mxu3 %v10344_v42  ;;  %v6763_v14 = vsub.f32 1.0, %v6762_v33  ;;  %v6464_v56 = vpop.f32.mrf.mxu0  ;;  %v6946_v5 = vld [vmem:[%s14168_s30 + $0x28] sm:$0xff]  ;;  %v6177_v42 = vadd.f32 %v13793_v59, %v6164_v49  ;;  %11629 = vpow2.f32 %v10685_v17  ;;  %v6959_v33 = vld [vmem:[%s14168_s30 + $0x90] sm:$0xff]  ;;  %vm14316_vm7 = vmor %vm6781_vm6, %vm6782_vm3 }
 0x3a9   : > { %7155 = vmatpush.msra.mxu1 %v6970_v22  ;;  %v6778_v21 = vsub.f32 1.0, %v6777_v62  ;;  %v6962_v22 = vld [vmem:[%s14168_s30 + $0xa8] sm:$0xff]  ;;  %11631 = vpow2.f32 %v10686_v26  ;;  %v6787_v62 = vand.u32 2147483648, %v14187_v35  ;;  %v7036_v17 = vld [vmem:[%s14168_s30 + $0x2f8] sm:$0xff] }
 0x3aa   : > { %7136 = vmatpush.msra.mxu0 %v6953_v48  ;;  %6695 = vmatmul.bf16.vlgmr.msrb.gmra.mxu2 %v12633_v41  ;;  %v14225_v41 = vpop.f32.mrf.mxu1  ;;  %v6764_v48 = vmul.f32 %v14212_v3, %v6763_v14  ;;  %v7051_v14 = vld [vmem:[%s14168_s30 + $0x370] sm:$0xff] }
 0x3ab   : > { %7156 = vmatpush.msra.mxu1 %v6969_v6  ;;  %7173 = vmatpush.msra.mxu2 %v6988_v39  ;;  %v6961_v39 = vld [vmem:[%s14168_s30 + $0xa0] sm:$0xff]  ;;  %v6779_v59 = vmul.f32 %v14218_v31, %v6778_v21 }
 0x3ac   : > { %7193 = vmatpush.msra.mxu3 %v7004_v30  ;;  %7137 = vmatpush.msra.mxu0 %v6952_v32  ;;  %v14246_v53 = vpop.eup %11625  ;;  %v6980_v30 = vld [vmem:[%s14168_s30 + $0x138] sm:$0xff]  ;;  %v6957_v21 = vld [vmem:[%s14168_s30 + $0x80] sm:$0xff] }
 0x3ad   : > { %6708 = vmatmul.bf16.vlgmr.msrb.gmra.mxu3 %v12649_v58  ;;  %7157 = vmatpush.msra.mxu1 %v6968_v23  ;;  %v6950_v58 = vld [vmem:[%s14168_s30 + $0x48] sm:$0xff]  ;;  %v14250_v61 = vpop.eup %11627  ;;  %v14259_v60 = vmul.f32 %v14246_v53, %v14203_v27  ;;  %v14276_v32 = vpop.f32.mrf.mxu2  ;;  %v6944_v23 = vld [vmem:[%s14168_s30 + $0x18] sm:$0xff]  ;;  %vm6797_vm10 = vweird.f32 %v14246_v53 }
 0x3ae   : > { %7174 = vmatpush.msra.mxu2 %v6987_v13  ;;  %7194 = vmatpush.msra.mxu3 %v7003_v20  ;;  %v14268_v6 = vmul.f32 %v14250_v61, %v14207_v19  ;;  %v6190_v20 = vadd.f32 %v13797_v2, %v6177_v42  ;;  %v6780_v2 = vadd.f32 %v14218_v31, %v6779_v59  ;;  %v11630_v49 = vpop.eup %11629  ;;  %vm6812_vm11 = vweird.f32 %v14250_v61  ;;  %vm14351_vm13 = vmor %vm6796_vm12, %vm6797_vm10 }
 0x3af   : > { %7138 = vmatpush.msra.mxu0 %v6951_v52  ;;  %7158 = vmatpush.msra.mxu1 %v6967_v47  ;;  %v6793_v13 = vsub.f32 1.0, %v14259_v60  ;;  %v14284_v52 = vpop.f32.mrf.mxu3  ;;  %v6979_v47 = vld [vmem:[%s14168_s30 + $0x130] sm:$0xff]  ;;  %v11632_v56 = vpop.eup %11631  ;;  %v7020_v60 = vld [vmem:[%s14168_s30 + $0x278] sm:$0xff]  ;;  %v6802_v59 = vand.u32 2147483648, %v14203_v27  ;;  %vm14362_vm15 = vmor %vm6811_vm14, %vm6812_vm11 }
 0x3b0   : > { %7175 = vmatpush.msra.mxu2 %v6986_v28  ;;  %7195 = vmatpush.msra.mxu3 %v7002_v46  ;;  %v6995_v28 = vld [vmem:[%s14168_s30 + $0x1b0] sm:$0xff]  ;;  %v6765_v46 = vadd.f32 %v14212_v3, %v6764_v48  ;;  %v14340_v26 = vadd.f32 1.0, %v11632_v56 }
 0x3b1   : > { %7139 = vmatpush.msra.mxu0 %v6950_v58  ;;  %7159 = vmatpush.msra.mxu1 %v6966_v29  ;;  %v6808_v58 = vsub.f32 1.0, %v14268_v6  ;;  %v6943_v29 = vld [vmem:[%s14168_s30 + $0x10] sm:$0xff] }
 0x3b2   : > { %7176 = vmatpush.msra.mxu2 %v6985_v18  ;;  %7196 = vmatpush.msra.mxu3 %v7001_v1  ;;  %v6477_v57 = vpop.f32.mrf.mxu1  ;;  %v6994_v18 = vld [vmem:[%s14168_s30 + $0x1a8] sm:$0xff]  ;;  %v6770_v1 = vand.u32 2147483647, %v14180_v11  ;;  %v6977_v11 = vld [vmem:[%s14168_s30 + $0x120] sm:$0xff]  ;;  %v6991_v48 = vld [vmem:[%s14168_s30 + $0x190] sm:$0xff]  ;;  %vm6841_vm6 = vweird.f32 %v14340_v26 }
 0x3b3   : > { %7140 = vmatpush.msra.mxu0 %v6949_v51  ;;  %7160 = vmatpush.msra.mxu1 %v6965_v4  ;;  %v6942_v51 = vld [vmem:[%s14168_s30 + $0x8] sm:$0xff] }
 0x3b4   : > { %7177 = vmatpush.msra.mxu2 %v6984_v0  ;;  %7197 = vmatpush.msra.mxu3 %v7000_v40  ;;  %v6958_v4 = vld [vmem:[%s14168_s30 + $0x88] sm:$0xff]  ;;  %v6785_v0 = vand.u32 2147483647, %v14187_v35  ;;  %v10687_v40 = vmul.f32 -1.442695, %v6190_v20  ;;  %vm6771_vm8 = vcmp.eq.f32.partialorder %v6770_v1, 8.507059e+37 }
 0x3b5   : > { %7141 = vmatpush.msra.mxu0 %v6948_v44  ;;  %7161 = vmatpush.msra.mxu1 %v6964_v50  ;;  %v6993_v44 = vld [vmem:[%s14168_s30 + $0x1a0] sm:$0xff]  ;;  %v6769_v50 = vsel %vm14303_vm5, %v14212_v3, %v6765_v46  ;;  %v10688_v35 = vmul.f32 -1.442695, %v13943_v54  ;;  %v6809_v3 = vmul.f32 %v14250_v61, %v6808_v58  ;;  %v6788_v54 = vor.u32 1.1754944e-38, %v6787_v62  ;;  %v6490_v57 = vpop.f32.mrf.mxu2  ;;  %v7018_v20 = vld [vmem:[%s14168_s30 + $0x268] sm:$0xff] }
 0x3b6   : > { %7178 = vmatpush.msra.mxu2 %v6983_v7  ;;  %7198 = vmatpush.msra.mxu3 %v6999_v8  ;;  %v6794_v7 = vmul.f32 %v14246_v53, %v6793_v13  ;;  %v6941_v8 = vld [vmem:[%s14168_s30] sm:$0xff]  ;;  %vm6786_vm9 = vcmp.eq.f32.partialorder %v6785_v0, 8.507059e+37  ;;  %11633 = vpow2.f32 %v10687_v40  ;;  %v6815_v13 = vand.u32 2147483647, %v14207_v19 }
 0x3b7   : > { %7142 = vmatpush.msra.mxu0 %v6947_v34  ;;  %7162 = vmatpush.msra.mxu1 %v6963_v38  ;;  %v6773_v34 = vor.u32 1.1754944e-38, %v6772_v36  ;;  %v6784_v38 = vsel %vm14316_vm7, %v14218_v31, %v6780_v2  ;;  %v6503_v31 = vpop.f32.mrf.mxu3  ;;  %11635 = vpow2.f32 %v10688_v35  ;;  %v6810_v6 = vadd.f32 %v14250_v61, %v6809_v3  ;;  %v6989_v46 = vld [vmem:[%s14168_s30 + $0x180] sm:$0xff]  ;;  %v7014_v3 = vld [vmem:[%s14168_s30 + $0x248] sm:$0xff] }
 0x3b8   : > { %7179 = vmatpush.msra.mxu2 %v6982_v24  ;;  %7199 = vmatpush.msra.mxu3 %v6998_v10  ;;  %v6976_v24 = vld [vmem:[%s14168_s30 + $0x118] sm:$0xff]  ;;  %v6795_v42 = vadd.f32 %v14246_v53, %v6794_v7  ;;  %v6800_v36 = vand.u32 2147483647, %v14203_v27  ;;  %v6973_v27 = vld [vmem:[%s14168_s30 + $0x100] sm:$0xff]  ;;  %vm6816_vm1 = vcmp.eq.f32.partialorder %v6815_v13, 8.507059e+37  ;;  %v6463_v40 = vadd.f32 %v14222_v43, %v14177_v37  ;;  %v7067_v7 = vld [vmem:[%s14168_s30 + $0x3f0] sm:$0xff] }
 0x3b9   : > { %7143 = vmatpush.msra.mxu0 %v6946_v5  ;;  %7163 = vmatpush.msra.mxu1 %v6962_v22  ;;  %v6992_v10 = vld [vmem:[%s14168_s30 + $0x198] sm:$0xff]  ;;  %v6774_v5 = vsel %vm6771_vm8, %v6773_v34, %v6769_v50  ;;  %v6789_v22 = vsel %vm6786_vm9, %v6788_v54, %v6784_v38  ;;  %v6814_v58 = vsel %vm14362_vm15, %v14250_v61, %v6810_v6  ;;  %v7031_v37 = vld [vmem:[%s14168_s30 + $0x2d0] sm:$0xff]  ;;  %v7066_v34 = vld [vmem:[%s14168_s30 + $0x3e8] sm:$0xff] }
 0x3ba   : > { %7180 = vmatpush.msra.mxu2 %v6981_v45  ;;  %7200 = vmatpush.msra.mxu3 %v6997_v25  ;;  %v14334_v45 = vadd.f32 1.0, %v11630_v49  ;;  %v6975_v25 = vld [vmem:[%s14168_s30 + $0x110] sm:$0xff]  ;;  %vm6801_vm0 = vcmp.eq.f32.partialorder %v6800_v36, 8.507059e+37  ;;  %v6476_v38 = vadd.f32 %v14225_v41, %v6463_v40  ;;  %v7030_v49 = vld [vmem:[%s14168_s30 + $0x2c8] sm:$0xff]  ;;  %v7065_v54 = vld [vmem:[%s14168_s30 + $0x3e0] sm:$0xff] }
 0x3bb   : > { %7144 = vmatpush.msra.mxu0 %v6945_v55  ;;  %7164 = vmatpush.msra.mxu1 %v6961_v39  ;;  %v7019_v55 = vld [vmem:[%s14168_s30 + $0x270] sm:$0xff]  ;;  %v7013_v57 = vld [vmem:[%s14168_s30 + $0x240] sm:$0xff]  ;;  %v7062_v36 = vld [vmem:[%s14168_s30 + $0x3c8] sm:$0xff] }
 0x3bc   : > { %7181 = vmatpush.msra.mxu2 %v6980_v30  ;;  %7201 = vmatpush.msra.mxu3 %v6996_v9  ;;  %v7035_v39 = vld [vmem:[%s14168_s30 + $0x2f0] sm:$0xff]  ;;  %v6817_v30 = vand.u32 2147483648, %v14207_v19  ;;  %v6974_v9 = vld [vmem:[%s14168_s30 + $0x108] sm:$0xff]  ;;  %11637 = vrcp.f32 %v14334_v45  ;;  %v6799_v19 = vsel %vm14351_vm13, %v14246_v53, %v6795_v42  ;;  %v7017_v53 = vld [vmem:[%s14168_s30 + $0x260] sm:$0xff]  ;;  %v6489_v56 = vadd.f32 %v14276_v32, %v6476_v38 }
 0x3bd   : > { %7145 = vmatpush.msra.mxu0 %v6944_v23  ;;  %7165 = vmatpush.msra.mxu1 %v6960_v63  ;;  %v6990_v23 = vld [vmem:[%s14168_s30 + $0x188] sm:$0xff]  ;;  %11639 = vrcp.f32 %v14340_v26  ;;  %v7012_v42 = vld [vmem:[%s14168_s30 + $0x238] sm:$0xff]  ;;  %v7063_v6 = vld [vmem:[%s14168_s30 + $0x3d0] sm:$0xff]  ;;  %vm6826_vm4 = vweird.f32 %v14334_v45 }
 0x3be   : > { %7182 = vmatpush.msra.mxu2 %v6979_v47  ;;  %7202 = vmatpush.msra.mxu3 %v6995_v28  ;;  %v7034_v47 = vld [vmem:[%s14168_s30 + $0x2e8] sm:$0xff]  ;;  %v6818_v2 = vor.u32 1.1754944e-38, %v6817_v30  ;;  %v7011_v30 = vld [vmem:[%s14168_s30 + $0x230] sm:$0xff]  ;;  %v10689_v28 = vmul.f32 -1.442695, %v14088_v16  ;;  %v7025_v16 = vld [vmem:[%s14168_s30 + $0x2a0] sm:$0xff] }
 0x3bf   : > { %7146 = vmatpush.msra.mxu0 %v6943_v29  ;;  %7166 = vmatpush.msra.mxu1 %v6959_v33  ;;  %v11634_v29 = vpop.eup %11633  ;;  %v6803_v33 = vor.u32 1.1754944e-38, %v6802_v59  ;;  %v6502_v59 = vadd.f32 %v14284_v52, %v6489_v56  ;;  %v7046_v63 = vld [vmem:[%s14168_s30 + $0x348] sm:$0xff]  ;;  %v7079_v56 = vld [vmem:[%s14168_s30 + $0x450] sm:$0xff] }
 0x3c0   : > { %7183 = vmatpush.msra.mxu2 %v6978_v15  ;;  %7203 = vmatpush.msra.mxu3 %v6994_v18  ;;  %v11636_v15 = vpop.eup %11635  ;;  %v7033_v18 = vld [vmem:[%s14168_s30 + $0x2e0] sm:$0xff]  ;;  %v14378_v1 = vpop.f32.mrf.mxu0  ;;  %v6819_v62 = vsel %vm6816_vm1, %v6818_v2, %v6814_v58  ;;  %v14384_v0 = vadd.f32 1.0, %v11634_v29  ;;  %v7026_v52 = vld [vmem:[%s14168_s30 + $0x2a8] sm:$0xff] }
 0x3c1   : > { %7147 = vmatpush.msra.mxu0 %v6942_v51  ;;  %7167 = vmatpush.msra.mxu1 %v6958_v4  ;;  %v6804_v61 = vsel %vm6801_vm0, %v6803_v33, %v6799_v19  ;;  %v7052_v51 = vld [vmem:[%s14168_s30 + $0x378] sm:$0xff]  ;;  %v14390_v50 = vadd.f32 1.0, %v11636_v15  ;;  %v10690_v29 = vmul.f32 -1.442695, %v6502_v59  ;;  %v7009_v33 = vld [vmem:[%s14168_s30 + $0x220] sm:$0xff]  ;;  %v7058_v38 = vld [vmem:[%s14168_s30 + $0x3a8] sm:$0xff] }
 0x3c2   : > { %7184 = vmatpush.msra.mxu2 %v6977_v11  ;;  %7204 = vmatpush.msra.mxu3 %v6993_v44  ;;  %v7068_v4 = vld [vmem:[%s14168_s30 + $0x3f8] sm:$0xff]  ;;  %v14394_v35 = vpop.eup %11637  ;;  %11641 = vrcp.f32 %v14384_v0  ;;  %vm6856_vm10 = vweird.f32 %v14384_v0 }
 0x3c3   : > { %7148 = vmatpush.msra.mxu0 %v6941_v8  ;;  %7168 = vmatpush.msra.mxu1 %v6957_v21  ;;  %v14382_v12 = vpop.f32.mrf.mxu1  ;;  %v7016_v11 = vld [vmem:[%s14168_s30 + $0x258] sm:$0xff]  ;;  %v7015_v8 = vld [vmem:[%s14168_s30 + $0x250] sm:$0xff]  ;;  %v14398_v43 = vpop.eup %11639  ;;  %v7050_v21 = vld [vmem:[%s14168_s30 + $0x368] sm:$0xff]  ;;  %11643 = vrcp.f32 %v14390_v50  ;;  %vm6827_vm2 = vweird.f32 %v14394_v35  ;;  %vm6871_vm14 = vweird.f32 %v14390_v50 }
 0x3c4   : > { %7185 = vmatpush.msra.mxu2 %v6976_v24  ;;  %7205 = vmatpush.msra.mxu3 %v6992_v10  ;;  %v7032_v44 = vld [vmem:[%s14168_s30 + $0x2d8] sm:$0xff]  ;;  %v6822_v24 = vmul.f32 %v14394_v35, %v14334_v45  ;;  %v7049_v10 = vld [vmem:[%s14168_s30 + $0x360] sm:$0xff]  ;;  %v6837_v41 = vmul.f32 %v14398_v43, %v14340_v26  ;;  %11645 = vpow2.f32 %v10689_v28  ;;  %vm6842_vm3 = vweird.f32 %v14398_v43  ;;  %vm14476_vm5 = vmor %vm6826_vm4, %vm6827_vm2 }
 0x3c5   : > { %7149 = vmatmul.f32.vlgmr.msra.gmra.mxu0 %v6774_v5  ;;  %7169 = vmatmul.f32.vlgmr.msra.gmra.mxu1 %v6789_v22  ;;  %v7029_v5 = vld [vmem:[%s14168_s30 + $0x2c0] sm:$0xff]  ;;  %v7048_v22 = vld [vmem:[%s14168_s30 + $0x358] sm:$0xff]  ;;  %11647 = vpow2.f32 %v10690_v29  ;;  %vm14490_vm7 = vmor %vm6841_vm6, %vm6842_vm3 }
 0x3c6   : > { %7213 = vmatpush.msrb.mxu0 %v7020_v60  ;;  %7233 = vmatpush.msrb.mxu1 %v7036_v17  ;;  %v7064_v60 = vld [vmem:[%s14168_s30 + $0x3d8] sm:$0xff]  ;;  %v6823_v32 = vsub.f32 1.0, %v6822_v24  ;;  %v6847_v24 = vand.u32 2147483648, %v14340_v26  ;;  %v7055_v28 = vld [vmem:[%s14168_s30 + $0x390] sm:$0xff] }
 0x3c7   : > { %7186 = vmatpush.msra.mxu2 %v6975_v25  ;;  %7206 = vmatpush.msra.mxu3 %v6991_v48  ;;  %v7028_v25 = vld [vmem:[%s14168_s30 + $0x2b8] sm:$0xff]  ;;  %v7047_v48 = vld [vmem:[%s14168_s30 + $0x350] sm:$0xff] }
 0x3c8   : > { %7214 = vmatpush.msrb.mxu0 %v7019_v55  ;;  %7234 = vmatpush.msrb.mxu1 %v7035_v39  ;;  %v6516_v31 = vpop.f32.mrf.mxu0  ;;  %v14422_v55 = vpop.eup %11641  ;;  %v6838_v39 = vsub.f32 1.0, %v6837_v41  ;;  %v6824_v19 = vmul.f32 %v14394_v35, %v6823_v32  ;;  %v7083_v29 = vld [vmem:[%s14168_s30 + $0x470] sm:$0xff] }
 0x3c9   : > { %7187 = vmatpush.msra.mxu2 %v6974_v9  ;;  %7207 = vmatpush.msra.mxu3 %v6990_v23  ;;  %v7027_v9 = vld [vmem:[%s14168_s30 + $0x2b0] sm:$0xff]  ;;  %v14427_v23 = vpop.eup %11643  ;;  %v6852_v15 = vmul.f32 %v14422_v55, %v14384_v0  ;;  %v7041_v31 = vld [vmem:[%s14168_s30 + $0x320] sm:$0xff]  ;;  %vm6857_vm11 = vweird.f32 %v14422_v55 }
 0x3ca   : > { %7215 = vmatpush.msrb.mxu0 %v7018_v20  ;;  %7235 = vmatpush.msrb.mxu1 %v7034_v47  ;;  %v7010_v20 = vld [vmem:[%s14168_s30 + $0x228] sm:$0xff]  ;;  %v14443_v58 = vmul.f32 %v14427_v23, %v14390_v50  ;;  %v6839_v2 = vmul.f32 %v14398_v43, %v6838_v39  ;;  %v6825_v40 = vadd.f32 %v14394_v35, %v6824_v19  ;;  %v7056_v39 = vld [vmem:[%s14168_s30 + $0x398] sm:$0xff]  ;;  %vm6872_vm12 = vweird.f32 %v14427_v23  ;;  %vm14528_vm13 = vmor %vm6856_vm10, %vm6857_vm11 }
 0x3cb   : > { %7188 = vmatpush.msra.mxu2 %v6973_v27  ;;  %7208 = vmatpush.msra.mxu3 %v6989_v46  ;;  %v6529_v17 = vpop.f32.mrf.mxu1  ;;  %v7045_v27 = vld [vmem:[%s14168_s30 + $0x340] sm:$0xff]  ;;  %vm14540_vm15 = vmor %vm6871_vm14, %vm6872_vm12 }
 0x3cc   : > { %7189 = vmatmul.f32.vlgmr.msra.gmra.mxu2 %v6804_v61  ;;  %7209 = vmatmul.f32.vlgmr.msra.gmra.mxu3 %v6819_v62  ;;  %v7061_v46 = vld [vmem:[%s14168_s30 + $0x3c0] sm:$0xff]  ;;  %v7008_v61 = vld [vmem:[%s14168_s30 + $0x218] sm:$0xff]  ;;  %v7094_v17 = vld [vmem:[%s14168_s30 + $0x4c8] sm:$0xff] }
 0x3cd   : > { %7216 = vmatpush.msrb.mxu0 %v7017_v53  ;;  %7236 = vmatpush.msrb.mxu1 %v7033_v18  ;;  %v14431_v13 = vpop.f32.mrf.mxu2  ;;  %v7044_v53 = vld [vmem:[%s14168_s30 + $0x338] sm:$0xff] }
 0x3ce   : > { %7253 = vmatpush.msrb.mxu2 %v7052_v51  ;;  %7273 = vmatpush.msrb.mxu3 %v7068_v4  ;;  %v14435_v47 = vpop.f32.mrf.mxu3  ;;  %v7060_v18 = vld [vmem:[%s14168_s30 + $0x3b8] sm:$0xff]  ;;  %v7043_v51 = vld [vmem:[%s14168_s30 + $0x330] sm:$0xff] }
 0x3cf   : > { %7217 = vmatpush.msrb.mxu0 %v7016_v11  ;;  %7237 = vmatpush.msrb.mxu1 %v7032_v44  ;;  %v7024_v62 = vld [vmem:[%s14168_s30 + $0x298] sm:$0xff]  ;;  %v7059_v4 = vld [vmem:[%s14168_s30 + $0x3b0] sm:$0xff]  ;;  %v6868_v11 = vsub.f32 1.0, %v14443_v58 }
 0x3d0   : > { %7254 = vmatpush.msrb.mxu2 %v7051_v14  ;;  %7274 = vmatpush.msrb.mxu3 %v7067_v7  ;;  %v7007_v44 = vld [vmem:[%s14168_s30 + $0x210] sm:$0xff]  ;;  %v6840_v7 = vadd.f32 %v14398_v43, %v6839_v2  ;;  %v6877_v2 = vand.u32 2147483648, %v14390_v50 }
 0x3d1   : > { %7218 = vmatpush.msrb.mxu0 %v7015_v8  ;;  %7238 = vmatpush.msrb.mxu1 %v7031_v37  ;;  %v7023_v14 = vld [vmem:[%s14168_s30 + $0x290] sm:$0xff]  ;;  %v6853_v8 = vsub.f32 1.0, %v6852_v15  ;;  %v14464_v37 = vld [vmem:[%s12877_s29 + $0x8] sm:$0xf]  ;;  %v6869_v32 = vmul.f32 %v14427_v23, %v6868_v11  ;;  %v7098_v11 = vld [vmem:[%s14168_s30 + $0x4e8] sm:$0xff] }
 0x3d2   : > { %7255 = vmatpush.msrb.mxu2 %v7050_v21  ;;  %7275 = vmatpush.msrb.mxu3 %v7066_v34  ;;  %v1611_v21 = vperm.slane %v14464_v37, 2  ;;  %v7042_v34 = vld [vmem:[%s14168_s30 + $0x328] sm:$0xff] }
 0x3d3   : > { %7219 = vmatpush.msrb.mxu0 %v7014_v3  ;;  %7239 = vmatpush.msrb.mxu1 %v7030_v49  ;;  %v6832_v49 = vand.u32 2147483648, %v14334_v45 }
 0x3d4   : > { %7256 = vmatpush.msrb.mxu2 %v7049_v10  ;;  %7276 = vmatpush.msrb.mxu3 %v7065_v54  ;;  %v7006_v10 = vld [vmem:[%s14168_s30 + $0x208] sm:$0xff] }
 0x3d5   : > { %7220 = vmatpush.msrb.mxu0 %v7013_v57  ;;  %7240 = vmatpush.msrb.mxu1 %v7029_v5  ;;  %v6542_v3 = vpop.f32.mrf.mxu2  ;;  %v7022_v54 = vld [vmem:[%s14168_s30 + $0x288] sm:$0xff]  ;;  %v6830_v57 = vand.u32 2147483647, %v14334_v45  ;;  %v6845_v5 = vand.u32 2147483647, %v14340_v26  ;;  %v7005_v45 = vld [vmem:[%s14168_s30 + $0x200] sm:$0xff] }
 0x3d6   : > { %7257 = vmatpush.msrb.mxu2 %v7048_v22  ;;  %7277 = vmatpush.msrb.mxu3 %v7064_v60  ;;  %v6555_v41 = vpop.f32.mrf.mxu3  ;;  %v7057_v22 = vld [vmem:[%s14168_s30 + $0x3a0] sm:$0xff]  ;;  %v6829_v60 = vsel %vm14476_vm5, %v14394_v35, %v6825_v40  ;;  %v6515_v35 = vadd.f32 %v14378_v1, %v1611_v21  ;;  %v6833_v59 = vor.u32 1.1754944e-38, %v6832_v49  ;;  %v7084_v1 = vld [vmem:[%s14168_s30 + $0x478] sm:$0xff]  ;;  %v7082_v40 = vld [vmem:[%s14168_s30 + $0x468] sm:$0xff] }
 0x3d7   : > { %7221 = vmatpush.msrb.mxu0 %v7012_v42  ;;  %7241 = vmatpush.msrb.mxu1 %v7028_v25  ;;  %v7021_v26 = vld [vmem:[%s14168_s30 + $0x280] sm:$0xff]  ;;  %v6844_v42 = vsel %vm14490_vm7, %v14398_v43, %v6840_v7  ;;  %v6854_v25 = vmul.f32 %v14422_v55, %v6853_v8  ;;  %vm6831_vm8 = vcmp.eq.f32.partialorder %v6830_v57, 8.507059e+37  ;;  %vm6846_vm9 = vcmp.eq.f32.partialorder %v6845_v5, 8.507059e+37  ;;  %v7116_v3 = vld [vmem:[%s14168_s30 + $0x578] sm:$0xff]  ;;  %v7115_v41 = vld [vmem:[%s14168_s30 + $0x570] sm:$0xff] }
 0x3d8   : > { %7258 = vmatpush.msrb.mxu2 %v7047_v48  ;;  %7278 = vmatpush.msrb.mxu3 %v7063_v6  ;;  %v11646_v48 = vpop.eup %11645  ;;  %v7040_v6 = vld [vmem:[%s14168_s30 + $0x318] sm:$0xff]  ;;  %v6834_v43 = vsel %vm6831_vm8, %v6833_v59, %v6829_v60  ;;  %v6528_v58 = vadd.f32 %v14382_v12, %v6515_v35  ;;  %v6878_v8 = vor.u32 1.1754944e-38, %v6877_v2  ;;  %v7081_v21 = vld [vmem:[%s14168_s30 + $0x460] sm:$0xff]  ;;  %v7095_v57 = vld [vmem:[%s14168_s30 + $0x4d0] sm:$0xff] }
 0x3d9   : > { %7222 = vmatpush.msrb.mxu0 %v7011_v30  ;;  %7242 = vmatpush.msrb.mxu1 %v7027_v9  ;;  %v6848_v30 = vor.u32 1.1754944e-38, %v6847_v24  ;;  %v11648_v9 = vpop.eup %11647  ;;  %v7080_v49 = vld [vmem:[%s14168_s30 + $0x458] sm:$0xff]  ;;  %v7078_v60 = vld [vmem:[%s14168_s30 + $0x448] sm:$0xff]  ;;  %v7089_v2 = vld [vmem:[%s14168_s30 + $0x4a0] sm:$0xff] }
 0x3da   : > { %7259 = vmatpush.msrb.mxu2 %v7046_v63  ;;  %7279 = vmatpush.msrb.mxu3 %v7062_v36  ;;  %v7100_v36 = vld [vmem:[%s14168_s30 + $0x4f8] sm:$0xff]  ;;  %v14515_v19 = vadd.f32 1.0, %v11648_v9 }
 0x3db   : > { %7223 = vmatpush.msrb.mxu0 %v7010_v20  ;;  %7243 = vmatpush.msrb.mxu1 %v7026_v52  ;;  %v6849_v63 = vsel %vm6846_vm9, %v6848_v30, %v6844_v42  ;;  %v14508_v20 = vadd.f32 1.0, %v11646_v48  ;;  %v7039_v52 = vld [vmem:[%s14168_s30 + $0x310] sm:$0xff]  ;;  %v7096_v24 = vld [vmem:[%s14168_s30 + $0x4d8] sm:$0xff]  ;;  %v7093_v48 = vld [vmem:[%s14168_s30 + $0x4c0] sm:$0xff] }
 0x3dc   : > { %7260 = vmatpush.msrb.mxu2 %v7045_v27  ;;  %7280 = vmatpush.msrb.mxu3 %v7061_v46  ;;  %v6855_v27 = vadd.f32 %v14422_v55, %v6854_v25  ;;  %v6870_v46 = vadd.f32 %v14427_v23, %v6869_v32  ;;  %v7077_v32 = vld [vmem:[%s14168_s30 + $0x440] sm:$0xff]  ;;  %v7112_v59 = vld [vmem:[%s14168_s30 + $0x558] sm:$0xff]  ;;  %vm6901_vm6 = vweird.f32 %v14515_v19 }
 0x3dd   : > { %7224 = vmatpush.msrb.mxu0 %v7009_v33  ;;  %7244 = vmatpush.msrb.mxu1 %v7025_v16  ;;  %v7099_v33 = vld [vmem:[%s14168_s30 + $0x4f0] sm:$0xff]  ;;  %v6862_v16 = vand.u32 2147483648, %v14384_v0  ;;  %11649 = vrcp.f32 %v14508_v20  ;;  %v7076_v30 = vld [vmem:[%s14168_s30 + $0x438] sm:$0xff]  ;;  %vm6886_vm4 = vweird.f32 %v14508_v20 }
 0x3de   : > { %7261 = vmatpush.msrb.mxu2 %v7044_v53  ;;  %7281 = vmatpush.msrb.mxu3 %v7060_v18  ;;  %v7038_v53 = vld [vmem:[%s14168_s30 + $0x308] sm:$0xff]  ;;  %11651 = vrcp.f32 %v14515_v19  ;;  %v7092_v9 = vld [vmem:[%s14168_s30 + $0x4b8] sm:$0xff] }
 0x3df   : > { %7225 = vmatpush.msrb.mxu0 %v7008_v61  ;;  %7245 = vmatpush.msrb.mxu1 %v7024_v62  ;;  %v7054_v18 = vld [vmem:[%s14168_s30 + $0x388] sm:$0xff]  ;;  %v6860_v61 = vand.u32 2147483647, %v14384_v0  ;;  %v6875_v62 = vand.u32 2147483647, %v14390_v50  ;;  %v7037_v0 = vld [vmem:[%s14168_s30 + $0x300] sm:$0xff] }
 0x3e0   : > { %7262 = vmatpush.msrb.mxu2 %v7043_v51  ;;  %7282 = vmatpush.msrb.mxu3 %v7059_v4  ;;  %v6566_v15 = vpop.f32.mrf.mxu0  ;;  %v6541_v4 = vadd.f32 %v14431_v13, %v6528_v58  ;;  %v7053_v50 = vld [vmem:[%s14168_s30 + $0x380] sm:$0xff]  ;;  %v6859_v13 = vsel %vm14528_vm13, %v14422_v55, %v6855_v27  ;;  %v6863_v7 = vor.u32 1.1754944e-38, %v6862_v16  ;;  %v7074_v58 = vld [vmem:[%s14168_s30 + $0x428] sm:$0xff] }
 0x3e1   : > { %7226 = vmatpush.msrb.mxu0 %v7007_v44  ;;  %7246 = vmatpush.msrb.mxu1 %v7023_v14  ;;  %v6874_v14 = vsel %vm14540_vm15, %v14427_v23, %v6870_v46  ;;  %vm6861_vm0 = vcmp.eq.f32.partialorder %v6860_v61, 8.507059e+37  ;;  %vm6876_vm1 = vcmp.eq.f32.partialorder %v6875_v62, 8.507059e+37  ;;  %v7097_v55 = vld [vmem:[%s14168_s30 + $0x4e0] sm:$0xff]  ;;  %v7110_v46 = vld [vmem:[%s14168_s30 + $0x548] sm:$0xff]  ;;  %v7108_v61 = vld [vmem:[%s14168_s30 + $0x538] sm:$0xff] }
 0x3e2   : > { %7263 = vmatpush.msrb.mxu2 %v7042_v34  ;;  %7283 = vmatpush.msrb.mxu3 %v7058_v38  ;;  %v6554_v34 = vadd.f32 %v14435_v47, %v6541_v4  ;;  %v6864_v23 = vsel %vm6861_vm0, %v6863_v7, %v6859_v13  ;;  %v6879_v38 = vsel %vm6876_vm1, %v6878_v8, %v6874_v14  ;;  %v7073_v16 = vld [vmem:[%s14168_s30 + $0x420] sm:$0xff]  ;;  %v7072_v62 = vld [vmem:[%s14168_s30 + $0x418] sm:$0xff]  ;;  %v7107_v4 = vld [vmem:[%s14168_s30 + $0x530] sm:$0xff]  ;;  %v6890_v13 = vand.u32 2147483647, %v14508_v20 }
 0x3e3   : > { %7227 = vmatpush.msrb.mxu0 %v7006_v10  ;;  %7247 = vmatpush.msrb.mxu1 %v7022_v54  ;;  %v6579_v51 = vpop.f32.mrf.mxu1  ;;  %v14561_v47 = vpop.eup %11649  ;;  %v6892_v14 = vand.u32 2147483648, %v14508_v20  ;;  %v6907_v7 = vand.u32 2147483648, %v14515_v19  ;;  %v7106_v8 = vld [vmem:[%s14168_s30 + $0x528] sm:$0xff] }
 0x3e4   : > { %7264 = vmatpush.msrb.mxu2 %v7041_v31  ;;  %7284 = vmatpush.msrb.mxu3 %v7057_v22  ;;  %v6567_v10 = vadd.f32 %v6566_v15, %v6554_v34  ;;  %v14565_v31 = vpop.eup %11651  ;;  %v7114_v22 = vld [vmem:[%s14168_s30 + $0x568] sm:$0xff]  ;;  %v6882_v42 = vmul.f32 %v14561_v47, %v14508_v20  ;;  %vm6887_vm2 = vweird.f32 %v14561_v47  ;;  %vm6891_vm8 = vcmp.eq.f32.partialorder %v6890_v13, 8.507059e+37  ;;  %v7120_v13 = vld [vmem:[%s14168_s30 + $0x598] sm:$0xff] }
 0x3e5   : > { %7228 = vmatpush.msrb.mxu0 %v7005_v45  ;;  %7248 = vmatpush.msrb.mxu1 %v7021_v26  ;;  %v7113_v26 = vld [vmem:[%s14168_s30 + $0x560] sm:$0xff]  ;;  %v6897_v25 = vmul.f32 %v14565_v31, %v14515_v19  ;;  %vm6902_vm3 = vweird.f32 %v14565_v31  ;;  %v7086_v34 = vld [vmem:[%s14168_s30 + $0x488] sm:$0xff]  ;;  %vm14610_vm5 = vmor %vm6886_vm4, %vm6887_vm2  ;;  %vm811_vm2 = vcmask 15360  }
 0x3e6   : > { %7265 = vmatpush.msrb.mxu2 %v7040_v6  ;;  %7285 = vmatpush.msrb.mxu3 %v7056_v39  ;;  %v6580_v45 = vadd.f32 %v6579_v51, %v6567_v10  ;;  %v7088_v51 = vld [vmem:[%s14168_s30 + $0x498] sm:$0xff]  ;;  %vm14618_vm7 = vmor %vm6901_vm6, %vm6902_vm3 }
 0x3e7   : > { %7229 = vmatmul.f32.vlgmr.msrb.gmra.mxu0 %v6834_v43  ;;  %7249 = vmatmul.f32.vlgmr.msrb.gmra.mxu1 %v6849_v63  ;;  %v7111_v63 = vld [vmem:[%s14168_s30 + $0x550] sm:$0xff] }
 0x3e8   : > { %7293 = vmatpush.msra.mxu0 %v7084_v1  ;;  %7313 = vmatpush.msra.mxu1 %v7100_v36  ;;  %v6568_v54 = vpop.f32.mrf.mxu0  ;;  %v6883_v1 = vsub.f32 1.0, %v6882_v42  ;;  %v6898_v36 = vsub.f32 1.0, %v6897_v25  ;;  %v7101_v42 = vld [vmem:[%s14168_s30 + $0x500] sm:$0xff] }
 0x3e9   : > { %7266 = vmatpush.msrb.mxu2 %v7039_v52  ;;  %7286 = vmatpush.msrb.mxu3 %v7055_v28  ;;  %v7075_v52 = vld [vmem:[%s14168_s30 + $0x430] sm:$0xff] }
 0x3ea   : > { %7294 = vmatpush.msra.mxu0 %v7083_v29  ;;  %7314 = vmatpush.msra.mxu1 %v7099_v33  ;;  %v7091_v28 = vld [vmem:[%s14168_s30 + $0x4b0] sm:$0xff]  ;;  %v7090_v29 = vld [vmem:[%s14168_s30 + $0x4a8] sm:$0xff]  ;;  %v7109_v33 = vld [vmem:[%s14168_s30 + $0x540] sm:$0xff] }
 0x3eb   : > { %7267 = vmatpush.msrb.mxu2 %v7038_v53  ;;  %7287 = vmatpush.msrb.mxu3 %v7054_v18  ;;  %v6581_v5 = vpop.f32.mrf.mxu1  ;;  %v6884_v53 = vmul.f32 %v14561_v47, %v6883_v1  ;;  %v6899_v18 = vmul.f32 %v14565_v31, %v6898_v36  ;;  %v7132_v1 = vld [vmem:[%s14168_s30 + $0x5f8] sm:$0xff] }
 0x3ec   : > { %7295 = vmatpush.msra.mxu0 %v7082_v40  ;;  %7315 = vmatpush.msra.mxu1 %v7098_v11  ;;  %v7071_v40 = vld [vmem:[%s14168_s30 + $0x410] sm:$0xff]  ;;  %v7104_v5 = vld [vmem:[%s14168_s30 + $0x518] sm:$0xff] }
 0x3ed   : > { %7268 = vmatpush.msrb.mxu2 %v7037_v0  ;;  %7288 = vmatpush.msrb.mxu3 %v7053_v50  ;;  %v6592_v35 = vpop.f32.mrf.mxu2  ;;  %v7087_v11 = vld [vmem:[%s14168_s30 + $0x490] sm:$0xff]  ;;  %v6885_v44 = vadd.f32 %v14561_v47, %v6884_v53  ;;  %v6900_v0 = vadd.f32 %v14565_v31, %v6899_v18  ;;  %v7126_v18 = vld [vmem:[%s14168_s30 + $0x5c8] sm:$0xff] }
 0x3ee   : > { %7269 = vmatmul.f32.vlgmr.msrb.gmra.mxu2 %v6864_v23  ;;  %7289 = vmatmul.f32.vlgmr.msrb.gmra.mxu3 %v6879_v38  ;;  %v6593_v6 = vadd.f32 %v6592_v35, %v6580_v45  ;;  %v6605_v39 = vpop.f32.mrf.mxu3  ;;  %v6905_v38 = vand.u32 2147483647, %v14515_v19  ;;  %v7127_v53 = vld [vmem:[%s14168_s30 + $0x5d0] sm:$0xff] }
 0x3ef   : > { %7296 = vmatpush.msra.mxu0 %v7081_v21  ;;  %7316 = vmatpush.msra.mxu1 %v7097_v55  ;;  %v7070_v55 = vld [vmem:[%s14168_s30 + $0x408] sm:$0xff]  ;;  %v6889_v10 = vsel %vm14610_vm5, %v14561_v47, %v6885_v44  ;;  %v6904_v19 = vsel %vm14618_vm7, %v14565_v31, %v6900_v0  ;;  %v7103_v31 = vld [vmem:[%s14168_s30 + $0x510] sm:$0xff]  ;;  %v7121_v0 = vld [vmem:[%s14168_s30 + $0x5a0] sm:$0xff] }
 0x3f0   : > { %7333 = vmatpush.msra.mxu2 %v7116_v3  ;;  %v6606_v43 = vadd.f32 %v6605_v39, %v6593_v6  ;;  %v7105_v3 = vld [vmem:[%s14168_s30 + $0x520] sm:$0xff]  ;;  %vm6906_vm9 = vcmp.eq.f32.partialorder %v6905_v38, 8.507059e+37  ;;  %7353 = vmatpush.msra.mxu3 %v7132_v1  ;;  %v7122_v44 = vld [vmem:[%s14168_s30 + $0x5a8] sm:$0xff] }
 0x3f1   : > { %7297 = vmatpush.msra.mxu0 %v7080_v49  ;;  %7317 = vmatpush.msra.mxu1 %v7096_v24  ;;  %v7069_v49 = vld [vmem:[%s14168_s30 + $0x400] sm:$0xff] }
 0x3f2   : > { %7334 = vmatpush.msra.mxu2 %v7115_v41  ;;  %v10691_v27 = vmul.f32 -1.442695, %v6606_v43  ;;  %v7085_v24 = vld [vmem:[%s14168_s30 + $0x480] sm:$0xff]  ;;  %v6893_v41 = vor.u32 1.1754944e-38, %v6892_v14 }
 0x3f3   : > { %7298 = vmatpush.msra.mxu0 %v7079_v56  ;;  %7318 = vmatpush.msra.mxu1 %v7095_v57  ;;  %v6908_v56 = vor.u32 1.1754944e-38, %v6907_v7  ;;  %v7117_v38 = vld [vmem:[%s14168_s30 + $0x580] sm:$0xff] }
 0x3f4   : > { %7335 = vmatpush.msra.mxu2 %v7114_v22  ;;  %11653 = vpow2.f32 %v10691_v27  ;;  %v6894_v47 = vsel %vm6891_vm8, %v6893_v41, %v6889_v10  ;;  %v7131_v27 = vld [vmem:[%s14168_s30 + $0x5f0] sm:$0xff] }
 0x3f5   : > { %7299 = vmatpush.msra.mxu0 %v7078_v60  ;;  %7319 = vmatpush.msra.mxu1 %v7094_v17  ;;  %v6594_v15 = vpop.f32.mrf.mxu2  ;;  %v6909_v22 = vsel %vm6906_vm9, %v6908_v56, %v6904_v19  ;;  %v7102_v17 = vld [vmem:[%s14168_s30 + $0x508] sm:$0xff] }
 0x3f6   : > { %7336 = vmatpush.msra.mxu2 %v7113_v26  ;;  %v6607_v12 = vpop.f32.mrf.mxu3  ;;  %7354 = vmatpush.msra.mxu3 %v7131_v27 }
 0x3f7   : > { %7300 = vmatpush.msra.mxu0 %v7077_v32  ;;  %7320 = vmatpush.msra.mxu1 %v7093_v48  ;;  %v7125_v12 = vld [vmem:[%s14168_s30 + $0x5c0] sm:$0xff] }
 0x3f8   : > { %7337 = vmatpush.msra.mxu2 %v7112_v59 }
 0x3f9   : > { %7301 = vmatpush.msra.mxu0 %v7076_v30  ;;  %7321 = vmatpush.msra.mxu1 %v7092_v9 }
 0x3fa   : > { %7338 = vmatpush.msra.mxu2 %v7111_v63  ;;  %v11654_v50 = vpop.eup %11653 }
 0x3fb   : > { %7302 = vmatpush.msra.mxu0 %v7075_v52  ;;  %7322 = vmatpush.msra.mxu1 %v7091_v28  ;;  %v6759_v21 = vadd.f32 1.0, %v11654_v50  ;;  %v1612_v52 = vperm.slane %v14464_v37, 3 }
 0x3fc   : > { %7339 = vmatpush.msra.mxu2 %v7110_v46  ;;  %v7130_v46 = vld [vmem:[%s14168_s30 + $0x5e8] sm:$0xff] }
 0x3fd   : > { %7303 = vmatpush.msra.mxu0 %v7074_v58  ;;  %7323 = vmatpush.msra.mxu1 %v7090_v29  ;;  %11655 = vrcp.f32 %v6759_v21  ;;  %v6922_v48 = vand.u32 2147483648, %v6759_v21  ;;  %v6920_v6 = vand.u32 2147483647, %v6759_v21  ;;  %vm6916_vm11 = vweird.f32 %v6759_v21  ;;  %v7129_v29 = vld [vmem:[%s14168_s30 + $0x5e0] sm:$0xff] }
 0x3fe   : > { %7340 = vmatpush.msra.mxu2 %v7109_v33  ;;  %7355 = vmatpush.msra.mxu3 %v7130_v46  ;;  %v7128_v33 = vld [vmem:[%s14168_s30 + $0x5d8] sm:$0xff] }
 0x3ff   : > { %7304 = vmatpush.msra.mxu0 %v7073_v16  ;;  %7324 = vmatpush.msra.mxu1 %v7089_v2  ;;  %v6923_v9 = vor.u32 1.1754944e-38, %v6922_v48  ;;  %vm6921_vm13 = vcmp.eq.f32.partialorder %v6920_v6, 8.507059e+37 }
 0x400   : > { %7341 = vmatpush.msra.mxu2 %v7108_v61  ;;  %v6618_v54 = vpop.f32.mrf.mxu0  ;;  %7356 = vmatpush.msra.mxu3 %v7129_v29 }
 0x401   : > { %7305 = vmatpush.msra.mxu0 %v7072_v62  ;;  %7325 = vmatpush.msra.mxu1 %v7088_v51  ;;  %v6619_v58 = vadd.f32 %v6618_v54, %v1612_v52  ;;  %v7124_v62 = vld [vmem:[%s14168_s30 + $0x5b8] sm:$0xff]  ;;  %v7123_v51 = vld [vmem:[%s14168_s30 + $0x5b0] sm:$0xff] }
 0x402   : > { %7342 = vmatpush.msra.mxu2 %v7107_v4  ;;  %7357 = vmatpush.msra.mxu3 %v7128_v33 }
 0x403   : > { %7306 = vmatpush.msra.mxu0 %v7071_v40  ;;  %7326 = vmatpush.msra.mxu1 %v7087_v11  ;;  %v6631_v57 = vpop.f32.mrf.mxu1  ;;  %v11656_v60 = vpop.eup %11655 }
 0x404   : > { %7343 = vmatpush.msra.mxu2 %v7106_v8  ;;  %v6912_v45 = vmul.f32 %v11656_v60, %v6759_v21  ;;  %vm6917_vm10 = vweird.f32 %v11656_v60  ;;  %v6632_v2 = vadd.f32 %v6631_v57, %v6619_v58  ;;  %7358 = vmatpush.msra.mxu3 %v7127_v53  ;;  %v7119_v21 = vld [vmem:[%s14168_s30 + $0x590] sm:$0xff] }
 0x405   : > { %7307 = vmatpush.msra.mxu0 %v7070_v55  ;;  %7327 = vmatpush.msra.mxu1 %v7086_v34  ;;  %vm6918_vm12 = vmor %vm6916_vm11, %vm6917_vm10  ;;  %v7118_v34 = vld [vmem:[%s14168_s30 + $0x588] sm:$0xff] }
 0x406   : > { %7344 = vmatpush.msra.mxu2 %v7105_v3  ;;  %v6913_v25 = vsub.f32 1.0, %v6912_v45  ;;  %7359 = vmatpush.msra.mxu3 %v7126_v18 }
 0x407   : > { %7308 = vmatpush.msra.mxu0 %v7069_v49  ;;  %7328 = vmatpush.msra.mxu1 %v7085_v24 }
 0x408   : > { %7309 = vmatmul.f32.vlgmr.msra.gmra.mxu0 %v6894_v47  ;;  %7329 = vmatmul.f32.vlgmr.msra.gmra.mxu1 %v6909_v22  ;;  %v6620_v26 = vpop.f32.mrf.mxu0  ;;  %v6914_v35 = vmul.f32 %v11656_v60, %v6913_v25 }
 0x409   : > { %7345 = vmatpush.msra.mxu2 %v7104_v5  ;;  %7360 = vmatpush.msra.mxu3 %v7125_v12 }
 0x40a   : > { %v6915_v59 = vadd.f32 %v11656_v60, %v6914_v35 }
 0x40b   : > { %7346 = vmatpush.msra.mxu2 %v7103_v31  ;;  %v6633_v32 = vpop.f32.mrf.mxu1  ;;  %7361 = vmatpush.msra.mxu3 %v7124_v62 }
 0x40c   : > { %v6919_v43 = vsel %vm6918_vm12, %v11656_v60, %v6915_v59  ;;  %v11884_v60 = vmov 0.0  }
 0x40d   : > { %7347 = vmatpush.msra.mxu2 %v7102_v17  ;;  %v6644_v39 = vpop.f32.mrf.mxu2  ;;  %v6924_v63 = vsel %vm6921_vm13, %v6923_v9, %v6919_v43  ;;  %7362 = vmatpush.msra.mxu3 %v7123_v51  ;;  %812 = vst.msk [vmem:[%s404_s15] sm:$0xff] %vm811_vm2, %v11884_v60 }
 0x40e   : > { %v6657_v30 = vpop.f32.mrf.mxu3  ;;  %v6645_v37 = vadd.f32 %v6644_v39, %v6632_v2 }
 0x40f   : > { %7348 = vmatpush.msra.mxu2 %v7101_v42  ;;  %7363 = vmatpush.msra.mxu3 %v7122_v44 }
 0x410   : > { %7349 = vmatmul.f32.vlgmr.msra.gmra.mxu2 %v6924_v63  ;;  %v6658_v61 = vadd.f32 %v6657_v30, %v6645_v37 }
 0x411   : > { %7364 = vmatpush.msra.mxu3 %v7121_v0 }
 0x413   : > { %7365 = vmatpush.msra.mxu3 %v7120_v13 }
 0x414   : > { %v7373_v29 = vld [vmem:[%s404_s15] sm:$0xff] }
 0x415   : > { %v6646_v36 = vpop.f32.mrf.mxu2  ;;  %7366 = vmatpush.msra.mxu3 %v7119_v21 }
 0x416   : > { %v6659_v28 = vpop.f32.mrf.mxu3 }
 0x417   : > { %7367 = vmatpush.msra.mxu3 %v7118_v34 }
 0x419   : > { %7368 = vmatpush.msra.mxu3 %v7117_v38 }
 0x420   : > { %v6670_v16 = vpop.f32.mrf.mxu0 }
 0x421   : > { %v6671_v40 = vadd.f32 %v6670_v16, %v6658_v61 }
 0x423   : > { %v6683_v15 = vpop.f32.mrf.mxu1 }
 0x424   : > { %v6684_v50 = vadd.f32 %v6683_v15, %v6671_v40 }
 0x428   : > { %v6672_v4 = vpop.f32.mrf.mxu0 }
 0x42b   : > { %v6685_v11 = vpop.f32.mrf.mxu1 }
 0x42d   : > { %v6696_v14 = vpop.f32.mrf.mxu2 }
 0x42e   : > { %v6697_v8 = vadd.f32 %v6696_v14, %v6684_v50 }
 0x430   : > { %v6709_v7 = vpop.f32.mrf.mxu3 }
 0x431   : > { %v6710_v55 = vadd.f32 %v6709_v7, %v6697_v8 }
 0x433   : > { %v10692_v23 = vmul.f32 -1.442695, %v6710_v55 }
 0x435   : > { %11657 = vpow2.f32 %v10692_v23  ;;  %v6698_v20 = vpop.f32.mrf.mxu2 }
 0x438   : > { %v6711_v3 = vpop.f32.mrf.mxu3 }
 0x43b   : > { %v11658_v49 = vpop.eup %11657 }
 0x43c   : > { %v6760_v24 = vadd.f32 1.0, %v11658_v49 }
 0x43e   : > { %11659 = vrcp.f32 %v6760_v24  ;;  %v6937_v41 = vand.u32 2147483648, %v6760_v24  ;;  %v6935_v57 = vand.u32 2147483647, %v6760_v24  ;;  %vm6931_vm15 = vweird.f32 %v6760_v24 }
 0x440   : > { %v6938_v47 = vor.u32 1.1754944e-38, %v6937_v41  ;;  %vm6936_vm1 = vcmp.eq.f32.partialorder %v6935_v57, 8.507059e+37 }
 0x442   : > { %v7150_v17 = vpop.f32.mrf.mxu0  ;;  %v7170_v45 = vpop.f32.mrf.mxu1 }
 0x443   : > { %v7171_v42 = vadd.f32 %v7170_v45, %v7150_v17 }
 0x444   : > { %v11660_v10 = vpop.eup %11659 }
 0x445   : > { %v6927_v19 = vmul.f32 %v11660_v10, %v6760_v24  ;;  %vm6932_vm14 = vweird.f32 %v11660_v10 }
 0x446   : > { %vm6933_vm0 = vmor %vm6931_vm15, %vm6932_vm14 }
 0x447   : > { %v6928_v54 = vsub.f32 1.0, %v6927_v19 }
 0x449   : > { %v6929_v56 = vmul.f32 %v11660_v10, %v6928_v54 }
 0x44b   : > { %v6930_v5 = vadd.f32 %v11660_v10, %v6929_v56 }
 0x44d   : > { %v6934_v22 = vsel %vm6933_vm0, %v11660_v10, %v6930_v5 }
 0x44e   : > { %v6939_v31 = vsel %vm6936_vm1, %v6938_v47, %v6934_v22 }
 0x44f   : > { %7369 = vmatmul.f32.vlgmr.msra.gmra.mxu3 %v6939_v31  ;;  %v7190_v26 = vpop.f32.mrf.mxu2  ;;  %v7210_v32 = vpop.f32.mrf.mxu3 }
 0x450   : > { %v7191_v25 = vadd.f32 %v7190_v26, %v7171_v42 }
 0x452   : > { %v7211_v35 = vadd.f32 %v7210_v32, %v7191_v25 }
 0x464   : > { %v7230_v48 = vpop.f32.mrf.mxu0  ;;  %v7250_v39 = vpop.f32.mrf.mxu1 }
 0x465   : > { %v7231_v6 = vadd.f32 %v7230_v48, %v7211_v35 }
 0x467   : > { %v7251_v30 = vadd.f32 %v7250_v39, %v7231_v6 }
 0x471   : > { %v7270_v59 = vpop.f32.mrf.mxu2  ;;  %v7290_v43 = vpop.f32.mrf.mxu3 }
 0x472   : > { %v7271_v9 = vadd.f32 %v7270_v59, %v7251_v30 }
 0x474   : > { %v7291_v1 = vadd.f32 %v7290_v43, %v7271_v9 }
 0x485   : > { %v7310_v63 = vpop.f32.mrf.mxu0  ;;  %v7330_v52 = vpop.f32.mrf.mxu1 }
 0x486   : > { %v7311_v36 = vadd.f32 %v7310_v63, %v7291_v1 }
 0x488   : > { %v7331_v27 = vadd.f32 %v7330_v52, %v7311_v36 }
 0x493   : > { %v7350_v28 = vpop.f32.mrf.mxu2 }
 0x494   : > { %v7351_v46 = vadd.f32 %v7350_v28, %v7331_v27 }
 0x4d2   : > { %v7370_v58 = vpop.f32.mrf.mxu3 }
 0x4d3   : > { %v7371_v33 = vadd.f32 %v7370_v58, %v7351_v46 }
 0x4d5   : > { %v7374_v16 = vadd.f32 %v7373_v29, %v7371_v33 }
 0x4d7   : > { %7376 = vst.msk [vmem:[%s404_s15] sm:$0xff] %vm811_vm2, %v7374_v16 }
 0x4d8 PF: > { %s21_s26 = sadd.s32 1, %s11874_s26   ;;  %s14745_s24 = sld [smem:[#allocation14_spill]] }
 0x4d9   : > { %p18_p3 = scmp.ge.s32.totalorder %s21_s26, 4   ;;  %s14746_s23 = sld [smem:[#allocation16_spill]] }
 0x4da   : > { %s14747_s11 = sld [smem:[#allocation15_spill]]  ;;  %s14748_s21 = smov %s11858_s22 }
 0x4dc   :  { %20 = sbr.rel (!%p18_p3) target bundleno = 10 (0xa), region = 115 }
 0x4de   : > { %s14749_s22 = smov %s14745_s24  ;;  %s14750_s24 = smov %s11870_s25 }
 0x4e0   : > { %s14751_s25 = smov %s14747_s11 }
 0x4e1   :  { %7396 = vsyncpa [#allocation4], 1 }
 0x4e2   :  { %7398 = vsyncpa [#allocation4 + $0x1], 1 }
 0x4e3   :  { %7399 = vsyncpa [#allocation6], 1 }
 0x4e4   :  { %7400 = vsyncpa [#allocation9], 1 }
 0x4e5   :  { %7402 = vsyncpa [#allocation9 + $0x1], 1 }

</bundles_post_ra>
